<compile_context>
chip_gen: v6e
topology: v6e:2x2x1
jax: 0.10.0
libtpu: 0.0.40
codegen_flags: <defaults>
</compile_context>

<pallas_src>
import functools
import math

import jax
import jax.numpy as jnp
from jax import lax
from jax.experimental import pallas as pl
from jax.experimental.pallas import tpu as pltpu

# ---------------------------------------------------------------------------
# Model hyper-parameters
# ---------------------------------------------------------------------------
BATCH = 2
IN_CH = 3
# Smallest input whose final feature map is 32 x 2 x 3 = 192, as required by Linear(192,128)
IMG_H = 96
IMG_W = 112
NF = 8
KSIZE = 5
LEAKY_SLOPE = 0.01          # nn.LeakyReLU default (act_kwargs={})
BN_EPS = 1e-5
D_FLAT = 192
HIDDEN = 128
NUM_OUT = 4
OUT_PAD = 8                 # sublane-padded head output rows
CIN0_PAD = 8                # conv1 input channels zero-padded 3 -> 8

# (cin_raw, cout, padding, maxpool_after)
CONV_CFGS = [
    (IN_CH,  NF,     2, False),
    (NF,     2 * NF, 1, False),
    (2 * NF, 2 * NF, 1, True),
    (2 * NF, 2 * NF, 1, True),
    (2 * NF, 4 * NF, 1, True),
    (4 * NF, 4 * NF, 1, True),
    (4 * NF, 4 * NF, 1, False),
]


def _layer_dims():
    """Static per-layer geometry (conv-output dims, next-layer halo, kernel Cin)."""
    dims = []
    h, w = IMG_H, IMG_W
    for li, (cin, cout, pad, pool) in enumerate(CONV_CFGS):
        oh = h + 2 * pad - (KSIZE - 1)
        ow = w + 2 * pad - (KSIZE - 1)
        cin_k = CIN0_PAD if li == 0 else cin
        pad_next = 0 if li == len(CONV_CFGS) - 1 else CONV_CFGS[li + 1][2]
        dims.append(dict(cin=cin_k, cout=cout, pad=pad, pool=pool,
                         hin=h, win=w, oh=oh, ow=ow, pad_next=pad_next))
        h, w = (oh // 2, ow // 2) if pool else (oh, ow)
    return dims


LAYERS = _layer_dims()
IN_ROWS = (LAYERS[0]["hin"] + 2 * LAYERS[0]["pad"]) * CIN0_PAD   # 800
IN_COLS = LAYERS[0]["win"] + 2 * LAYERS[0]["pad"]                # 116


def _dst_shape(l):
    """VMEM scratch shape holding layer l's (post-act, post-pool) output, pre-padded
    with the NEXT layer's halo, in [(h,c), w] layout."""
    if l == len(LAYERS) - 1:
        L = LAYERS[l]
        return (L["oh"] * L["cout"], L["ow"])                    # (64, 3) head input
    N = LAYERS[l + 1]
    return ((N["hin"] + 2 * N["pad"]) * N["cin"], N["win"] + 2 * N["pad"])


# ---------------------------------------------------------------------------
# In-kernel building blocks
# ---------------------------------------------------------------------------
def _conv_row(src_ref, w_ref, sb_ref, oh, *, cin, cout, ow):
    """One conv output row: 5 dots of [Cout, 5*Cin] x [5*Cin, OW] (+ folded BN + LeakyReLU).
    src_ref: [(Hin+2p)*Cin, Win+2p];  w_ref: [5(kw), Cout, 5*Cin];  sb_ref: [2, Cout, 1]."""
    r0 = pl.multiple_of(oh * cin, 8)
    band = src_ref[pl.ds(r0, KSIZE * cin), :]                    # [5*Cin, Wp]
    acc = jnp.zeros((cout, ow), jnp.float32)
    for kw in range(KSIZE):
        acc = acc + jnp.dot(w_ref[kw], band[:, kw:kw + ow],
                            preferred_element_type=jnp.float32)
    y = acc * sb_ref[0] + sb_ref[1]                              # eval-mode BatchNorm (folded)
    return jnp.where(y > 0.0, y, LEAKY_SLOPE * y)                # LeakyReLU(0.01)


def _conv_layer(src_ref, dst_ref, w_ref, sb_ref, sel_ref, L):
    """Full conv stage (optionally with fused 2x2 maxpool); rows iterated via fori_loop."""
    cin, cout, ow, oh, pn = L["cin"], L["cout"], L["ow"], L["oh"], L["pad_next"]
    row = functools.partial(_conv_row, src_ref, w_ref, sb_ref,
                            cin=cin, cout=cout, ow=ow)
    if L["pool"]:
        owh = ow // 2

        def body(p, carry):
            rm = jnp.maximum(row(2 * p), row(2 * p + 1))         # row-pair max
            pooled = jnp.maximum(                                # even/odd column select
                jnp.dot(rm, sel_ref[0], preferred_element_type=jnp.float32),
                jnp.dot(rm, sel_ref[1], preferred_element_type=jnp.float32))
            d0 = pl.multiple_of((p + pn) * cout, 8)
            dst_ref[pl.ds(d0, cout), pl.ds(pn, owh)] = pooled
            return carry

        lax.fori_loop(0, oh // 2, body, 0)
    else:
        def body(i, carry):
            d0 = pl.multiple_of((i + pn) * cout, 8)
            dst_ref[pl.ds(d0, cout), pl.ds(pn, ow)] = row(i)
            return carry

        lax.fori_loop(0, oh, body, 0)


def _fused_kernel(x_ref,
                  w1, w2, w3, w4, w5, w6, w7,
                  s1, s2, s3, s4, s5, s6, s7,
                  p3, p4, p5, p6,
                  hw1, hb1, hw2, hb2,
                  o_ref,
                  b2, b3, b4, b5, b6, b7, b8):
    # Zero the pre-padded activation buffers once per image (halo columns/rows must be 0).
    for buf in (b2, b3, b4, b5, b6, b7, b8):
        buf[...] = jnp.zeros_like(buf)

    srcs = (x_ref, b2, b3, b4, b5, b6, b7)
    dsts = (b2, b3, b4, b5, b6, b7, b8)
    ws = (w1, w2, w3, w4, w5, w6, w7)
    sbs = (s1, s2, s3, s4, s5, s6, s7)
    sels = (None, None, p3, p4, p5, p6, None)
    for l, L in enumerate(LAYERS):
        _conv_layer(srcs[l], dsts[l], ws[l], sbs[l], sels[l], L)

    # Head: Linear(192,128) -> Dropout(identity, eval) -> LeakyReLU -> Linear(128,4).
    # The NCHW flatten permutation is baked into hw1, so we just contract column-wise.
    h = hb1[...]                                                 # [128, 1]
    for wcol in range(LAYERS[-1]["ow"]):                         # 3 lane columns
        h = h + jnp.dot(hw1[wcol], b8[:, wcol:wcol + 1],
                        preferred_element_type=jnp.float32)
    h = jnp.where(h > 0.0, h, LEAKY_SLOPE * h)
    o_ref[...] = jnp.dot(hw2[...], h, preferred_element_type=jnp.float32) + hb2[...]


# ---------------------------------------------------------------------------
# pallas_call wrapper
# ---------------------------------------------------------------------------
def _fused_call(x_img, packed):
    bsz = x_img.shape[0]
    inputs = [x_img, *packed["conv_w"], *packed["conv_sb"], *packed["sel"],
              packed["hw1"], packed["hb1"], packed["hw2"], packed["hb2"]]

    def const_spec(a):
        n = a.ndim
        return pl.BlockSpec(a.shape, lambda b: (0,) * n)         # VMEM-resident constant

    in_specs = [pl.BlockSpec((None, IN_ROWS, IN_COLS), lambda b: (b, 0, 0))]
    in_specs += [const_spec(a) for a in inputs[1:]]

    scratch = [pltpu.VMEM(_dst_shape(l), jnp.float32) for l in range(len(LAYERS))]

    flops = 0
    for L in LAYERS:
        flops += 2 * L["oh"] * L["ow"] * L["cout"] * L["cin"] * KSIZE * KSIZE
    flops += 2 * (D_FLAT * HIDDEN + HIDDEN * NUM_OUT)
    flops *= bsz
    bytes_accessed = 4 * (x_img.size + sum(int(a.size) for a in inputs[1:])
                          + bsz * OUT_PAD)

    return pl.pallas_call(
        _fused_kernel,
        out_shape=jax.ShapeDtypeStruct((bsz, OUT_PAD, 1), jnp.float32),
        grid=(bsz,),
        in_specs=in_specs,
        out_specs=pl.BlockSpec((None, OUT_PAD, 1), lambda b: (b, 0, 0)),
        scratch_shapes=scratch,
        compiler_params=pltpu.CompilerParams(
            dimension_semantics=("parallel",)),
        cost_estimate=pl.CostEstimate(flops=flops, transcendentals=0,
                                      bytes_accessed=bytes_accessed),
    )(*inputs)


@jax.jit
def img_net_forward(x_nchw, packed):
    b = x_nchw.shape[0]
    p0 = LAYERS[0]["pad"]
    # Single one-time input prep (channel 3->8 zero-pad + conv1 halo + [(h,c), w] layout).
    xp = jnp.pad(x_nchw, ((0, 0), (0, CIN0_PAD - IN_CH), (p0, p0), (p0, p0)))
    xp = jnp.transpose(xp, (0, 2, 1, 3)).reshape(b, IN_ROWS, IN_COLS)
    out = _fused_call(xp, packed)                                # [B, 8, 1]
    return out[:, :NUM_OUT, 0]


# ---------------------------------------------------------------------------
# Parameters
# ---------------------------------------------------------------------------
def init_params(key):
    raw = {"convs": []}
    for (cin, cout, _pad, _pool) in CONV_CFGS:
        key, kw_, kg, kb, km, kv = jax.random.split(key, 6)
        bound = 1.0 / math.sqrt(cin * KSIZE * KSIZE)
        raw["convs"].append(dict(
            w=jax.random.uniform(kw_, (cout, cin, KSIZE, KSIZE), jnp.float32,
                                 -bound, bound),
            gamma=jax.random.uniform(kg, (cout,), jnp.float32, 1.5, 2.5),
            beta=jax.random.uniform(kb, (cout,), jnp.float32, -0.2, 0.2),
            mean=jax.random.uniform(km, (cout,), jnp.float32, -0.2, 0.2),
            var=jax.random.uniform(kv, (cout,), jnp.float32, 0.5, 1.5),
        ))
    key, k1, k2, k3, k4 = jax.random.split(key, 5)
    b1 = 1.0 / math.sqrt(D_FLAT)
    b2 = 1.0 / math.sqrt(HIDDEN)
    raw["fc1_w"] = jax.random.uniform(k1, (HIDDEN, D_FLAT), jnp.float32, -b1, b1)
    raw["fc1_b"] = jax.random.uniform(k2, (HIDDEN,), jnp.float32, -b1, b1)
    raw["fc2_w"] = jax.random.uniform(k3, (NUM_OUT, HIDDEN), jnp.float32, -b2, b2)
    raw["fc2_b"] = jax.random.uniform(k4, (NUM_OUT,), jnp.float32, -b2, b2)
    return raw


def _pool_select(ow):
    """0/1 selection matrices for even/odd column picking (built once, passed as input)."""
    owh = ow // 2
    col = jnp.arange(ow)[:, None]
    j = jnp.arange(owh)[None, :]
    s_even = (col == 2 * j).astype(jnp.float32)
    s_odd = (col == 2 * j + 1).astype(jnp.float32)
    return jnp.stack([s_even, s_odd])                            # [2, OW, OW//2]


def pack_params(raw):
    conv_w, conv_sb, sels = [], [], []
    for li, ((cin_raw, cout, _pad, pool), p) in enumerate(zip(CONV_CFGS, raw["convs"])):
        w = p["w"]                                               # [Cout, Cin, 5, 5] (OIHW)
        if li == 0:
            w = jnp.pad(w, ((0, 0), (0, CIN0_PAD - cin_raw), (0, 0), (0, 0)))
        cin = w.shape[1]
        # -> [kw, Cout, (kh, Cin)] so each kw tap is one [Cout, 5*Cin] MXU dot.
        wk = jnp.transpose(w, (3, 0, 2, 1)).reshape(KSIZE, cout, KSIZE * cin)
        scale = p["gamma"] / jnp.sqrt(p["var"] + BN_EPS)
        shift = p["beta"] - p["mean"] * scale
        conv_w.append(wk)
        conv_sb.append(jnp.stack([scale, shift])[:, :, None])    # [2, Cout, 1]
        if pool:
            sels.append(_pool_select(LAYERS[li]["ow"]))
    # fc1 permuted so the NCHW flatten happens via the weight, not the activation:
    # hw1[w, j, h*32 + c] = fc1_w[j, c*6 + h*3 + w]
    L7 = LAYERS[-1]
    hw1 = raw["fc1_w"].reshape(HIDDEN, L7["cout"], L7["oh"], L7["ow"])
    hw1 = jnp.transpose(hw1, (3, 0, 2, 1)).reshape(L7["ow"], HIDDEN,
                                                   L7["oh"] * L7["cout"])
    hb1 = raw["fc1_b"][:, None]                                  # [128, 1]
    hw2 = jnp.zeros((OUT_PAD, HIDDEN), jnp.float32).at[:NUM_OUT].set(raw["fc2_w"])
    hb2 = jnp.zeros((OUT_PAD, 1), jnp.float32).at[:NUM_OUT, 0].set(raw["fc2_b"])
    return dict(conv_w=conv_w, conv_sb=conv_sb, sel=sels,
                hw1=hw1, hb1=hb1, hw2=hw2, hb2=hb2)


# ---------------------------------------------------------------------------
# Pure-JAX reference (independent ops) for correctness check
# ---------------------------------------------------------------------------
def reference_forward(x, raw):
    h = x
    for (cin, cout, pad, pool), p in zip(CONV_CFGS, raw["convs"]):
        h = jax.lax.conv_general_dilated(
            h, p["w"], window_strides=(1, 1), padding=[(pad, pad), (pad, pad)],
            dimension_numbers=("NCHW", "OIHW", "NCHW"),
            precision=jax.lax.Precision.HIGHEST)
        scale = p["gamma"] / jnp.sqrt(p["var"] + BN_EPS)
        shift = p["beta"] - p["mean"] * scale
        h = h * scale[None, :, None, None] + shift[None, :, None, None]
        h = jnp.where(h > 0.0, h, LEAKY_SLOPE * h)
        if pool:
            h = jax.lax.reduce_window(h, -jnp.inf, jax.lax.max,
                                      (1, 1, 2, 2), (1, 1, 2, 2), "VALID")
    h = h.reshape(h.shape[0], -1)
    h = jnp.dot(h, raw["fc1_w"].T, precision=jax.lax.Precision.HIGHEST) + raw["fc1_b"]
    h = jnp.where(h > 0.0, h, LEAKY_SLOPE * h)
    h = jnp.dot(h, raw["fc2_w"].T, precision=jax.lax.Precision.HIGHEST) + raw["fc2_b"]
    return h


if __name__ == "__main__":
    key = jax.random.PRNGKey(0)
    key, kx = jax.random.split(key)
    x = jax.random.normal(kx, (BATCH, IN_CH, IMG_H, IMG_W), dtype=jnp.float32)

    raw = init_params(key)
    packed = pack_params(raw)

    y = img_net_forward(x, packed)
    y = jax.block_until_ready(y)

    y_ref = reference_forward(x, raw)
    y_ref = jax.block_until_ready(y_ref)

    assert y.shape == (BATCH, NUM_OUT)
    assert jnp.allclose(y, y_ref, atol=2e-2, rtol=2e-2), (
        "mismatch vs reference, max abs diff = "
        f"{float(jnp.max(jnp.abs(y - y_ref)))}")

    print("KERNEL_OK")
</pallas_src>

<mosaic_0001>
module attributes {stable_mosaic.version = 11 : i64} {
  func.func @_fused_kernel(%arg0: i32, %arg1: memref<1x800x116xf32, #tpu.memory_space<vmem>>, %arg2: memref<5x8x40xf32, #tpu.memory_space<vmem>>, %arg3: memref<5x16x40xf32, #tpu.memory_space<vmem>>, %arg4: memref<5x16x80xf32, #tpu.memory_space<vmem>>, %arg5: memref<5x16x80xf32, #tpu.memory_space<vmem>>, %arg6: memref<5x32x80xf32, #tpu.memory_space<vmem>>, %arg7: memref<5x32x160xf32, #tpu.memory_space<vmem>>, %arg8: memref<5x32x160xf32, #tpu.memory_space<vmem>>, %arg9: memref<2x8x1xf32, #tpu.memory_space<vmem>>, %arg10: memref<2x16x1xf32, #tpu.memory_space<vmem>>, %arg11: memref<2x16x1xf32, #tpu.memory_space<vmem>>, %arg12: memref<2x16x1xf32, #tpu.memory_space<vmem>>, %arg13: memref<2x32x1xf32, #tpu.memory_space<vmem>>, %arg14: memref<2x32x1xf32, #tpu.memory_space<vmem>>, %arg15: memref<2x32x1xf32, #tpu.memory_space<vmem>>, %arg16: memref<2x108x54xf32, #tpu.memory_space<vmem>>, %arg17: memref<2x52x26xf32, #tpu.memory_space<vmem>>, %arg18: memref<2x24x12xf32, #tpu.memory_space<vmem>>, %arg19: memref<2x10x5xf32, #tpu.memory_space<vmem>>, %arg20: memref<3x128x64xf32, #tpu.memory_space<vmem>>, %arg21: memref<128x1xf32, #tpu.memory_space<vmem>>, %arg22: memref<8x128xf32, #tpu.memory_space<vmem>>, %arg23: memref<8x1xf32, #tpu.memory_space<vmem>>, %arg24: memref<1x8x1xf32, #tpu.memory_space<vmem>>, %arg25: memref<784x114xf32, #tpu.memory_space<vmem>>, %arg26: memref<1536x112xf32, #tpu.memory_space<vmem>>, %arg27: memref<768x56xf32, #tpu.memory_space<vmem>>, %arg28: memref<384x28xf32, #tpu.memory_space<vmem>>, %arg29: memref<384x14xf32, #tpu.memory_space<vmem>>, %arg30: memref<192x7xf32, #tpu.memory_space<vmem>>, %arg31: memref<64x3xf32, #tpu.memory_space<vmem>>) attributes {dimension_semantics = [#tpu.dimension_semantics<parallel>], iteration_bounds = array<i64: 2>, scalar_prefetch = 0 : i64, scratch_operands = 7 : i64, tpu.core_type = #tpu.core_type<tc>, window_params = [{transform_indices = @transform_0, window_bounds = array<i64: 1, 800, 116>}, {pipeline_mode = #tpu.pipeline_mode<synchronous>, transform_indices = @transform_1, window_bounds = array<i64: 5, 8, 40>}, {pipeline_mode = #tpu.pipeline_mode<synchronous>, transform_indices = @transform_2, window_bounds = array<i64: 5, 16, 40>}, {pipeline_mode = #tpu.pipeline_mode<synchronous>, transform_indices = @transform_3, window_bounds = array<i64: 5, 16, 80>}, {pipeline_mode = #tpu.pipeline_mode<synchronous>, transform_indices = @transform_4, window_bounds = array<i64: 5, 16, 80>}, {pipeline_mode = #tpu.pipeline_mode<synchronous>, transform_indices = @transform_5, window_bounds = array<i64: 5, 32, 80>}, {pipeline_mode = #tpu.pipeline_mode<synchronous>, transform_indices = @transform_6, window_bounds = array<i64: 5, 32, 160>}, {pipeline_mode = #tpu.pipeline_mode<synchronous>, transform_indices = @transform_7, window_bounds = array<i64: 5, 32, 160>}, {pipeline_mode = #tpu.pipeline_mode<synchronous>, transform_indices = @transform_8, window_bounds = array<i64: 2, 8, 1>}, {pipeline_mode = #tpu.pipeline_mode<synchronous>, transform_indices = @transform_9, window_bounds = array<i64: 2, 16, 1>}, {pipeline_mode = #tpu.pipeline_mode<synchronous>, transform_indices = @transform_10, window_bounds = array<i64: 2, 16, 1>}, {pipeline_mode = #tpu.pipeline_mode<synchronous>, transform_indices = @transform_11, window_bounds = array<i64: 2, 16, 1>}, {pipeline_mode = #tpu.pipeline_mode<synchronous>, transform_indices = @transform_12, window_bounds = array<i64: 2, 32, 1>}, {pipeline_mode = #tpu.pipeline_mode<synchronous>, transform_indices = @transform_13, window_bounds = array<i64: 2, 32, 1>}, {pipeline_mode = #tpu.pipeline_mode<synchronous>, transform_indices = @transform_14, window_bounds = array<i64: 2, 32, 1>}, {pipeline_mode = #tpu.pipeline_mode<synchronous>, transform_indices = @transform_15, window_bounds = array<i64: 2, 108, 54>}, {pipeline_mode = #tpu.pipeline_mode<synchronous>, transform_indices = @transform_16, window_bounds = array<i64: 2, 52, 26>}, {pipeline_mode = #tpu.pipeline_mode<synchronous>, transform_indices = @transform_17, window_bounds = array<i64: 2, 24, 12>}, {pipeline_mode = #tpu.pipeline_mode<synchronous>, transform_indices = @transform_18, window_bounds = array<i64: 2, 10, 5>}, {pipeline_mode = #tpu.pipeline_mode<synchronous>, transform_indices = @transform_19, window_bounds = array<i64: 3, 128, 64>}, {pipeline_mode = #tpu.pipeline_mode<synchronous>, transform_indices = @transform_20, window_bounds = array<i64: 128, 1>}, {pipeline_mode = #tpu.pipeline_mode<synchronous>, transform_indices = @transform_21, window_bounds = array<i64: 8, 128>}, {pipeline_mode = #tpu.pipeline_mode<synchronous>, transform_indices = @transform_22, window_bounds = array<i64: 8, 1>}, {transform_indices = @transform_23, window_bounds = array<i64: 1, 8, 1>}]} {
    %cst = arith.constant 0.000000e+00 : f32
    %0 = vector.broadcast %cst : f32 to vector<784x114xf32>
    %c0 = arith.constant 0 : index
    %c0_0 = arith.constant 0 : index
    %1 = vector.load %arg25[%c0, %c0_0] : memref<784x114xf32, #tpu.memory_space<vmem>>, vector<784x114xf32>
    tpu.vector_store %arg25[%c0, %c0_0], %0 {strides = array<i32>} : memref<784x114xf32, #tpu.memory_space<vmem>>, vector<784x114xf32>,
    %cst_1 = arith.constant 0.000000e+00 : f32
    %2 = vector.broadcast %cst_1 : f32 to vector<1536x112xf32>
    %c0_2 = arith.constant 0 : index
    %c0_3 = arith.constant 0 : index
    %3 = vector.load %arg26[%c0_2, %c0_3] : memref<1536x112xf32, #tpu.memory_space<vmem>>, vector<1536x112xf32>
    tpu.vector_store %arg26[%c0_2, %c0_3], %2 {strides = array<i32>} : memref<1536x112xf32, #tpu.memory_space<vmem>>, vector<1536x112xf32>,
    %cst_4 = arith.constant 0.000000e+00 : f32
    %4 = vector.broadcast %cst_4 : f32 to vector<768x56xf32>
    %c0_5 = arith.constant 0 : index
    %c0_6 = arith.constant 0 : index
    %5 = vector.load %arg27[%c0_5, %c0_6] : memref<768x56xf32, #tpu.memory_space<vmem>>, vector<768x56xf32>
    tpu.vector_store %arg27[%c0_5, %c0_6], %4 {strides = array<i32>} : memref<768x56xf32, #tpu.memory_space<vmem>>, vector<768x56xf32>,
    %cst_7 = arith.constant 0.000000e+00 : f32
    %6 = vector.broadcast %cst_7 : f32 to vector<384x28xf32>
    %c0_8 = arith.constant 0 : index
    %c0_9 = arith.constant 0 : index
    %7 = vector.load %arg28[%c0_8, %c0_9] : memref<384x28xf32, #tpu.memory_space<vmem>>, vector<384x28xf32>
    tpu.vector_store %arg28[%c0_8, %c0_9], %6 {strides = array<i32>} : memref<384x28xf32, #tpu.memory_space<vmem>>, vector<384x28xf32>,
    %cst_10 = arith.constant 0.000000e+00 : f32
    %8 = vector.broadcast %cst_10 : f32 to vector<384x14xf32>
    %c0_11 = arith.constant 0 : index
    %c0_12 = arith.constant 0 : index
    %9 = vector.load %arg29[%c0_11, %c0_12] : memref<384x14xf32, #tpu.memory_space<vmem>>, vector<384x14xf32>
    tpu.vector_store %arg29[%c0_11, %c0_12], %8 {strides = array<i32>} : memref<384x14xf32, #tpu.memory_space<vmem>>, vector<384x14xf32>,
    %cst_13 = arith.constant 0.000000e+00 : f32
    %10 = vector.broadcast %cst_13 : f32 to vector<192x7xf32>
    %c0_14 = arith.constant 0 : index
    %c0_15 = arith.constant 0 : index
    %11 = vector.load %arg30[%c0_14, %c0_15] : memref<192x7xf32, #tpu.memory_space<vmem>>, vector<192x7xf32>
    tpu.vector_store %arg30[%c0_14, %c0_15], %10 {strides = array<i32>} : memref<192x7xf32, #tpu.memory_space<vmem>>, vector<192x7xf32>,
    %cst_16 = arith.constant 0.000000e+00 : f32
    %12 = vector.broadcast %cst_16 : f32 to vector<64x3xf32>
    %c0_17 = arith.constant 0 : index
    %c0_18 = arith.constant 0 : index
    %13 = vector.load %arg31[%c0_17, %c0_18] : memref<64x3xf32, #tpu.memory_space<vmem>>, vector<64x3xf32>
    tpu.vector_store %arg31[%c0_17, %c0_18], %12 {strides = array<i32>} : memref<64x3xf32, #tpu.memory_space<vmem>>, vector<64x3xf32>,
    %c0_i32 = arith.constant 0 : i32
    %c96_i32 = arith.constant 96 : i32
    %14 = arith.addi %c0_i32, %c96_i32 : i32
    %c1_i32 = arith.constant 1 : i32
    scf.for %arg32 = %c0_i32 to %14 step %c1_i32  : i32 {
      %c1_i32_66 = arith.constant 1 : i32
      %49 = arith.addi %arg32, %c1_i32_66 : i32
      %c8_i32 = arith.constant 8 : i32
      %50 = arith.muli %49, %c8_i32 : i32
      %51 = tpu.assume_multiple %50, 8 : i32
      %c8_i32_67 = arith.constant 8 : i32
      %52 = arith.muli %arg32, %c8_i32_67 : i32
      %53 = tpu.assume_multiple %52, 8 : i32
      %c0_68 = arith.constant 0 : index
      %54 = arith.index_cast %53 : i32 to index
      %c0_69 = arith.constant 0 : index
      %55 = vector.load %arg1[%c0_68, %54, %c0_69] : memref<1x800x116xf32, #tpu.memory_space<vmem>>, vector<1x40x116xf32>
      %56 = vector.shape_cast %55 : vector<1x40x116xf32> to vector<40x116xf32>
      %cst_70 = arith.constant 0.000000e+00 : f32
      %57 = vector.broadcast %cst_70 : f32 to vector<8x112xf32>
      %c0_71 = arith.constant 0 : index
      %c0_72 = arith.constant 0 : index
      %c0_73 = arith.constant 0 : index
      %58 = vector.load %arg2[%c0_71, %c0_72, %c0_73] : memref<5x8x40xf32, #tpu.memory_space<vmem>>, vector<1x8x40xf32>
      %59 = vector.shape_cast %58 : vector<1x8x40xf32> to vector<8x40xf32>
      %60 = vector.extract_strided_slice %56 {offsets = [0, 0], sizes = [40, 112], strides = [1, 1]} : vector<40x116xf32> to vector<40x112xf32>
      %cst_74 = arith.constant dense<0.000000e+00> : vector<8x112xf32>
      %61 = tpu.matmul %59, %60, %cst_74 {dimension_numbers = #tpu.dot_dimension_numbers<[1], [0], [0], [1], [0, 0, 1, 1], [], []>} : vector<8x40xf32>, vector<40x112xf32>, vector<8x112xf32> -> vector<8x112xf32>
      %62 = arith.addf %57, %61 : vector<8x112xf32>
      %c1_75 = arith.constant 1 : index
      %c0_76 = arith.constant 0 : index
      %c0_77 = arith.constant 0 : index
      %63 = vector.load %arg2[%c1_75, %c0_76, %c0_77] : memref<5x8x40xf32, #tpu.memory_space<vmem>>, vector<1x8x40xf32>
      %64 = vector.shape_cast %63 : vector<1x8x40xf32> to vector<8x40xf32>
      %65 = vector.extract_strided_slice %56 {offsets = [0, 1], sizes = [40, 112], strides = [1, 1]} : vector<40x116xf32> to vector<40x112xf32>
      %cst_78 = arith.constant dense<0.000000e+00> : vector<8x112xf32>
      %66 = tpu.matmul %64, %65, %cst_78 {dimension_numbers = #tpu.dot_dimension_numbers<[1], [0], [0], [1], [0, 0, 1, 1], [], []>} : vector<8x40xf32>, vector<40x112xf32>, vector<8x112xf32> -> vector<8x112xf32>
      %67 = arith.addf %62, %66 : vector<8x112xf32>
      %c2_79 = arith.constant 2 : index
      %c0_80 = arith.constant 0 : index
      %c0_81 = arith.constant 0 : index
      %68 = vector.load %arg2[%c2_79, %c0_80, %c0_81] : memref<5x8x40xf32, #tpu.memory_space<vmem>>, vector<1x8x40xf32>
      %69 = vector.shape_cast %68 : vector<1x8x40xf32> to vector<8x40xf32>
      %70 = vector.extract_strided_slice %56 {offsets = [0, 2], sizes = [40, 112], strides = [1, 1]} : vector<40x116xf32> to vector<40x112xf32>
      %cst_82 = arith.constant dense<0.000000e+00> : vector<8x112xf32>
      %71 = tpu.matmul %69, %70, %cst_82 {dimension_numbers = #tpu.dot_dimension_numbers<[1], [0], [0], [1], [0, 0, 1, 1], [], []>} : vector<8x40xf32>, vector<40x112xf32>, vector<8x112xf32> -> vector<8x112xf32>
      %72 = arith.addf %67, %71 : vector<8x112xf32>
      %c3 = arith.constant 3 : index
      %c0_83 = arith.constant 0 : index
      %c0_84 = arith.constant 0 : index
      %73 = vector.load %arg2[%c3, %c0_83, %c0_84] : memref<5x8x40xf32, #tpu.memory_space<vmem>>, vector<1x8x40xf32>
      %74 = vector.shape_cast %73 : vector<1x8x40xf32> to vector<8x40xf32>
      %75 = vector.extract_strided_slice %56 {offsets = [0, 3], sizes = [40, 112], strides = [1, 1]} : vector<40x116xf32> to vector<40x112xf32>
      %cst_85 = arith.constant dense<0.000000e+00> : vector<8x112xf32>
      %76 = tpu.matmul %74, %75, %cst_85 {dimension_numbers = #tpu.dot_dimension_numbers<[1], [0], [0], [1], [0, 0, 1, 1], [], []>} : vector<8x40xf32>, vector<40x112xf32>, vector<8x112xf32> -> vector<8x112xf32>
      %77 = arith.addf %72, %76 : vector<8x112xf32>
      %c4 = arith.constant 4 : index
      %c0_86 = arith.constant 0 : index
      %c0_87 = arith.constant 0 : index
      %78 = vector.load %arg2[%c4, %c0_86, %c0_87] : memref<5x8x40xf32, #tpu.memory_space<vmem>>, vector<1x8x40xf32>
      %79 = vector.shape_cast %78 : vector<1x8x40xf32> to vector<8x40xf32>
      %80 = vector.extract_strided_slice %56 {offsets = [0, 4], sizes = [40, 112], strides = [1, 1]} : vector<40x116xf32> to vector<40x112xf32>
      %cst_88 = arith.constant dense<0.000000e+00> : vector<8x112xf32>
      %81 = tpu.matmul %79, %80, %cst_88 {dimension_numbers = #tpu.dot_dimension_numbers<[1], [0], [0], [1], [0, 0, 1, 1], [], []>} : vector<8x40xf32>, vector<40x112xf32>, vector<8x112xf32> -> vector<8x112xf32>
      %82 = arith.addf %77, %81 : vector<8x112xf32>
      %c0_89 = arith.constant 0 : index
      %c0_90 = arith.constant 0 : index
      %c0_91 = arith.constant 0 : index
      %83 = vector.load %arg9[%c0_89, %c0_90, %c0_91] : memref<2x8x1xf32, #tpu.memory_space<vmem>>, vector<1x8x1xf32>
      %84 = vector.shape_cast %83 : vector<1x8x1xf32> to vector<8x1xf32>
      %85 = vector.broadcast %84 : vector<8x1xf32> to vector<8x112xf32>
      %86 = arith.mulf %82, %85 : vector<8x112xf32>
      %c1_92 = arith.constant 1 : index
      %c0_93 = arith.constant 0 : index
      %c0_94 = arith.constant 0 : index
      %87 = vector.load %arg9[%c1_92, %c0_93, %c0_94] : memref<2x8x1xf32, #tpu.memory_space<vmem>>, vector<1x8x1xf32>
      %88 = vector.shape_cast %87 : vector<1x8x1xf32> to vector<8x1xf32>
      %89 = vector.broadcast %88 : vector<8x1xf32> to vector<8x112xf32>
      %90 = arith.addf %86, %89 : vector<8x112xf32>
      %cst_95 = arith.constant 0.000000e+00 : f32
      %91 = vector.broadcast %cst_95 : f32 to vector<8x112xf32>
      %92 = arith.cmpf ogt, %90, %91 : vector<8x112xf32>
      %cst_96 = arith.constant 0.00999999977 : f32
      %93 = vector.broadcast %cst_96 : f32 to vector<8x112xf32>
      %94 = arith.mulf %93, %90 : vector<8x112xf32>
      %95 = arith.select %92, %90, %94 : vector<8x112xi1>, vector<8x112xf32>
      %96 = arith.index_cast %51 : i32 to index
      %c1_97 = arith.constant 1 : index
      %97 = vector.load %arg25[%96, %c1_97] : memref<784x114xf32, #tpu.memory_space<vmem>>, vector<8x112xf32>
      tpu.vector_store %arg25[%96, %c1_97], %95 {strides = array<i32>} : memref<784x114xf32, #tpu.memory_space<vmem>>, vector<8x112xf32>,
    }
    %c96_i32_19 = arith.constant 96 : i32
    %c0_i32_20 = arith.constant 0 : i32
    %c94_i32 = arith.constant 94 : i32
    %15 = arith.addi %c0_i32_20, %c94_i32 : i32
    %c1_i32_21 = arith.constant 1 : i32
    scf.for %arg32 = %c0_i32_20 to %15 step %c1_i32_21  : i32 {
      %c1_i32_66 = arith.constant 1 : i32
      %49 = arith.addi %arg32, %c1_i32_66 : i32
      %c16_i32 = arith.constant 16 : i32
      %50 = arith.muli %49, %c16_i32 : i32
      %51 = tpu.assume_multiple %50, 8 : i32
      %c8_i32 = arith.constant 8 : i32
      %52 = arith.muli %arg32, %c8_i32 : i32
      %53 = tpu.assume_multiple %52, 8 : i32
      %54 = arith.index_cast %53 : i32 to index
      %c0_67 = arith.constant 0 : index
      %55 = vector.load %arg25[%54, %c0_67] : memref<784x114xf32, #tpu.memory_space<vmem>>, vector<40x114xf32>
      %cst_68 = arith.constant 0.000000e+00 : f32
      %56 = vector.broadcast %cst_68 : f32 to vector<16x110xf32>
      %c0_69 = arith.constant 0 : index
      %c0_70 = arith.constant 0 : index
      %c0_71 = arith.constant 0 : index
      %57 = vector.load %arg3[%c0_69, %c0_70, %c0_71] : memref<5x16x40xf32, #tpu.memory_space<vmem>>, vector<1x16x40xf32>
      %58 = vector.shape_cast %57 : vector<1x16x40xf32> to vector<16x40xf32>
      %59 = vector.extract_strided_slice %55 {offsets = [0, 0], sizes = [40, 110], strides = [1, 1]} : vector<40x114xf32> to vector<40x110xf32>
      %cst_72 = arith.constant dense<0.000000e+00> : vector<16x110xf32>
      %60 = tpu.matmul %58, %59, %cst_72 {dimension_numbers = #tpu.dot_dimension_numbers<[1], [0], [0], [1], [0, 0, 1, 1], [], []>} : vector<16x40xf32>, vector<40x110xf32>, vector<16x110xf32> -> vector<16x110xf32>
      %61 = arith.addf %56, %60 : vector<16x110xf32>
      %c1_73 = arith.constant 1 : index
      %c0_74 = arith.constant 0 : index
      %c0_75 = arith.constant 0 : index
      %62 = vector.load %arg3[%c1_73, %c0_74, %c0_75] : memref<5x16x40xf32, #tpu.memory_space<vmem>>, vector<1x16x40xf32>
      %63 = vector.shape_cast %62 : vector<1x16x40xf32> to vector<16x40xf32>
      %64 = vector.extract_strided_slice %55 {offsets = [0, 1], sizes = [40, 110], strides = [1, 1]} : vector<40x114xf32> to vector<40x110xf32>
      %cst_76 = arith.constant dense<0.000000e+00> : vector<16x110xf32>
      %65 = tpu.matmul %63, %64, %cst_76 {dimension_numbers = #tpu.dot_dimension_numbers<[1], [0], [0], [1], [0, 0, 1, 1], [], []>} : vector<16x40xf32>, vector<40x110xf32>, vector<16x110xf32> -> vector<16x110xf32>
      %66 = arith.addf %61, %65 : vector<16x110xf32>
      %c2_77 = arith.constant 2 : index
      %c0_78 = arith.constant 0 : index
      %c0_79 = arith.constant 0 : index
      %67 = vector.load %arg3[%c2_77, %c0_78, %c0_79] : memref<5x16x40xf32, #tpu.memory_space<vmem>>, vector<1x16x40xf32>
      %68 = vector.shape_cast %67 : vector<1x16x40xf32> to vector<16x40xf32>
      %69 = vector.extract_strided_slice %55 {offsets = [0, 2], sizes = [40, 110], strides = [1, 1]} : vector<40x114xf32> to vector<40x110xf32>
      %cst_80 = arith.constant dense<0.000000e+00> : vector<16x110xf32>
      %70 = tpu.matmul %68, %69, %cst_80 {dimension_numbers = #tpu.dot_dimension_numbers<[1], [0], [0], [1], [0, 0, 1, 1], [], []>} : vector<16x40xf32>, vector<40x110xf32>, vector<16x110xf32> -> vector<16x110xf32>
      %71 = arith.addf %66, %70 : vector<16x110xf32>
      %c3 = arith.constant 3 : index
      %c0_81 = arith.constant 0 : index
      %c0_82 = arith.constant 0 : index
      %72 = vector.load %arg3[%c3, %c0_81, %c0_82] : memref<5x16x40xf32, #tpu.memory_space<vmem>>, vector<1x16x40xf32>
      %73 = vector.shape_cast %72 : vector<1x16x40xf32> to vector<16x40xf32>
      %74 = vector.extract_strided_slice %55 {offsets = [0, 3], sizes = [40, 110], strides = [1, 1]} : vector<40x114xf32> to vector<40x110xf32>
      %cst_83 = arith.constant dense<0.000000e+00> : vector<16x110xf32>
      %75 = tpu.matmul %73, %74, %cst_83 {dimension_numbers = #tpu.dot_dimension_numbers<[1], [0], [0], [1], [0, 0, 1, 1], [], []>} : vector<16x40xf32>, vector<40x110xf32>, vector<16x110xf32> -> vector<16x110xf32>
      %76 = arith.addf %71, %75 : vector<16x110xf32>
      %c4 = arith.constant 4 : index
      %c0_84 = arith.constant 0 : index
      %c0_85 = arith.constant 0 : index
      %77 = vector.load %arg3[%c4, %c0_84, %c0_85] : memref<5x16x40xf32, #tpu.memory_space<vmem>>, vector<1x16x40xf32>
      %78 = vector.shape_cast %77 : vector<1x16x40xf32> to vector<16x40xf32>
      %79 = vector.extract_strided_slice %55 {offsets = [0, 4], sizes = [40, 110], strides = [1, 1]} : vector<40x114xf32> to vector<40x110xf32>
      %cst_86 = arith.constant dense<0.000000e+00> : vector<16x110xf32>
      %80 = tpu.matmul %78, %79, %cst_86 {dimension_numbers = #tpu.dot_dimension_numbers<[1], [0], [0], [1], [0, 0, 1, 1], [], []>} : vector<16x40xf32>, vector<40x110xf32>, vector<16x110xf32> -> vector<16x110xf32>
      %81 = arith.addf %76, %80 : vector<16x110xf32>
      %c0_87 = arith.constant 0 : index
      %c0_88 = arith.constant 0 : index
      %c0_89 = arith.constant 0 : index
      %82 = vector.load %arg10[%c0_87, %c0_88, %c0_89] : memref<2x16x1xf32, #tpu.memory_space<vmem>>, vector<1x16x1xf32>
      %83 = vector.shape_cast %82 : vector<1x16x1xf32> to vector<16x1xf32>
      %84 = vector.broadcast %83 : vector<16x1xf32> to vector<16x110xf32>
      %85 = arith.mulf %81, %84 : vector<16x110xf32>
      %c1_90 = arith.constant 1 : index
      %c0_91 = arith.constant 0 : index
      %c0_92 = arith.constant 0 : index
      %86 = vector.load %arg10[%c1_90, %c0_91, %c0_92] : memref<2x16x1xf32, #tpu.memory_space<vmem>>, vector<1x16x1xf32>
      %87 = vector.shape_cast %86 : vector<1x16x1xf32> to vector<16x1xf32>
      %88 = vector.broadcast %87 : vector<16x1xf32> to vector<16x110xf32>
      %89 = arith.addf %85, %88 : vector<16x110xf32>
      %cst_93 = arith.constant 0.000000e+00 : f32
      %90 = vector.broadcast %cst_93 : f32 to vector<16x110xf32>
      %91 = arith.cmpf ogt, %89, %90 : vector<16x110xf32>
      %cst_94 = arith.constant 0.00999999977 : f32
      %92 = vector.broadcast %cst_94 : f32 to vector<16x110xf32>
      %93 = arith.mulf %92, %89 : vector<16x110xf32>
      %94 = arith.select %91, %89, %93 : vector<16x110xi1>, vector<16x110xf32>
      %95 = arith.index_cast %51 : i32 to index
      %c1_95 = arith.constant 1 : index
      %96 = vector.load %arg26[%95, %c1_95] : memref<1536x112xf32, #tpu.memory_space<vmem>>, vector<16x110xf32>
      tpu.vector_store %arg26[%95, %c1_95], %94 {strides = array<i32>} : memref<1536x112xf32, #tpu.memory_space<vmem>>, vector<16x110xf32>,
    }
    %c94_i32_22 = arith.constant 94 : i32
    %c0_i32_23 = arith.constant 0 : i32
    %c46_i32 = arith.constant 46 : i32
    %16 = arith.addi %c0_i32_23, %c46_i32 : i32
    %c1_i32_24 = arith.constant 1 : i32
    scf.for %arg32 = %c0_i32_23 to %16 step %c1_i32_24  : i32 {
      %c2_i32_66 = arith.constant 2 : i32
      %49 = arith.muli %c2_i32_66, %arg32 : i32
      %c16_i32 = arith.constant 16 : i32
      %50 = arith.muli %49, %c16_i32 : i32
      %51 = tpu.assume_multiple %50, 8 : i32
      %52 = arith.index_cast %51 : i32 to index
      %c0_67 = arith.constant 0 : index
      %53 = vector.load %arg26[%52, %c0_67] : memref<1536x112xf32, #tpu.memory_space<vmem>>, vector<80x112xf32>
      %cst_68 = arith.constant 0.000000e+00 : f32
      %54 = vector.broadcast %cst_68 : f32 to vector<16x108xf32>
      %c0_69 = arith.constant 0 : index
      %c0_70 = arith.constant 0 : index
      %c0_71 = arith.constant 0 : index
      %55 = vector.load %arg4[%c0_69, %c0_70, %c0_71] : memref<5x16x80xf32, #tpu.memory_space<vmem>>, vector<1x16x80xf32>
      %56 = vector.shape_cast %55 : vector<1x16x80xf32> to vector<16x80xf32>
      %57 = vector.extract_strided_slice %53 {offsets = [0, 0], sizes = [80, 108], strides = [1, 1]} : vector<80x112xf32> to vector<80x108xf32>
      %cst_72 = arith.constant dense<0.000000e+00> : vector<16x108xf32>
      %58 = tpu.matmul %56, %57, %cst_72 {dimension_numbers = #tpu.dot_dimension_numbers<[1], [0], [0], [1], [0, 0, 1, 1], [], []>} : vector<16x80xf32>, vector<80x108xf32>, vector<16x108xf32> -> vector<16x108xf32>
      %59 = arith.addf %54, %58 : vector<16x108xf32>
      %c1_73 = arith.constant 1 : index
      %c0_74 = arith.constant 0 : index
      %c0_75 = arith.constant 0 : index
      %60 = vector.load %arg4[%c1_73, %c0_74, %c0_75] : memref<5x16x80xf32, #tpu.memory_space<vmem>>, vector<1x16x80xf32>
      %61 = vector.shape_cast %60 : vector<1x16x80xf32> to vector<16x80xf32>
      %62 = vector.extract_strided_slice %53 {offsets = [0, 1], sizes = [80, 108], strides = [1, 1]} : vector<80x112xf32> to vector<80x108xf32>
      %cst_76 = arith.constant dense<0.000000e+00> : vector<16x108xf32>
      %63 = tpu.matmul %61, %62, %cst_76 {dimension_numbers = #tpu.dot_dimension_numbers<[1], [0], [0], [1], [0, 0, 1, 1], [], []>} : vector<16x80xf32>, vector<80x108xf32>, vector<16x108xf32> -> vector<16x108xf32>
      %64 = arith.addf %59, %63 : vector<16x108xf32>
      %c2_77 = arith.constant 2 : index
      %c0_78 = arith.constant 0 : index
      %c0_79 = arith.constant 0 : index
      %65 = vector.load %arg4[%c2_77, %c0_78, %c0_79] : memref<5x16x80xf32, #tpu.memory_space<vmem>>, vector<1x16x80xf32>
      %66 = vector.shape_cast %65 : vector<1x16x80xf32> to vector<16x80xf32>
      %67 = vector.extract_strided_slice %53 {offsets = [0, 2], sizes = [80, 108], strides = [1, 1]} : vector<80x112xf32> to vector<80x108xf32>
      %cst_80 = arith.constant dense<0.000000e+00> : vector<16x108xf32>
      %68 = tpu.matmul %66, %67, %cst_80 {dimension_numbers = #tpu.dot_dimension_numbers<[1], [0], [0], [1], [0, 0, 1, 1], [], []>} : vector<16x80xf32>, vector<80x108xf32>, vector<16x108xf32> -> vector<16x108xf32>
      %69 = arith.addf %64, %68 : vector<16x108xf32>
      %c3 = arith.constant 3 : index
      %c0_81 = arith.constant 0 : index
      %c0_82 = arith.constant 0 : index
      %70 = vector.load %arg4[%c3, %c0_81, %c0_82] : memref<5x16x80xf32, #tpu.memory_space<vmem>>, vector<1x16x80xf32>
      %71 = vector.shape_cast %70 : vector<1x16x80xf32> to vector<16x80xf32>
      %72 = vector.extract_strided_slice %53 {offsets = [0, 3], sizes = [80, 108], strides = [1, 1]} : vector<80x112xf32> to vector<80x108xf32>
      %cst_83 = arith.constant dense<0.000000e+00> : vector<16x108xf32>
      %73 = tpu.matmul %71, %72, %cst_83 {dimension_numbers = #tpu.dot_dimension_numbers<[1], [0], [0], [1], [0, 0, 1, 1], [], []>} : vector<16x80xf32>, vector<80x108xf32>, vector<16x108xf32> -> vector<16x108xf32>
      %74 = arith.addf %69, %73 : vector<16x108xf32>
      %c4 = arith.constant 4 : index
      %c0_84 = arith.constant 0 : index
      %c0_85 = arith.constant 0 : index
      %75 = vector.load %arg4[%c4, %c0_84, %c0_85] : memref<5x16x80xf32, #tpu.memory_space<vmem>>, vector<1x16x80xf32>
      %76 = vector.shape_cast %75 : vector<1x16x80xf32> to vector<16x80xf32>
      %77 = vector.extract_strided_slice %53 {offsets = [0, 4], sizes = [80, 108], strides = [1, 1]} : vector<80x112xf32> to vector<80x108xf32>
      %cst_86 = arith.constant dense<0.000000e+00> : vector<16x108xf32>
      %78 = tpu.matmul %76, %77, %cst_86 {dimension_numbers = #tpu.dot_dimension_numbers<[1], [0], [0], [1], [0, 0, 1, 1], [], []>} : vector<16x80xf32>, vector<80x108xf32>, vector<16x108xf32> -> vector<16x108xf32>
      %79 = arith.addf %74, %78 : vector<16x108xf32>
      %c0_87 = arith.constant 0 : index
      %c0_88 = arith.constant 0 : index
      %c0_89 = arith.constant 0 : index
      %80 = vector.load %arg11[%c0_87, %c0_88, %c0_89] : memref<2x16x1xf32, #tpu.memory_space<vmem>>, vector<1x16x1xf32>
      %81 = vector.shape_cast %80 : vector<1x16x1xf32> to vector<16x1xf32>
      %82 = vector.broadcast %81 : vector<16x1xf32> to vector<16x108xf32>
      %83 = arith.mulf %79, %82 : vector<16x108xf32>
      %c1_90 = arith.constant 1 : index
      %c0_91 = arith.constant 0 : index
      %c0_92 = arith.constant 0 : index
      %84 = vector.load %arg11[%c1_90, %c0_91, %c0_92] : memref<2x16x1xf32, #tpu.memory_space<vmem>>, vector<1x16x1xf32>
      %85 = vector.shape_cast %84 : vector<1x16x1xf32> to vector<16x1xf32>
      %86 = vector.broadcast %85 : vector<16x1xf32> to vector<16x108xf32>
      %87 = arith.addf %83, %86 : vector<16x108xf32>
      %cst_93 = arith.constant 0.000000e+00 : f32
      %88 = vector.broadcast %cst_93 : f32 to vector<16x108xf32>
      %89 = arith.cmpf ogt, %87, %88 : vector<16x108xf32>
      %cst_94 = arith.constant 0.00999999977 : f32
      %90 = vector.broadcast %cst_94 : f32 to vector<16x108xf32>
      %91 = arith.mulf %90, %87 : vector<16x108xf32>
      %92 = arith.select %89, %87, %91 : vector<16x108xi1>, vector<16x108xf32>
      %c2_i32_95 = arith.constant 2 : i32
      %93 = arith.muli %c2_i32_95, %arg32 : i32
      %c1_i32_96 = arith.constant 1 : i32
      %94 = arith.addi %93, %c1_i32_96 : i32
      %c16_i32_97 = arith.constant 16 : i32
      %95 = arith.muli %94, %c16_i32_97 : i32
      %96 = tpu.assume_multiple %95, 8 : i32
      %97 = arith.index_cast %96 : i32 to index
      %c0_98 = arith.constant 0 : index
      %98 = vector.load %arg26[%97, %c0_98] : memref<1536x112xf32, #tpu.memory_space<vmem>>, vector<80x112xf32>
      %cst_99 = arith.constant 0.000000e+00 : f32
      %99 = vector.broadcast %cst_99 : f32 to vector<16x108xf32>
      %c0_100 = arith.constant 0 : index
      %c0_101 = arith.constant 0 : index
      %c0_102 = arith.constant 0 : index
      %100 = vector.load %arg4[%c0_100, %c0_101, %c0_102] : memref<5x16x80xf32, #tpu.memory_space<vmem>>, vector<1x16x80xf32>
      %101 = vector.shape_cast %100 : vector<1x16x80xf32> to vector<16x80xf32>
      %102 = vector.extract_strided_slice %98 {offsets = [0, 0], sizes = [80, 108], strides = [1, 1]} : vector<80x112xf32> to vector<80x108xf32>
      %cst_103 = arith.constant dense<0.000000e+00> : vector<16x108xf32>
      %103 = tpu.matmul %101, %102, %cst_103 {dimension_numbers = #tpu.dot_dimension_numbers<[1], [0], [0], [1], [0, 0, 1, 1], [], []>} : vector<16x80xf32>, vector<80x108xf32>, vector<16x108xf32> -> vector<16x108xf32>
      %104 = arith.addf %99, %103 : vector<16x108xf32>
      %c1_104 = arith.constant 1 : index
      %c0_105 = arith.constant 0 : index
      %c0_106 = arith.constant 0 : index
      %105 = vector.load %arg4[%c1_104, %c0_105, %c0_106] : memref<5x16x80xf32, #tpu.memory_space<vmem>>, vector<1x16x80xf32>
      %106 = vector.shape_cast %105 : vector<1x16x80xf32> to vector<16x80xf32>
      %107 = vector.extract_strided_slice %98 {offsets = [0, 1], sizes = [80, 108], strides = [1, 1]} : vector<80x112xf32> to vector<80x108xf32>
      %cst_107 = arith.constant dense<0.000000e+00> : vector<16x108xf32>
      %108 = tpu.matmul %106, %107, %cst_107 {dimension_numbers = #tpu.dot_dimension_numbers<[1], [0], [0], [1], [0, 0, 1, 1], [], []>} : vector<16x80xf32>, vector<80x108xf32>, vector<16x108xf32> -> vector<16x108xf32>
      %109 = arith.addf %104, %108 : vector<16x108xf32>
      %c2_108 = arith.constant 2 : index
      %c0_109 = arith.constant 0 : index
      %c0_110 = arith.constant 0 : index
      %110 = vector.load %arg4[%c2_108, %c0_109, %c0_110] : memref<5x16x80xf32, #tpu.memory_space<vmem>>, vector<1x16x80xf32>
      %111 = vector.shape_cast %110 : vector<1x16x80xf32> to vector<16x80xf32>
      %112 = vector.extract_strided_slice %98 {offsets = [0, 2], sizes = [80, 108], strides = [1, 1]} : vector<80x112xf32> to vector<80x108xf32>
      %cst_111 = arith.constant dense<0.000000e+00> : vector<16x108xf32>
      %113 = tpu.matmul %111, %112, %cst_111 {dimension_numbers = #tpu.dot_dimension_numbers<[1], [0], [0], [1], [0, 0, 1, 1], [], []>} : vector<16x80xf32>, vector<80x108xf32>, vector<16x108xf32> -> vector<16x108xf32>
      %114 = arith.addf %109, %113 : vector<16x108xf32>
      %c3_112 = arith.constant 3 : index
      %c0_113 = arith.constant 0 : index
      %c0_114 = arith.constant 0 : index
      %115 = vector.load %arg4[%c3_112, %c0_113, %c0_114] : memref<5x16x80xf32, #tpu.memory_space<vmem>>, vector<1x16x80xf32>
      %116 = vector.shape_cast %115 : vector<1x16x80xf32> to vector<16x80xf32>
      %117 = vector.extract_strided_slice %98 {offsets = [0, 3], sizes = [80, 108], strides = [1, 1]} : vector<80x112xf32> to vector<80x108xf32>
      %cst_115 = arith.constant dense<0.000000e+00> : vector<16x108xf32>
      %118 = tpu.matmul %116, %117, %cst_115 {dimension_numbers = #tpu.dot_dimension_numbers<[1], [0], [0], [1], [0, 0, 1, 1], [], []>} : vector<16x80xf32>, vector<80x108xf32>, vector<16x108xf32> -> vector<16x108xf32>
      %119 = arith.addf %114, %118 : vector<16x108xf32>
      %c4_116 = arith.constant 4 : index
      %c0_117 = arith.constant 0 : index
      %c0_118 = arith.constant 0 : index
      %120 = vector.load %arg4[%c4_116, %c0_117, %c0_118] : memref<5x16x80xf32, #tpu.memory_space<vmem>>, vector<1x16x80xf32>
      %121 = vector.shape_cast %120 : vector<1x16x80xf32> to vector<16x80xf32>
      %122 = vector.extract_strided_slice %98 {offsets = [0, 4], sizes = [80, 108], strides = [1, 1]} : vector<80x112xf32> to vector<80x108xf32>
      %cst_119 = arith.constant dense<0.000000e+00> : vector<16x108xf32>
      %123 = tpu.matmul %121, %122, %cst_119 {dimension_numbers = #tpu.dot_dimension_numbers<[1], [0], [0], [1], [0, 0, 1, 1], [], []>} : vector<16x80xf32>, vector<80x108xf32>, vector<16x108xf32> -> vector<16x108xf32>
      %124 = arith.addf %119, %123 : vector<16x108xf32>
      %c0_120 = arith.constant 0 : index
      %c0_121 = arith.constant 0 : index
      %c0_122 = arith.constant 0 : index
      %125 = vector.load %arg11[%c0_120, %c0_121, %c0_122] : memref<2x16x1xf32, #tpu.memory_space<vmem>>, vector<1x16x1xf32>
      %126 = vector.shape_cast %125 : vector<1x16x1xf32> to vector<16x1xf32>
      %127 = vector.broadcast %126 : vector<16x1xf32> to vector<16x108xf32>
      %128 = arith.mulf %124, %127 : vector<16x108xf32>
      %c1_123 = arith.constant 1 : index
      %c0_124 = arith.constant 0 : index
      %c0_125 = arith.constant 0 : index
      %129 = vector.load %arg11[%c1_123, %c0_124, %c0_125] : memref<2x16x1xf32, #tpu.memory_space<vmem>>, vector<1x16x1xf32>
      %130 = vector.shape_cast %129 : vector<1x16x1xf32> to vector<16x1xf32>
      %131 = vector.broadcast %130 : vector<16x1xf32> to vector<16x108xf32>
      %132 = arith.addf %128, %131 : vector<16x108xf32>
      %cst_126 = arith.constant 0.000000e+00 : f32
      %133 = vector.broadcast %cst_126 : f32 to vector<16x108xf32>
      %134 = arith.cmpf ogt, %132, %133 : vector<16x108xf32>
      %cst_127 = arith.constant 0.00999999977 : f32
      %135 = vector.broadcast %cst_127 : f32 to vector<16x108xf32>
      %136 = arith.mulf %135, %132 : vector<16x108xf32>
      %137 = arith.select %134, %132, %136 : vector<16x108xi1>, vector<16x108xf32>
      %138 = arith.maximumf %92, %137 : vector<16x108xf32>
      %c0_128 = arith.constant 0 : index
      %c0_129 = arith.constant 0 : index
      %c0_130 = arith.constant 0 : index
      %139 = vector.load %arg16[%c0_128, %c0_129, %c0_130] : memref<2x108x54xf32, #tpu.memory_space<vmem>>, vector<1x108x54xf32>
      %140 = vector.shape_cast %139 : vector<1x108x54xf32> to vector<108x54xf32>
      %cst_131 = arith.constant dense<0.000000e+00> : vector<16x54xf32>
      %141 = tpu.matmul %138, %140, %cst_131 {dimension_numbers = #tpu.dot_dimension_numbers<[1], [0], [0], [1], [0, 0, 1, 1], [], []>} : vector<16x108xf32>, vector<108x54xf32>, vector<16x54xf32> -> vector<16x54xf32>
      %c1_132 = arith.constant 1 : index
      %c0_133 = arith.constant 0 : index
      %c0_134 = arith.constant 0 : index
      %142 = vector.load %arg16[%c1_132, %c0_133, %c0_134] : memref<2x108x54xf32, #tpu.memory_space<vmem>>, vector<1x108x54xf32>
      %143 = vector.shape_cast %142 : vector<1x108x54xf32> to vector<108x54xf32>
      %cst_135 = arith.constant dense<0.000000e+00> : vector<16x54xf32>
      %144 = tpu.matmul %138, %143, %cst_135 {dimension_numbers = #tpu.dot_dimension_numbers<[1], [0], [0], [1], [0, 0, 1, 1], [], []>} : vector<16x108xf32>, vector<108x54xf32>, vector<16x54xf32> -> vector<16x54xf32>
      %145 = arith.maximumf %141, %144 : vector<16x54xf32>
      %c1_i32_136 = arith.constant 1 : i32
      %146 = arith.addi %arg32, %c1_i32_136 : i32
      %c16_i32_137 = arith.constant 16 : i32
      %147 = arith.muli %146, %c16_i32_137 : i32
      %148 = tpu.assume_multiple %147, 8 : i32
      %149 = arith.index_cast %148 : i32 to index
      %c1_138 = arith.constant 1 : index
      %150 = vector.load %arg27[%149, %c1_138] : memref<768x56xf32, #tpu.memory_space<vmem>>, vector<16x54xf32>
      tpu.vector_store %arg27[%149, %c1_138], %145 {strides = array<i32>} : memref<768x56xf32, #tpu.memory_space<vmem>>, vector<16x54xf32>,
    }
    %c46_i32_25 = arith.constant 46 : i32
    %c0_i32_26 = arith.constant 0 : i32
    %c22_i32 = arith.constant 22 : i32
    %17 = arith.addi %c0_i32_26, %c22_i32 : i32
    %c1_i32_27 = arith.constant 1 : i32
    scf.for %arg32 = %c0_i32_26 to %17 step %c1_i32_27  : i32 {
      %c2_i32_66 = arith.constant 2 : i32
      %49 = arith.muli %c2_i32_66, %arg32 : i32
      %c16_i32 = arith.constant 16 : i32
      %50 = arith.muli %49, %c16_i32 : i32
      %51 = tpu.assume_multiple %50, 8 : i32
      %52 = arith.index_cast %51 : i32 to index
      %c0_67 = arith.constant 0 : index
      %53 = vector.load %arg27[%52, %c0_67] : memref<768x56xf32, #tpu.memory_space<vmem>>, vector<80x56xf32>
      %cst_68 = arith.constant 0.000000e+00 : f32
      %54 = vector.broadcast %cst_68 : f32 to vector<16x52xf32>
      %c0_69 = arith.constant 0 : index
      %c0_70 = arith.constant 0 : index
      %c0_71 = arith.constant 0 : index
      %55 = vector.load %arg5[%c0_69, %c0_70, %c0_71] : memref<5x16x80xf32, #tpu.memory_space<vmem>>, vector<1x16x80xf32>
      %56 = vector.shape_cast %55 : vector<1x16x80xf32> to vector<16x80xf32>
      %57 = vector.extract_strided_slice %53 {offsets = [0, 0], sizes = [80, 52], strides = [1, 1]} : vector<80x56xf32> to vector<80x52xf32>
      %cst_72 = arith.constant dense<0.000000e+00> : vector<16x52xf32>
      %58 = tpu.matmul %56, %57, %cst_72 {dimension_numbers = #tpu.dot_dimension_numbers<[1], [0], [0], [1], [0, 0, 1, 1], [], []>} : vector<16x80xf32>, vector<80x52xf32>, vector<16x52xf32> -> vector<16x52xf32>
      %59 = arith.addf %54, %58 : vector<16x52xf32>
      %c1_73 = arith.constant 1 : index
      %c0_74 = arith.constant 0 : index
      %c0_75 = arith.constant 0 : index
      %60 = vector.load %arg5[%c1_73, %c0_74, %c0_75] : memref<5x16x80xf32, #tpu.memory_space<vmem>>, vector<1x16x80xf32>
      %61 = vector.shape_cast %60 : vector<1x16x80xf32> to vector<16x80xf32>
      %62 = vector.extract_strided_slice %53 {offsets = [0, 1], sizes = [80, 52], strides = [1, 1]} : vector<80x56xf32> to vector<80x52xf32>
      %cst_76 = arith.constant dense<0.000000e+00> : vector<16x52xf32>
      %63 = tpu.matmul %61, %62, %cst_76 {dimension_numbers = #tpu.dot_dimension_numbers<[1], [0], [0], [1], [0, 0, 1, 1], [], []>} : vector<16x80xf32>, vector<80x52xf32>, vector<16x52xf32> -> vector<16x52xf32>
      %64 = arith.addf %59, %63 : vector<16x52xf32>
      %c2_77 = arith.constant 2 : index
      %c0_78 = arith.constant 0 : index
      %c0_79 = arith.constant 0 : index
      %65 = vector.load %arg5[%c2_77, %c0_78, %c0_79] : memref<5x16x80xf32, #tpu.memory_space<vmem>>, vector<1x16x80xf32>
      %66 = vector.shape_cast %65 : vector<1x16x80xf32> to vector<16x80xf32>
      %67 = vector.extract_strided_slice %53 {offsets = [0, 2], sizes = [80, 52], strides = [1, 1]} : vector<80x56xf32> to vector<80x52xf32>
      %cst_80 = arith.constant dense<0.000000e+00> : vector<16x52xf32>
      %68 = tpu.matmul %66, %67, %cst_80 {dimension_numbers = #tpu.dot_dimension_numbers<[1], [0], [0], [1], [0, 0, 1, 1], [], []>} : vector<16x80xf32>, vector<80x52xf32>, vector<16x52xf32> -> vector<16x52xf32>
      %69 = arith.addf %64, %68 : vector<16x52xf32>
      %c3 = arith.constant 3 : index
      %c0_81 = arith.constant 0 : index
      %c0_82 = arith.constant 0 : index
      %70 = vector.load %arg5[%c3, %c0_81, %c0_82] : memref<5x16x80xf32, #tpu.memory_space<vmem>>, vector<1x16x80xf32>
      %71 = vector.shape_cast %70 : vector<1x16x80xf32> to vector<16x80xf32>
      %72 = vector.extract_strided_slice %53 {offsets = [0, 3], sizes = [80, 52], strides = [1, 1]} : vector<80x56xf32> to vector<80x52xf32>
      %cst_83 = arith.constant dense<0.000000e+00> : vector<16x52xf32>
      %73 = tpu.matmul %71, %72, %cst_83 {dimension_numbers = #tpu.dot_dimension_numbers<[1], [0], [0], [1], [0, 0, 1, 1], [], []>} : vector<16x80xf32>, vector<80x52xf32>, vector<16x52xf32> -> vector<16x52xf32>
      %74 = arith.addf %69, %73 : vector<16x52xf32>
      %c4 = arith.constant 4 : index
      %c0_84 = arith.constant 0 : index
      %c0_85 = arith.constant 0 : index
      %75 = vector.load %arg5[%c4, %c0_84, %c0_85] : memref<5x16x80xf32, #tpu.memory_space<vmem>>, vector<1x16x80xf32>
      %76 = vector.shape_cast %75 : vector<1x16x80xf32> to vector<16x80xf32>
      %77 = vector.extract_strided_slice %53 {offsets = [0, 4], sizes = [80, 52], strides = [1, 1]} : vector<80x56xf32> to vector<80x52xf32>
      %cst_86 = arith.constant dense<0.000000e+00> : vector<16x52xf32>
      %78 = tpu.matmul %76, %77, %cst_86 {dimension_numbers = #tpu.dot_dimension_numbers<[1], [0], [0], [1], [0, 0, 1, 1], [], []>} : vector<16x80xf32>, vector<80x52xf32>, vector<16x52xf32> -> vector<16x52xf32>
      %79 = arith.addf %74, %78 : vector<16x52xf32>
      %c0_87 = arith.constant 0 : index
      %c0_88 = arith.constant 0 : index
      %c0_89 = arith.constant 0 : index
      %80 = vector.load %arg12[%c0_87, %c0_88, %c0_89] : memref<2x16x1xf32, #tpu.memory_space<vmem>>, vector<1x16x1xf32>
      %81 = vector.shape_cast %80 : vector<1x16x1xf32> to vector<16x1xf32>
      %82 = vector.broadcast %81 : vector<16x1xf32> to vector<16x52xf32>
      %83 = arith.mulf %79, %82 : vector<16x52xf32>
      %c1_90 = arith.constant 1 : index
      %c0_91 = arith.constant 0 : index
      %c0_92 = arith.constant 0 : index
      %84 = vector.load %arg12[%c1_90, %c0_91, %c0_92] : memref<2x16x1xf32, #tpu.memory_space<vmem>>, vector<1x16x1xf32>
      %85 = vector.shape_cast %84 : vector<1x16x1xf32> to vector<16x1xf32>
      %86 = vector.broadcast %85 : vector<16x1xf32> to vector<16x52xf32>
      %87 = arith.addf %83, %86 : vector<16x52xf32>
      %cst_93 = arith.constant 0.000000e+00 : f32
      %88 = vector.broadcast %cst_93 : f32 to vector<16x52xf32>
      %89 = arith.cmpf ogt, %87, %88 : vector<16x52xf32>
      %cst_94 = arith.constant 0.00999999977 : f32
      %90 = vector.broadcast %cst_94 : f32 to vector<16x52xf32>
      %91 = arith.mulf %90, %87 : vector<16x52xf32>
      %92 = arith.select %89, %87, %91 : vector<16x52xi1>, vector<16x52xf32>
      %c2_i32_95 = arith.constant 2 : i32
      %93 = arith.muli %c2_i32_95, %arg32 : i32
      %c1_i32_96 = arith.constant 1 : i32
      %94 = arith.addi %93, %c1_i32_96 : i32
      %c16_i32_97 = arith.constant 16 : i32
      %95 = arith.muli %94, %c16_i32_97 : i32
      %96 = tpu.assume_multiple %95, 8 : i32
      %97 = arith.index_cast %96 : i32 to index
      %c0_98 = arith.constant 0 : index
      %98 = vector.load %arg27[%97, %c0_98] : memref<768x56xf32, #tpu.memory_space<vmem>>, vector<80x56xf32>
      %cst_99 = arith.constant 0.000000e+00 : f32
      %99 = vector.broadcast %cst_99 : f32 to vector<16x52xf32>
      %c0_100 = arith.constant 0 : index
      %c0_101 = arith.constant 0 : index
      %c0_102 = arith.constant 0 : index
      %100 = vector.load %arg5[%c0_100, %c0_101, %c0_102] : memref<5x16x80xf32, #tpu.memory_space<vmem>>, vector<1x16x80xf32>
      %101 = vector.shape_cast %100 : vector<1x16x80xf32> to vector<16x80xf32>
      %102 = vector.extract_strided_slice %98 {offsets = [0, 0], sizes = [80, 52], strides = [1, 1]} : vector<80x56xf32> to vector<80x52xf32>
      %cst_103 = arith.constant dense<0.000000e+00> : vector<16x52xf32>
      %103 = tpu.matmul %101, %102, %cst_103 {dimension_numbers = #tpu.dot_dimension_numbers<[1], [0], [0], [1], [0, 0, 1, 1], [], []>} : vector<16x80xf32>, vector<80x52xf32>, vector<16x52xf32> -> vector<16x52xf32>
      %104 = arith.addf %99, %103 : vector<16x52xf32>
      %c1_104 = arith.constant 1 : index
      %c0_105 = arith.constant 0 : index
      %c0_106 = arith.constant 0 : index
      %105 = vector.load %arg5[%c1_104, %c0_105, %c0_106] : memref<5x16x80xf32, #tpu.memory_space<vmem>>, vector<1x16x80xf32>
      %106 = vector.shape_cast %105 : vector<1x16x80xf32> to vector<16x80xf32>
      %107 = vector.extract_strided_slice %98 {offsets = [0, 1], sizes = [80, 52], strides = [1, 1]} : vector<80x56xf32> to vector<80x52xf32>
      %cst_107 = arith.constant dense<0.000000e+00> : vector<16x52xf32>
      %108 = tpu.matmul %106, %107, %cst_107 {dimension_numbers = #tpu.dot_dimension_numbers<[1], [0], [0], [1], [0, 0, 1, 1], [], []>} : vector<16x80xf32>, vector<80x52xf32>, vector<16x52xf32> -> vector<16x52xf32>
      %109 = arith.addf %104, %108 : vector<16x52xf32>
      %c2_108 = arith.constant 2 : index
      %c0_109 = arith.constant 0 : index
      %c0_110 = arith.constant 0 : index
      %110 = vector.load %arg5[%c2_108, %c0_109, %c0_110] : memref<5x16x80xf32, #tpu.memory_space<vmem>>, vector<1x16x80xf32>
      %111 = vector.shape_cast %110 : vector<1x16x80xf32> to vector<16x80xf32>
      %112 = vector.extract_strided_slice %98 {offsets = [0, 2], sizes = [80, 52], strides = [1, 1]} : vector<80x56xf32> to vector<80x52xf32>
      %cst_111 = arith.constant dense<0.000000e+00> : vector<16x52xf32>
      %113 = tpu.matmul %111, %112, %cst_111 {dimension_numbers = #tpu.dot_dimension_numbers<[1], [0], [0], [1], [0, 0, 1, 1], [], []>} : vector<16x80xf32>, vector<80x52xf32>, vector<16x52xf32> -> vector<16x52xf32>
      %114 = arith.addf %109, %113 : vector<16x52xf32>
      %c3_112 = arith.constant 3 : index
      %c0_113 = arith.constant 0 : index
      %c0_114 = arith.constant 0 : index
      %115 = vector.load %arg5[%c3_112, %c0_113, %c0_114] : memref<5x16x80xf32, #tpu.memory_space<vmem>>, vector<1x16x80xf32>
      %116 = vector.shape_cast %115 : vector<1x16x80xf32> to vector<16x80xf32>
      %117 = vector.extract_strided_slice %98 {offsets = [0, 3], sizes = [80, 52], strides = [1, 1]} : vector<80x56xf32> to vector<80x52xf32>
      %cst_115 = arith.constant dense<0.000000e+00> : vector<16x52xf32>
      %118 = tpu.matmul %116, %117, %cst_115 {dimension_numbers = #tpu.dot_dimension_numbers<[1], [0], [0], [1], [0, 0, 1, 1], [], []>} : vector<16x80xf32>, vector<80x52xf32>, vector<16x52xf32> -> vector<16x52xf32>
      %119 = arith.addf %114, %118 : vector<16x52xf32>
      %c4_116 = arith.constant 4 : index
      %c0_117 = arith.constant 0 : index
      %c0_118 = arith.constant 0 : index
      %120 = vector.load %arg5[%c4_116, %c0_117, %c0_118] : memref<5x16x80xf32, #tpu.memory_space<vmem>>, vector<1x16x80xf32>
      %121 = vector.shape_cast %120 : vector<1x16x80xf32> to vector<16x80xf32>
      %122 = vector.extract_strided_slice %98 {offsets = [0, 4], sizes = [80, 52], strides = [1, 1]} : vector<80x56xf32> to vector<80x52xf32>
      %cst_119 = arith.constant dense<0.000000e+00> : vector<16x52xf32>
      %123 = tpu.matmul %121, %122, %cst_119 {dimension_numbers = #tpu.dot_dimension_numbers<[1], [0], [0], [1], [0, 0, 1, 1], [], []>} : vector<16x80xf32>, vector<80x52xf32>, vector<16x52xf32> -> vector<16x52xf32>
      %124 = arith.addf %119, %123 : vector<16x52xf32>
      %c0_120 = arith.constant 0 : index
      %c0_121 = arith.constant 0 : index
      %c0_122 = arith.constant 0 : index
      %125 = vector.load %arg12[%c0_120, %c0_121, %c0_122] : memref<2x16x1xf32, #tpu.memory_space<vmem>>, vector<1x16x1xf32>
      %126 = vector.shape_cast %125 : vector<1x16x1xf32> to vector<16x1xf32>
      %127 = vector.broadcast %126 : vector<16x1xf32> to vector<16x52xf32>
      %128 = arith.mulf %124, %127 : vector<16x52xf32>
      %c1_123 = arith.constant 1 : index
      %c0_124 = arith.constant 0 : index
      %c0_125 = arith.constant 0 : index
      %129 = vector.load %arg12[%c1_123, %c0_124, %c0_125] : memref<2x16x1xf32, #tpu.memory_space<vmem>>, vector<1x16x1xf32>
      %130 = vector.shape_cast %129 : vector<1x16x1xf32> to vector<16x1xf32>
      %131 = vector.broadcast %130 : vector<16x1xf32> to vector<16x52xf32>
      %132 = arith.addf %128, %131 : vector<16x52xf32>
      %cst_126 = arith.constant 0.000000e+00 : f32
      %133 = vector.broadcast %cst_126 : f32 to vector<16x52xf32>
      %134 = arith.cmpf ogt, %132, %133 : vector<16x52xf32>
      %cst_127 = arith.constant 0.00999999977 : f32
      %135 = vector.broadcast %cst_127 : f32 to vector<16x52xf32>
      %136 = arith.mulf %135, %132 : vector<16x52xf32>
      %137 = arith.select %134, %132, %136 : vector<16x52xi1>, vector<16x52xf32>
      %138 = arith.maximumf %92, %137 : vector<16x52xf32>
      %c0_128 = arith.constant 0 : index
      %c0_129 = arith.constant 0 : index
      %c0_130 = arith.constant 0 : index
      %139 = vector.load %arg17[%c0_128, %c0_129, %c0_130] : memref<2x52x26xf32, #tpu.memory_space<vmem>>, vector<1x52x26xf32>
      %140 = vector.shape_cast %139 : vector<1x52x26xf32> to vector<52x26xf32>
      %cst_131 = arith.constant dense<0.000000e+00> : vector<16x26xf32>
      %141 = tpu.matmul %138, %140, %cst_131 {dimension_numbers = #tpu.dot_dimension_numbers<[1], [0], [0], [1], [0, 0, 1, 1], [], []>} : vector<16x52xf32>, vector<52x26xf32>, vector<16x26xf32> -> vector<16x26xf32>
      %c1_132 = arith.constant 1 : index
      %c0_133 = arith.constant 0 : index
      %c0_134 = arith.constant 0 : index
      %142 = vector.load %arg17[%c1_132, %c0_133, %c0_134] : memref<2x52x26xf32, #tpu.memory_space<vmem>>, vector<1x52x26xf32>
      %143 = vector.shape_cast %142 : vector<1x52x26xf32> to vector<52x26xf32>
      %cst_135 = arith.constant dense<0.000000e+00> : vector<16x26xf32>
      %144 = tpu.matmul %138, %143, %cst_135 {dimension_numbers = #tpu.dot_dimension_numbers<[1], [0], [0], [1], [0, 0, 1, 1], [], []>} : vector<16x52xf32>, vector<52x26xf32>, vector<16x26xf32> -> vector<16x26xf32>
      %145 = arith.maximumf %141, %144 : vector<16x26xf32>
      %c1_i32_136 = arith.constant 1 : i32
      %146 = arith.addi %arg32, %c1_i32_136 : i32
      %c16_i32_137 = arith.constant 16 : i32
      %147 = arith.muli %146, %c16_i32_137 : i32
      %148 = tpu.assume_multiple %147, 8 : i32
      %149 = arith.index_cast %148 : i32 to index
      %c1_138 = arith.constant 1 : index
      %150 = vector.load %arg28[%149, %c1_138] : memref<384x28xf32, #tpu.memory_space<vmem>>, vector<16x26xf32>
      tpu.vector_store %arg28[%149, %c1_138], %145 {strides = array<i32>} : memref<384x28xf32, #tpu.memory_space<vmem>>, vector<16x26xf32>,
    }
    %c22_i32_28 = arith.constant 22 : i32
    %c0_i32_29 = arith.constant 0 : i32
    %c10_i32 = arith.constant 10 : i32
    %18 = arith.addi %c0_i32_29, %c10_i32 : i32
    %c1_i32_30 = arith.constant 1 : i32
    scf.for %arg32 = %c0_i32_29 to %18 step %c1_i32_30  : i32 {
      %c2_i32_66 = arith.constant 2 : i32
      %49 = arith.muli %c2_i32_66, %arg32 : i32
      %c16_i32 = arith.constant 16 : i32
      %50 = arith.muli %49, %c16_i32 : i32
      %51 = tpu.assume_multiple %50, 8 : i32
      %52 = arith.index_cast %51 : i32 to index
      %c0_67 = arith.constant 0 : index
      %53 = vector.load %arg28[%52, %c0_67] : memref<384x28xf32, #tpu.memory_space<vmem>>, vector<80x28xf32>
      %cst_68 = arith.constant 0.000000e+00 : f32
      %54 = vector.broadcast %cst_68 : f32 to vector<32x24xf32>
      %c0_69 = arith.constant 0 : index
      %c0_70 = arith.constant 0 : index
      %c0_71 = arith.constant 0 : index
      %55 = vector.load %arg6[%c0_69, %c0_70, %c0_71] : memref<5x32x80xf32, #tpu.memory_space<vmem>>, vector<1x32x80xf32>
      %56 = vector.shape_cast %55 : vector<1x32x80xf32> to vector<32x80xf32>
      %57 = vector.extract_strided_slice %53 {offsets = [0, 0], sizes = [80, 24], strides = [1, 1]} : vector<80x28xf32> to vector<80x24xf32>
      %cst_72 = arith.constant dense<0.000000e+00> : vector<32x24xf32>
      %58 = tpu.matmul %56, %57, %cst_72 {dimension_numbers = #tpu.dot_dimension_numbers<[1], [0], [0], [1], [0, 0, 1, 1], [], []>} : vector<32x80xf32>, vector<80x24xf32>, vector<32x24xf32> -> vector<32x24xf32>
      %59 = arith.addf %54, %58 : vector<32x24xf32>
      %c1_73 = arith.constant 1 : index
      %c0_74 = arith.constant 0 : index
      %c0_75 = arith.constant 0 : index
      %60 = vector.load %arg6[%c1_73, %c0_74, %c0_75] : memref<5x32x80xf32, #tpu.memory_space<vmem>>, vector<1x32x80xf32>
      %61 = vector.shape_cast %60 : vector<1x32x80xf32> to vector<32x80xf32>
      %62 = vector.extract_strided_slice %53 {offsets = [0, 1], sizes = [80, 24], strides = [1, 1]} : vector<80x28xf32> to vector<80x24xf32>
      %cst_76 = arith.constant dense<0.000000e+00> : vector<32x24xf32>
      %63 = tpu.matmul %61, %62, %cst_76 {dimension_numbers = #tpu.dot_dimension_numbers<[1], [0], [0], [1], [0, 0, 1, 1], [], []>} : vector<32x80xf32>, vector<80x24xf32>, vector<32x24xf32> -> vector<32x24xf32>
      %64 = arith.addf %59, %63 : vector<32x24xf32>
      %c2_77 = arith.constant 2 : index
      %c0_78 = arith.constant 0 : index
      %c0_79 = arith.constant 0 : index
      %65 = vector.load %arg6[%c2_77, %c0_78, %c0_79] : memref<5x32x80xf32, #tpu.memory_space<vmem>>, vector<1x32x80xf32>
      %66 = vector.shape_cast %65 : vector<1x32x80xf32> to vector<32x80xf32>
      %67 = vector.extract_strided_slice %53 {offsets = [0, 2], sizes = [80, 24], strides = [1, 1]} : vector<80x28xf32> to vector<80x24xf32>
      %cst_80 = arith.constant dense<0.000000e+00> : vector<32x24xf32>
      %68 = tpu.matmul %66, %67, %cst_80 {dimension_numbers = #tpu.dot_dimension_numbers<[1], [0], [0], [1], [0, 0, 1, 1], [], []>} : vector<32x80xf32>, vector<80x24xf32>, vector<32x24xf32> -> vector<32x24xf32>
      %69 = arith.addf %64, %68 : vector<32x24xf32>
      %c3 = arith.constant 3 : index
      %c0_81 = arith.constant 0 : index
      %c0_82 = arith.constant 0 : index
      %70 = vector.load %arg6[%c3, %c0_81, %c0_82] : memref<5x32x80xf32, #tpu.memory_space<vmem>>, vector<1x32x80xf32>
      %71 = vector.shape_cast %70 : vector<1x32x80xf32> to vector<32x80xf32>
      %72 = vector.extract_strided_slice %53 {offsets = [0, 3], sizes = [80, 24], strides = [1, 1]} : vector<80x28xf32> to vector<80x24xf32>
      %cst_83 = arith.constant dense<0.000000e+00> : vector<32x24xf32>
      %73 = tpu.matmul %71, %72, %cst_83 {dimension_numbers = #tpu.dot_dimension_numbers<[1], [0], [0], [1], [0, 0, 1, 1], [], []>} : vector<32x80xf32>, vector<80x24xf32>, vector<32x24xf32> -> vector<32x24xf32>
      %74 = arith.addf %69, %73 : vector<32x24xf32>
      %c4 = arith.constant 4 : index
      %c0_84 = arith.constant 0 : index
      %c0_85 = arith.constant 0 : index
      %75 = vector.load %arg6[%c4, %c0_84, %c0_85] : memref<5x32x80xf32, #tpu.memory_space<vmem>>, vector<1x32x80xf32>
      %76 = vector.shape_cast %75 : vector<1x32x80xf32> to vector<32x80xf32>
      %77 = vector.extract_strided_slice %53 {offsets = [0, 4], sizes = [80, 24], strides = [1, 1]} : vector<80x28xf32> to vector<80x24xf32>
      %cst_86 = arith.constant dense<0.000000e+00> : vector<32x24xf32>
      %78 = tpu.matmul %76, %77, %cst_86 {dimension_numbers = #tpu.dot_dimension_numbers<[1], [0], [0], [1], [0, 0, 1, 1], [], []>} : vector<32x80xf32>, vector<80x24xf32>, vector<32x24xf32> -> vector<32x24xf32>
      %79 = arith.addf %74, %78 : vector<32x24xf32>
      %c0_87 = arith.constant 0 : index
      %c0_88 = arith.constant 0 : index
      %c0_89 = arith.constant 0 : index
      %80 = vector.load %arg13[%c0_87, %c0_88, %c0_89] : memref<2x32x1xf32, #tpu.memory_space<vmem>>, vector<1x32x1xf32>
      %81 = vector.shape_cast %80 : vector<1x32x1xf32> to vector<32x1xf32>
      %82 = vector.broadcast %81 : vector<32x1xf32> to vector<32x24xf32>
      %83 = arith.mulf %79, %82 : vector<32x24xf32>
      %c1_90 = arith.constant 1 : index
      %c0_91 = arith.constant 0 : index
      %c0_92 = arith.constant 0 : index
      %84 = vector.load %arg13[%c1_90, %c0_91, %c0_92] : memref<2x32x1xf32, #tpu.memory_space<vmem>>, vector<1x32x1xf32>
      %85 = vector.shape_cast %84 : vector<1x32x1xf32> to vector<32x1xf32>
      %86 = vector.broadcast %85 : vector<32x1xf32> to vector<32x24xf32>
      %87 = arith.addf %83, %86 : vector<32x24xf32>
      %cst_93 = arith.constant 0.000000e+00 : f32
      %88 = vector.broadcast %cst_93 : f32 to vector<32x24xf32>
      %89 = arith.cmpf ogt, %87, %88 : vector<32x24xf32>
      %cst_94 = arith.constant 0.00999999977 : f32
      %90 = vector.broadcast %cst_94 : f32 to vector<32x24xf32>
      %91 = arith.mulf %90, %87 : vector<32x24xf32>
      %92 = arith.select %89, %87, %91 : vector<32x24xi1>, vector<32x24xf32>
      %c2_i32_95 = arith.constant 2 : i32
      %93 = arith.muli %c2_i32_95, %arg32 : i32
      %c1_i32_96 = arith.constant 1 : i32
      %94 = arith.addi %93, %c1_i32_96 : i32
      %c16_i32_97 = arith.constant 16 : i32
      %95 = arith.muli %94, %c16_i32_97 : i32
      %96 = tpu.assume_multiple %95, 8 : i32
      %97 = arith.index_cast %96 : i32 to index
      %c0_98 = arith.constant 0 : index
      %98 = vector.load %arg28[%97, %c0_98] : memref<384x28xf32, #tpu.memory_space<vmem>>, vector<80x28xf32>
      %cst_99 = arith.constant 0.000000e+00 : f32
      %99 = vector.broadcast %cst_99 : f32 to vector<32x24xf32>
      %c0_100 = arith.constant 0 : index
      %c0_101 = arith.constant 0 : index
      %c0_102 = arith.constant 0 : index
      %100 = vector.load %arg6[%c0_100, %c0_101, %c0_102] : memref<5x32x80xf32, #tpu.memory_space<vmem>>, vector<1x32x80xf32>
      %101 = vector.shape_cast %100 : vector<1x32x80xf32> to vector<32x80xf32>
      %102 = vector.extract_strided_slice %98 {offsets = [0, 0], sizes = [80, 24], strides = [1, 1]} : vector<80x28xf32> to vector<80x24xf32>
      %cst_103 = arith.constant dense<0.000000e+00> : vector<32x24xf32>
      %103 = tpu.matmul %101, %102, %cst_103 {dimension_numbers = #tpu.dot_dimension_numbers<[1], [0], [0], [1], [0, 0, 1, 1], [], []>} : vector<32x80xf32>, vector<80x24xf32>, vector<32x24xf32> -> vector<32x24xf32>
      %104 = arith.addf %99, %103 : vector<32x24xf32>
      %c1_104 = arith.constant 1 : index
      %c0_105 = arith.constant 0 : index
      %c0_106 = arith.constant 0 : index
      %105 = vector.load %arg6[%c1_104, %c0_105, %c0_106] : memref<5x32x80xf32, #tpu.memory_space<vmem>>, vector<1x32x80xf32>
      %106 = vector.shape_cast %105 : vector<1x32x80xf32> to vector<32x80xf32>
      %107 = vector.extract_strided_slice %98 {offsets = [0, 1], sizes = [80, 24], strides = [1, 1]} : vector<80x28xf32> to vector<80x24xf32>
      %cst_107 = arith.constant dense<0.000000e+00> : vector<32x24xf32>
      %108 = tpu.matmul %106, %107, %cst_107 {dimension_numbers = #tpu.dot_dimension_numbers<[1], [0], [0], [1], [0, 0, 1, 1], [], []>} : vector<32x80xf32>, vector<80x24xf32>, vector<32x24xf32> -> vector<32x24xf32>
      %109 = arith.addf %104, %108 : vector<32x24xf32>
      %c2_108 = arith.constant 2 : index
      %c0_109 = arith.constant 0 : index
      %c0_110 = arith.constant 0 : index
      %110 = vector.load %arg6[%c2_108, %c0_109, %c0_110] : memref<5x32x80xf32, #tpu.memory_space<vmem>>, vector<1x32x80xf32>
      %111 = vector.shape_cast %110 : vector<1x32x80xf32> to vector<32x80xf32>
      %112 = vector.extract_strided_slice %98 {offsets = [0, 2], sizes = [80, 24], strides = [1, 1]} : vector<80x28xf32> to vector<80x24xf32>
      %cst_111 = arith.constant dense<0.000000e+00> : vector<32x24xf32>
      %113 = tpu.matmul %111, %112, %cst_111 {dimension_numbers = #tpu.dot_dimension_numbers<[1], [0], [0], [1], [0, 0, 1, 1], [], []>} : vector<32x80xf32>, vector<80x24xf32>, vector<32x24xf32> -> vector<32x24xf32>
      %114 = arith.addf %109, %113 : vector<32x24xf32>
      %c3_112 = arith.constant 3 : index
      %c0_113 = arith.constant 0 : index
      %c0_114 = arith.constant 0 : index
      %115 = vector.load %arg6[%c3_112, %c0_113, %c0_114] : memref<5x32x80xf32, #tpu.memory_space<vmem>>, vector<1x32x80xf32>
      %116 = vector.shape_cast %115 : vector<1x32x80xf32> to vector<32x80xf32>
      %117 = vector.extract_strided_slice %98 {offsets = [0, 3], sizes = [80, 24], strides = [1, 1]} : vector<80x28xf32> to vector<80x24xf32>
      %cst_115 = arith.constant dense<0.000000e+00> : vector<32x24xf32>
      %118 = tpu.matmul %116, %117, %cst_115 {dimension_numbers = #tpu.dot_dimension_numbers<[1], [0], [0], [1], [0, 0, 1, 1], [], []>} : vector<32x80xf32>, vector<80x24xf32>, vector<32x24xf32> -> vector<32x24xf32>
      %119 = arith.addf %114, %118 : vector<32x24xf32>
      %c4_116 = arith.constant 4 : index
      %c0_117 = arith.constant 0 : index
      %c0_118 = arith.constant 0 : index
      %120 = vector.load %arg6[%c4_116, %c0_117, %c0_118] : memref<5x32x80xf32, #tpu.memory_space<vmem>>, vector<1x32x80xf32>
      %121 = vector.shape_cast %120 : vector<1x32x80xf32> to vector<32x80xf32>
      %122 = vector.extract_strided_slice %98 {offsets = [0, 4], sizes = [80, 24], strides = [1, 1]} : vector<80x28xf32> to vector<80x24xf32>
      %cst_119 = arith.constant dense<0.000000e+00> : vector<32x24xf32>
      %123 = tpu.matmul %121, %122, %cst_119 {dimension_numbers = #tpu.dot_dimension_numbers<[1], [0], [0], [1], [0, 0, 1, 1], [], []>} : vector<32x80xf32>, vector<80x24xf32>, vector<32x24xf32> -> vector<32x24xf32>
      %124 = arith.addf %119, %123 : vector<32x24xf32>
      %c0_120 = arith.constant 0 : index
      %c0_121 = arith.constant 0 : index
      %c0_122 = arith.constant 0 : index
      %125 = vector.load %arg13[%c0_120, %c0_121, %c0_122] : memref<2x32x1xf32, #tpu.memory_space<vmem>>, vector<1x32x1xf32>
      %126 = vector.shape_cast %125 : vector<1x32x1xf32> to vector<32x1xf32>
      %127 = vector.broadcast %126 : vector<32x1xf32> to vector<32x24xf32>
      %128 = arith.mulf %124, %127 : vector<32x24xf32>
      %c1_123 = arith.constant 1 : index
      %c0_124 = arith.constant 0 : index
      %c0_125 = arith.constant 0 : index
      %129 = vector.load %arg13[%c1_123, %c0_124, %c0_125] : memref<2x32x1xf32, #tpu.memory_space<vmem>>, vector<1x32x1xf32>
      %130 = vector.shape_cast %129 : vector<1x32x1xf32> to vector<32x1xf32>
      %131 = vector.broadcast %130 : vector<32x1xf32> to vector<32x24xf32>
      %132 = arith.addf %128, %131 : vector<32x24xf32>
      %cst_126 = arith.constant 0.000000e+00 : f32
      %133 = vector.broadcast %cst_126 : f32 to vector<32x24xf32>
      %134 = arith.cmpf ogt, %132, %133 : vector<32x24xf32>
      %cst_127 = arith.constant 0.00999999977 : f32
      %135 = vector.broadcast %cst_127 : f32 to vector<32x24xf32>
      %136 = arith.mulf %135, %132 : vector<32x24xf32>
      %137 = arith.select %134, %132, %136 : vector<32x24xi1>, vector<32x24xf32>
      %138 = arith.maximumf %92, %137 : vector<32x24xf32>
      %c0_128 = arith.constant 0 : index
      %c0_129 = arith.constant 0 : index
      %c0_130 = arith.constant 0 : index
      %139 = vector.load %arg18[%c0_128, %c0_129, %c0_130] : memref<2x24x12xf32, #tpu.memory_space<vmem>>, vector<1x24x12xf32>
      %140 = vector.shape_cast %139 : vector<1x24x12xf32> to vector<24x12xf32>
      %cst_131 = arith.constant dense<0.000000e+00> : vector<32x12xf32>
      %141 = tpu.matmul %138, %140, %cst_131 {dimension_numbers = #tpu.dot_dimension_numbers<[1], [0], [0], [1], [0, 0, 1, 1], [], []>} : vector<32x24xf32>, vector<24x12xf32>, vector<32x12xf32> -> vector<32x12xf32>
      %c1_132 = arith.constant 1 : index
      %c0_133 = arith.constant 0 : index
      %c0_134 = arith.constant 0 : index
      %142 = vector.load %arg18[%c1_132, %c0_133, %c0_134] : memref<2x24x12xf32, #tpu.memory_space<vmem>>, vector<1x24x12xf32>
      %143 = vector.shape_cast %142 : vector<1x24x12xf32> to vector<24x12xf32>
      %cst_135 = arith.constant dense<0.000000e+00> : vector<32x12xf32>
      %144 = tpu.matmul %138, %143, %cst_135 {dimension_numbers = #tpu.dot_dimension_numbers<[1], [0], [0], [1], [0, 0, 1, 1], [], []>} : vector<32x24xf32>, vector<24x12xf32>, vector<32x12xf32> -> vector<32x12xf32>
      %145 = arith.maximumf %141, %144 : vector<32x12xf32>
      %c1_i32_136 = arith.constant 1 : i32
      %146 = arith.addi %arg32, %c1_i32_136 : i32
      %c32_i32 = arith.constant 32 : i32
      %147 = arith.muli %146, %c32_i32 : i32
      %148 = tpu.assume_multiple %147, 8 : i32
      %149 = arith.index_cast %148 : i32 to index
      %c1_137 = arith.constant 1 : index
      %150 = vector.load %arg29[%149, %c1_137] : memref<384x14xf32, #tpu.memory_space<vmem>>, vector<32x12xf32>
      tpu.vector_store %arg29[%149, %c1_137], %145 {strides = array<i32>} : memref<384x14xf32, #tpu.memory_space<vmem>>, vector<32x12xf32>,
    }
    %c10_i32_31 = arith.constant 10 : i32
    %c0_i32_32 = arith.constant 0 : i32
    %c4_i32 = arith.constant 4 : i32
    %19 = arith.addi %c0_i32_32, %c4_i32 : i32
    %c1_i32_33 = arith.constant 1 : i32
    scf.for %arg32 = %c0_i32_32 to %19 step %c1_i32_33  : i32 {
      %c2_i32_66 = arith.constant 2 : i32
      %49 = arith.muli %c2_i32_66, %arg32 : i32
      %c32_i32 = arith.constant 32 : i32
      %50 = arith.muli %49, %c32_i32 : i32
      %51 = tpu.assume_multiple %50, 8 : i32
      %52 = arith.index_cast %51 : i32 to index
      %c0_67 = arith.constant 0 : index
      %53 = vector.load %arg29[%52, %c0_67] : memref<384x14xf32, #tpu.memory_space<vmem>>, vector<160x14xf32>
      %cst_68 = arith.constant 0.000000e+00 : f32
      %54 = vector.broadcast %cst_68 : f32 to vector<32x10xf32>
      %c0_69 = arith.constant 0 : index
      %c0_70 = arith.constant 0 : index
      %c0_71 = arith.constant 0 : index
      %55 = vector.load %arg7[%c0_69, %c0_70, %c0_71] : memref<5x32x160xf32, #tpu.memory_space<vmem>>, vector<1x32x160xf32>
      %56 = vector.shape_cast %55 : vector<1x32x160xf32> to vector<32x160xf32>
      %57 = vector.extract_strided_slice %53 {offsets = [0, 0], sizes = [160, 10], strides = [1, 1]} : vector<160x14xf32> to vector<160x10xf32>
      %cst_72 = arith.constant dense<0.000000e+00> : vector<32x10xf32>
      %58 = tpu.matmul %56, %57, %cst_72 {dimension_numbers = #tpu.dot_dimension_numbers<[1], [0], [0], [1], [0, 0, 1, 1], [], []>} : vector<32x160xf32>, vector<160x10xf32>, vector<32x10xf32> -> vector<32x10xf32>
      %59 = arith.addf %54, %58 : vector<32x10xf32>
      %c1_73 = arith.constant 1 : index
      %c0_74 = arith.constant 0 : index
      %c0_75 = arith.constant 0 : index
      %60 = vector.load %arg7[%c1_73, %c0_74, %c0_75] : memref<5x32x160xf32, #tpu.memory_space<vmem>>, vector<1x32x160xf32>
      %61 = vector.shape_cast %60 : vector<1x32x160xf32> to vector<32x160xf32>
      %62 = vector.extract_strided_slice %53 {offsets = [0, 1], sizes = [160, 10], strides = [1, 1]} : vector<160x14xf32> to vector<160x10xf32>
      %cst_76 = arith.constant dense<0.000000e+00> : vector<32x10xf32>
      %63 = tpu.matmul %61, %62, %cst_76 {dimension_numbers = #tpu.dot_dimension_numbers<[1], [0], [0], [1], [0, 0, 1, 1], [], []>} : vector<32x160xf32>, vector<160x10xf32>, vector<32x10xf32> -> vector<32x10xf32>
      %64 = arith.addf %59, %63 : vector<32x10xf32>
      %c2_77 = arith.constant 2 : index
      %c0_78 = arith.constant 0 : index
      %c0_79 = arith.constant 0 : index
      %65 = vector.load %arg7[%c2_77, %c0_78, %c0_79] : memref<5x32x160xf32, #tpu.memory_space<vmem>>, vector<1x32x160xf32>
      %66 = vector.shape_cast %65 : vector<1x32x160xf32> to vector<32x160xf32>
      %67 = vector.extract_strided_slice %53 {offsets = [0, 2], sizes = [160, 10], strides = [1, 1]} : vector<160x14xf32> to vector<160x10xf32>
      %cst_80 = arith.constant dense<0.000000e+00> : vector<32x10xf32>
      %68 = tpu.matmul %66, %67, %cst_80 {dimension_numbers = #tpu.dot_dimension_numbers<[1], [0], [0], [1], [0, 0, 1, 1], [], []>} : vector<32x160xf32>, vector<160x10xf32>, vector<32x10xf32> -> vector<32x10xf32>
      %69 = arith.addf %64, %68 : vector<32x10xf32>
      %c3 = arith.constant 3 : index
      %c0_81 = arith.constant 0 : index
      %c0_82 = arith.constant 0 : index
      %70 = vector.load %arg7[%c3, %c0_81, %c0_82] : memref<5x32x160xf32, #tpu.memory_space<vmem>>, vector<1x32x160xf32>
      %71 = vector.shape_cast %70 : vector<1x32x160xf32> to vector<32x160xf32>
      %72 = vector.extract_strided_slice %53 {offsets = [0, 3], sizes = [160, 10], strides = [1, 1]} : vector<160x14xf32> to vector<160x10xf32>
      %cst_83 = arith.constant dense<0.000000e+00> : vector<32x10xf32>
      %73 = tpu.matmul %71, %72, %cst_83 {dimension_numbers = #tpu.dot_dimension_numbers<[1], [0], [0], [1], [0, 0, 1, 1], [], []>} : vector<32x160xf32>, vector<160x10xf32>, vector<32x10xf32> -> vector<32x10xf32>
      %74 = arith.addf %69, %73 : vector<32x10xf32>
      %c4 = arith.constant 4 : index
      %c0_84 = arith.constant 0 : index
      %c0_85 = arith.constant 0 : index
      %75 = vector.load %arg7[%c4, %c0_84, %c0_85] : memref<5x32x160xf32, #tpu.memory_space<vmem>>, vector<1x32x160xf32>
      %76 = vector.shape_cast %75 : vector<1x32x160xf32> to vector<32x160xf32>
      %77 = vector.extract_strided_slice %53 {offsets = [0, 4], sizes = [160, 10], strides = [1, 1]} : vector<160x14xf32> to vector<160x10xf32>
      %cst_86 = arith.constant dense<0.000000e+00> : vector<32x10xf32>
      %78 = tpu.matmul %76, %77, %cst_86 {dimension_numbers = #tpu.dot_dimension_numbers<[1], [0], [0], [1], [0, 0, 1, 1], [], []>} : vector<32x160xf32>, vector<160x10xf32>, vector<32x10xf32> -> vector<32x10xf32>
      %79 = arith.addf %74, %78 : vector<32x10xf32>
      %c0_87 = arith.constant 0 : index
      %c0_88 = arith.constant 0 : index
      %c0_89 = arith.constant 0 : index
      %80 = vector.load %arg14[%c0_87, %c0_88, %c0_89] : memref<2x32x1xf32, #tpu.memory_space<vmem>>, vector<1x32x1xf32>
      %81 = vector.shape_cast %80 : vector<1x32x1xf32> to vector<32x1xf32>
      %82 = vector.broadcast %81 : vector<32x1xf32> to vector<32x10xf32>
      %83 = arith.mulf %79, %82 : vector<32x10xf32>
      %c1_90 = arith.constant 1 : index
      %c0_91 = arith.constant 0 : index
      %c0_92 = arith.constant 0 : index
      %84 = vector.load %arg14[%c1_90, %c0_91, %c0_92] : memref<2x32x1xf32, #tpu.memory_space<vmem>>, vector<1x32x1xf32>
      %85 = vector.shape_cast %84 : vector<1x32x1xf32> to vector<32x1xf32>
      %86 = vector.broadcast %85 : vector<32x1xf32> to vector<32x10xf32>
      %87 = arith.addf %83, %86 : vector<32x10xf32>
      %cst_93 = arith.constant 0.000000e+00 : f32
      %88 = vector.broadcast %cst_93 : f32 to vector<32x10xf32>
      %89 = arith.cmpf ogt, %87, %88 : vector<32x10xf32>
      %cst_94 = arith.constant 0.00999999977 : f32
      %90 = vector.broadcast %cst_94 : f32 to vector<32x10xf32>
      %91 = arith.mulf %90, %87 : vector<32x10xf32>
      %92 = arith.select %89, %87, %91 : vector<32x10xi1>, vector<32x10xf32>
      %c2_i32_95 = arith.constant 2 : i32
      %93 = arith.muli %c2_i32_95, %arg32 : i32
      %c1_i32_96 = arith.constant 1 : i32
      %94 = arith.addi %93, %c1_i32_96 : i32
      %c32_i32_97 = arith.constant 32 : i32
      %95 = arith.muli %94, %c32_i32_97 : i32
      %96 = tpu.assume_multiple %95, 8 : i32
      %97 = arith.index_cast %96 : i32 to index
      %c0_98 = arith.constant 0 : index
      %98 = vector.load %arg29[%97, %c0_98] : memref<384x14xf32, #tpu.memory_space<vmem>>, vector<160x14xf32>
      %cst_99 = arith.constant 0.000000e+00 : f32
      %99 = vector.broadcast %cst_99 : f32 to vector<32x10xf32>
      %c0_100 = arith.constant 0 : index
      %c0_101 = arith.constant 0 : index
      %c0_102 = arith.constant 0 : index
      %100 = vector.load %arg7[%c0_100, %c0_101, %c0_102] : memref<5x32x160xf32, #tpu.memory_space<vmem>>, vector<1x32x160xf32>
      %101 = vector.shape_cast %100 : vector<1x32x160xf32> to vector<32x160xf32>
      %102 = vector.extract_strided_slice %98 {offsets = [0, 0], sizes = [160, 10], strides = [1, 1]} : vector<160x14xf32> to vector<160x10xf32>
      %cst_103 = arith.constant dense<0.000000e+00> : vector<32x10xf32>
      %103 = tpu.matmul %101, %102, %cst_103 {dimension_numbers = #tpu.dot_dimension_numbers<[1], [0], [0], [1], [0, 0, 1, 1], [], []>} : vector<32x160xf32>, vector<160x10xf32>, vector<32x10xf32> -> vector<32x10xf32>
      %104 = arith.addf %99, %103 : vector<32x10xf32>
      %c1_104 = arith.constant 1 : index
      %c0_105 = arith.constant 0 : index
      %c0_106 = arith.constant 0 : index
      %105 = vector.load %arg7[%c1_104, %c0_105, %c0_106] : memref<5x32x160xf32, #tpu.memory_space<vmem>>, vector<1x32x160xf32>
      %106 = vector.shape_cast %105 : vector<1x32x160xf32> to vector<32x160xf32>
      %107 = vector.extract_strided_slice %98 {offsets = [0, 1], sizes = [160, 10], strides = [1, 1]} : vector<160x14xf32> to vector<160x10xf32>
      %cst_107 = arith.constant dense<0.000000e+00> : vector<32x10xf32>
      %108 = tpu.matmul %106, %107, %cst_107 {dimension_numbers = #tpu.dot_dimension_numbers<[1], [0], [0], [1], [0, 0, 1, 1], [], []>} : vector<32x160xf32>, vector<160x10xf32>, vector<32x10xf32> -> vector<32x10xf32>
      %109 = arith.addf %104, %108 : vector<32x10xf32>
      %c2_108 = arith.constant 2 : index
      %c0_109 = arith.constant 0 : index
      %c0_110 = arith.constant 0 : index
      %110 = vector.load %arg7[%c2_108, %c0_109, %c0_110] : memref<5x32x160xf32, #tpu.memory_space<vmem>>, vector<1x32x160xf32>
      %111 = vector.shape_cast %110 : vector<1x32x160xf32> to vector<32x160xf32>
      %112 = vector.extract_strided_slice %98 {offsets = [0, 2], sizes = [160, 10], strides = [1, 1]} : vector<160x14xf32> to vector<160x10xf32>
      %cst_111 = arith.constant dense<0.000000e+00> : vector<32x10xf32>
      %113 = tpu.matmul %111, %112, %cst_111 {dimension_numbers = #tpu.dot_dimension_numbers<[1], [0], [0], [1], [0, 0, 1, 1], [], []>} : vector<32x160xf32>, vector<160x10xf32>, vector<32x10xf32> -> vector<32x10xf32>
      %114 = arith.addf %109, %113 : vector<32x10xf32>
      %c3_112 = arith.constant 3 : index
      %c0_113 = arith.constant 0 : index
      %c0_114 = arith.constant 0 : index
      %115 = vector.load %arg7[%c3_112, %c0_113, %c0_114] : memref<5x32x160xf32, #tpu.memory_space<vmem>>, vector<1x32x160xf32>
      %116 = vector.shape_cast %115 : vector<1x32x160xf32> to vector<32x160xf32>
      %117 = vector.extract_strided_slice %98 {offsets = [0, 3], sizes = [160, 10], strides = [1, 1]} : vector<160x14xf32> to vector<160x10xf32>
      %cst_115 = arith.constant dense<0.000000e+00> : vector<32x10xf32>
      %118 = tpu.matmul %116, %117, %cst_115 {dimension_numbers = #tpu.dot_dimension_numbers<[1], [0], [0], [1], [0, 0, 1, 1], [], []>} : vector<32x160xf32>, vector<160x10xf32>, vector<32x10xf32> -> vector<32x10xf32>
      %119 = arith.addf %114, %118 : vector<32x10xf32>
      %c4_116 = arith.constant 4 : index
      %c0_117 = arith.constant 0 : index
      %c0_118 = arith.constant 0 : index
      %120 = vector.load %arg7[%c4_116, %c0_117, %c0_118] : memref<5x32x160xf32, #tpu.memory_space<vmem>>, vector<1x32x160xf32>
      %121 = vector.shape_cast %120 : vector<1x32x160xf32> to vector<32x160xf32>
      %122 = vector.extract_strided_slice %98 {offsets = [0, 4], sizes = [160, 10], strides = [1, 1]} : vector<160x14xf32> to vector<160x10xf32>
      %cst_119 = arith.constant dense<0.000000e+00> : vector<32x10xf32>
      %123 = tpu.matmul %121, %122, %cst_119 {dimension_numbers = #tpu.dot_dimension_numbers<[1], [0], [0], [1], [0, 0, 1, 1], [], []>} : vector<32x160xf32>, vector<160x10xf32>, vector<32x10xf32> -> vector<32x10xf32>
      %124 = arith.addf %119, %123 : vector<32x10xf32>
      %c0_120 = arith.constant 0 : index
      %c0_121 = arith.constant 0 : index
      %c0_122 = arith.constant 0 : index
      %125 = vector.load %arg14[%c0_120, %c0_121, %c0_122] : memref<2x32x1xf32, #tpu.memory_space<vmem>>, vector<1x32x1xf32>
      %126 = vector.shape_cast %125 : vector<1x32x1xf32> to vector<32x1xf32>
      %127 = vector.broadcast %126 : vector<32x1xf32> to vector<32x10xf32>
      %128 = arith.mulf %124, %127 : vector<32x10xf32>
      %c1_123 = arith.constant 1 : index
      %c0_124 = arith.constant 0 : index
      %c0_125 = arith.constant 0 : index
      %129 = vector.load %arg14[%c1_123, %c0_124, %c0_125] : memref<2x32x1xf32, #tpu.memory_space<vmem>>, vector<1x32x1xf32>
      %130 = vector.shape_cast %129 : vector<1x32x1xf32> to vector<32x1xf32>
      %131 = vector.broadcast %130 : vector<32x1xf32> to vector<32x10xf32>
      %132 = arith.addf %128, %131 : vector<32x10xf32>
      %cst_126 = arith.constant 0.000000e+00 : f32
      %133 = vector.broadcast %cst_126 : f32 to vector<32x10xf32>
      %134 = arith.cmpf ogt, %132, %133 : vector<32x10xf32>
      %cst_127 = arith.constant 0.00999999977 : f32
      %135 = vector.broadcast %cst_127 : f32 to vector<32x10xf32>
      %136 = arith.mulf %135, %132 : vector<32x10xf32>
      %137 = arith.select %134, %132, %136 : vector<32x10xi1>, vector<32x10xf32>
      %138 = arith.maximumf %92, %137 : vector<32x10xf32>
      %c0_128 = arith.constant 0 : index
      %c0_129 = arith.constant 0 : index
      %c0_130 = arith.constant 0 : index
      %139 = vector.load %arg19[%c0_128, %c0_129, %c0_130] : memref<2x10x5xf32, #tpu.memory_space<vmem>>, vector<1x10x5xf32>
      %140 = vector.shape_cast %139 : vector<1x10x5xf32> to vector<10x5xf32>
      %cst_131 = arith.constant dense<0.000000e+00> : vector<32x5xf32>
      %141 = tpu.matmul %138, %140, %cst_131 {dimension_numbers = #tpu.dot_dimension_numbers<[1], [0], [0], [1], [0, 0, 1, 1], [], []>} : vector<32x10xf32>, vector<10x5xf32>, vector<32x5xf32> -> vector<32x5xf32>
      %c1_132 = arith.constant 1 : index
      %c0_133 = arith.constant 0 : index
      %c0_134 = arith.constant 0 : index
      %142 = vector.load %arg19[%c1_132, %c0_133, %c0_134] : memref<2x10x5xf32, #tpu.memory_space<vmem>>, vector<1x10x5xf32>
      %143 = vector.shape_cast %142 : vector<1x10x5xf32> to vector<10x5xf32>
      %cst_135 = arith.constant dense<0.000000e+00> : vector<32x5xf32>
      %144 = tpu.matmul %138, %143, %cst_135 {dimension_numbers = #tpu.dot_dimension_numbers<[1], [0], [0], [1], [0, 0, 1, 1], [], []>} : vector<32x10xf32>, vector<10x5xf32>, vector<32x5xf32> -> vector<32x5xf32>
      %145 = arith.maximumf %141, %144 : vector<32x5xf32>
      %c1_i32_136 = arith.constant 1 : i32
      %146 = arith.addi %arg32, %c1_i32_136 : i32
      %c32_i32_137 = arith.constant 32 : i32
      %147 = arith.muli %146, %c32_i32_137 : i32
      %148 = tpu.assume_multiple %147, 8 : i32
      %149 = arith.index_cast %148 : i32 to index
      %c1_138 = arith.constant 1 : index
      %150 = vector.load %arg30[%149, %c1_138] : memref<192x7xf32, #tpu.memory_space<vmem>>, vector<32x5xf32>
      tpu.vector_store %arg30[%149, %c1_138], %145 {strides = array<i32>} : memref<192x7xf32, #tpu.memory_space<vmem>>, vector<32x5xf32>,
    }
    %c4_i32_34 = arith.constant 4 : i32
    %c0_i32_35 = arith.constant 0 : i32
    %c2_i32 = arith.constant 2 : i32
    %20 = arith.addi %c0_i32_35, %c2_i32 : i32
    %c1_i32_36 = arith.constant 1 : i32
    scf.for %arg32 = %c0_i32_35 to %20 step %c1_i32_36  : i32 {
      %c0_i32_66 = arith.constant 0 : i32
      %49 = arith.addi %arg32, %c0_i32_66 : i32
      %c32_i32 = arith.constant 32 : i32
      %50 = arith.muli %49, %c32_i32 : i32
      %51 = tpu.assume_multiple %50, 8 : i32
      %c32_i32_67 = arith.constant 32 : i32
      %52 = arith.muli %arg32, %c32_i32_67 : i32
      %53 = tpu.assume_multiple %52, 8 : i32
      %54 = arith.index_cast %53 : i32 to index
      %c0_68 = arith.constant 0 : index
      %55 = vector.load %arg30[%54, %c0_68] : memref<192x7xf32, #tpu.memory_space<vmem>>, vector<160x7xf32>
      %cst_69 = arith.constant 0.000000e+00 : f32
      %56 = vector.broadcast %cst_69 : f32 to vector<32x3xf32>
      %c0_70 = arith.constant 0 : index
      %c0_71 = arith.constant 0 : index
      %c0_72 = arith.constant 0 : index
      %57 = vector.load %arg8[%c0_70, %c0_71, %c0_72] : memref<5x32x160xf32, #tpu.memory_space<vmem>>, vector<1x32x160xf32>
      %58 = vector.shape_cast %57 : vector<1x32x160xf32> to vector<32x160xf32>
      %59 = vector.extract_strided_slice %55 {offsets = [0, 0], sizes = [160, 3], strides = [1, 1]} : vector<160x7xf32> to vector<160x3xf32>
      %cst_73 = arith.constant dense<0.000000e+00> : vector<32x3xf32>
      %60 = tpu.matmul %58, %59, %cst_73 {dimension_numbers = #tpu.dot_dimension_numbers<[1], [0], [0], [1], [0, 0, 1, 1], [], []>} : vector<32x160xf32>, vector<160x3xf32>, vector<32x3xf32> -> vector<32x3xf32>
      %61 = arith.addf %56, %60 : vector<32x3xf32>
      %c1_74 = arith.constant 1 : index
      %c0_75 = arith.constant 0 : index
      %c0_76 = arith.constant 0 : index
      %62 = vector.load %arg8[%c1_74, %c0_75, %c0_76] : memref<5x32x160xf32, #tpu.memory_space<vmem>>, vector<1x32x160xf32>
      %63 = vector.shape_cast %62 : vector<1x32x160xf32> to vector<32x160xf32>
      %64 = vector.extract_strided_slice %55 {offsets = [0, 1], sizes = [160, 3], strides = [1, 1]} : vector<160x7xf32> to vector<160x3xf32>
      %cst_77 = arith.constant dense<0.000000e+00> : vector<32x3xf32>
      %65 = tpu.matmul %63, %64, %cst_77 {dimension_numbers = #tpu.dot_dimension_numbers<[1], [0], [0], [1], [0, 0, 1, 1], [], []>} : vector<32x160xf32>, vector<160x3xf32>, vector<32x3xf32> -> vector<32x3xf32>
      %66 = arith.addf %61, %65 : vector<32x3xf32>
      %c2_78 = arith.constant 2 : index
      %c0_79 = arith.constant 0 : index
      %c0_80 = arith.constant 0 : index
      %67 = vector.load %arg8[%c2_78, %c0_79, %c0_80] : memref<5x32x160xf32, #tpu.memory_space<vmem>>, vector<1x32x160xf32>
      %68 = vector.shape_cast %67 : vector<1x32x160xf32> to vector<32x160xf32>
      %69 = vector.extract_strided_slice %55 {offsets = [0, 2], sizes = [160, 3], strides = [1, 1]} : vector<160x7xf32> to vector<160x3xf32>
      %cst_81 = arith.constant dense<0.000000e+00> : vector<32x3xf32>
      %70 = tpu.matmul %68, %69, %cst_81 {dimension_numbers = #tpu.dot_dimension_numbers<[1], [0], [0], [1], [0, 0, 1, 1], [], []>} : vector<32x160xf32>, vector<160x3xf32>, vector<32x3xf32> -> vector<32x3xf32>
      %71 = arith.addf %66, %70 : vector<32x3xf32>
      %c3 = arith.constant 3 : index
      %c0_82 = arith.constant 0 : index
      %c0_83 = arith.constant 0 : index
      %72 = vector.load %arg8[%c3, %c0_82, %c0_83] : memref<5x32x160xf32, #tpu.memory_space<vmem>>, vector<1x32x160xf32>
      %73 = vector.shape_cast %72 : vector<1x32x160xf32> to vector<32x160xf32>
      %74 = vector.extract_strided_slice %55 {offsets = [0, 3], sizes = [160, 3], strides = [1, 1]} : vector<160x7xf32> to vector<160x3xf32>
      %cst_84 = arith.constant dense<0.000000e+00> : vector<32x3xf32>
      %75 = tpu.matmul %73, %74, %cst_84 {dimension_numbers = #tpu.dot_dimension_numbers<[1], [0], [0], [1], [0, 0, 1, 1], [], []>} : vector<32x160xf32>, vector<160x3xf32>, vector<32x3xf32> -> vector<32x3xf32>
      %76 = arith.addf %71, %75 : vector<32x3xf32>
      %c4 = arith.constant 4 : index
      %c0_85 = arith.constant 0 : index
      %c0_86 = arith.constant 0 : index
      %77 = vector.load %arg8[%c4, %c0_85, %c0_86] : memref<5x32x160xf32, #tpu.memory_space<vmem>>, vector<1x32x160xf32>
      %78 = vector.shape_cast %77 : vector<1x32x160xf32> to vector<32x160xf32>
      %79 = vector.extract_strided_slice %55 {offsets = [0, 4], sizes = [160, 3], strides = [1, 1]} : vector<160x7xf32> to vector<160x3xf32>
      %cst_87 = arith.constant dense<0.000000e+00> : vector<32x3xf32>
      %80 = tpu.matmul %78, %79, %cst_87 {dimension_numbers = #tpu.dot_dimension_numbers<[1], [0], [0], [1], [0, 0, 1, 1], [], []>} : vector<32x160xf32>, vector<160x3xf32>, vector<32x3xf32> -> vector<32x3xf32>
      %81 = arith.addf %76, %80 : vector<32x3xf32>
      %c0_88 = arith.constant 0 : index
      %c0_89 = arith.constant 0 : index
      %c0_90 = arith.constant 0 : index
      %82 = vector.load %arg15[%c0_88, %c0_89, %c0_90] : memref<2x32x1xf32, #tpu.memory_space<vmem>>, vector<1x32x1xf32>
      %83 = vector.shape_cast %82 : vector<1x32x1xf32> to vector<32x1xf32>
      %84 = vector.broadcast %83 : vector<32x1xf32> to vector<32x3xf32>
      %85 = arith.mulf %81, %84 : vector<32x3xf32>
      %c1_91 = arith.constant 1 : index
      %c0_92 = arith.constant 0 : index
      %c0_93 = arith.constant 0 : index
      %86 = vector.load %arg15[%c1_91, %c0_92, %c0_93] : memref<2x32x1xf32, #tpu.memory_space<vmem>>, vector<1x32x1xf32>
      %87 = vector.shape_cast %86 : vector<1x32x1xf32> to vector<32x1xf32>
      %88 = vector.broadcast %87 : vector<32x1xf32> to vector<32x3xf32>
      %89 = arith.addf %85, %88 : vector<32x3xf32>
      %cst_94 = arith.constant 0.000000e+00 : f32
      %90 = vector.broadcast %cst_94 : f32 to vector<32x3xf32>
      %91 = arith.cmpf ogt, %89, %90 : vector<32x3xf32>
      %cst_95 = arith.constant 0.00999999977 : f32
      %92 = vector.broadcast %cst_95 : f32 to vector<32x3xf32>
      %93 = arith.mulf %92, %89 : vector<32x3xf32>
      %94 = arith.select %91, %89, %93 : vector<32x3xi1>, vector<32x3xf32>
      %95 = arith.index_cast %51 : i32 to index
      %c0_96 = arith.constant 0 : index
      %96 = vector.load %arg31[%95, %c0_96] : memref<64x3xf32, #tpu.memory_space<vmem>>, vector<32x3xf32>
      tpu.vector_store %arg31[%95, %c0_96], %94 {strides = array<i32>} : memref<64x3xf32, #tpu.memory_space<vmem>>, vector<32x3xf32>,
    }
    %c2_i32_37 = arith.constant 2 : i32
    %c0_38 = arith.constant 0 : index
    %c0_39 = arith.constant 0 : index
    %21 = vector.load %arg21[%c0_38, %c0_39] : memref<128x1xf32, #tpu.memory_space<vmem>>, vector<128x1xf32>
    %c0_40 = arith.constant 0 : index
    %c0_41 = arith.constant 0 : index
    %c0_42 = arith.constant 0 : index
    %22 = vector.load %arg20[%c0_40, %c0_41, %c0_42] : memref<3x128x64xf32, #tpu.memory_space<vmem>>, vector<1x128x64xf32>
    %23 = vector.shape_cast %22 : vector<1x128x64xf32> to vector<128x64xf32>
    %c0_43 = arith.constant 0 : index
    %c0_44 = arith.constant 0 : index
    %24 = vector.load %arg31[%c0_43, %c0_44] : memref<64x3xf32, #tpu.memory_space<vmem>>, vector<64x1xf32>
    %cst_45 = arith.constant dense<0.000000e+00> : vector<128x1xf32>
    %25 = tpu.matmul %23, %24, %cst_45 {dimension_numbers = #tpu.dot_dimension_numbers<[1], [0], [0], [1], [0, 0, 1, 1], [], []>} : vector<128x64xf32>, vector<64x1xf32>, vector<128x1xf32> -> vector<128x1xf32>
    %26 = arith.addf %21, %25 : vector<128x1xf32>
    %c1 = arith.constant 1 : index
    %c0_46 = arith.constant 0 : index
    %c0_47 = arith.constant 0 : index
    %27 = vector.load %arg20[%c1, %c0_46, %c0_47] : memref<3x128x64xf32, #tpu.memory_space<vmem>>, vector<1x128x64xf32>
    %28 = vector.shape_cast %27 : vector<1x128x64xf32> to vector<128x64xf32>
    %c0_48 = arith.constant 0 : index
    %c1_49 = arith.constant 1 : index
    %29 = vector.load %arg31[%c0_48, %c1_49] : memref<64x3xf32, #tpu.memory_space<vmem>>, vector<64x1xf32>
    %cst_50 = arith.constant dense<0.000000e+00> : vector<128x1xf32>
    %30 = tpu.matmul %28, %29, %cst_50 {dimension_numbers = #tpu.dot_dimension_numbers<[1], [0], [0], [1], [0, 0, 1, 1], [], []>} : vector<128x64xf32>, vector<64x1xf32>, vector<128x1xf32> -> vector<128x1xf32>
    %31 = arith.addf %26, %30 : vector<128x1xf32>
    %c2 = arith.constant 2 : index
    %c0_51 = arith.constant 0 : index
    %c0_52 = arith.constant 0 : index
    %32 = vector.load %arg20[%c2, %c0_51, %c0_52] : memref<3x128x64xf32, #tpu.memory_space<vmem>>, vector<1x128x64xf32>
    %33 = vector.shape_cast %32 : vector<1x128x64xf32> to vector<128x64xf32>
    %c0_53 = arith.constant 0 : index
    %c2_54 = arith.constant 2 : index
    %34 = vector.load %arg31[%c0_53, %c2_54] : memref<64x3xf32, #tpu.memory_space<vmem>>, vector<64x1xf32>
    %cst_55 = arith.constant dense<0.000000e+00> : vector<128x1xf32>
    %35 = tpu.matmul %33, %34, %cst_55 {dimension_numbers = #tpu.dot_dimension_numbers<[1], [0], [0], [1], [0, 0, 1, 1], [], []>} : vector<128x64xf32>, vector<64x1xf32>, vector<128x1xf32> -> vector<128x1xf32>
    %36 = arith.addf %31, %35 : vector<128x1xf32>
    %cst_56 = arith.constant 0.000000e+00 : f32
    %37 = vector.broadcast %cst_56 : f32 to vector<128x1xf32>
    %38 = arith.cmpf ogt, %36, %37 : vector<128x1xf32>
    %cst_57 = arith.constant 0.00999999977 : f32
    %39 = vector.broadcast %cst_57 : f32 to vector<128x1xf32>
    %40 = arith.mulf %39, %36 : vector<128x1xf32>
    %41 = arith.select %38, %36, %40 : vector<128x1xi1>, vector<128x1xf32>
    %c0_58 = arith.constant 0 : index
    %c0_59 = arith.constant 0 : index
    %42 = vector.load %arg22[%c0_58, %c0_59] : memref<8x128xf32, #tpu.memory_space<vmem>>, vector<8x128xf32>
    %cst_60 = arith.constant dense<0.000000e+00> : vector<8x1xf32>
    %43 = tpu.matmul %42, %41, %cst_60 {dimension_numbers = #tpu.dot_dimension_numbers<[1], [0], [0], [1], [0, 0, 1, 1], [], []>} : vector<8x128xf32>, vector<128x1xf32>, vector<8x1xf32> -> vector<8x1xf32>
    %c0_61 = arith.constant 0 : index
    %c0_62 = arith.constant 0 : index
    %44 = vector.load %arg23[%c0_61, %c0_62] : memref<8x1xf32, #tpu.memory_space<vmem>>, vector<8x1xf32>
    %45 = arith.addf %43, %44 : vector<8x1xf32>
    %c0_63 = arith.constant 0 : index
    %c0_64 = arith.constant 0 : index
    %c0_65 = arith.constant 0 : index
    %46 = vector.load %arg24[%c0_63, %c0_64, %c0_65] : memref<1x8x1xf32, #tpu.memory_space<vmem>>, vector<1x8x1xf32>
    %47 = vector.shape_cast %46 : vector<1x8x1xf32> to vector<8x1xf32>
    %48 = vector.shape_cast %45 : vector<8x1xf32> to vector<1x8x1xf32>
    tpu.vector_store %arg24[%c0_63, %c0_64, %c0_65], %48 {strides = array<i32>} : memref<1x8x1xf32, #tpu.memory_space<vmem>>, vector<1x8x1xf32>,
    return
  }
  func.func @transform_0(%arg0: i32) -> (i32, i32, i32) {
    %c0_i32 = arith.constant 0 : i32
    %c0_i32_0 = arith.constant 0 : i32
    %c0_i32_1 = arith.constant 0 : i32
    return %arg0, %c0_i32, %c0_i32_0 : i32, i32, i32
  }
  func.func @transform_1(%arg0: i32) -> (i32, i32, i32) {
    %c0_i32 = arith.constant 0 : i32
    %c0_i32_0 = arith.constant 0 : i32
    %c0_i32_1 = arith.constant 0 : i32
    %c0_i32_2 = arith.constant 0 : i32
    return %c0_i32, %c0_i32_0, %c0_i32_1 : i32, i32, i32
  }
  func.func @transform_2(%arg0: i32) -> (i32, i32, i32) {
    %c0_i32 = arith.constant 0 : i32
    %c0_i32_0 = arith.constant 0 : i32
    %c0_i32_1 = arith.constant 0 : i32
    %c0_i32_2 = arith.constant 0 : i32
    return %c0_i32, %c0_i32_0, %c0_i32_1 : i32, i32, i32
  }
  func.func @transform_3(%arg0: i32) -> (i32, i32, i32) {
    %c0_i32 = arith.constant 0 : i32
    %c0_i32_0 = arith.constant 0 : i32
    %c0_i32_1 = arith.constant 0 : i32
    %c0_i32_2 = arith.constant 0 : i32
    return %c0_i32, %c0_i32_0, %c0_i32_1 : i32, i32, i32
  }
  func.func @transform_4(%arg0: i32) -> (i32, i32, i32) {
    %c0_i32 = arith.constant 0 : i32
    %c0_i32_0 = arith.constant 0 : i32
    %c0_i32_1 = arith.constant 0 : i32
    %c0_i32_2 = arith.constant 0 : i32
    return %c0_i32, %c0_i32_0, %c0_i32_1 : i32, i32, i32
  }
  func.func @transform_5(%arg0: i32) -> (i32, i32, i32) {
    %c0_i32 = arith.constant 0 : i32
    %c0_i32_0 = arith.constant 0 : i32
    %c0_i32_1 = arith.constant 0 : i32
    %c0_i32_2 = arith.constant 0 : i32
    return %c0_i32, %c0_i32_0, %c0_i32_1 : i32, i32, i32
  }
  func.func @transform_6(%arg0: i32) -> (i32, i32, i32) {
    %c0_i32 = arith.constant 0 : i32
    %c0_i32_0 = arith.constant 0 : i32
    %c0_i32_1 = arith.constant 0 : i32
    %c0_i32_2 = arith.constant 0 : i32
    return %c0_i32, %c0_i32_0, %c0_i32_1 : i32, i32, i32
  }
  func.func @transform_7(%arg0: i32) -> (i32, i32, i32) {
    %c0_i32 = arith.constant 0 : i32
    %c0_i32_0 = arith.constant 0 : i32
    %c0_i32_1 = arith.constant 0 : i32
    %c0_i32_2 = arith.constant 0 : i32
    return %c0_i32, %c0_i32_0, %c0_i32_1 : i32, i32, i32
  }
  func.func @transform_8(%arg0: i32) -> (i32, i32, i32) {
    %c0_i32 = arith.constant 0 : i32
    %c0_i32_0 = arith.constant 0 : i32
    %c0_i32_1 = arith.constant 0 : i32
    %c0_i32_2 = arith.constant 0 : i32
    return %c0_i32, %c0_i32_0, %c0_i32_1 : i32, i32, i32
  }
  func.func @transform_9(%arg0: i32) -> (i32, i32, i32) {
    %c0_i32 = arith.constant 0 : i32
    %c0_i32_0 = arith.constant 0 : i32
    %c0_i32_1 = arith.constant 0 : i32
    %c0_i32_2 = arith.constant 0 : i32
    return %c0_i32, %c0_i32_0, %c0_i32_1 : i32, i32, i32
  }
  func.func @transform_10(%arg0: i32) -> (i32, i32, i32) {
    %c0_i32 = arith.constant 0 : i32
    %c0_i32_0 = arith.constant 0 : i32
    %c0_i32_1 = arith.constant 0 : i32
    %c0_i32_2 = arith.constant 0 : i32
    return %c0_i32, %c0_i32_0, %c0_i32_1 : i32, i32, i32
  }
  func.func @transform_11(%arg0: i32) -> (i32, i32, i32) {
    %c0_i32 = arith.constant 0 : i32
    %c0_i32_0 = arith.constant 0 : i32
    %c0_i32_1 = arith.constant 0 : i32
    %c0_i32_2 = arith.constant 0 : i32
    return %c0_i32, %c0_i32_0, %c0_i32_1 : i32, i32, i32
  }
  func.func @transform_12(%arg0: i32) -> (i32, i32, i32) {
    %c0_i32 = arith.constant 0 : i32
    %c0_i32_0 = arith.constant 0 : i32
    %c0_i32_1 = arith.constant 0 : i32
    %c0_i32_2 = arith.constant 0 : i32
    return %c0_i32, %c0_i32_0, %c0_i32_1 : i32, i32, i32
  }
  func.func @transform_13(%arg0: i32) -> (i32, i32, i32) {
    %c0_i32 = arith.constant 0 : i32
    %c0_i32_0 = arith.constant 0 : i32
    %c0_i32_1 = arith.constant 0 : i32
    %c0_i32_2 = arith.constant 0 : i32
    return %c0_i32, %c0_i32_0, %c0_i32_1 : i32, i32, i32
  }
  func.func @transform_14(%arg0: i32) -> (i32, i32, i32) {
    %c0_i32 = arith.constant 0 : i32
    %c0_i32_0 = arith.constant 0 : i32
    %c0_i32_1 = arith.constant 0 : i32
    %c0_i32_2 = arith.constant 0 : i32
    return %c0_i32, %c0_i32_0, %c0_i32_1 : i32, i32, i32
  }
  func.func @transform_15(%arg0: i32) -> (i32, i32, i32) {
    %c0_i32 = arith.constant 0 : i32
    %c0_i32_0 = arith.constant 0 : i32
    %c0_i32_1 = arith.constant 0 : i32
    %c0_i32_2 = arith.constant 0 : i32
    return %c0_i32, %c0_i32_0, %c0_i32_1 : i32, i32, i32
  }
  func.func @transform_16(%arg0: i32) -> (i32, i32, i32) {
    %c0_i32 = arith.constant 0 : i32
    %c0_i32_0 = arith.constant 0 : i32
    %c0_i32_1 = arith.constant 0 : i32
    %c0_i32_2 = arith.constant 0 : i32
    return %c0_i32, %c0_i32_0, %c0_i32_1 : i32, i32, i32
  }
  func.func @transform_17(%arg0: i32) -> (i32, i32, i32) {
    %c0_i32 = arith.constant 0 : i32
    %c0_i32_0 = arith.constant 0 : i32
    %c0_i32_1 = arith.constant 0 : i32
    %c0_i32_2 = arith.constant 0 : i32
    return %c0_i32, %c0_i32_0, %c0_i32_1 : i32, i32, i32
  }
  func.func @transform_18(%arg0: i32) -> (i32, i32, i32) {
    %c0_i32 = arith.constant 0 : i32
    %c0_i32_0 = arith.constant 0 : i32
    %c0_i32_1 = arith.constant 0 : i32
    %c0_i32_2 = arith.constant 0 : i32
    return %c0_i32, %c0_i32_0, %c0_i32_1 : i32, i32, i32
  }
  func.func @transform_19(%arg0: i32) -> (i32, i32, i32) {
    %c0_i32 = arith.constant 0 : i32
    %c0_i32_0 = arith.constant 0 : i32
    %c0_i32_1 = arith.constant 0 : i32
    %c0_i32_2 = arith.constant 0 : i32
    return %c0_i32, %c0_i32_0, %c0_i32_1 : i32, i32, i32
  }
  func.func @transform_20(%arg0: i32) -> (i32, i32) {
    %c0_i32 = arith.constant 0 : i32
    %c0_i32_0 = arith.constant 0 : i32
    %c0_i32_1 = arith.constant 0 : i32
    return %c0_i32, %c0_i32_0 : i32, i32
  }
  func.func @transform_21(%arg0: i32) -> (i32, i32) {
    %c0_i32 = arith.constant 0 : i32
    %c0_i32_0 = arith.constant 0 : i32
    %c0_i32_1 = arith.constant 0 : i32
    return %c0_i32, %c0_i32_0 : i32, i32
  }
  func.func @transform_22(%arg0: i32) -> (i32, i32) {
    %c0_i32 = arith.constant 0 : i32
    %c0_i32_0 = arith.constant 0 : i32
    %c0_i32_1 = arith.constant 0 : i32
    return %c0_i32, %c0_i32_0 : i32, i32
  }
  func.func @transform_23(%arg0: i32) -> (i32, i32, i32) {
    %c0_i32 = arith.constant 0 : i32
    %c0_i32_0 = arith.constant 0 : i32
    %c0_i32_1 = arith.constant 0 : i32
    return %arg0, %c0_i32, %c0_i32_0 : i32, i32, i32
  }
}

</mosaic_0001>

<bundles_post_ra>
// kernel: img_net_forward.1
= control target key start
LH: loop header
LB: loop body
LE: loop exit
PB: predicated region body
PF: predicated region fallthrough
CT: control target
= control target key end

     0   :  { %s17474_s0 = inlined_call_operand.vmem [shape: f32[2,800,116], index: 0, kind: input, shape index: {}]   ;;  %s17475_s1 = inlined_call_operand.vmem [shape: f32[5,8,40], index: 1, kind: input, shape index: {}]   ;;  %s17476_s2 = inlined_call_operand.vmem [shape: f32[5,16,40], index: 2, kind: input, shape index: {}]   ;;  %s17477_s3 = inlined_call_operand.vmem [shape: f32[5,16,80], index: 3, kind: input, shape index: {}]   ;;  %s17478_s4 = inlined_call_operand.vmem [shape: f32[5,16,80], index: 4, kind: input, shape index: {}]   ;;  %s17479_s5 = inlined_call_operand.vmem [shape: f32[5,32,80], index: 5, kind: input, shape index: {}]   ;;  %s17480_s6 = inlined_call_operand.vmem [shape: f32[5,32,160], index: 6, kind: input, shape index: {}]   ;;  %s17481_s7 = inlined_call_operand.vmem [shape: f32[5,32,160], index: 7, kind: input, shape index: {}]   ;;  %s17482_s8 = inlined_call_operand.vmem [shape: f32[2,8,1], index: 8, kind: input, shape index: {}]   ;;  %s17483_s9 = inlined_call_operand.vmem [shape: f32[2,16,1], index: 9, kind: input, shape index: {}]   ;;  %s17484_s10 = inlined_call_operand.vmem [shape: f32[2,16,1], index: 10, kind: input, shape index: {}]   ;;  %s17485_s11 = inlined_call_operand.vmem [shape: f32[2,16,1], index: 11, kind: input, shape index: {}]   ;;  %s17486_s12 = inlined_call_operand.vmem [shape: f32[2,32,1], index: 12, kind: input, shape index: {}]   ;;  %s17487_s13 = inlined_call_operand.vmem [shape: f32[2,32,1], index: 13, kind: input, shape index: {}]   ;;  %s17488_s14 = inlined_call_operand.vmem [shape: f32[2,32,1], index: 14, kind: input, shape index: {}]   ;;  %s17489_s15 = inlined_call_operand.vmem [shape: f32[2,108,54], index: 15, kind: input, shape index: {}]   ;;  %s17490_s16 = inlined_call_operand.vmem [shape: f32[2,52,26], index: 16, kind: input, shape index: {}]   ;;  %s17491_s17 = inlined_call_operand.vmem [shape: f32[2,24,12], index: 17, kind: input, shape index: {}]   ;;  %s17492_s18 = inlined_call_operand.vmem [shape: f32[2,10,5], index: 18, kind: input, shape index: {}]   ;;  %s17493_s19 = inlined_call_operand.vmem [shape: f32[3,128,64], index: 19, kind: input, shape index: {}]   ;;  %s17494_s20 = inlined_call_operand.vmem [shape: f32[128,1], index: 20, kind: input, shape index: {}]   ;;  %s17495_s21 = inlined_call_operand.vmem [shape: f32[8,128], index: 21, kind: input, shape index: {}]   ;;  %s17496_s22 = inlined_call_operand.vmem [shape: f32[8,1], index: 22, kind: input, shape index: {}]   ;;  %s17497_s23 = inlined_call_operand.vmem [shape: f32[2,8,1], index: 23, kind: output, shape index: {}]  }
   0x1   :  { %17513 = sst [smem:[#allocation9_spill]] %s17474_s0 }
   0x2   :  { %17514 = sst [smem:[#allocation10_spill]] %s17475_s1 }
   0x3   :  { %17515 = sst [smem:[#allocation11_spill]] %s17476_s2 }
   0x4   :  { %17516 = sst [smem:[#allocation12_spill]] %s17477_s3 }
   0x5   :  { %17517 = sst [smem:[#allocation13_spill]] %s17478_s4  ;;  %s13027_s4 = smov 0  }
   0x6   :  { %17518 = sst [smem:[#allocation14_spill]] %s17479_s5 }
   0x7   :  { %17519 = sst [smem:[#allocation15_spill]] %s17480_s6 }
   0x8   :  { %17520 = sst [smem:[#allocation16_spill]] %s17481_s7 }
   0x9   :  { %17521 = sst [smem:[#allocation17_spill]] %s17482_s8 }
   0xa LB: > { %s10313_s30 = sadd.s32 4294967295, %s12828_s4   ;;  %p10317_p0 = scmp.ge.s32.totalorder %s12828_s4, 1  ;;  %s12828_s4 = sphi %s13027_s4, %s33_s4  }
   0xb   : > { %p637_p1 = scmp.lt.s32.totalorder %s12828_s4, 3 }
   0xd   : > { %p638_p2 = pnand %p10317_p0, %p637_p1 }
   0xe   : > { %p13037_p3 = scmp.lt.s32.totalorder (!%p638_p2), %s10313_s30, 1  ;;  %s17523_s7 = sld [smem:[#allocation9_spill]] (!%p638_p2) }
   0xf   : > { %641 = sbr.rel (%p638_p2) target bundleno = 5720 (0x1658), region = 112  ;;  %s14087_s29 = smov (!%p638_p2), 0  }
  0x14   : > { %vm709_vm0 = vcmask 932864   ;;  %vm808_vm1 = vcmask 916480   ;;  %vm1001_vm2 = vcmask 457728   ;;  %v17511_v0 = vmov 0.0   ;;  %s17536_s30 = smov (!%p13037_p3, %s10313_s30), 1 }
  0x15   : > { %710 = vst.msk [vmem:[#allocation2] sm:$0xff] %vm709_vm0, %v17511_v0  ;;  %711 = vst.msk [vmem:[#allocation2 + $0x8] sm:$0xff] %vm709_vm0, %v17511_v0  ;;  %vm1098_vm3 = vcmask 228352   ;;  %vm1147_vm4 = vcmask 113664   ;;  %vm1196_vm5 = vcmask 56320   ;;  %vm1221_vm6 = vcmask 23552  }
  0x16   : > { %712 = vst.msk [vmem:[#allocation2 + $0x10] sm:$0xff] %vm709_vm0, %v17511_v0  ;;  %713 = vst.msk [vmem:[#allocation2 + $0x18] sm:$0xff] %vm709_vm0, %v17511_v0  ;;  %s12641_s25 = smul.u32 800, %s17536_s30  ;;  %s10319_s5 = sshll.u32 %s17536_s30, 3 }
  0x17   : > { %714 = vst.msk [vmem:[#allocation2 + $0x20] sm:$0xff] %vm709_vm0, %v17511_v0  ;;  %715 = vst.msk [vmem:[#allocation2 + $0x28] sm:$0xff] %vm709_vm0, %v17511_v0  ;;  %s14080_s2 = scalar_lea.vmem %s17497_s23, %s10319_s5 }
  0x18   : > { %716 = vst.msk [vmem:[#allocation2 + $0x30] sm:$0xff] %vm709_vm0, %v17511_v0  ;;  %717 = vst.msk [vmem:[#allocation2 + $0x38] sm:$0xff] %vm709_vm0, %v17511_v0  ;;  %s14085_s28 = scalar_lea.vmem %s17523_s7, %s12641_s25 }
  0x19   : > { %718 = vst.msk [vmem:[#allocation2 + $0x40] sm:$0xff] %vm709_vm0, %v17511_v0  ;;  %719 = vst.msk [vmem:[#allocation2 + $0x48] sm:$0xff] %vm709_vm0, %v17511_v0 }
  0x1a   : > { %720 = vst.msk [vmem:[#allocation2 + $0x50] sm:$0xff] %vm709_vm0, %v17511_v0  ;;  %721 = vst.msk [vmem:[#allocation2 + $0x58] sm:$0xff] %vm709_vm0, %v17511_v0 }
  0x1b   : > { %722 = vst.msk [vmem:[#allocation2 + $0x60] sm:$0xff] %vm709_vm0, %v17511_v0  ;;  %723 = vst.msk [vmem:[#allocation2 + $0x68] sm:$0xff] %vm709_vm0, %v17511_v0 }
  0x1c   : > { %724 = vst.msk [vmem:[#allocation2 + $0x70] sm:$0xff] %vm709_vm0, %v17511_v0  ;;  %725 = vst.msk [vmem:[#allocation2 + $0x78] sm:$0xff] %vm709_vm0, %v17511_v0 }
  0x1d   : > { %726 = vst.msk [vmem:[#allocation2 + $0x80] sm:$0xff] %vm709_vm0, %v17511_v0  ;;  %727 = vst.msk [vmem:[#allocation2 + $0x88] sm:$0xff] %vm709_vm0, %v17511_v0 }
  0x1e   : > { %728 = vst.msk [vmem:[#allocation2 + $0x90] sm:$0xff] %vm709_vm0, %v17511_v0  ;;  %729 = vst.msk [vmem:[#allocation2 + $0x98] sm:$0xff] %vm709_vm0, %v17511_v0 }
  0x1f   : > { %730 = vst.msk [vmem:[#allocation2 + $0xa0] sm:$0xff] %vm709_vm0, %v17511_v0  ;;  %731 = vst.msk [vmem:[#allocation2 + $0xa8] sm:$0xff] %vm709_vm0, %v17511_v0 }
  0x20   : > { %732 = vst.msk [vmem:[#allocation2 + $0xb0] sm:$0xff] %vm709_vm0, %v17511_v0  ;;  %733 = vst.msk [vmem:[#allocation2 + $0xb8] sm:$0xff] %vm709_vm0, %v17511_v0 }
  0x21   : > { %734 = vst.msk [vmem:[#allocation2 + $0xc0] sm:$0xff] %vm709_vm0, %v17511_v0  ;;  %735 = vst.msk [vmem:[#allocation2 + $0xc8] sm:$0xff] %vm709_vm0, %v17511_v0 }
  0x22   : > { %736 = vst.msk [vmem:[#allocation2 + $0xd0] sm:$0xff] %vm709_vm0, %v17511_v0  ;;  %737 = vst.msk [vmem:[#allocation2 + $0xd8] sm:$0xff] %vm709_vm0, %v17511_v0 }
  0x23   : > { %738 = vst.msk [vmem:[#allocation2 + $0xe0] sm:$0xff] %vm709_vm0, %v17511_v0  ;;  %739 = vst.msk [vmem:[#allocation2 + $0xe8] sm:$0xff] %vm709_vm0, %v17511_v0 }
  0x24   : > { %740 = vst.msk [vmem:[#allocation2 + $0xf0] sm:$0xff] %vm709_vm0, %v17511_v0  ;;  %741 = vst.msk [vmem:[#allocation2 + $0xf8] sm:$0xff] %vm709_vm0, %v17511_v0 }
  0x25   : > { %742 = vst.msk [vmem:[#allocation2 + $0x100] sm:$0xff] %vm709_vm0, %v17511_v0  ;;  %743 = vst.msk [vmem:[#allocation2 + $0x108] sm:$0xff] %vm709_vm0, %v17511_v0 }
  0x26   : > { %744 = vst.msk [vmem:[#allocation2 + $0x110] sm:$0xff] %vm709_vm0, %v17511_v0  ;;  %745 = vst.msk [vmem:[#allocation2 + $0x118] sm:$0xff] %vm709_vm0, %v17511_v0 }
  0x27   : > { %746 = vst.msk [vmem:[#allocation2 + $0x120] sm:$0xff] %vm709_vm0, %v17511_v0  ;;  %747 = vst.msk [vmem:[#allocation2 + $0x128] sm:$0xff] %vm709_vm0, %v17511_v0 }
  0x28   : > { %748 = vst.msk [vmem:[#allocation2 + $0x130] sm:$0xff] %vm709_vm0, %v17511_v0  ;;  %749 = vst.msk [vmem:[#allocation2 + $0x138] sm:$0xff] %vm709_vm0, %v17511_v0 }
  0x29   : > { %750 = vst.msk [vmem:[#allocation2 + $0x140] sm:$0xff] %vm709_vm0, %v17511_v0  ;;  %751 = vst.msk [vmem:[#allocation2 + $0x148] sm:$0xff] %vm709_vm0, %v17511_v0 }
  0x2a   : > { %752 = vst.msk [vmem:[#allocation2 + $0x150] sm:$0xff] %vm709_vm0, %v17511_v0  ;;  %753 = vst.msk [vmem:[#allocation2 + $0x158] sm:$0xff] %vm709_vm0, %v17511_v0 }
  0x2b   : > { %754 = vst.msk [vmem:[#allocation2 + $0x160] sm:$0xff] %vm709_vm0, %v17511_v0  ;;  %755 = vst.msk [vmem:[#allocation2 + $0x168] sm:$0xff] %vm709_vm0, %v17511_v0 }
  0x2c   : > { %756 = vst.msk [vmem:[#allocation2 + $0x170] sm:$0xff] %vm709_vm0, %v17511_v0  ;;  %757 = vst.msk [vmem:[#allocation2 + $0x178] sm:$0xff] %vm709_vm0, %v17511_v0 }
  0x2d   : > { %758 = vst.msk [vmem:[#allocation2 + $0x180] sm:$0xff] %vm709_vm0, %v17511_v0  ;;  %759 = vst.msk [vmem:[#allocation2 + $0x188] sm:$0xff] %vm709_vm0, %v17511_v0 }
  0x2e   : > { %760 = vst.msk [vmem:[#allocation2 + $0x190] sm:$0xff] %vm709_vm0, %v17511_v0  ;;  %761 = vst.msk [vmem:[#allocation2 + $0x198] sm:$0xff] %vm709_vm0, %v17511_v0 }
  0x2f   : > { %762 = vst.msk [vmem:[#allocation2 + $0x1a0] sm:$0xff] %vm709_vm0, %v17511_v0  ;;  %763 = vst.msk [vmem:[#allocation2 + $0x1a8] sm:$0xff] %vm709_vm0, %v17511_v0 }
  0x30   : > { %764 = vst.msk [vmem:[#allocation2 + $0x1b0] sm:$0xff] %vm709_vm0, %v17511_v0  ;;  %765 = vst.msk [vmem:[#allocation2 + $0x1b8] sm:$0xff] %vm709_vm0, %v17511_v0 }
  0x31   : > { %766 = vst.msk [vmem:[#allocation2 + $0x1c0] sm:$0xff] %vm709_vm0, %v17511_v0  ;;  %767 = vst.msk [vmem:[#allocation2 + $0x1c8] sm:$0xff] %vm709_vm0, %v17511_v0 }
  0x32   : > { %768 = vst.msk [vmem:[#allocation2 + $0x1d0] sm:$0xff] %vm709_vm0, %v17511_v0  ;;  %769 = vst.msk [vmem:[#allocation2 + $0x1d8] sm:$0xff] %vm709_vm0, %v17511_v0 }
  0x33   : > { %770 = vst.msk [vmem:[#allocation2 + $0x1e0] sm:$0xff] %vm709_vm0, %v17511_v0  ;;  %771 = vst.msk [vmem:[#allocation2 + $0x1e8] sm:$0xff] %vm709_vm0, %v17511_v0 }
  0x34   : > { %772 = vst.msk [vmem:[#allocation2 + $0x1f0] sm:$0xff] %vm709_vm0, %v17511_v0  ;;  %773 = vst.msk [vmem:[#allocation2 + $0x1f8] sm:$0xff] %vm709_vm0, %v17511_v0 }
  0x35   : > { %774 = vst.msk [vmem:[#allocation2 + $0x200] sm:$0xff] %vm709_vm0, %v17511_v0  ;;  %775 = vst.msk [vmem:[#allocation2 + $0x208] sm:$0xff] %vm709_vm0, %v17511_v0 }
  0x36   : > { %776 = vst.msk [vmem:[#allocation2 + $0x210] sm:$0xff] %vm709_vm0, %v17511_v0  ;;  %777 = vst.msk [vmem:[#allocation2 + $0x218] sm:$0xff] %vm709_vm0, %v17511_v0 }
  0x37   : > { %778 = vst.msk [vmem:[#allocation2 + $0x220] sm:$0xff] %vm709_vm0, %v17511_v0  ;;  %779 = vst.msk [vmem:[#allocation2 + $0x228] sm:$0xff] %vm709_vm0, %v17511_v0 }
  0x38   : > { %780 = vst.msk [vmem:[#allocation2 + $0x230] sm:$0xff] %vm709_vm0, %v17511_v0  ;;  %781 = vst.msk [vmem:[#allocation2 + $0x238] sm:$0xff] %vm709_vm0, %v17511_v0 }
  0x39   : > { %782 = vst.msk [vmem:[#allocation2 + $0x240] sm:$0xff] %vm709_vm0, %v17511_v0  ;;  %783 = vst.msk [vmem:[#allocation2 + $0x248] sm:$0xff] %vm709_vm0, %v17511_v0 }
  0x3a   : > { %784 = vst.msk [vmem:[#allocation2 + $0x250] sm:$0xff] %vm709_vm0, %v17511_v0  ;;  %785 = vst.msk [vmem:[#allocation2 + $0x258] sm:$0xff] %vm709_vm0, %v17511_v0 }
  0x3b   : > { %786 = vst.msk [vmem:[#allocation2 + $0x260] sm:$0xff] %vm709_vm0, %v17511_v0  ;;  %787 = vst.msk [vmem:[#allocation2 + $0x268] sm:$0xff] %vm709_vm0, %v17511_v0 }
  0x3c   : > { %788 = vst.msk [vmem:[#allocation2 + $0x270] sm:$0xff] %vm709_vm0, %v17511_v0  ;;  %789 = vst.msk [vmem:[#allocation2 + $0x278] sm:$0xff] %vm709_vm0, %v17511_v0 }
  0x3d   : > { %790 = vst.msk [vmem:[#allocation2 + $0x280] sm:$0xff] %vm709_vm0, %v17511_v0  ;;  %791 = vst.msk [vmem:[#allocation2 + $0x288] sm:$0xff] %vm709_vm0, %v17511_v0 }
  0x3e   : > { %792 = vst.msk [vmem:[#allocation2 + $0x290] sm:$0xff] %vm709_vm0, %v17511_v0  ;;  %793 = vst.msk [vmem:[#allocation2 + $0x298] sm:$0xff] %vm709_vm0, %v17511_v0 }
  0x3f   : > { %794 = vst.msk [vmem:[#allocation2 + $0x2a0] sm:$0xff] %vm709_vm0, %v17511_v0  ;;  %795 = vst.msk [vmem:[#allocation2 + $0x2a8] sm:$0xff] %vm709_vm0, %v17511_v0 }
  0x40   : > { %796 = vst.msk [vmem:[#allocation2 + $0x2b0] sm:$0xff] %vm709_vm0, %v17511_v0  ;;  %797 = vst.msk [vmem:[#allocation2 + $0x2b8] sm:$0xff] %vm709_vm0, %v17511_v0 }
  0x41   : > { %798 = vst.msk [vmem:[#allocation2 + $0x2c0] sm:$0xff] %vm709_vm0, %v17511_v0  ;;  %799 = vst.msk [vmem:[#allocation2 + $0x2c8] sm:$0xff] %vm709_vm0, %v17511_v0 }
  0x42   : > { %800 = vst.msk [vmem:[#allocation2 + $0x2d0] sm:$0xff] %vm709_vm0, %v17511_v0  ;;  %801 = vst.msk [vmem:[#allocation2 + $0x2d8] sm:$0xff] %vm709_vm0, %v17511_v0 }
  0x43   : > { %802 = vst.msk [vmem:[#allocation2 + $0x2e0] sm:$0xff] %vm709_vm0, %v17511_v0  ;;  %803 = vst.msk [vmem:[#allocation2 + $0x2e8] sm:$0xff] %vm709_vm0, %v17511_v0 }
  0x44   : > { %804 = vst.msk [vmem:[#allocation2 + $0x2f0] sm:$0xff] %vm709_vm0, %v17511_v0  ;;  %805 = vst.msk [vmem:[#allocation2 + $0x2f8] sm:$0xff] %vm709_vm0, %v17511_v0 }
  0x45   : > { %806 = vst.msk [vmem:[#allocation2 + $0x300] sm:$0xff] %vm709_vm0, %v17511_v0  ;;  %807 = vst.msk [vmem:[#allocation2 + $0x308] sm:$0xff] %vm709_vm0, %v17511_v0 }
  0x46   : > { %809 = vst.msk [vmem:[#allocation3] sm:$0xff] %vm808_vm1, %v17511_v0  ;;  %810 = vst.msk [vmem:[#allocation3 + $0x8] sm:$0xff] %vm808_vm1, %v17511_v0 }
  0x47   : > { %811 = vst.msk [vmem:[#allocation3 + $0x10] sm:$0xff] %vm808_vm1, %v17511_v0  ;;  %812 = vst.msk [vmem:[#allocation3 + $0x18] sm:$0xff] %vm808_vm1, %v17511_v0 }
  0x48   : > { %813 = vst.msk [vmem:[#allocation3 + $0x20] sm:$0xff] %vm808_vm1, %v17511_v0  ;;  %814 = vst.msk [vmem:[#allocation3 + $0x28] sm:$0xff] %vm808_vm1, %v17511_v0 }
  0x49   : > { %815 = vst.msk [vmem:[#allocation3 + $0x30] sm:$0xff] %vm808_vm1, %v17511_v0  ;;  %816 = vst.msk [vmem:[#allocation3 + $0x38] sm:$0xff] %vm808_vm1, %v17511_v0 }
  0x4a   : > { %817 = vst.msk [vmem:[#allocation3 + $0x40] sm:$0xff] %vm808_vm1, %v17511_v0  ;;  %818 = vst.msk [vmem:[#allocation3 + $0x48] sm:$0xff] %vm808_vm1, %v17511_v0 }
  0x4b   : > { %819 = vst.msk [vmem:[#allocation3 + $0x50] sm:$0xff] %vm808_vm1, %v17511_v0  ;;  %820 = vst.msk [vmem:[#allocation3 + $0x58] sm:$0xff] %vm808_vm1, %v17511_v0 }
  0x4c   : > { %821 = vst.msk [vmem:[#allocation3 + $0x60] sm:$0xff] %vm808_vm1, %v17511_v0  ;;  %822 = vst.msk [vmem:[#allocation3 + $0x68] sm:$0xff] %vm808_vm1, %v17511_v0 }
  0x4d   : > { %823 = vst.msk [vmem:[#allocation3 + $0x70] sm:$0xff] %vm808_vm1, %v17511_v0  ;;  %824 = vst.msk [vmem:[#allocation3 + $0x78] sm:$0xff] %vm808_vm1, %v17511_v0 }
  0x4e   : > { %825 = vst.msk [vmem:[#allocation3 + $0x80] sm:$0xff] %vm808_vm1, %v17511_v0  ;;  %826 = vst.msk [vmem:[#allocation3 + $0x88] sm:$0xff] %vm808_vm1, %v17511_v0 }
  0x4f   : > { %827 = vst.msk [vmem:[#allocation3 + $0x90] sm:$0xff] %vm808_vm1, %v17511_v0  ;;  %828 = vst.msk [vmem:[#allocation3 + $0x98] sm:$0xff] %vm808_vm1, %v17511_v0 }
  0x50   : > { %829 = vst.msk [vmem:[#allocation3 + $0xa0] sm:$0xff] %vm808_vm1, %v17511_v0  ;;  %830 = vst.msk [vmem:[#allocation3 + $0xa8] sm:$0xff] %vm808_vm1, %v17511_v0 }
  0x51   : > { %831 = vst.msk [vmem:[#allocation3 + $0xb0] sm:$0xff] %vm808_vm1, %v17511_v0  ;;  %832 = vst.msk [vmem:[#allocation3 + $0xb8] sm:$0xff] %vm808_vm1, %v17511_v0 }
  0x52   : > { %833 = vst.msk [vmem:[#allocation3 + $0xc0] sm:$0xff] %vm808_vm1, %v17511_v0  ;;  %834 = vst.msk [vmem:[#allocation3 + $0xc8] sm:$0xff] %vm808_vm1, %v17511_v0 }
  0x53   : > { %835 = vst.msk [vmem:[#allocation3 + $0xd0] sm:$0xff] %vm808_vm1, %v17511_v0  ;;  %836 = vst.msk [vmem:[#allocation3 + $0xd8] sm:$0xff] %vm808_vm1, %v17511_v0 }
  0x54   : > { %837 = vst.msk [vmem:[#allocation3 + $0xe0] sm:$0xff] %vm808_vm1, %v17511_v0  ;;  %838 = vst.msk [vmem:[#allocation3 + $0xe8] sm:$0xff] %vm808_vm1, %v17511_v0 }
  0x55   : > { %839 = vst.msk [vmem:[#allocation3 + $0xf0] sm:$0xff] %vm808_vm1, %v17511_v0  ;;  %840 = vst.msk [vmem:[#allocation3 + $0xf8] sm:$0xff] %vm808_vm1, %v17511_v0 }
  0x56   : > { %841 = vst.msk [vmem:[#allocation3 + $0x100] sm:$0xff] %vm808_vm1, %v17511_v0  ;;  %842 = vst.msk [vmem:[#allocation3 + $0x108] sm:$0xff] %vm808_vm1, %v17511_v0 }
  0x57   : > { %843 = vst.msk [vmem:[#allocation3 + $0x110] sm:$0xff] %vm808_vm1, %v17511_v0  ;;  %844 = vst.msk [vmem:[#allocation3 + $0x118] sm:$0xff] %vm808_vm1, %v17511_v0 }
  0x58   : > { %845 = vst.msk [vmem:[#allocation3 + $0x120] sm:$0xff] %vm808_vm1, %v17511_v0  ;;  %846 = vst.msk [vmem:[#allocation3 + $0x128] sm:$0xff] %vm808_vm1, %v17511_v0 }
  0x59   : > { %847 = vst.msk [vmem:[#allocation3 + $0x130] sm:$0xff] %vm808_vm1, %v17511_v0  ;;  %848 = vst.msk [vmem:[#allocation3 + $0x138] sm:$0xff] %vm808_vm1, %v17511_v0 }
  0x5a   : > { %849 = vst.msk [vmem:[#allocation3 + $0x140] sm:$0xff] %vm808_vm1, %v17511_v0  ;;  %850 = vst.msk [vmem:[#allocation3 + $0x148] sm:$0xff] %vm808_vm1, %v17511_v0 }
  0x5b   : > { %851 = vst.msk [vmem:[#allocation3 + $0x150] sm:$0xff] %vm808_vm1, %v17511_v0  ;;  %852 = vst.msk [vmem:[#allocation3 + $0x158] sm:$0xff] %vm808_vm1, %v17511_v0 }
  0x5c   : > { %853 = vst.msk [vmem:[#allocation3 + $0x160] sm:$0xff] %vm808_vm1, %v17511_v0  ;;  %854 = vst.msk [vmem:[#allocation3 + $0x168] sm:$0xff] %vm808_vm1, %v17511_v0 }
  0x5d   : > { %855 = vst.msk [vmem:[#allocation3 + $0x170] sm:$0xff] %vm808_vm1, %v17511_v0  ;;  %856 = vst.msk [vmem:[#allocation3 + $0x178] sm:$0xff] %vm808_vm1, %v17511_v0 }
  0x5e   : > { %857 = vst.msk [vmem:[#allocation3 + $0x180] sm:$0xff] %vm808_vm1, %v17511_v0  ;;  %858 = vst.msk [vmem:[#allocation3 + $0x188] sm:$0xff] %vm808_vm1, %v17511_v0 }
  0x5f   : > { %859 = vst.msk [vmem:[#allocation3 + $0x190] sm:$0xff] %vm808_vm1, %v17511_v0  ;;  %860 = vst.msk [vmem:[#allocation3 + $0x198] sm:$0xff] %vm808_vm1, %v17511_v0 }
  0x60   : > { %861 = vst.msk [vmem:[#allocation3 + $0x1a0] sm:$0xff] %vm808_vm1, %v17511_v0  ;;  %862 = vst.msk [vmem:[#allocation3 + $0x1a8] sm:$0xff] %vm808_vm1, %v17511_v0 }
  0x61   : > { %863 = vst.msk [vmem:[#allocation3 + $0x1b0] sm:$0xff] %vm808_vm1, %v17511_v0  ;;  %864 = vst.msk [vmem:[#allocation3 + $0x1b8] sm:$0xff] %vm808_vm1, %v17511_v0 }
  0x62   : > { %865 = vst.msk [vmem:[#allocation3 + $0x1c0] sm:$0xff] %vm808_vm1, %v17511_v0  ;;  %866 = vst.msk [vmem:[#allocation3 + $0x1c8] sm:$0xff] %vm808_vm1, %v17511_v0 }
  0x63   : > { %867 = vst.msk [vmem:[#allocation3 + $0x1d0] sm:$0xff] %vm808_vm1, %v17511_v0  ;;  %868 = vst.msk [vmem:[#allocation3 + $0x1d8] sm:$0xff] %vm808_vm1, %v17511_v0 }
  0x64   : > { %869 = vst.msk [vmem:[#allocation3 + $0x1e0] sm:$0xff] %vm808_vm1, %v17511_v0  ;;  %870 = vst.msk [vmem:[#allocation3 + $0x1e8] sm:$0xff] %vm808_vm1, %v17511_v0 }
  0x65   : > { %871 = vst.msk [vmem:[#allocation3 + $0x1f0] sm:$0xff] %vm808_vm1, %v17511_v0  ;;  %872 = vst.msk [vmem:[#allocation3 + $0x1f8] sm:$0xff] %vm808_vm1, %v17511_v0 }
  0x66   : > { %873 = vst.msk [vmem:[#allocation3 + $0x200] sm:$0xff] %vm808_vm1, %v17511_v0  ;;  %874 = vst.msk [vmem:[#allocation3 + $0x208] sm:$0xff] %vm808_vm1, %v17511_v0 }
  0x67   : > { %875 = vst.msk [vmem:[#allocation3 + $0x210] sm:$0xff] %vm808_vm1, %v17511_v0  ;;  %876 = vst.msk [vmem:[#allocation3 + $0x218] sm:$0xff] %vm808_vm1, %v17511_v0 }
  0x68   : > { %877 = vst.msk [vmem:[#allocation3 + $0x220] sm:$0xff] %vm808_vm1, %v17511_v0  ;;  %878 = vst.msk [vmem:[#allocation3 + $0x228] sm:$0xff] %vm808_vm1, %v17511_v0 }
  0x69   : > { %879 = vst.msk [vmem:[#allocation3 + $0x230] sm:$0xff] %vm808_vm1, %v17511_v0  ;;  %880 = vst.msk [vmem:[#allocation3 + $0x238] sm:$0xff] %vm808_vm1, %v17511_v0 }
  0x6a   : > { %881 = vst.msk [vmem:[#allocation3 + $0x240] sm:$0xff] %vm808_vm1, %v17511_v0  ;;  %882 = vst.msk [vmem:[#allocation3 + $0x248] sm:$0xff] %vm808_vm1, %v17511_v0 }
  0x6b   : > { %883 = vst.msk [vmem:[#allocation3 + $0x250] sm:$0xff] %vm808_vm1, %v17511_v0  ;;  %884 = vst.msk [vmem:[#allocation3 + $0x258] sm:$0xff] %vm808_vm1, %v17511_v0 }
  0x6c   : > { %885 = vst.msk [vmem:[#allocation3 + $0x260] sm:$0xff] %vm808_vm1, %v17511_v0  ;;  %886 = vst.msk [vmem:[#allocation3 + $0x268] sm:$0xff] %vm808_vm1, %v17511_v0 }
  0x6d   : > { %887 = vst.msk [vmem:[#allocation3 + $0x270] sm:$0xff] %vm808_vm1, %v17511_v0  ;;  %888 = vst.msk [vmem:[#allocation3 + $0x278] sm:$0xff] %vm808_vm1, %v17511_v0 }
  0x6e   : > { %889 = vst.msk [vmem:[#allocation3 + $0x280] sm:$0xff] %vm808_vm1, %v17511_v0  ;;  %890 = vst.msk [vmem:[#allocation3 + $0x288] sm:$0xff] %vm808_vm1, %v17511_v0 }
  0x6f   : > { %891 = vst.msk [vmem:[#allocation3 + $0x290] sm:$0xff] %vm808_vm1, %v17511_v0  ;;  %892 = vst.msk [vmem:[#allocation3 + $0x298] sm:$0xff] %vm808_vm1, %v17511_v0 }
  0x70   : > { %893 = vst.msk [vmem:[#allocation3 + $0x2a0] sm:$0xff] %vm808_vm1, %v17511_v0  ;;  %894 = vst.msk [vmem:[#allocation3 + $0x2a8] sm:$0xff] %vm808_vm1, %v17511_v0 }
  0x71   : > { %895 = vst.msk [vmem:[#allocation3 + $0x2b0] sm:$0xff] %vm808_vm1, %v17511_v0  ;;  %896 = vst.msk [vmem:[#allocation3 + $0x2b8] sm:$0xff] %vm808_vm1, %v17511_v0 }
  0x72   : > { %897 = vst.msk [vmem:[#allocation3 + $0x2c0] sm:$0xff] %vm808_vm1, %v17511_v0  ;;  %898 = vst.msk [vmem:[#allocation3 + $0x2c8] sm:$0xff] %vm808_vm1, %v17511_v0 }
  0x73   : > { %899 = vst.msk [vmem:[#allocation3 + $0x2d0] sm:$0xff] %vm808_vm1, %v17511_v0  ;;  %900 = vst.msk [vmem:[#allocation3 + $0x2d8] sm:$0xff] %vm808_vm1, %v17511_v0 }
  0x74   : > { %901 = vst.msk [vmem:[#allocation3 + $0x2e0] sm:$0xff] %vm808_vm1, %v17511_v0  ;;  %902 = vst.msk [vmem:[#allocation3 + $0x2e8] sm:$0xff] %vm808_vm1, %v17511_v0 }
  0x75   : > { %903 = vst.msk [vmem:[#allocation3 + $0x2f0] sm:$0xff] %vm808_vm1, %v17511_v0  ;;  %904 = vst.msk [vmem:[#allocation3 + $0x2f8] sm:$0xff] %vm808_vm1, %v17511_v0 }
  0x76   : > { %905 = vst.msk [vmem:[#allocation3 + $0x300] sm:$0xff] %vm808_vm1, %v17511_v0  ;;  %906 = vst.msk [vmem:[#allocation3 + $0x308] sm:$0xff] %vm808_vm1, %v17511_v0 }
  0x77   : > { %907 = vst.msk [vmem:[#allocation3 + $0x310] sm:$0xff] %vm808_vm1, %v17511_v0  ;;  %908 = vst.msk [vmem:[#allocation3 + $0x318] sm:$0xff] %vm808_vm1, %v17511_v0 }
  0x78   : > { %909 = vst.msk [vmem:[#allocation3 + $0x320] sm:$0xff] %vm808_vm1, %v17511_v0  ;;  %910 = vst.msk [vmem:[#allocation3 + $0x328] sm:$0xff] %vm808_vm1, %v17511_v0 }
  0x79   : > { %911 = vst.msk [vmem:[#allocation3 + $0x330] sm:$0xff] %vm808_vm1, %v17511_v0  ;;  %912 = vst.msk [vmem:[#allocation3 + $0x338] sm:$0xff] %vm808_vm1, %v17511_v0 }
  0x7a   : > { %913 = vst.msk [vmem:[#allocation3 + $0x340] sm:$0xff] %vm808_vm1, %v17511_v0  ;;  %914 = vst.msk [vmem:[#allocation3 + $0x348] sm:$0xff] %vm808_vm1, %v17511_v0 }
  0x7b   : > { %915 = vst.msk [vmem:[#allocation3 + $0x350] sm:$0xff] %vm808_vm1, %v17511_v0  ;;  %916 = vst.msk [vmem:[#allocation3 + $0x358] sm:$0xff] %vm808_vm1, %v17511_v0 }
  0x7c   : > { %917 = vst.msk [vmem:[#allocation3 + $0x360] sm:$0xff] %vm808_vm1, %v17511_v0  ;;  %918 = vst.msk [vmem:[#allocation3 + $0x368] sm:$0xff] %vm808_vm1, %v17511_v0 }
  0x7d   : > { %919 = vst.msk [vmem:[#allocation3 + $0x370] sm:$0xff] %vm808_vm1, %v17511_v0  ;;  %920 = vst.msk [vmem:[#allocation3 + $0x378] sm:$0xff] %vm808_vm1, %v17511_v0 }
  0x7e   : > { %921 = vst.msk [vmem:[#allocation3 + $0x380] sm:$0xff] %vm808_vm1, %v17511_v0  ;;  %922 = vst.msk [vmem:[#allocation3 + $0x388] sm:$0xff] %vm808_vm1, %v17511_v0 }
  0x7f   : > { %923 = vst.msk [vmem:[#allocation3 + $0x390] sm:$0xff] %vm808_vm1, %v17511_v0  ;;  %924 = vst.msk [vmem:[#allocation3 + $0x398] sm:$0xff] %vm808_vm1, %v17511_v0 }
  0x80   : > { %925 = vst.msk [vmem:[#allocation3 + $0x3a0] sm:$0xff] %vm808_vm1, %v17511_v0  ;;  %926 = vst.msk [vmem:[#allocation3 + $0x3a8] sm:$0xff] %vm808_vm1, %v17511_v0 }
  0x81   : > { %927 = vst.msk [vmem:[#allocation3 + $0x3b0] sm:$0xff] %vm808_vm1, %v17511_v0  ;;  %928 = vst.msk [vmem:[#allocation3 + $0x3b8] sm:$0xff] %vm808_vm1, %v17511_v0 }
  0x82   : > { %929 = vst.msk [vmem:[#allocation3 + $0x3c0] sm:$0xff] %vm808_vm1, %v17511_v0  ;;  %930 = vst.msk [vmem:[#allocation3 + $0x3c8] sm:$0xff] %vm808_vm1, %v17511_v0 }
  0x83   : > { %931 = vst.msk [vmem:[#allocation3 + $0x3d0] sm:$0xff] %vm808_vm1, %v17511_v0  ;;  %932 = vst.msk [vmem:[#allocation3 + $0x3d8] sm:$0xff] %vm808_vm1, %v17511_v0 }
  0x84   : > { %933 = vst.msk [vmem:[#allocation3 + $0x3e0] sm:$0xff] %vm808_vm1, %v17511_v0  ;;  %934 = vst.msk [vmem:[#allocation3 + $0x3e8] sm:$0xff] %vm808_vm1, %v17511_v0 }
  0x85   : > { %935 = vst.msk [vmem:[#allocation3 + $0x3f0] sm:$0xff] %vm808_vm1, %v17511_v0  ;;  %936 = vst.msk [vmem:[#allocation3 + $0x3f8] sm:$0xff] %vm808_vm1, %v17511_v0 }
  0x86   : > { %937 = vst.msk [vmem:[#allocation3 + $0x400] sm:$0xff] %vm808_vm1, %v17511_v0  ;;  %938 = vst.msk [vmem:[#allocation3 + $0x408] sm:$0xff] %vm808_vm1, %v17511_v0 }
  0x87   : > { %939 = vst.msk [vmem:[#allocation3 + $0x410] sm:$0xff] %vm808_vm1, %v17511_v0  ;;  %940 = vst.msk [vmem:[#allocation3 + $0x418] sm:$0xff] %vm808_vm1, %v17511_v0 }
  0x88   : > { %941 = vst.msk [vmem:[#allocation3 + $0x420] sm:$0xff] %vm808_vm1, %v17511_v0  ;;  %942 = vst.msk [vmem:[#allocation3 + $0x428] sm:$0xff] %vm808_vm1, %v17511_v0 }
  0x89   : > { %943 = vst.msk [vmem:[#allocation3 + $0x430] sm:$0xff] %vm808_vm1, %v17511_v0  ;;  %944 = vst.msk [vmem:[#allocation3 + $0x438] sm:$0xff] %vm808_vm1, %v17511_v0 }
  0x8a   : > { %945 = vst.msk [vmem:[#allocation3 + $0x440] sm:$0xff] %vm808_vm1, %v17511_v0  ;;  %946 = vst.msk [vmem:[#allocation3 + $0x448] sm:$0xff] %vm808_vm1, %v17511_v0 }
  0x8b   : > { %947 = vst.msk [vmem:[#allocation3 + $0x450] sm:$0xff] %vm808_vm1, %v17511_v0  ;;  %948 = vst.msk [vmem:[#allocation3 + $0x458] sm:$0xff] %vm808_vm1, %v17511_v0 }
  0x8c   : > { %949 = vst.msk [vmem:[#allocation3 + $0x460] sm:$0xff] %vm808_vm1, %v17511_v0  ;;  %950 = vst.msk [vmem:[#allocation3 + $0x468] sm:$0xff] %vm808_vm1, %v17511_v0 }
  0x8d   : > { %951 = vst.msk [vmem:[#allocation3 + $0x470] sm:$0xff] %vm808_vm1, %v17511_v0  ;;  %952 = vst.msk [vmem:[#allocation3 + $0x478] sm:$0xff] %vm808_vm1, %v17511_v0 }
  0x8e   : > { %953 = vst.msk [vmem:[#allocation3 + $0x480] sm:$0xff] %vm808_vm1, %v17511_v0  ;;  %954 = vst.msk [vmem:[#allocation3 + $0x488] sm:$0xff] %vm808_vm1, %v17511_v0 }
  0x8f   : > { %955 = vst.msk [vmem:[#allocation3 + $0x490] sm:$0xff] %vm808_vm1, %v17511_v0  ;;  %956 = vst.msk [vmem:[#allocation3 + $0x498] sm:$0xff] %vm808_vm1, %v17511_v0 }
  0x90   : > { %957 = vst.msk [vmem:[#allocation3 + $0x4a0] sm:$0xff] %vm808_vm1, %v17511_v0  ;;  %958 = vst.msk [vmem:[#allocation3 + $0x4a8] sm:$0xff] %vm808_vm1, %v17511_v0 }
  0x91   : > { %959 = vst.msk [vmem:[#allocation3 + $0x4b0] sm:$0xff] %vm808_vm1, %v17511_v0  ;;  %960 = vst.msk [vmem:[#allocation3 + $0x4b8] sm:$0xff] %vm808_vm1, %v17511_v0 }
  0x92   : > { %961 = vst.msk [vmem:[#allocation3 + $0x4c0] sm:$0xff] %vm808_vm1, %v17511_v0  ;;  %962 = vst.msk [vmem:[#allocation3 + $0x4c8] sm:$0xff] %vm808_vm1, %v17511_v0 }
  0x93   : > { %963 = vst.msk [vmem:[#allocation3 + $0x4d0] sm:$0xff] %vm808_vm1, %v17511_v0  ;;  %964 = vst.msk [vmem:[#allocation3 + $0x4d8] sm:$0xff] %vm808_vm1, %v17511_v0 }
  0x94   : > { %965 = vst.msk [vmem:[#allocation3 + $0x4e0] sm:$0xff] %vm808_vm1, %v17511_v0  ;;  %966 = vst.msk [vmem:[#allocation3 + $0x4e8] sm:$0xff] %vm808_vm1, %v17511_v0 }
  0x95   : > { %967 = vst.msk [vmem:[#allocation3 + $0x4f0] sm:$0xff] %vm808_vm1, %v17511_v0  ;;  %968 = vst.msk [vmem:[#allocation3 + $0x4f8] sm:$0xff] %vm808_vm1, %v17511_v0 }
  0x96   : > { %969 = vst.msk [vmem:[#allocation3 + $0x500] sm:$0xff] %vm808_vm1, %v17511_v0  ;;  %970 = vst.msk [vmem:[#allocation3 + $0x508] sm:$0xff] %vm808_vm1, %v17511_v0 }
  0x97   : > { %971 = vst.msk [vmem:[#allocation3 + $0x510] sm:$0xff] %vm808_vm1, %v17511_v0  ;;  %972 = vst.msk [vmem:[#allocation3 + $0x518] sm:$0xff] %vm808_vm1, %v17511_v0 }
  0x98   : > { %973 = vst.msk [vmem:[#allocation3 + $0x520] sm:$0xff] %vm808_vm1, %v17511_v0  ;;  %974 = vst.msk [vmem:[#allocation3 + $0x528] sm:$0xff] %vm808_vm1, %v17511_v0 }
  0x99   : > { %975 = vst.msk [vmem:[#allocation3 + $0x530] sm:$0xff] %vm808_vm1, %v17511_v0  ;;  %976 = vst.msk [vmem:[#allocation3 + $0x538] sm:$0xff] %vm808_vm1, %v17511_v0 }
  0x9a   : > { %977 = vst.msk [vmem:[#allocation3 + $0x540] sm:$0xff] %vm808_vm1, %v17511_v0  ;;  %978 = vst.msk [vmem:[#allocation3 + $0x548] sm:$0xff] %vm808_vm1, %v17511_v0 }
  0x9b   : > { %979 = vst.msk [vmem:[#allocation3 + $0x550] sm:$0xff] %vm808_vm1, %v17511_v0  ;;  %980 = vst.msk [vmem:[#allocation3 + $0x558] sm:$0xff] %vm808_vm1, %v17511_v0 }
  0x9c   : > { %981 = vst.msk [vmem:[#allocation3 + $0x560] sm:$0xff] %vm808_vm1, %v17511_v0  ;;  %982 = vst.msk [vmem:[#allocation3 + $0x568] sm:$0xff] %vm808_vm1, %v17511_v0 }
  0x9d   : > { %983 = vst.msk [vmem:[#allocation3 + $0x570] sm:$0xff] %vm808_vm1, %v17511_v0  ;;  %984 = vst.msk [vmem:[#allocation3 + $0x578] sm:$0xff] %vm808_vm1, %v17511_v0 }
  0x9e   : > { %985 = vst.msk [vmem:[#allocation3 + $0x580] sm:$0xff] %vm808_vm1, %v17511_v0  ;;  %986 = vst.msk [vmem:[#allocation3 + $0x588] sm:$0xff] %vm808_vm1, %v17511_v0 }
  0x9f   : > { %987 = vst.msk [vmem:[#allocation3 + $0x590] sm:$0xff] %vm808_vm1, %v17511_v0  ;;  %988 = vst.msk [vmem:[#allocation3 + $0x598] sm:$0xff] %vm808_vm1, %v17511_v0 }
  0xa0   : > { %989 = vst.msk [vmem:[#allocation3 + $0x5a0] sm:$0xff] %vm808_vm1, %v17511_v0  ;;  %990 = vst.msk [vmem:[#allocation3 + $0x5a8] sm:$0xff] %vm808_vm1, %v17511_v0 }
  0xa1   : > { %991 = vst.msk [vmem:[#allocation3 + $0x5b0] sm:$0xff] %vm808_vm1, %v17511_v0  ;;  %992 = vst.msk [vmem:[#allocation3 + $0x5b8] sm:$0xff] %vm808_vm1, %v17511_v0 }
  0xa2   : > { %993 = vst.msk [vmem:[#allocation3 + $0x5c0] sm:$0xff] %vm808_vm1, %v17511_v0  ;;  %994 = vst.msk [vmem:[#allocation3 + $0x5c8] sm:$0xff] %vm808_vm1, %v17511_v0 }
  0xa3   : > { %995 = vst.msk [vmem:[#allocation3 + $0x5d0] sm:$0xff] %vm808_vm1, %v17511_v0  ;;  %996 = vst.msk [vmem:[#allocation3 + $0x5d8] sm:$0xff] %vm808_vm1, %v17511_v0 }
  0xa4   : > { %997 = vst.msk [vmem:[#allocation3 + $0x5e0] sm:$0xff] %vm808_vm1, %v17511_v0  ;;  %998 = vst.msk [vmem:[#allocation3 + $0x5e8] sm:$0xff] %vm808_vm1, %v17511_v0 }
  0xa5   : > { %999 = vst.msk [vmem:[#allocation3 + $0x5f0] sm:$0xff] %vm808_vm1, %v17511_v0  ;;  %1000 = vst.msk [vmem:[#allocation3 + $0x5f8] sm:$0xff] %vm808_vm1, %v17511_v0 }
  0xa6   : > { %1002 = vst.msk [vmem:[#allocation4] sm:$0xff] %vm1001_vm2, %v17511_v0  ;;  %1003 = vst.msk [vmem:[#allocation4 + $0x8] sm:$0xff] %vm1001_vm2, %v17511_v0 }
  0xa7   : > { %1004 = vst.msk [vmem:[#allocation4 + $0x10] sm:$0xff] %vm1001_vm2, %v17511_v0  ;;  %1005 = vst.msk [vmem:[#allocation4 + $0x18] sm:$0xff] %vm1001_vm2, %v17511_v0 }
  0xa8   : > { %1006 = vst.msk [vmem:[#allocation4 + $0x20] sm:$0xff] %vm1001_vm2, %v17511_v0  ;;  %1007 = vst.msk [vmem:[#allocation4 + $0x28] sm:$0xff] %vm1001_vm2, %v17511_v0 }
  0xa9   : > { %1008 = vst.msk [vmem:[#allocation4 + $0x30] sm:$0xff] %vm1001_vm2, %v17511_v0  ;;  %1009 = vst.msk [vmem:[#allocation4 + $0x38] sm:$0xff] %vm1001_vm2, %v17511_v0 }
  0xaa   : > { %1010 = vst.msk [vmem:[#allocation4 + $0x40] sm:$0xff] %vm1001_vm2, %v17511_v0  ;;  %1011 = vst.msk [vmem:[#allocation4 + $0x48] sm:$0xff] %vm1001_vm2, %v17511_v0 }
  0xab   : > { %1012 = vst.msk [vmem:[#allocation4 + $0x50] sm:$0xff] %vm1001_vm2, %v17511_v0  ;;  %1013 = vst.msk [vmem:[#allocation4 + $0x58] sm:$0xff] %vm1001_vm2, %v17511_v0 }
  0xac   : > { %1014 = vst.msk [vmem:[#allocation4 + $0x60] sm:$0xff] %vm1001_vm2, %v17511_v0  ;;  %1015 = vst.msk [vmem:[#allocation4 + $0x68] sm:$0xff] %vm1001_vm2, %v17511_v0 }
  0xad   : > { %1016 = vst.msk [vmem:[#allocation4 + $0x70] sm:$0xff] %vm1001_vm2, %v17511_v0  ;;  %1017 = vst.msk [vmem:[#allocation4 + $0x78] sm:$0xff] %vm1001_vm2, %v17511_v0 }
  0xae   : > { %1018 = vst.msk [vmem:[#allocation4 + $0x80] sm:$0xff] %vm1001_vm2, %v17511_v0  ;;  %1019 = vst.msk [vmem:[#allocation4 + $0x88] sm:$0xff] %vm1001_vm2, %v17511_v0 }
  0xaf   : > { %1020 = vst.msk [vmem:[#allocation4 + $0x90] sm:$0xff] %vm1001_vm2, %v17511_v0  ;;  %1021 = vst.msk [vmem:[#allocation4 + $0x98] sm:$0xff] %vm1001_vm2, %v17511_v0 }
  0xb0   : > { %1022 = vst.msk [vmem:[#allocation4 + $0xa0] sm:$0xff] %vm1001_vm2, %v17511_v0  ;;  %1023 = vst.msk [vmem:[#allocation4 + $0xa8] sm:$0xff] %vm1001_vm2, %v17511_v0 }
  0xb1   : > { %1024 = vst.msk [vmem:[#allocation4 + $0xb0] sm:$0xff] %vm1001_vm2, %v17511_v0  ;;  %1025 = vst.msk [vmem:[#allocation4 + $0xb8] sm:$0xff] %vm1001_vm2, %v17511_v0 }
  0xb2   : > { %1026 = vst.msk [vmem:[#allocation4 + $0xc0] sm:$0xff] %vm1001_vm2, %v17511_v0  ;;  %1027 = vst.msk [vmem:[#allocation4 + $0xc8] sm:$0xff] %vm1001_vm2, %v17511_v0 }
  0xb3   : > { %1028 = vst.msk [vmem:[#allocation4 + $0xd0] sm:$0xff] %vm1001_vm2, %v17511_v0  ;;  %1029 = vst.msk [vmem:[#allocation4 + $0xd8] sm:$0xff] %vm1001_vm2, %v17511_v0 }
  0xb4   : > { %1030 = vst.msk [vmem:[#allocation4 + $0xe0] sm:$0xff] %vm1001_vm2, %v17511_v0  ;;  %1031 = vst.msk [vmem:[#allocation4 + $0xe8] sm:$0xff] %vm1001_vm2, %v17511_v0 }
  0xb5   : > { %1032 = vst.msk [vmem:[#allocation4 + $0xf0] sm:$0xff] %vm1001_vm2, %v17511_v0  ;;  %1033 = vst.msk [vmem:[#allocation4 + $0xf8] sm:$0xff] %vm1001_vm2, %v17511_v0 }
  0xb6   : > { %1034 = vst.msk [vmem:[#allocation4 + $0x100] sm:$0xff] %vm1001_vm2, %v17511_v0  ;;  %1035 = vst.msk [vmem:[#allocation4 + $0x108] sm:$0xff] %vm1001_vm2, %v17511_v0 }
  0xb7   : > { %1036 = vst.msk [vmem:[#allocation4 + $0x110] sm:$0xff] %vm1001_vm2, %v17511_v0  ;;  %1037 = vst.msk [vmem:[#allocation4 + $0x118] sm:$0xff] %vm1001_vm2, %v17511_v0 }
  0xb8   : > { %1038 = vst.msk [vmem:[#allocation4 + $0x120] sm:$0xff] %vm1001_vm2, %v17511_v0  ;;  %1039 = vst.msk [vmem:[#allocation4 + $0x128] sm:$0xff] %vm1001_vm2, %v17511_v0 }
  0xb9   : > { %1040 = vst.msk [vmem:[#allocation4 + $0x130] sm:$0xff] %vm1001_vm2, %v17511_v0  ;;  %1041 = vst.msk [vmem:[#allocation4 + $0x138] sm:$0xff] %vm1001_vm2, %v17511_v0 }
  0xba   : > { %1042 = vst.msk [vmem:[#allocation4 + $0x140] sm:$0xff] %vm1001_vm2, %v17511_v0  ;;  %1043 = vst.msk [vmem:[#allocation4 + $0x148] sm:$0xff] %vm1001_vm2, %v17511_v0 }
  0xbb   : > { %1044 = vst.msk [vmem:[#allocation4 + $0x150] sm:$0xff] %vm1001_vm2, %v17511_v0  ;;  %1045 = vst.msk [vmem:[#allocation4 + $0x158] sm:$0xff] %vm1001_vm2, %v17511_v0 }
  0xbc   : > { %1046 = vst.msk [vmem:[#allocation4 + $0x160] sm:$0xff] %vm1001_vm2, %v17511_v0  ;;  %1047 = vst.msk [vmem:[#allocation4 + $0x168] sm:$0xff] %vm1001_vm2, %v17511_v0 }
  0xbd   : > { %1048 = vst.msk [vmem:[#allocation4 + $0x170] sm:$0xff] %vm1001_vm2, %v17511_v0  ;;  %1049 = vst.msk [vmem:[#allocation4 + $0x178] sm:$0xff] %vm1001_vm2, %v17511_v0 }
  0xbe   : > { %1050 = vst.msk [vmem:[#allocation4 + $0x180] sm:$0xff] %vm1001_vm2, %v17511_v0  ;;  %1051 = vst.msk [vmem:[#allocation4 + $0x188] sm:$0xff] %vm1001_vm2, %v17511_v0 }
  0xbf   : > { %1052 = vst.msk [vmem:[#allocation4 + $0x190] sm:$0xff] %vm1001_vm2, %v17511_v0  ;;  %1053 = vst.msk [vmem:[#allocation4 + $0x198] sm:$0xff] %vm1001_vm2, %v17511_v0 }
  0xc0   : > { %1054 = vst.msk [vmem:[#allocation4 + $0x1a0] sm:$0xff] %vm1001_vm2, %v17511_v0  ;;  %1055 = vst.msk [vmem:[#allocation4 + $0x1a8] sm:$0xff] %vm1001_vm2, %v17511_v0 }
  0xc1   : > { %1056 = vst.msk [vmem:[#allocation4 + $0x1b0] sm:$0xff] %vm1001_vm2, %v17511_v0  ;;  %1057 = vst.msk [vmem:[#allocation4 + $0x1b8] sm:$0xff] %vm1001_vm2, %v17511_v0 }
  0xc2   : > { %1058 = vst.msk [vmem:[#allocation4 + $0x1c0] sm:$0xff] %vm1001_vm2, %v17511_v0  ;;  %1059 = vst.msk [vmem:[#allocation4 + $0x1c8] sm:$0xff] %vm1001_vm2, %v17511_v0 }
  0xc3   : > { %1060 = vst.msk [vmem:[#allocation4 + $0x1d0] sm:$0xff] %vm1001_vm2, %v17511_v0  ;;  %1061 = vst.msk [vmem:[#allocation4 + $0x1d8] sm:$0xff] %vm1001_vm2, %v17511_v0 }
  0xc4   : > { %1062 = vst.msk [vmem:[#allocation4 + $0x1e0] sm:$0xff] %vm1001_vm2, %v17511_v0  ;;  %1063 = vst.msk [vmem:[#allocation4 + $0x1e8] sm:$0xff] %vm1001_vm2, %v17511_v0 }
  0xc5   : > { %1064 = vst.msk [vmem:[#allocation4 + $0x1f0] sm:$0xff] %vm1001_vm2, %v17511_v0  ;;  %1065 = vst.msk [vmem:[#allocation4 + $0x1f8] sm:$0xff] %vm1001_vm2, %v17511_v0 }
  0xc6   : > { %1066 = vst.msk [vmem:[#allocation4 + $0x200] sm:$0xff] %vm1001_vm2, %v17511_v0  ;;  %1067 = vst.msk [vmem:[#allocation4 + $0x208] sm:$0xff] %vm1001_vm2, %v17511_v0 }
  0xc7   : > { %1068 = vst.msk [vmem:[#allocation4 + $0x210] sm:$0xff] %vm1001_vm2, %v17511_v0  ;;  %1069 = vst.msk [vmem:[#allocation4 + $0x218] sm:$0xff] %vm1001_vm2, %v17511_v0 }
  0xc8   : > { %1070 = vst.msk [vmem:[#allocation4 + $0x220] sm:$0xff] %vm1001_vm2, %v17511_v0  ;;  %1071 = vst.msk [vmem:[#allocation4 + $0x228] sm:$0xff] %vm1001_vm2, %v17511_v0 }
  0xc9   : > { %1072 = vst.msk [vmem:[#allocation4 + $0x230] sm:$0xff] %vm1001_vm2, %v17511_v0  ;;  %1073 = vst.msk [vmem:[#allocation4 + $0x238] sm:$0xff] %vm1001_vm2, %v17511_v0 }
  0xca   : > { %1074 = vst.msk [vmem:[#allocation4 + $0x240] sm:$0xff] %vm1001_vm2, %v17511_v0  ;;  %1075 = vst.msk [vmem:[#allocation4 + $0x248] sm:$0xff] %vm1001_vm2, %v17511_v0 }
  0xcb   : > { %1076 = vst.msk [vmem:[#allocation4 + $0x250] sm:$0xff] %vm1001_vm2, %v17511_v0  ;;  %1077 = vst.msk [vmem:[#allocation4 + $0x258] sm:$0xff] %vm1001_vm2, %v17511_v0 }
  0xcc   : > { %1078 = vst.msk [vmem:[#allocation4 + $0x260] sm:$0xff] %vm1001_vm2, %v17511_v0  ;;  %1079 = vst.msk [vmem:[#allocation4 + $0x268] sm:$0xff] %vm1001_vm2, %v17511_v0 }
  0xcd   : > { %1080 = vst.msk [vmem:[#allocation4 + $0x270] sm:$0xff] %vm1001_vm2, %v17511_v0  ;;  %1081 = vst.msk [vmem:[#allocation4 + $0x278] sm:$0xff] %vm1001_vm2, %v17511_v0 }
  0xce   : > { %1082 = vst.msk [vmem:[#allocation4 + $0x280] sm:$0xff] %vm1001_vm2, %v17511_v0  ;;  %1083 = vst.msk [vmem:[#allocation4 + $0x288] sm:$0xff] %vm1001_vm2, %v17511_v0 }
  0xcf   : > { %1084 = vst.msk [vmem:[#allocation4 + $0x290] sm:$0xff] %vm1001_vm2, %v17511_v0  ;;  %1085 = vst.msk [vmem:[#allocation4 + $0x298] sm:$0xff] %vm1001_vm2, %v17511_v0 }
  0xd0   : > { %1086 = vst.msk [vmem:[#allocation4 + $0x2a0] sm:$0xff] %vm1001_vm2, %v17511_v0  ;;  %1087 = vst.msk [vmem:[#allocation4 + $0x2a8] sm:$0xff] %vm1001_vm2, %v17511_v0 }
  0xd1   : > { %1088 = vst.msk [vmem:[#allocation4 + $0x2b0] sm:$0xff] %vm1001_vm2, %v17511_v0  ;;  %1089 = vst.msk [vmem:[#allocation4 + $0x2b8] sm:$0xff] %vm1001_vm2, %v17511_v0 }
  0xd2   : > { %1090 = vst.msk [vmem:[#allocation4 + $0x2c0] sm:$0xff] %vm1001_vm2, %v17511_v0  ;;  %1091 = vst.msk [vmem:[#allocation4 + $0x2c8] sm:$0xff] %vm1001_vm2, %v17511_v0 }
  0xd3   : > { %1092 = vst.msk [vmem:[#allocation4 + $0x2d0] sm:$0xff] %vm1001_vm2, %v17511_v0  ;;  %1093 = vst.msk [vmem:[#allocation4 + $0x2d8] sm:$0xff] %vm1001_vm2, %v17511_v0 }
  0xd4   : > { %1094 = vst.msk [vmem:[#allocation4 + $0x2e0] sm:$0xff] %vm1001_vm2, %v17511_v0  ;;  %1095 = vst.msk [vmem:[#allocation4 + $0x2e8] sm:$0xff] %vm1001_vm2, %v17511_v0 }
  0xd5   : > { %1096 = vst.msk [vmem:[#allocation4 + $0x2f0] sm:$0xff] %vm1001_vm2, %v17511_v0  ;;  %1097 = vst.msk [vmem:[#allocation4 + $0x2f8] sm:$0xff] %vm1001_vm2, %v17511_v0 }
  0xd6   : > { %1099 = vst.msk [vmem:[#allocation5] sm:$0xff] %vm1098_vm3, %v17511_v0  ;;  %1100 = vst.msk [vmem:[#allocation5 + $0x8] sm:$0xff] %vm1098_vm3, %v17511_v0 }
  0xd7   : > { %1101 = vst.msk [vmem:[#allocation5 + $0x10] sm:$0xff] %vm1098_vm3, %v17511_v0  ;;  %1102 = vst.msk [vmem:[#allocation5 + $0x18] sm:$0xff] %vm1098_vm3, %v17511_v0 }
  0xd8   : > { %1103 = vst.msk [vmem:[#allocation5 + $0x20] sm:$0xff] %vm1098_vm3, %v17511_v0  ;;  %1104 = vst.msk [vmem:[#allocation5 + $0x28] sm:$0xff] %vm1098_vm3, %v17511_v0 }
  0xd9   : > { %1105 = vst.msk [vmem:[#allocation5 + $0x30] sm:$0xff] %vm1098_vm3, %v17511_v0  ;;  %1106 = vst.msk [vmem:[#allocation5 + $0x38] sm:$0xff] %vm1098_vm3, %v17511_v0 }
  0xda   : > { %1107 = vst.msk [vmem:[#allocation5 + $0x40] sm:$0xff] %vm1098_vm3, %v17511_v0  ;;  %1108 = vst.msk [vmem:[#allocation5 + $0x48] sm:$0xff] %vm1098_vm3, %v17511_v0 }
  0xdb   : > { %1109 = vst.msk [vmem:[#allocation5 + $0x50] sm:$0xff] %vm1098_vm3, %v17511_v0  ;;  %1110 = vst.msk [vmem:[#allocation5 + $0x58] sm:$0xff] %vm1098_vm3, %v17511_v0 }
  0xdc   : > { %1111 = vst.msk [vmem:[#allocation5 + $0x60] sm:$0xff] %vm1098_vm3, %v17511_v0  ;;  %1112 = vst.msk [vmem:[#allocation5 + $0x68] sm:$0xff] %vm1098_vm3, %v17511_v0 }
  0xdd   : > { %1113 = vst.msk [vmem:[#allocation5 + $0x70] sm:$0xff] %vm1098_vm3, %v17511_v0  ;;  %1114 = vst.msk [vmem:[#allocation5 + $0x78] sm:$0xff] %vm1098_vm3, %v17511_v0 }
  0xde   : > { %1115 = vst.msk [vmem:[#allocation5 + $0x80] sm:$0xff] %vm1098_vm3, %v17511_v0  ;;  %1116 = vst.msk [vmem:[#allocation5 + $0x88] sm:$0xff] %vm1098_vm3, %v17511_v0 }
  0xdf   : > { %1117 = vst.msk [vmem:[#allocation5 + $0x90] sm:$0xff] %vm1098_vm3, %v17511_v0  ;;  %1118 = vst.msk [vmem:[#allocation5 + $0x98] sm:$0xff] %vm1098_vm3, %v17511_v0 }
  0xe0   : > { %1119 = vst.msk [vmem:[#allocation5 + $0xa0] sm:$0xff] %vm1098_vm3, %v17511_v0  ;;  %1120 = vst.msk [vmem:[#allocation5 + $0xa8] sm:$0xff] %vm1098_vm3, %v17511_v0 }
  0xe1   : > { %1121 = vst.msk [vmem:[#allocation5 + $0xb0] sm:$0xff] %vm1098_vm3, %v17511_v0  ;;  %1122 = vst.msk [vmem:[#allocation5 + $0xb8] sm:$0xff] %vm1098_vm3, %v17511_v0 }
  0xe2   : > { %1123 = vst.msk [vmem:[#allocation5 + $0xc0] sm:$0xff] %vm1098_vm3, %v17511_v0  ;;  %1124 = vst.msk [vmem:[#allocation5 + $0xc8] sm:$0xff] %vm1098_vm3, %v17511_v0 }
  0xe3   : > { %1125 = vst.msk [vmem:[#allocation5 + $0xd0] sm:$0xff] %vm1098_vm3, %v17511_v0  ;;  %1126 = vst.msk [vmem:[#allocation5 + $0xd8] sm:$0xff] %vm1098_vm3, %v17511_v0 }
  0xe4   : > { %1127 = vst.msk [vmem:[#allocation5 + $0xe0] sm:$0xff] %vm1098_vm3, %v17511_v0  ;;  %1128 = vst.msk [vmem:[#allocation5 + $0xe8] sm:$0xff] %vm1098_vm3, %v17511_v0 }
  0xe5   : > { %1129 = vst.msk [vmem:[#allocation5 + $0xf0] sm:$0xff] %vm1098_vm3, %v17511_v0  ;;  %1130 = vst.msk [vmem:[#allocation5 + $0xf8] sm:$0xff] %vm1098_vm3, %v17511_v0 }
  0xe6   : > { %1131 = vst.msk [vmem:[#allocation5 + $0x100] sm:$0xff] %vm1098_vm3, %v17511_v0  ;;  %1132 = vst.msk [vmem:[#allocation5 + $0x108] sm:$0xff] %vm1098_vm3, %v17511_v0 }
  0xe7   : > { %1133 = vst.msk [vmem:[#allocation5 + $0x110] sm:$0xff] %vm1098_vm3, %v17511_v0  ;;  %1134 = vst.msk [vmem:[#allocation5 + $0x118] sm:$0xff] %vm1098_vm3, %v17511_v0 }
  0xe8   : > { %1135 = vst.msk [vmem:[#allocation5 + $0x120] sm:$0xff] %vm1098_vm3, %v17511_v0  ;;  %1136 = vst.msk [vmem:[#allocation5 + $0x128] sm:$0xff] %vm1098_vm3, %v17511_v0 }
  0xe9   : > { %1137 = vst.msk [vmem:[#allocation5 + $0x130] sm:$0xff] %vm1098_vm3, %v17511_v0  ;;  %1138 = vst.msk [vmem:[#allocation5 + $0x138] sm:$0xff] %vm1098_vm3, %v17511_v0 }
  0xea   : > { %1139 = vst.msk [vmem:[#allocation5 + $0x140] sm:$0xff] %vm1098_vm3, %v17511_v0  ;;  %1140 = vst.msk [vmem:[#allocation5 + $0x148] sm:$0xff] %vm1098_vm3, %v17511_v0 }
  0xeb   : > { %1141 = vst.msk [vmem:[#allocation5 + $0x150] sm:$0xff] %vm1098_vm3, %v17511_v0  ;;  %1142 = vst.msk [vmem:[#allocation5 + $0x158] sm:$0xff] %vm1098_vm3, %v17511_v0 }
  0xec   : > { %1143 = vst.msk [vmem:[#allocation5 + $0x160] sm:$0xff] %vm1098_vm3, %v17511_v0  ;;  %1144 = vst.msk [vmem:[#allocation5 + $0x168] sm:$0xff] %vm1098_vm3, %v17511_v0 }
  0xed   : > { %1145 = vst.msk [vmem:[#allocation5 + $0x170] sm:$0xff] %vm1098_vm3, %v17511_v0  ;;  %1146 = vst.msk [vmem:[#allocation5 + $0x178] sm:$0xff] %vm1098_vm3, %v17511_v0 }
  0xee   : > { %1148 = vst.msk [vmem:[#allocation6] sm:$0xff] %vm1147_vm4, %v17511_v0  ;;  %1149 = vst.msk [vmem:[#allocation6 + $0x8] sm:$0xff] %vm1147_vm4, %v17511_v0 }
  0xef   : > { %1150 = vst.msk [vmem:[#allocation6 + $0x10] sm:$0xff] %vm1147_vm4, %v17511_v0  ;;  %1151 = vst.msk [vmem:[#allocation6 + $0x18] sm:$0xff] %vm1147_vm4, %v17511_v0 }
  0xf0   : > { %1152 = vst.msk [vmem:[#allocation6 + $0x20] sm:$0xff] %vm1147_vm4, %v17511_v0  ;;  %1153 = vst.msk [vmem:[#allocation6 + $0x28] sm:$0xff] %vm1147_vm4, %v17511_v0 }
  0xf1   : > { %1154 = vst.msk [vmem:[#allocation6 + $0x30] sm:$0xff] %vm1147_vm4, %v17511_v0  ;;  %1155 = vst.msk [vmem:[#allocation6 + $0x38] sm:$0xff] %vm1147_vm4, %v17511_v0 }
  0xf2   : > { %1156 = vst.msk [vmem:[#allocation6 + $0x40] sm:$0xff] %vm1147_vm4, %v17511_v0  ;;  %1157 = vst.msk [vmem:[#allocation6 + $0x48] sm:$0xff] %vm1147_vm4, %v17511_v0 }
  0xf3   : > { %1158 = vst.msk [vmem:[#allocation6 + $0x50] sm:$0xff] %vm1147_vm4, %v17511_v0  ;;  %1159 = vst.msk [vmem:[#allocation6 + $0x58] sm:$0xff] %vm1147_vm4, %v17511_v0 }
  0xf4   : > { %1160 = vst.msk [vmem:[#allocation6 + $0x60] sm:$0xff] %vm1147_vm4, %v17511_v0  ;;  %1161 = vst.msk [vmem:[#allocation6 + $0x68] sm:$0xff] %vm1147_vm4, %v17511_v0 }
  0xf5   : > { %1162 = vst.msk [vmem:[#allocation6 + $0x70] sm:$0xff] %vm1147_vm4, %v17511_v0  ;;  %1163 = vst.msk [vmem:[#allocation6 + $0x78] sm:$0xff] %vm1147_vm4, %v17511_v0 }
  0xf6   : > { %1164 = vst.msk [vmem:[#allocation6 + $0x80] sm:$0xff] %vm1147_vm4, %v17511_v0  ;;  %1165 = vst.msk [vmem:[#allocation6 + $0x88] sm:$0xff] %vm1147_vm4, %v17511_v0 }
  0xf7   : > { %1166 = vst.msk [vmem:[#allocation6 + $0x90] sm:$0xff] %vm1147_vm4, %v17511_v0  ;;  %1167 = vst.msk [vmem:[#allocation6 + $0x98] sm:$0xff] %vm1147_vm4, %v17511_v0 }
  0xf8   : > { %1168 = vst.msk [vmem:[#allocation6 + $0xa0] sm:$0xff] %vm1147_vm4, %v17511_v0  ;;  %1169 = vst.msk [vmem:[#allocation6 + $0xa8] sm:$0xff] %vm1147_vm4, %v17511_v0 }
  0xf9   : > { %1170 = vst.msk [vmem:[#allocation6 + $0xb0] sm:$0xff] %vm1147_vm4, %v17511_v0  ;;  %1171 = vst.msk [vmem:[#allocation6 + $0xb8] sm:$0xff] %vm1147_vm4, %v17511_v0 }
  0xfa   : > { %1172 = vst.msk [vmem:[#allocation6 + $0xc0] sm:$0xff] %vm1147_vm4, %v17511_v0  ;;  %1173 = vst.msk [vmem:[#allocation6 + $0xc8] sm:$0xff] %vm1147_vm4, %v17511_v0 }
  0xfb   : > { %1174 = vst.msk [vmem:[#allocation6 + $0xd0] sm:$0xff] %vm1147_vm4, %v17511_v0  ;;  %1175 = vst.msk [vmem:[#allocation6 + $0xd8] sm:$0xff] %vm1147_vm4, %v17511_v0 }
  0xfc   : > { %1176 = vst.msk [vmem:[#allocation6 + $0xe0] sm:$0xff] %vm1147_vm4, %v17511_v0  ;;  %1177 = vst.msk [vmem:[#allocation6 + $0xe8] sm:$0xff] %vm1147_vm4, %v17511_v0 }
  0xfd   : > { %1178 = vst.msk [vmem:[#allocation6 + $0xf0] sm:$0xff] %vm1147_vm4, %v17511_v0  ;;  %1179 = vst.msk [vmem:[#allocation6 + $0xf8] sm:$0xff] %vm1147_vm4, %v17511_v0 }
  0xfe   : > { %1180 = vst.msk [vmem:[#allocation6 + $0x100] sm:$0xff] %vm1147_vm4, %v17511_v0  ;;  %1181 = vst.msk [vmem:[#allocation6 + $0x108] sm:$0xff] %vm1147_vm4, %v17511_v0 }
  0xff   : > { %1182 = vst.msk [vmem:[#allocation6 + $0x110] sm:$0xff] %vm1147_vm4, %v17511_v0  ;;  %1183 = vst.msk [vmem:[#allocation6 + $0x118] sm:$0xff] %vm1147_vm4, %v17511_v0 }
 0x100   : > { %1184 = vst.msk [vmem:[#allocation6 + $0x120] sm:$0xff] %vm1147_vm4, %v17511_v0  ;;  %1185 = vst.msk [vmem:[#allocation6 + $0x128] sm:$0xff] %vm1147_vm4, %v17511_v0 }
 0x101   : > { %1186 = vst.msk [vmem:[#allocation6 + $0x130] sm:$0xff] %vm1147_vm4, %v17511_v0  ;;  %1187 = vst.msk [vmem:[#allocation6 + $0x138] sm:$0xff] %vm1147_vm4, %v17511_v0 }
 0x102   : > { %1188 = vst.msk [vmem:[#allocation6 + $0x140] sm:$0xff] %vm1147_vm4, %v17511_v0  ;;  %1189 = vst.msk [vmem:[#allocation6 + $0x148] sm:$0xff] %vm1147_vm4, %v17511_v0 }
 0x103   : > { %1190 = vst.msk [vmem:[#allocation6 + $0x150] sm:$0xff] %vm1147_vm4, %v17511_v0  ;;  %1191 = vst.msk [vmem:[#allocation6 + $0x158] sm:$0xff] %vm1147_vm4, %v17511_v0 }
 0x104   : > { %1192 = vst.msk [vmem:[#allocation6 + $0x160] sm:$0xff] %vm1147_vm4, %v17511_v0  ;;  %1193 = vst.msk [vmem:[#allocation6 + $0x168] sm:$0xff] %vm1147_vm4, %v17511_v0 }
 0x105   : > { %1194 = vst.msk [vmem:[#allocation6 + $0x170] sm:$0xff] %vm1147_vm4, %v17511_v0  ;;  %1195 = vst.msk [vmem:[#allocation6 + $0x178] sm:$0xff] %vm1147_vm4, %v17511_v0 }
 0x106   : > { %1197 = vst.msk [vmem:[#allocation7] sm:$0xff] %vm1196_vm5, %v17511_v0  ;;  %1198 = vst.msk [vmem:[#allocation7 + $0x8] sm:$0xff] %vm1196_vm5, %v17511_v0 }
 0x107   : > { %1199 = vst.msk [vmem:[#allocation7 + $0x10] sm:$0xff] %vm1196_vm5, %v17511_v0  ;;  %1200 = vst.msk [vmem:[#allocation7 + $0x18] sm:$0xff] %vm1196_vm5, %v17511_v0 }
 0x108   : > { %1201 = vst.msk [vmem:[#allocation7 + $0x20] sm:$0xff] %vm1196_vm5, %v17511_v0  ;;  %1202 = vst.msk [vmem:[#allocation7 + $0x28] sm:$0xff] %vm1196_vm5, %v17511_v0 }
 0x109   : > { %1203 = vst.msk [vmem:[#allocation7 + $0x30] sm:$0xff] %vm1196_vm5, %v17511_v0  ;;  %1204 = vst.msk [vmem:[#allocation7 + $0x38] sm:$0xff] %vm1196_vm5, %v17511_v0 }
 0x10a   : > { %1205 = vst.msk [vmem:[#allocation7 + $0x40] sm:$0xff] %vm1196_vm5, %v17511_v0  ;;  %1206 = vst.msk [vmem:[#allocation7 + $0x48] sm:$0xff] %vm1196_vm5, %v17511_v0 }
 0x10b   : > { %1207 = vst.msk [vmem:[#allocation7 + $0x50] sm:$0xff] %vm1196_vm5, %v17511_v0  ;;  %1208 = vst.msk [vmem:[#allocation7 + $0x58] sm:$0xff] %vm1196_vm5, %v17511_v0 }
 0x10c   : > { %1209 = vst.msk [vmem:[#allocation7 + $0x60] sm:$0xff] %vm1196_vm5, %v17511_v0  ;;  %1210 = vst.msk [vmem:[#allocation7 + $0x68] sm:$0xff] %vm1196_vm5, %v17511_v0 }
 0x10d   : > { %1211 = vst.msk [vmem:[#allocation7 + $0x70] sm:$0xff] %vm1196_vm5, %v17511_v0  ;;  %1212 = vst.msk [vmem:[#allocation7 + $0x78] sm:$0xff] %vm1196_vm5, %v17511_v0 }
 0x10e   : > { %1213 = vst.msk [vmem:[#allocation7 + $0x80] sm:$0xff] %vm1196_vm5, %v17511_v0  ;;  %1214 = vst.msk [vmem:[#allocation7 + $0x88] sm:$0xff] %vm1196_vm5, %v17511_v0 }
 0x10f   : > { %1215 = vst.msk [vmem:[#allocation7 + $0x90] sm:$0xff] %vm1196_vm5, %v17511_v0  ;;  %1216 = vst.msk [vmem:[#allocation7 + $0x98] sm:$0xff] %vm1196_vm5, %v17511_v0 }
 0x110   : > { %1217 = vst.msk [vmem:[#allocation7 + $0xa0] sm:$0xff] %vm1196_vm5, %v17511_v0  ;;  %1218 = vst.msk [vmem:[#allocation7 + $0xa8] sm:$0xff] %vm1196_vm5, %v17511_v0 }
 0x111   : > { %1219 = vst.msk [vmem:[#allocation7 + $0xb0] sm:$0xff] %vm1196_vm5, %v17511_v0  ;;  %1220 = vst.msk [vmem:[#allocation7 + $0xb8] sm:$0xff] %vm1196_vm5, %v17511_v0 }
 0x112   : > { %1222 = vst.msk [vmem:[#allocation8] sm:$0xff] %vm1221_vm6, %v17511_v0  ;;  %1223 = vst.msk [vmem:[#allocation8 + $0x8] sm:$0xff] %vm1221_vm6, %v17511_v0 }
 0x113   : > { %1224 = vst.msk [vmem:[#allocation8 + $0x10] sm:$0xff] %vm1221_vm6, %v17511_v0  ;;  %1225 = vst.msk [vmem:[#allocation8 + $0x18] sm:$0xff] %vm1221_vm6, %v17511_v0 }
 0x114   : > { %1226 = vst.msk [vmem:[#allocation8 + $0x20] sm:$0xff] %vm1221_vm6, %v17511_v0  ;;  %1227 = vst.msk [vmem:[#allocation8 + $0x28] sm:$0xff] %vm1221_vm6, %v17511_v0 }
 0x115   : > { %1228 = vst.msk [vmem:[#allocation8 + $0x30] sm:$0xff] %vm1221_vm6, %v17511_v0  ;;  %1229 = vst.msk [vmem:[#allocation8 + $0x38] sm:$0xff] %vm1221_vm6, %v17511_v0 }
 0x116 LB: >> { %v12859_v1 = vmov 0.0   ;;  %s10320_s3 = sshll.u32 %s12832_s29, 3  ;;  %vm12860_vm7 = vmmov 0   ;;  %s12861_s30 = smov 127   ;;  %vm1268_vm8 = vcmask 326656   ;;  %v12865_v8 = vmov 0   ;;  %s12832_s29 = sphi %s14087_s29, %s1235_s29  }
 0x117   : >> { %11440 = vmatprep.subr.mxu0 %v12859_v1  ;;  %11453 = vmatprep.subr.mxu1 %v12859_v1  ;;  %s1239_s0 = scalar_lea.vmem %s14085_s28, %s10320_s3  ;;  %s12862_s24 = smov 126   ;;  %vm1711_vm10 = vcmask 924680  }
 0x118   : >> { %11450 = vmatprep.mubr.msk.f32.mxu0 %vm12860_vm7, %v12859_v1  ;;  %11463 = vmatprep.mubr.msk.f32.mxu1 %vm12860_vm7, %v12859_v1  ;;  %v1244_v2 = vld [vmem:[%s1239_s0 + $0x20] sm:$0xff]  ;;  %v1242_v3 = vld [vmem:[%s1239_s0 + $0x10] sm:$0xff]  ;;  %v1243_v4 = vld [vmem:[%s1239_s0 + $0x18] sm:$0xff]  ;;  %s17524_s1 = sld [smem:[#allocation10_spill]]  ;;  %s12863_s26 = smov 125  }
 0x119   : >> { %1261 = vrot.lane.b32.xlu0 %v1244_v2, %s12861_s30  ;;  %1257 = vrot.lane.b32.xlu1 %v1242_v3, %s12861_s30  ;;  %v1241_v5 = vld [vmem:[%s1239_s0 + $0x8] sm:$0xff]  ;;  %v1240_v6 = vld [vmem:[%s1239_s0] sm:$0xff]  ;;  %s12864_s6 = smov 124   ;;  %s17525_s8 = sld [smem:[#allocation17_spill]] }
 0x11a   : >> { %11454 = vmatpush3.msra.mxu1 %v1244_v2  ;;  %12755 = vset.pattern.permute.xlu0 %v12865_v8  ;;  %s1235_s29 = sadd.s32 1, %s12832_s29  }
 0x11b   : >> { %11455 = vmatprep.subr.mxu1 %v12859_v1  ;;  %12756 = vset.pattern.permute.xlu1 %v12865_v8  ;;  %p1232_p4 = scmp.ge.s32.totalorder %s1235_s29, 96  }
 0x11c   : >> { %11456 = vmatpush3.msra.mxu1 %v1243_v4  ;;  %s14162_s25 = smov (%p1232_p4), 0  }
 0x11d   : >> { %1259 = vrot.lane.b32.xlu0 %v1243_v4, %s12861_s30  ;;  %1255 = vrot.lane.b32.xlu1 %v1241_v5, %s12861_s30 }
 0x11e   : >> { %11457 = vmatprep.subr.mxu1 %v12859_v1  ;;  %v1245_v7 = vld [vmem:[%s17524_s1] sm:$0xff]  ;;  %v10321_v17 = vld [vmem:[%s17524_s1 + $0x8] sm:$0xff]  ;;  %v10324_v22 = vld [vmem:[%s17524_s1 + $0x10] sm:$0xff] }
 0x11f   : >> { %11458 = vmatpush3.msra.mxu1 %v1242_v3  ;;  %v1688_v9 = vld [vmem:[%s17525_s8] sm:$0xff]  ;;  %v10330_v10 = vld [vmem:[%s17525_s8 + $0x8] sm:$0xff]  ;;  %v10326_v29 = vld [vmem:[%s17524_s1 + $0x18] sm:$0xff] }
 0x120   : >> { %11459 = vmatprep.subr.mxu1 %v12859_v1  ;;  %v10328_v34 = vld [vmem:[%s17524_s1 + $0x20] sm:$0xff] }
 0x121   : >> { %1425 = vrot.lane.b32.xlu1 %v1244_v2, %s12862_s24  ;;  %1253 = vrot.lane.b32.xlu0 %v1240_v6, %s12861_s30  ;;  %s12866_s30 = smov 1  }
 0x122   : >> { %11460 = vmatpush3.msra.mxu1 %v1241_v5 }
 0x123   : >> { %11461 = vmatprep.subr.mxu1 %v12859_v1 }
 0x124   : >> { %11462 = vmatpush3.msra.mxu1 %v1240_v6 }
 0x125   : >> { %1421 = vrot.lane.b32.xlu1 %v1242_v3, %s12862_s24  ;;  %1423 = vrot.lane.b32.xlu0 %v1243_v4, %s12862_s24 }
 0x126   : >> { %11479 = vmatprep.subr.mxu1 %v12859_v1  ;;  %11464 = vmatmul.mubr.msk.f32.vlgmr.msra.gmra.mxu1 %vm1268_vm8, %v1245_v7 }
 0x127   : >> { %11489 = vmatprep.mubr.msk.f32.mxu1 %vm12860_vm7, %v12859_v1 }
 0x129   : >> { %1417 = vrot.lane.b32.xlu1 %v1240_v6, %s12862_s24  ;;  %1419 = vrot.lane.b32.xlu0 %v1241_v5, %s12862_s24  ;;  %s10207_s24 = scalar_lea.vmem [#allocation2], %s10320_s3 }
 0x12d   : >> { %1514 = vrot.lane.b32.xlu1 %v1243_v4, %s12863_s26  ;;  %1516 = vrot.lane.b32.xlu0 %v1244_v2, %s12863_s26 }
 0x131   : >> { %1512 = vrot.lane.b32.xlu1 %v1242_v3, %s12863_s26  ;;  %1607 = vrot.lane.b32.xlu0 %v1244_v2, %s12864_s6 }
 0x135   : >> { %1510 = vrot.lane.b32.xlu1 %v1241_v5, %s12863_s26  ;;  %1605 = vrot.lane.b32.xlu0 %v1243_v4, %s12864_s6 }
 0x139   : >> { %1508 = vrot.lane.b32.xlu1 %v1240_v6, %s12863_s26  ;;  %1603 = vrot.lane.b32.xlu0 %v1242_v3, %s12864_s6 }
 0x13d   : >> { %1601 = vrot.lane.b32.xlu0 %v1241_v5, %s12864_s6  ;;  %1599 = vrot.lane.b32.xlu1 %v1240_v6, %s12864_s6 }
 0x141   : >> { %1691 = vperm.xlu0 %12755, %v1688_v9   ;;  %1699 = vperm.xlu1 %12756, %v10330_v10  }
 0x18b   : >> { %v1262_v11 = vpop.permute.xlu0 %1261  ;;  %v1258_v12 = vpop.permute.xlu1 %1257 }
 0x18c   : >> { %11441 = vmatpush3.msra.mxu0 %v1262_v11 }
 0x18d   : >> { %11442 = vmatprep.subr.mxu0 %v12859_v1 }
 0x18f   : >> { %v1260_v13 = vpop.permute.xlu0 %1259  ;;  %v1256_v14 = vpop.permute.xlu1 %1255 }
 0x190   : >> { %11443 = vmatpush3.msra.mxu0 %v1260_v13 }
 0x191   : >> { %11444 = vmatprep.subr.mxu0 %v12859_v1 }
 0x192   : >> { %11445 = vmatpush3.msra.mxu0 %v1258_v12 }
 0x193   : >> { %11446 = vmatprep.subr.mxu0 %v12859_v1  ;;  %v1426_v15 = vpop.permute.xlu1 %1425  ;;  %v1254_v16 = vpop.permute.xlu0 %1253 }
 0x194   : >> { %11447 = vmatpush3.msra.mxu0 %v1256_v14 }
 0x195   : >> { %11448 = vmatprep.subr.mxu0 %v12859_v1 }
 0x196   : >> { %11449 = vmatpush3.msra.mxu0 %v1254_v16 }
 0x197   : >> { %v1422_v18 = vpop.permute.xlu1 %1421  ;;  %11466 = vmatprep.subr.mxu0 %v12859_v1  ;;  %v1424_v19 = vpop.permute.xlu0 %1423  ;;  %11451 = vmatmul.mubr.msk.f32.vlgmr.msra.gmra.mxu0 %vm1268_vm8, %v10321_v17 }
 0x198   : >> { %11467 = vmatpush3.msra.mxu0 %v1426_v15  ;;  %11476 = vmatprep.mubr.msk.f32.mxu0 %vm12860_vm7, %v12859_v1 }
 0x199   : >> { %11468 = vmatprep.subr.mxu0 %v12859_v1 }
 0x19a   : >> { %11469 = vmatpush3.msra.mxu0 %v1424_v19 }
 0x19b   : >> { %v1418_v20 = vpop.permute.xlu1 %1417  ;;  %11470 = vmatprep.subr.mxu0 %v12859_v1  ;;  %v1420_v21 = vpop.permute.xlu0 %1419 }
 0x19c   : >> { %11471 = vmatpush3.msra.mxu0 %v1422_v18 }
 0x19d   : >> { %11472 = vmatprep.subr.mxu0 %v12859_v1 }
 0x19e   : >> { %11473 = vmatpush3.msra.mxu0 %v1420_v21 }
 0x19f   : >> { %v1515_v23 = vpop.permute.xlu1 %1514  ;;  %11474 = vmatprep.subr.mxu0 %v12859_v1  ;;  %v1517_v24 = vpop.permute.xlu0 %1516 }
 0x1a0   : >> { %11475 = vmatpush3.msra.mxu0 %v1418_v20  ;;  %11480 = vmatpush3.msra.mxu1 %v1517_v24 }
 0x1a1   : >> { %11481 = vmatprep.subr.mxu1 %v12859_v1  ;;  %11477 = vmatmul.mubr.msk.f32.vlgmr.msra.gmra.mxu0 %vm1268_vm8, %v10324_v22 }
 0x1a2   : >> { %11482 = vmatpush3.msra.mxu1 %v1515_v23  ;;  %11492 = vmatprep.subr.mxu0 %v12859_v1 }
 0x1a3   : >> { %v1513_v25 = vpop.permute.xlu1 %1512  ;;  %v1608_v26 = vpop.permute.xlu0 %1607  ;;  %11483 = vmatprep.subr.mxu1 %v12859_v1  ;;  %11502 = vmatprep.mubr.msk.f32.mxu0 %vm12860_vm7, %v12859_v1 }
 0x1a4   : >> { %11493 = vmatpush3.msra.mxu0 %v1608_v26  ;;  %11484 = vmatpush3.msra.mxu1 %v1513_v25 }
 0x1a5   : >> { %11494 = vmatprep.subr.mxu0 %v12859_v1  ;;  %11485 = vmatprep.subr.mxu1 %v12859_v1 }
 0x1a7   : >> { %v1511_v27 = vpop.permute.xlu1 %1510  ;;  %v1606_v28 = vpop.permute.xlu0 %1605 }
 0x1a8   : >> { %11495 = vmatpush3.msra.mxu0 %v1606_v28  ;;  %11486 = vmatpush3.msra.mxu1 %v1511_v27 }
 0x1a9   : >> { %11496 = vmatprep.subr.mxu0 %v12859_v1  ;;  %11487 = vmatprep.subr.mxu1 %v12859_v1 }
 0x1ab   : >> { %v1509_v30 = vpop.permute.xlu1 %1508  ;;  %v1604_v31 = vpop.permute.xlu0 %1603 }
 0x1ac   : >> { %11488 = vmatpush3.msra.mxu1 %v1509_v30  ;;  %11497 = vmatpush3.msra.mxu0 %v1604_v31 }
 0x1ad   : >> { %11490 = vmatmul.mubr.msk.f32.vlgmr.msra.gmra.mxu1 %vm1268_vm8, %v10326_v29  ;;  %11498 = vmatprep.subr.mxu0 %v12859_v1 }
 0x1af   : >> { %v1602_v32 = vpop.permute.xlu0 %1601  ;;  %v1600_v33 = vpop.permute.xlu1 %1599 }
 0x1b0   : >> { %11499 = vmatpush3.msra.mxu0 %v1602_v32 }
 0x1b1   : >> { %11500 = vmatprep.subr.mxu0 %v12859_v1 }
 0x1b2   : >> { %11501 = vmatpush3.msra.mxu0 %v1600_v33 }
 0x1b3   : >> { %11503 = vmatmul.mubr.msk.f32.vlgmr.msra.gmra.mxu0 %vm1268_vm8, %v10328_v34 }
 0x1bc   : >> { %v1692_v47 = vpop.permute.xlu0 %1691  ;;  %v1700_v50 = vpop.permute.xlu1 %1699 }
 0x1e6   : >> { %v1411_v35 = vpop.f32.mrf.mxu1 }
 0x1e8   : >> { %v11465_v36 = vpop.f32.mrf.mxu1 }
 0x257   : >> { %v1338_v37 = vpop.f32.mrf.mxu0 }
 0x258   : >> { %v1412_v41 = vadd.f32 %v1411_v35, %v1338_v37 }
 0x259   : >> { %v11452_v38 = vpop.f32.mrf.mxu0 }
 0x261   : >> { %v1501_v39 = vpop.f32.mrf.mxu0 }
 0x262   : >> { %v1505_v44 = vadd.f32 %v1501_v39, %v1412_v41 }
 0x263   : >> { %v11478_v40 = vpop.f32.mrf.mxu0 }
 0x26d   : >> { %v1592_v42 = vpop.f32.mrf.mxu1 }
 0x26e   : >> { %v1596_v45 = vadd.f32 %v1592_v42, %v1505_v44 }
 0x26f   : >> { %v11491_v43 = vpop.f32.mrf.mxu1 }
 0x273   : >> { %v1683_v46 = vpop.f32.mrf.mxu0 }
 0x274   : >> { %v1687_v48 = vadd.f32 %v1683_v46, %v1596_v45 }
 0x275   : >> { %v11504_v49 = vpop.f32.mrf.mxu0 }
 0x276   : >> { %v1694_v51 = vmul.f32 %v1692_v47, %v1687_v48 }
 0x278   : >> { %v1702_v52 = vadd.f32 %v1700_v50, %v1694_v51 }
 0x27a   : >> { %v1704_v53 = vmul.f32 0.01, %v1702_v52  ;;  %vm1703_vm9 = vcmp.gt.f32.partialorder %v1702_v52, 0.0 }
 0x27c   : >> { %v1705_v54 = vsel %vm1703_vm9, %v1702_v52, %v1704_v53 }
 0x27d   : >> { %1707 = vrot.lane.b32.xlu1 %v1705_v54, %s12866_s30 }
 0x2ec   : > { %1234 = sbr.rel (!%p1232_p4) target bundleno = 278 (0x116), region = 250 }
 0x2ef   : >> { %v1708_v55 = vpop.permute.xlu1 %1707 }
 0x2f0   : >> { %10332 = vst.msk [vmem:[%s10207_s24 + $0x8] sm:$0xff] %vm1711_vm10, %v1708_v55 }
 0x2f1 LB: >> { %s10333_s5 = sshll.u32 %s12836_s25, 3  ;;  %s17526_s27 = sld [smem:[#allocation11_spill]]  ;;  %v12871_v2 = vmov 0   ;;  %v2220_v3 = vld [vmem:[%s17483_s9 + $0x8] sm:$0xff]  ;;  %v2219_v4 = vld [vmem:[%s17483_s9] sm:$0xff]  ;;  %v10352_v5 = vld [vmem:[%s17483_s9 + $0x10] sm:$0xff]  ;;  %s12836_s25 = sphi %s14162_s25, %s1718_s25  }
 0x2f2   : >> { %s1722_s3 = scalar_lea.vmem [#allocation2], %s10333_s5  ;;  %s12867_s29 = smov 127   ;;  %12758 = vset.pattern.permute.xlu1 %v12871_v2  ;;  %12757 = vset.pattern.permute.xlu0 %v12871_v2  ;;  %v10353_v6 = vld [vmem:[%s17483_s9 + $0x18] sm:$0xff]  ;;  %vm2263_vm13 = vcmask 908296  }
 0x2f3   : >> { %s12868_s0 = smov 126   ;;  %s12869_s6 = smov 125  }
 0x2f4   : >> { %s10354_s28 = sshll.u32 %s12836_s25, 4  ;;  %s1718_s25 = sadd.s32 1, %s12836_s25  }
 0x2f5   : >> { %s10212_s7 = scalar_lea.vmem [#allocation3], %s10354_s28  ;;  %p1715_p5 = scmp.ge.s32.totalorder %s1718_s25, 94  }
 0x2f7   : >> { %v10334_v56 = vld [vmem:[%s17526_s27 + $0x10] sm:$0xff]  ;;  %v1727_v57 = vld [vmem:[%s1722_s3 + $0x20] sm:$0xff]  ;;  %v1726_v59 = vld [vmem:[%s1722_s3 + $0x18] sm:$0xff] }
 0x2f8   : >> { %v1725_v58 = vld [vmem:[%s1722_s3 + $0x10] sm:$0xff]  ;;  %11515 = vmatprep.mubr.msk.f32.mxu0 %vm1268_vm8, %v10334_v56  ;;  %1746 = vrot.lane.b32.xlu0 %v1727_v57, %s12867_s29  ;;  %v1724_v60 = vld [vmem:[%s1722_s3 + $0x8] sm:$0xff]  ;;  %v1728_v61 = vld [vmem:[%s17526_s27] sm:$0xff] }
 0x2f9   : >> { %1742 = vrot.lane.b32.xlu1 %v1725_v58, %s12867_s29  ;;  %11518 = vmatprep.subr.mxu1 %v1727_v57  ;;  %v1723_v62 = vld [vmem:[%s1722_s3] sm:$0xff]  ;;  %v1729_v63 = vld [vmem:[%s17526_s27 + $0x8] sm:$0xff]  ;;  %v10344_v1 = vld [vmem:[%s17526_s27 + $0x30] sm:$0xff]  ;;  %s12870_s3 = smov 124  }
 0x2fa   : >> { %11519 = vmatpush3.msra.mxu1 %v1727_v57  ;;  %11528 = vmatprep.mubr.msk.f32.mxu1 %vm1268_vm8, %v1728_v61  ;;  %v10335_v13 = vld [vmem:[%s17526_s27 + $0x18] sm:$0xff]  ;;  %v10340_v14 = vld [vmem:[%s17526_s27 + $0x20] sm:$0xff]  ;;  %v10341_v21 = vld [vmem:[%s17526_s27 + $0x28] sm:$0xff] }
 0x2fb   : >> { %11520 = vmatprep.subr.mxu1 %v1726_v59  ;;  %v10348_v22 = vld [vmem:[%s17526_s27 + $0x40] sm:$0xff]  ;;  %v10345_v29 = vld [vmem:[%s17526_s27 + $0x38] sm:$0xff]  ;;  %v10349_v32 = vld [vmem:[%s17526_s27 + $0x48] sm:$0xff] }
 0x2fc   : >> { %1744 = vrot.lane.b32.xlu0 %v1726_v59, %s12867_s29  ;;  %11521 = vmatpush3.msra.mxu1 %v1726_v59 }
 0x2fd   : >> { %1740 = vrot.lane.b32.xlu1 %v1724_v60, %s12867_s29  ;;  %11522 = vmatprep.subr.mxu1 %v1725_v58 }
 0x2fe   : >> { %11523 = vmatpush3.msra.mxu1 %v1725_v58 }
 0x2ff   : >> { %11524 = vmatprep.subr.mxu1 %v1724_v60 }
 0x300   : >> { %1738 = vrot.lane.b32.xlu0 %v1723_v62, %s12867_s29  ;;  %11525 = vmatpush3.msra.mxu1 %v1724_v60  ;;  %s12872_s29 = smov 1  }
 0x301   : >> { %1927 = vrot.lane.b32.xlu1 %v1727_v57, %s12868_s0  ;;  %11526 = vmatprep.subr.mxu1 %v1723_v62 }
 0x302   : >> { %11527 = vmatpush3.msra.mxu1 %v1723_v62 }
 0x303   : >> { %11529 = vmatmul.mubr.msk.f32.vlgmr.msra.gmra.mxu1 %vm1268_vm8, %v1729_v63 }
 0x304   : >> { %1925 = vrot.lane.b32.xlu0 %v1726_v59, %s12868_s0  ;;  %11554 = vmatprep.mubr.msk.f32.mxu1 %vm1268_vm8, %v10344_v1 }
 0x305   : >> { %1923 = vrot.lane.b32.xlu1 %v1725_v58, %s12868_s0 }
 0x308   : >> { %1921 = vrot.lane.b32.xlu0 %v1724_v60, %s12868_s0 }
 0x309   : >> { %1919 = vrot.lane.b32.xlu1 %v1723_v62, %s12868_s0  ;;  %s14224_s0 = smov (%p1715_p5), 0  }
 0x30c   : >> { %2028 = vrot.lane.b32.xlu0 %v1727_v57, %s12869_s6 }
 0x30d   : >> { %2026 = vrot.lane.b32.xlu1 %v1726_v59, %s12869_s6 }
 0x310   : >> { %2129 = vrot.lane.b32.xlu0 %v1727_v57, %s12870_s3 }
 0x311   : >> { %2024 = vrot.lane.b32.xlu1 %v1725_v58, %s12869_s6 }
 0x314   : >> { %2127 = vrot.lane.b32.xlu0 %v1726_v59, %s12870_s3 }
 0x315   : >> { %2022 = vrot.lane.b32.xlu1 %v1724_v60, %s12869_s6 }
 0x318   : >> { %2125 = vrot.lane.b32.xlu0 %v1725_v58, %s12870_s3 }
 0x319   : >> { %2020 = vrot.lane.b32.xlu1 %v1723_v62, %s12869_s6 }
 0x31c   : >> { %2123 = vrot.lane.b32.xlu0 %v1724_v60, %s12870_s3 }
 0x31d   : >> { %2121 = vrot.lane.b32.xlu1 %v1723_v62, %s12870_s3 }
 0x320   : >> { %2223 = vperm.xlu0 %12757, %v2219_v4  }
 0x321   : >> { %2228 = vperm.xlu1 %12758, %v2220_v3  }
 0x324   : >> { %2243 = vperm.xlu0 %12757, %v10353_v6  }
 0x325   : >> { %2238 = vperm.xlu1 %12758, %v10352_v5  }
 0x36a   : >> { %v1747_v7 = vpop.permute.xlu0 %1746 }
 0x36b   : >> { %v1743_v8 = vpop.permute.xlu1 %1742  ;;  %11505 = vmatprep.subr.mxu0 %v1747_v7 }
 0x36c   : >> { %11506 = vmatpush3.msra.mxu0 %v1747_v7 }
 0x36e   : >> { %v1745_v9 = vpop.permute.xlu0 %1744 }
 0x36f   : >> { %v1741_v10 = vpop.permute.xlu1 %1740  ;;  %11507 = vmatprep.subr.mxu0 %v1745_v9 }
 0x370   : >> { %11508 = vmatpush3.msra.mxu0 %v1745_v9 }
 0x371   : >> { %11509 = vmatprep.subr.mxu0 %v1743_v8 }
 0x372   : >> { %11510 = vmatpush3.msra.mxu0 %v1743_v8  ;;  %v1739_v12 = vpop.permute.xlu0 %1738 }
 0x373   : >> { %v1928_v11 = vpop.permute.xlu1 %1927  ;;  %11511 = vmatprep.subr.mxu0 %v1741_v10 }
 0x374   : >> { %11512 = vmatpush3.msra.mxu0 %v1741_v10 }
 0x375   : >> { %11513 = vmatprep.subr.mxu0 %v1739_v12 }
 0x376   : >> { %11514 = vmatpush3.msra.mxu0 %v1739_v12  ;;  %v1926_v16 = vpop.permute.xlu0 %1925 }
 0x377   : >> { %v1924_v15 = vpop.permute.xlu1 %1923  ;;  %11531 = vmatprep.subr.mxu0 %v1928_v11  ;;  %11516 = vmatmul.mubr.msk.f32.vlgmr.msra.gmra.mxu0 %vm1268_vm8, %v10335_v13 }
 0x378   : >> { %11532 = vmatpush3.msra.mxu0 %v1928_v11  ;;  %11541 = vmatprep.mubr.msk.f32.mxu0 %vm1268_vm8, %v10340_v14 }
 0x379   : >> { %11533 = vmatprep.subr.mxu0 %v1926_v16 }
 0x37a   : >> { %11534 = vmatpush3.msra.mxu0 %v1926_v16  ;;  %v1922_v18 = vpop.permute.xlu0 %1921 }
 0x37b   : >> { %v1920_v17 = vpop.permute.xlu1 %1919  ;;  %11535 = vmatprep.subr.mxu0 %v1924_v15 }
 0x37c   : >> { %11536 = vmatpush3.msra.mxu0 %v1924_v15 }
 0x37d   : >> { %11537 = vmatprep.subr.mxu0 %v1922_v18 }
 0x37e   : >> { %11538 = vmatpush3.msra.mxu0 %v1922_v18  ;;  %v2029_v20 = vpop.permute.xlu0 %2028 }
 0x37f   : >> { %v2027_v19 = vpop.permute.xlu1 %2026  ;;  %11539 = vmatprep.subr.mxu0 %v1920_v17  ;;  %11544 = vmatprep.subr.mxu1 %v2029_v20 }
 0x380   : >> { %11540 = vmatpush3.msra.mxu0 %v1920_v17  ;;  %11545 = vmatpush3.msra.mxu1 %v2029_v20 }
 0x381   : >> { %11542 = vmatmul.mubr.msk.f32.vlgmr.msra.gmra.mxu0 %vm1268_vm8, %v10341_v21  ;;  %11546 = vmatprep.subr.mxu1 %v2027_v19 }
 0x382   : >> { %v2130_v24 = vpop.permute.xlu0 %2129  ;;  %11547 = vmatpush3.msra.mxu1 %v2027_v19  ;;  %11567 = vmatprep.mubr.msk.f32.mxu0 %vm1268_vm8, %v10348_v22 }
 0x383   : >> { %v2025_v23 = vpop.permute.xlu1 %2024  ;;  %11557 = vmatprep.subr.mxu0 %v2130_v24 }
 0x384   : >> { %11548 = vmatprep.subr.mxu1 %v2025_v23  ;;  %11558 = vmatpush3.msra.mxu0 %v2130_v24 }
 0x385   : >> { %11549 = vmatpush3.msra.mxu1 %v2025_v23 }
 0x386   : >> { %v2128_v26 = vpop.permute.xlu0 %2127 }
 0x387   : >> { %v2023_v25 = vpop.permute.xlu1 %2022  ;;  %11559 = vmatprep.subr.mxu0 %v2128_v26 }
 0x388   : >> { %11550 = vmatprep.subr.mxu1 %v2023_v25  ;;  %11560 = vmatpush3.msra.mxu0 %v2128_v26 }
 0x389   : >> { %11551 = vmatpush3.msra.mxu1 %v2023_v25 }
 0x38a   : >> { %v2126_v28 = vpop.permute.xlu0 %2125 }
 0x38b   : >> { %v2021_v27 = vpop.permute.xlu1 %2020  ;;  %11561 = vmatprep.subr.mxu0 %v2126_v28 }
 0x38c   : >> { %11552 = vmatprep.subr.mxu1 %v2021_v27  ;;  %11562 = vmatpush3.msra.mxu0 %v2126_v28 }
 0x38d   : >> { %11553 = vmatpush3.msra.mxu1 %v2021_v27 }
 0x38e   : >> { %11555 = vmatmul.mubr.msk.f32.vlgmr.msra.gmra.mxu1 %vm1268_vm8, %v10345_v29  ;;  %v2124_v30 = vpop.permute.xlu0 %2123 }
 0x38f   : >> { %v2122_v31 = vpop.permute.xlu1 %2121  ;;  %11563 = vmatprep.subr.mxu0 %v2124_v30 }
 0x390   : >> { %11564 = vmatpush3.msra.mxu0 %v2124_v30 }
 0x391   : >> { %11565 = vmatprep.subr.mxu0 %v2122_v31 }
 0x392   : >> { %11566 = vmatpush3.msra.mxu0 %v2122_v31 }
 0x393   : >> { %11568 = vmatmul.mubr.msk.f32.vlgmr.msra.gmra.mxu0 %vm1268_vm8, %v10349_v32 }
 0x39b   : >> { %v2224_v44 = vpop.permute.xlu0 %2223 }
 0x39c   : >> { %v2229_v47 = vpop.permute.xlu1 %2228 }
 0x39f   : >> { %v2244_v54 = vpop.permute.xlu0 %2243 }
 0x3a0   : >> { %v2239_v57 = vpop.permute.xlu1 %2238 }
 0x3c3   : >> { %v11530_v34 = vpop.f32.mrf.mxu1 }
 0x3c5   : >> { %v1907_v36 = vpop.f32.mrf.mxu1 }
 0x437   : >> { %v11517_v33 = vpop.f32.mrf.mxu0 }
 0x438   : >> { %v1913_v38 = vadd.f32 %v11530_v34, %v11517_v33 }
 0x439   : >> { %v1826_v35 = vpop.f32.mrf.mxu0 }
 0x43a   : >> { %v1908_v40 = vadd.f32 %v1907_v36, %v1826_v35 }
 0x441   : >> { %v11543_v37 = vpop.f32.mrf.mxu0 }
 0x442   : >> { %v2016_v42 = vadd.f32 %v11543_v37, %v1913_v38 }
 0x443   : >> { %v2006_v41 = vpop.f32.mrf.mxu0 }
 0x444   : >> { %v2015_v45 = vadd.f32 %v2006_v41, %v1908_v40 }
 0x44e   : >> { %v11556_v39 = vpop.f32.mrf.mxu1 }
 0x44f   : >> { %v2117_v46 = vadd.f32 %v11556_v39, %v2016_v42 }
 0x450   : >> { %v2107_v43 = vpop.f32.mrf.mxu1 }
 0x451   : >> { %v2116_v49 = vadd.f32 %v2107_v43, %v2015_v45 }
 0x453   : >> { %v11569_v48 = vpop.f32.mrf.mxu0 }
 0x454   : >> { %v2218_v50 = vadd.f32 %v11569_v48, %v2117_v46 }
 0x455   : >> { %v2208_v51 = vpop.f32.mrf.mxu0 }
 0x456   : >> { %v2217_v52 = vadd.f32 %v2208_v51, %v2116_v49  ;;  %v2232_v53 = vmul.f32 %v2229_v47, %v2218_v50 }
 0x458   : >> { %v2231_v55 = vmul.f32 %v2224_v44, %v2217_v52  ;;  %v2247_v56 = vadd.f32 %v2244_v54, %v2232_v53 }
 0x45a   : >> { %v2246_v58 = vadd.f32 %v2239_v57, %v2231_v55  ;;  %v2251_v59 = vmul.f32 0.01, %v2247_v56  ;;  %vm2249_vm11 = vcmp.gt.f32.partialorder %v2247_v56, 0.0 }
 0x45c   : >> { %v2253_v60 = vsel %vm2249_vm11, %v2247_v56, %v2251_v59  ;;  %vm2248_vm12 = vcmp.gt.f32.partialorder %v2246_v58, 0.0  ;;  %v2250_v61 = vmul.f32 0.01, %v2246_v58 }
 0x45d   : >> { %2258 = vrot.lane.b32.xlu0 %v2253_v60, %s12872_s29 }
 0x45e   : >> { %v2252_v62 = vsel %vm2248_vm12, %v2246_v58, %v2250_v61 }
 0x45f   : >> { %2256 = vrot.lane.b32.xlu1 %v2252_v62, %s12872_s29 }
 0x4ce   : > { %1717 = sbr.rel (!%p1715_p5) target bundleno = 753 (0x2f1), region = 261 }
 0x4cf   : >> { %v2259_v63 = vpop.permute.xlu0 %2258 }
 0x4d0   : >> { %10356 = vst.msk [vmem:[%s10212_s7 + $0x18] sm:$0xff] %vm2263_vm13, %v2259_v63 }
 0x4d1   : >> { %v2257_v1 = vpop.permute.xlu1 %2256 }
 0x4d2   : >> { %10355 = vst.msk [vmem:[%s10212_s7 + $0x10] sm:$0xff] %vm2263_vm13, %v2257_v1 }
 0x4d3 LB: >> { %s10357_s30 = sshll.u32 %s12840_s0, 5  ;;  %s12873_s25 = smov 127   ;;  %vm2329_vm14 = vcmask 654336   ;;  %v12877_v40 = vmov 0   ;;  %v2840_v45 = vld [vmem:[%s17484_s10] sm:$0xff]  ;;  %v2841_v46 = vld [vmem:[%s17484_s10 + $0x8] sm:$0xff]  ;;  %s12840_s0 = sphi %s14224_s0, %s2271_s0  }
 0x4d4   : >> { %s14230_s24 = scalar_lea.vmem [#allocation3], %s10357_s30  ;;  %s17527_s6 = sld [smem:[#allocation12_spill]]  ;;  %12759 = vset.pattern.permute.xlu0 %v12877_v40  ;;  %12760 = vset.pattern.permute.xlu1 %v12877_v40  ;;  %v10377_v49 = vld [vmem:[%s17484_s10 + $0x18] sm:$0xff]  ;;  %v10376_v50 = vld [vmem:[%s17484_s10 + $0x10] sm:$0xff]  ;;  %vm3433_vm15 = vcmask 1043456   ;;  %vm3426_vm4 = vcmask 883712  }
 0x4d5   : >> { %s12874_s28 = smov 126   ;;  %s12875_s7 = smov 125   ;;  %vm3618_vm5 = vcmask 449544  }
 0x4d6   : >> { %s12876_s29 = smov 124  }
 0x4d9   : >> { %v14233_v2 = vld [vmem:[%s14230_s24 + $0x48] sm:$0xff]  ;;  %v14236_v3 = vld [vmem:[%s14230_s24 + $0x38] sm:$0xff]  ;;  %v14243_v4 = vld [vmem:[%s14230_s24 + $0x40] sm:$0xff] }
 0x4da   : >> { %2317 = vrot.lane.b32.xlu0 %v14233_v2, %s12873_s25  ;;  %2313 = vrot.lane.b32.xlu1 %v14236_v3, %s12873_s25  ;;  %v14246_v5 = vld [vmem:[%s14230_s24 + $0x30] sm:$0xff]  ;;  %v14256_v6 = vld [vmem:[%s14230_s24 + $0x28] sm:$0xff] }
 0x4db   : >> { %11593 = vmatprep.subr.mxu1 %v14233_v2  ;;  %v14259_v7 = vld [vmem:[%s14230_s24 + $0x20] sm:$0xff]  ;;  %v14269_v8 = vld [vmem:[%s14230_s24 + $0x18] sm:$0xff]  ;;  %v14272_v9 = vld [vmem:[%s14230_s24 + $0x10] sm:$0xff] }
 0x4dc   : >> { %11594 = vmatpush3.msra.mxu1 %v14233_v2  ;;  %v14278_v10 = vld [vmem:[%s17527_s6 + $0x10] sm:$0xff]  ;;  %v14287_v11 = vld [vmem:[%s17527_s6] sm:$0xff]  ;;  %v2275_v12 = vld [vmem:[%s14230_s24 + $0x8] sm:$0xff] }
 0x4dd   : >> { %11595 = vmatprep.subr.mxu1 %v14243_v4  ;;  %11590 = vmatprep.mubr.msk.f32.mxu0 %vm2329_vm14, %v14278_v10  ;;  %v2274_v13 = vld [vmem:[%s14230_s24] sm:$0xff]  ;;  %v14317_v14 = vld [vmem:[%s17527_s6 + $0x8] sm:$0xff]  ;;  %v14347_v15 = vld [vmem:[%s17527_s6 + $0x30] sm:$0xff] }
 0x4de   : >> { %2315 = vrot.lane.b32.xlu0 %v14243_v4, %s12873_s25  ;;  %2311 = vrot.lane.b32.xlu1 %v14246_v5, %s12873_s25  ;;  %v14361_v16 = vld [vmem:[%s14230_s24 + $0x58] sm:$0xff]  ;;  %v14368_v17 = vld [vmem:[%s14230_s24 + $0x50] sm:$0xff] }
 0x4df   : >> { %11596 = vmatpush3.msra.mxu1 %v14243_v4  ;;  %11613 = vmatprep.mubr.msk.f32.mxu1 %vm2329_vm14, %v14287_v11  ;;  %v14439_v30 = vld [vmem:[%s17527_s6 + $0x18] sm:$0xff]  ;;  %v14454_v35 = vld [vmem:[%s17527_s6 + $0x20] sm:$0xff]  ;;  %v14489_v53 = vld [vmem:[%s17527_s6 + $0x28] sm:$0xff] }
 0x4e0   : >> { %11597 = vmatprep.subr.mxu1 %v14236_v3  ;;  %v14494_v54 = vld [vmem:[%s17527_s6 + $0x40] sm:$0xff]  ;;  %v14503_v57 = vld [vmem:[%s17527_s6 + $0x38] sm:$0xff] }
 0x4e1   : >> { %11598 = vmatpush3.msra.mxu1 %v14236_v3 }
 0x4e2   : >> { %2309 = vrot.lane.b32.xlu0 %v14256_v6, %s12873_s25  ;;  %2307 = vrot.lane.b32.xlu1 %v14259_v7, %s12873_s25 }
 0x4e3   : >> { %11599 = vmatprep.subr.mxu1 %v14246_v5 }
 0x4e4   : >> { %11600 = vmatpush3.msra.mxu1 %v14246_v5 }
 0x4e5   : >> { %11601 = vmatprep.subr.mxu1 %v14256_v6 }
 0x4e6   : >> { %2305 = vrot.lane.b32.xlu0 %v14269_v8, %s12873_s25  ;;  %2303 = vrot.lane.b32.xlu1 %v14272_v9, %s12873_s25 }
 0x4e7   : >> { %11602 = vmatpush3.msra.mxu1 %v14256_v6 }
 0x4e8   : >> { %11603 = vmatprep.subr.mxu1 %v14259_v7 }
 0x4e9   : >> { %11604 = vmatpush3.msra.mxu1 %v14259_v7 }
 0x4ea   : >> { %2301 = vrot.lane.b32.xlu0 %v2275_v12, %s12873_s25  ;;  %2299 = vrot.lane.b32.xlu1 %v2274_v13, %s12873_s25 }
 0x4eb   : >> { %11605 = vmatprep.subr.mxu1 %v14269_v8 }
 0x4ec   : >> { %11606 = vmatpush3.msra.mxu1 %v14269_v8 }
 0x4ed   : >> { %11607 = vmatprep.subr.mxu1 %v14272_v9 }
 0x4ee   : >> { %2513 = vrot.lane.b32.xlu0 %v14233_v2, %s12874_s28  ;;  %2511 = vrot.lane.b32.xlu1 %v14243_v4, %s12874_s28 }
 0x4ef   : >> { %11608 = vmatpush3.msra.mxu1 %v14272_v9 }
 0x4f0   : >> { %11609 = vmatprep.subr.mxu1 %v2275_v12 }
 0x4f1   : >> { %11610 = vmatpush3.msra.mxu1 %v2275_v12 }
 0x4f2   : >> { %2629 = vrot.lane.b32.xlu0 %v14233_v2, %s12875_s7  ;;  %2509 = vrot.lane.b32.xlu1 %v14236_v3, %s12874_s28 }
 0x4f3   : >> { %11611 = vmatprep.subr.mxu1 %v2274_v13 }
 0x4f4   : >> { %11612 = vmatpush3.msra.mxu1 %v2274_v13 }
 0x4f5   : >> { %11614 = vmatmul.mubr.msk.f32.vlgmr.msra.gmra.mxu1 %vm2329_vm14, %v14317_v14 }
 0x4f6   : >> { %2627 = vrot.lane.b32.xlu0 %v14243_v4, %s12875_s7  ;;  %2507 = vrot.lane.b32.xlu1 %v14246_v5, %s12874_s28 }
 0x4f7   : >> { %11659 = vmatprep.mubr.msk.f32.mxu1 %vm2329_vm14, %v14347_v15 }
 0x4fa   : >> { %2625 = vrot.lane.b32.xlu0 %v14236_v3, %s12875_s7  ;;  %2505 = vrot.lane.b32.xlu1 %v14256_v6, %s12874_s28 }
 0x4fe   : >> { %2623 = vrot.lane.b32.xlu0 %v14246_v5, %s12875_s7  ;;  %2503 = vrot.lane.b32.xlu1 %v14259_v7, %s12874_s28 }
 0x502   : >> { %2621 = vrot.lane.b32.xlu0 %v14256_v6, %s12875_s7  ;;  %2501 = vrot.lane.b32.xlu1 %v14269_v8, %s12874_s28 }
 0x506   : >> { %2619 = vrot.lane.b32.xlu0 %v14259_v7, %s12875_s7  ;;  %2499 = vrot.lane.b32.xlu1 %v14272_v9, %s12874_s28 }
 0x50a   : >> { %2617 = vrot.lane.b32.xlu0 %v14269_v8, %s12875_s7  ;;  %2497 = vrot.lane.b32.xlu1 %v2275_v12, %s12874_s28 }
 0x50e   : >> { %2615 = vrot.lane.b32.xlu0 %v14272_v9, %s12875_s7  ;;  %2495 = vrot.lane.b32.xlu1 %v2274_v13, %s12874_s28 }
 0x512   : >> { %2613 = vrot.lane.b32.xlu0 %v2275_v12, %s12875_s7  ;;  %2611 = vrot.lane.b32.xlu1 %v2274_v13, %s12875_s7 }
 0x516   : >> { %2745 = vrot.lane.b32.xlu0 %v14233_v2, %s12876_s29  ;;  %2743 = vrot.lane.b32.xlu1 %v14243_v4, %s12876_s29 }
 0x51a   : >> { %2917 = vrot.lane.b32.xlu0 %v14361_v16, %s12873_s25  ;;  %2741 = vrot.lane.b32.xlu1 %v14236_v3, %s12876_s29 }
 0x51e   : >> { %2915 = vrot.lane.b32.xlu0 %v14368_v17, %s12873_s25  ;;  %2739 = vrot.lane.b32.xlu1 %v14246_v5, %s12876_s29 }
 0x522   : >> { %2913 = vrot.lane.b32.xlu0 %v14233_v2, %s12873_s25  ;;  %2737 = vrot.lane.b32.xlu1 %v14256_v6, %s12876_s29 }
 0x526   : >> { %2911 = vrot.lane.b32.xlu0 %v14243_v4, %s12873_s25  ;;  %2735 = vrot.lane.b32.xlu1 %v14259_v7, %s12876_s29 }
 0x52a   : >> { %2909 = vrot.lane.b32.xlu0 %v14236_v3, %s12873_s25  ;;  %2733 = vrot.lane.b32.xlu1 %v14269_v8, %s12876_s29 }
 0x52e   : >> { %2907 = vrot.lane.b32.xlu0 %v14246_v5, %s12873_s25  ;;  %2731 = vrot.lane.b32.xlu1 %v14272_v9, %s12876_s29 }
 0x532   : >> { %2905 = vrot.lane.b32.xlu0 %v14256_v6, %s12873_s25  ;;  %2729 = vrot.lane.b32.xlu1 %v2275_v12, %s12876_s29 }
 0x536   : >> { %2903 = vrot.lane.b32.xlu0 %v14259_v7, %s12873_s25  ;;  %2727 = vrot.lane.b32.xlu1 %v2274_v13, %s12876_s29 }
 0x53a   : >> { %2901 = vrot.lane.b32.xlu0 %v14269_v8, %s12873_s25  ;;  %2899 = vrot.lane.b32.xlu1 %v14272_v9, %s12873_s25  ;;  %s10420_s25 = sshll.u32 %s12840_s0, 4  ;;  %s2271_s0 = sadd.s32 1, %s12840_s0  }
 0x53b   : >> { %p2268_p6 = scmp.ge.s32.totalorder %s2271_s0, 46  }
 0x53c   : > { %s14646_s30 = smov (%p2268_p6), 0  }
 0x53e   : >> { %3097 = vrot.lane.b32.xlu0 %v14361_v16, %s12874_s28  ;;  %3095 = vrot.lane.b32.xlu1 %v14368_v17, %s12874_s28 }
 0x542   : >> { %3093 = vrot.lane.b32.xlu0 %v14233_v2, %s12874_s28  ;;  %3091 = vrot.lane.b32.xlu1 %v14243_v4, %s12874_s28 }
 0x546   : >> { %3089 = vrot.lane.b32.xlu0 %v14236_v3, %s12874_s28  ;;  %3087 = vrot.lane.b32.xlu1 %v14246_v5, %s12874_s28 }
 0x54a   : >> { %3085 = vrot.lane.b32.xlu0 %v14256_v6, %s12874_s28  ;;  %3083 = vrot.lane.b32.xlu1 %v14259_v7, %s12874_s28 }
 0x54c   : >> { %v2318_v18 = vpop.permute.xlu0 %2317  ;;  %v2314_v19 = vpop.permute.xlu1 %2313 }
 0x54d   : >> { %11570 = vmatprep.subr.mxu0 %v2318_v18 }
 0x54e   : >> { %11571 = vmatpush3.msra.mxu0 %v2318_v18  ;;  %3081 = vrot.lane.b32.xlu0 %v14269_v8, %s12874_s28 }
 0x54f   : >> { %3079 = vrot.lane.b32.xlu1 %v14272_v9, %s12874_s28  ;;  %s10221_s28 = scalar_lea.vmem [#allocation4], %s10420_s25 }
 0x550   : >> { %v2316_v20 = vpop.permute.xlu0 %2315  ;;  %v2312_v21 = vpop.permute.xlu1 %2311 }
 0x551   : >> { %11572 = vmatprep.subr.mxu0 %v2316_v20 }
 0x552   : >> { %11573 = vmatpush3.msra.mxu0 %v2316_v20  ;;  %3204 = vrot.lane.b32.xlu0 %v14361_v16, %s12875_s7 }
 0x553   : >> { %3202 = vrot.lane.b32.xlu1 %v14368_v17, %s12875_s7  ;;  %11574 = vmatprep.subr.mxu0 %v2314_v19 }
 0x554   : >> { %11575 = vmatpush3.msra.mxu0 %v2314_v19  ;;  %v2310_v22 = vpop.permute.xlu0 %2309  ;;  %v2308_v23 = vpop.permute.xlu1 %2307 }
 0x555   : >> { %11576 = vmatprep.subr.mxu0 %v2312_v21 }
 0x556   : >> { %11577 = vmatpush3.msra.mxu0 %v2312_v21  ;;  %3311 = vrot.lane.b32.xlu0 %v14361_v16, %s12876_s29 }
 0x557   : >> { %3200 = vrot.lane.b32.xlu1 %v14233_v2, %s12875_s7  ;;  %11578 = vmatprep.subr.mxu0 %v2310_v22 }
 0x558   : >> { %11579 = vmatpush3.msra.mxu0 %v2310_v22  ;;  %v2306_v24 = vpop.permute.xlu0 %2305  ;;  %v2304_v25 = vpop.permute.xlu1 %2303 }
 0x559   : >> { %11580 = vmatprep.subr.mxu0 %v2308_v23 }
 0x55a   : >> { %11581 = vmatpush3.msra.mxu0 %v2308_v23  ;;  %3309 = vrot.lane.b32.xlu0 %v14368_v17, %s12876_s29 }
 0x55b   : >> { %3198 = vrot.lane.b32.xlu1 %v14243_v4, %s12875_s7  ;;  %11582 = vmatprep.subr.mxu0 %v2306_v24 }
 0x55c   : >> { %11583 = vmatpush3.msra.mxu0 %v2306_v24  ;;  %v2302_v26 = vpop.permute.xlu0 %2301  ;;  %v2300_v27 = vpop.permute.xlu1 %2299 }
 0x55d   : >> { %11584 = vmatprep.subr.mxu0 %v2304_v25 }
 0x55e   : >> { %11585 = vmatpush3.msra.mxu0 %v2304_v25  ;;  %3307 = vrot.lane.b32.xlu0 %v14233_v2, %s12876_s29 }
 0x55f   : >> { %3196 = vrot.lane.b32.xlu1 %v14236_v3, %s12875_s7  ;;  %11586 = vmatprep.subr.mxu0 %v2302_v26 }
 0x560   : >> { %11587 = vmatpush3.msra.mxu0 %v2302_v26  ;;  %v2514_v28 = vpop.permute.xlu0 %2513  ;;  %v2512_v29 = vpop.permute.xlu1 %2511  ;;  %v14512_v26 = vld [vmem:[%s17527_s6 + $0x48] sm:$0xff] }
 0x561   : >> { %11588 = vmatprep.subr.mxu0 %v2300_v27 }
 0x562   : >> { %3305 = vrot.lane.b32.xlu0 %v14243_v4, %s12876_s29  ;;  %11589 = vmatpush3.msra.mxu0 %v2300_v27 }
 0x563   : >> { %3194 = vrot.lane.b32.xlu1 %v14246_v5, %s12875_s7  ;;  %11616 = vmatprep.subr.mxu0 %v2514_v28 }
 0x564   : >> { %v2630_v31 = vpop.permute.xlu0 %2629  ;;  %11591 = vmatmul.mubr.msk.f32.vlgmr.msra.gmra.mxu0 %vm2329_vm14, %v14439_v30  ;;  %v2510_v32 = vpop.permute.xlu1 %2509 }
 0x565   : >> { %11617 = vmatpush3.msra.mxu0 %v2514_v28  ;;  %11639 = vmatprep.subr.mxu1 %v2630_v31 }
 0x566   : >> { %11618 = vmatprep.subr.mxu0 %v2512_v29  ;;  %3303 = vrot.lane.b32.xlu0 %v14236_v3, %s12876_s29 }
 0x567   : >> { %3192 = vrot.lane.b32.xlu1 %v14256_v6, %s12875_s7  ;;  %11619 = vmatpush3.msra.mxu0 %v2512_v29 }
 0x568   : >> { %11640 = vmatpush3.msra.mxu1 %v2630_v31  ;;  %11620 = vmatprep.subr.mxu0 %v2510_v32  ;;  %v2628_v33 = vpop.permute.xlu0 %2627  ;;  %v2508_v34 = vpop.permute.xlu1 %2507 }
 0x569   : >> { %11621 = vmatpush3.msra.mxu0 %v2510_v32  ;;  %11641 = vmatprep.subr.mxu1 %v2628_v33 }
 0x56a   : >> { %3301 = vrot.lane.b32.xlu0 %v14246_v5, %s12876_s29  ;;  %11622 = vmatprep.subr.mxu0 %v2508_v34 }
 0x56b   : >> { %3190 = vrot.lane.b32.xlu1 %v14259_v7, %s12875_s7  ;;  %11642 = vmatpush3.msra.mxu1 %v2628_v33 }
 0x56c   : >> { %11623 = vmatpush3.msra.mxu0 %v2508_v34  ;;  %v2626_v36 = vpop.permute.xlu0 %2625  ;;  %v2506_v37 = vpop.permute.xlu1 %2505  ;;  %11636 = vmatprep.mubr.msk.f32.mxu0 %vm2329_vm14, %v14454_v35 }
 0x56d   : >> { %11643 = vmatprep.subr.mxu1 %v2626_v36  ;;  %11624 = vmatprep.subr.mxu0 %v2506_v37 }
 0x56e   : >> { %3299 = vrot.lane.b32.xlu0 %v14256_v6, %s12876_s29  ;;  %11644 = vmatpush3.msra.mxu1 %v2626_v36 }
 0x56f   : >> { %3188 = vrot.lane.b32.xlu1 %v14269_v8, %s12875_s7  ;;  %11625 = vmatpush3.msra.mxu0 %v2506_v37 }
 0x570   : >> { %v2624_v38 = vpop.permute.xlu0 %2623  ;;  %v2504_v39 = vpop.permute.xlu1 %2503 }
 0x571   : >> { %11645 = vmatprep.subr.mxu1 %v2624_v38  ;;  %11626 = vmatprep.subr.mxu0 %v2504_v39 }
 0x572   : >> { %3297 = vrot.lane.b32.xlu0 %v14259_v7, %s12876_s29  ;;  %11646 = vmatpush3.msra.mxu1 %v2624_v38 }
 0x573   : >> { %3186 = vrot.lane.b32.xlu1 %v14272_v9, %s12875_s7  ;;  %11627 = vmatpush3.msra.mxu0 %v2504_v39 }
 0x574   : >> { %v2622_v41 = vpop.permute.xlu0 %2621  ;;  %v2502_v42 = vpop.permute.xlu1 %2501 }
 0x575   : >> { %11647 = vmatprep.subr.mxu1 %v2622_v41  ;;  %11628 = vmatprep.subr.mxu0 %v2502_v42 }
 0x576   : >> { %3295 = vrot.lane.b32.xlu0 %v14269_v8, %s12876_s29  ;;  %11648 = vmatpush3.msra.mxu1 %v2622_v41 }
 0x577   : >> { %11629 = vmatpush3.msra.mxu0 %v2502_v42  ;;  %3293 = vrot.lane.b32.xlu1 %v14272_v9, %s12876_s29  ;;  %s12878_s29 = smov 1  }
 0x578   : >> { %v2620_v43 = vpop.permute.xlu0 %2619  ;;  %v2500_v44 = vpop.permute.xlu1 %2499 }
 0x579   : >> { %11649 = vmatprep.subr.mxu1 %v2620_v43  ;;  %11630 = vmatprep.subr.mxu0 %v2500_v44 }
 0x57a   : >> { %11650 = vmatpush3.msra.mxu1 %v2620_v43  ;;  %11631 = vmatpush3.msra.mxu0 %v2500_v44 }
 0x57b   : >> { %2844 = vperm.xlu0 %12759, %v2840_v45   ;;  %2849 = vperm.xlu1 %12760, %v2841_v46   ;;  %v3425_v46 = vld [vmem:[%s17489_s15 + $0x68] sm:$0xf] }
 0x57c   : >> { %v2618_v47 = vpop.permute.xlu0 %2617  ;;  %v2498_v48 = vpop.permute.xlu1 %2497 }
 0x57d   : >> { %11651 = vmatprep.subr.mxu1 %v2618_v47  ;;  %11632 = vmatprep.subr.mxu0 %v2498_v48 }
 0x57e   : >> { %11652 = vmatpush3.msra.mxu1 %v2618_v47  ;;  %11633 = vmatpush3.msra.mxu0 %v2498_v48  ;;  %v10416_v47 = vld [vmem:[%s17489_s15 + $0xd8] sm:$0xf]  ;;  %v3424_v48 = vld [vmem:[%s17489_s15 + $0x60] sm:$0xff] }
 0x57f   : >> { %2864 = vperm.xlu0 %12759, %v10377_v49   ;;  %2859 = vperm.xlu1 %12760, %v10376_v50   ;;  %v10415_v49 = vld [vmem:[%s17489_s15 + $0xd0] sm:$0xff]  ;;  %v3423_v50 = vld [vmem:[%s17489_s15 + $0x58] sm:$0xff] }
 0x580   : >> { %v2616_v51 = vpop.permute.xlu0 %2615  ;;  %v2496_v52 = vpop.permute.xlu1 %2495 }
 0x581   : >> { %11653 = vmatprep.subr.mxu1 %v2616_v51  ;;  %11634 = vmatprep.subr.mxu0 %v2496_v52 }
 0x582   : >> { %11654 = vmatpush3.msra.mxu1 %v2616_v51  ;;  %11635 = vmatpush3.msra.mxu0 %v2496_v52  ;;  %v10414_v51 = vld [vmem:[%s17489_s15 + $0xc8] sm:$0xff]  ;;  %v3422_v52 = vld [vmem:[%s17489_s15 + $0x50] sm:$0xff] }
 0x583   : >> { %11637 = vmatmul.mubr.msk.f32.vlgmr.msra.gmra.mxu0 %vm2329_vm14, %v14489_v53 }
 0x584   : >> { %v2614_v55 = vpop.permute.xlu0 %2613  ;;  %v2612_v56 = vpop.permute.xlu1 %2611  ;;  %11682 = vmatprep.mubr.msk.f32.mxu0 %vm2329_vm14, %v14494_v54 }
 0x585   : >> { %11655 = vmatprep.subr.mxu1 %v2614_v55 }
 0x586   : >> { %11656 = vmatpush3.msra.mxu1 %v2614_v55  ;;  %v10412_v55 = vld [vmem:[%s17489_s15 + $0xb8] sm:$0xff] }
 0x587   : >> { %11657 = vmatprep.subr.mxu1 %v2612_v56 }
 0x588   : >> { %v2746_v58 = vpop.permute.xlu0 %2745  ;;  %v2744_v59 = vpop.permute.xlu1 %2743  ;;  %11658 = vmatpush3.msra.mxu1 %v2612_v56  ;;  %v3420_v56 = vld [vmem:[%s17489_s15 + $0x40] sm:$0xff] }
 0x589   : >> { %11662 = vmatprep.subr.mxu0 %v2746_v58  ;;  %11660 = vmatmul.mubr.msk.f32.vlgmr.msra.gmra.mxu1 %vm2329_vm14, %v14503_v57 }
 0x58a   : >> { %11663 = vmatpush3.msra.mxu0 %v2746_v58  ;;  %11705 = vmatprep.mubr.msk.f32.mxu1 %vm2329_vm14, %v14278_v10  ;;  %v3419_v58 = vld [vmem:[%s17489_s15 + $0x38] sm:$0xff] }
 0x58b   : >> { %11664 = vmatprep.subr.mxu0 %v2744_v59 }
 0x58c   : >> { %v2918_v60 = vpop.permute.xlu0 %2917  ;;  %11665 = vmatpush3.msra.mxu0 %v2744_v59  ;;  %v2742_v61 = vpop.permute.xlu1 %2741  ;;  %v10410_v59 = vld [vmem:[%s17489_s15 + $0xa8] sm:$0xff] }
 0x58d   : >> { %11685 = vmatprep.subr.mxu1 %v2918_v60  ;;  %11666 = vmatprep.subr.mxu0 %v2742_v61 }
 0x58e   : >> { %11686 = vmatpush3.msra.mxu1 %v2918_v60  ;;  %11667 = vmatpush3.msra.mxu0 %v2742_v61  ;;  %v3418_v60 = vld [vmem:[%s17489_s15 + $0x30] sm:$0xff]  ;;  %v10409_v61 = vld [vmem:[%s17489_s15 + $0xa0] sm:$0xff] }
 0x590   : >> { %v2916_v62 = vpop.permute.xlu0 %2915  ;;  %v2740_v63 = vpop.permute.xlu1 %2739 }
 0x591   : >> { %11687 = vmatprep.subr.mxu1 %v2916_v62  ;;  %11668 = vmatprep.subr.mxu0 %v2740_v63 }
 0x592   : >> { %11688 = vmatpush3.msra.mxu1 %v2916_v62  ;;  %11669 = vmatpush3.msra.mxu0 %v2740_v63  ;;  %v3417_v62 = vld [vmem:[%s17489_s15 + $0x28] sm:$0xff]  ;;  %v10408_v63 = vld [vmem:[%s17489_s15 + $0x98] sm:$0xff] }
 0x594   : >> { %v2914_v1 = vpop.permute.xlu0 %2913  ;;  %v2738_v12 = vpop.permute.xlu1 %2737 }
 0x595   : >> { %11689 = vmatprep.subr.mxu1 %v2914_v1  ;;  %11670 = vmatprep.subr.mxu0 %v2738_v12 }
 0x596   : >> { %11690 = vmatpush3.msra.mxu1 %v2914_v1  ;;  %11671 = vmatpush3.msra.mxu0 %v2738_v12  ;;  %v3416_v1 = vld [vmem:[%s17489_s15 + $0x20] sm:$0xff]  ;;  %v10407_v12 = vld [vmem:[%s17489_s15 + $0x90] sm:$0xff] }
 0x598   : >> { %v2912_v10 = vpop.permute.xlu0 %2911  ;;  %v2736_v13 = vpop.permute.xlu1 %2735 }
 0x599   : >> { %11691 = vmatprep.subr.mxu1 %v2912_v10  ;;  %11672 = vmatprep.subr.mxu0 %v2736_v13 }
 0x59a   : >> { %11692 = vmatpush3.msra.mxu1 %v2912_v10  ;;  %11673 = vmatpush3.msra.mxu0 %v2736_v13  ;;  %v3415_v10 = vld [vmem:[%s17489_s15 + $0x18] sm:$0xff]  ;;  %v10406_v13 = vld [vmem:[%s17489_s15 + $0x88] sm:$0xff] }
 0x59c   : >> { %v2910_v18 = vpop.permute.xlu0 %2909  ;;  %v2734_v19 = vpop.permute.xlu1 %2733 }
 0x59d   : >> { %11693 = vmatprep.subr.mxu1 %v2910_v18  ;;  %11674 = vmatprep.subr.mxu0 %v2734_v19 }
 0x59e   : >> { %11694 = vmatpush3.msra.mxu1 %v2910_v18  ;;  %11675 = vmatpush3.msra.mxu0 %v2734_v19  ;;  %v3414_v18 = vld [vmem:[%s17489_s15 + $0x10] sm:$0xff]  ;;  %v10405_v19 = vld [vmem:[%s17489_s15 + $0x80] sm:$0xff] }
 0x5a0   : >> { %v2908_v20 = vpop.permute.xlu0 %2907  ;;  %v2732_v21 = vpop.permute.xlu1 %2731 }
 0x5a1   : >> { %11695 = vmatprep.subr.mxu1 %v2908_v20  ;;  %11676 = vmatprep.subr.mxu0 %v2732_v21 }
 0x5a2   : >> { %11696 = vmatpush3.msra.mxu1 %v2908_v20  ;;  %11677 = vmatpush3.msra.mxu0 %v2732_v21  ;;  %v3413_v20 = vld [vmem:[%s17489_s15 + $0x8] sm:$0xff]  ;;  %v10404_v21 = vld [vmem:[%s17489_s15 + $0x78] sm:$0xff] }
 0x5a4   : >> { %v2906_v22 = vpop.permute.xlu0 %2905  ;;  %v2730_v23 = vpop.permute.xlu1 %2729 }
 0x5a5   : >> { %11697 = vmatprep.subr.mxu1 %v2906_v22  ;;  %11678 = vmatprep.subr.mxu0 %v2730_v23 }
 0x5a6   : >> { %11698 = vmatpush3.msra.mxu1 %v2906_v22  ;;  %11679 = vmatpush3.msra.mxu0 %v2730_v23  ;;  %v3412_v22 = vld [vmem:[%s17489_s15] sm:$0xff]  ;;  %v10403_v23 = vld [vmem:[%s17489_s15 + $0x70] sm:$0xff] }
 0x5a8   : >> { %v2904_v24 = vpop.permute.xlu0 %2903  ;;  %v2728_v25 = vpop.permute.xlu1 %2727 }
 0x5a9   : >> { %11680 = vmatprep.subr.mxu0 %v2728_v25  ;;  %11699 = vmatprep.subr.mxu1 %v2904_v24 }
 0x5aa   : >> { %11681 = vmatpush3.msra.mxu0 %v2728_v25  ;;  %11700 = vmatpush3.msra.mxu1 %v2904_v24 }
 0x5ab   : >> { %11683 = vmatmul.mubr.msk.f32.vlgmr.msra.gmra.mxu0 %vm2329_vm14, %v14512_v26  ;;  %11708 = vmatprep.subr.mxu0 %v14361_v16 }
 0x5ac   : >> { %v2902_v27 = vpop.permute.xlu0 %2901  ;;  %v2900_v28 = vpop.permute.xlu1 %2899  ;;  %11709 = vmatpush3.msra.mxu0 %v14361_v16  ;;  %11728 = vmatprep.mubr.msk.f32.mxu0 %vm2329_vm14, %v14287_v11 }
 0x5ad   : >> { %11701 = vmatprep.subr.mxu1 %v2902_v27  ;;  %11710 = vmatprep.subr.mxu0 %v14368_v17 }
 0x5ae   : >> { %11702 = vmatpush3.msra.mxu1 %v2902_v27  ;;  %11711 = vmatpush3.msra.mxu0 %v14368_v17 }
 0x5af   : >> { %11703 = vmatprep.subr.mxu1 %v2900_v28  ;;  %11712 = vmatprep.subr.mxu0 %v14233_v2 }
 0x5b0   : >> { %v3098_v29 = vpop.permute.xlu0 %3097  ;;  %v3096_v31 = vpop.permute.xlu1 %3095  ;;  %11704 = vmatpush3.msra.mxu1 %v2900_v28  ;;  %11713 = vmatpush3.msra.mxu0 %v14233_v2 }
 0x5b1   : >> { %11731 = vmatprep.subr.mxu1 %v3098_v29  ;;  %11706 = vmatmul.mubr.msk.f32.vlgmr.msra.gmra.mxu1 %vm2329_vm14, %v14439_v30 }
 0x5b2   : >> { %11732 = vmatpush3.msra.mxu1 %v3098_v29  ;;  %11714 = vmatprep.subr.mxu0 %v14243_v4 }
 0x5b3   : >> { %11733 = vmatprep.subr.mxu1 %v3096_v31  ;;  %11715 = vmatpush3.msra.mxu0 %v14243_v4 }
 0x5b4   : >> { %v3094_v11 = vpop.permute.xlu0 %3093  ;;  %v3092_v16 = vpop.permute.xlu1 %3091  ;;  %11734 = vmatpush3.msra.mxu1 %v3096_v31  ;;  %11716 = vmatprep.subr.mxu0 %v14236_v3 }
 0x5b5   : >> { %11735 = vmatprep.subr.mxu1 %v3094_v11  ;;  %11717 = vmatpush3.msra.mxu0 %v14236_v3  ;;  %v11615_v25 = vpop.f32.mrf.mxu1 }
 0x5b6   : >> { %11736 = vmatpush3.msra.mxu1 %v3094_v11  ;;  %11718 = vmatprep.subr.mxu0 %v14246_v5 }
 0x5b7   : >> { %11737 = vmatprep.subr.mxu1 %v3092_v16  ;;  %11719 = vmatpush3.msra.mxu0 %v14246_v5  ;;  %v2483_v27 = vpop.f32.mrf.mxu1 }
 0x5b8   : >> { %v3090_v2 = vpop.permute.xlu0 %3089  ;;  %v3088_v17 = vpop.permute.xlu1 %3087  ;;  %11738 = vmatpush3.msra.mxu1 %v3092_v16  ;;  %11720 = vmatprep.subr.mxu0 %v14256_v6 }
 0x5b9   : >> { %11739 = vmatprep.subr.mxu1 %v3090_v2  ;;  %11721 = vmatpush3.msra.mxu0 %v14256_v6 }
 0x5ba   : >> { %11740 = vmatpush3.msra.mxu1 %v3090_v2  ;;  %11722 = vmatprep.subr.mxu0 %v14259_v7 }
 0x5bb   : >> { %11741 = vmatprep.subr.mxu1 %v3088_v17  ;;  %11723 = vmatpush3.msra.mxu0 %v14259_v7 }
 0x5bc   : >> { %v3086_v3 = vpop.permute.xlu0 %3085  ;;  %v3084_v4 = vpop.permute.xlu1 %3083  ;;  %11742 = vmatpush3.msra.mxu1 %v3088_v17  ;;  %11724 = vmatprep.subr.mxu0 %v14269_v8 }
 0x5bd   : >> { %11743 = vmatprep.subr.mxu1 %v3086_v3  ;;  %11725 = vmatpush3.msra.mxu0 %v14269_v8 }
 0x5be   : >> { %11744 = vmatpush3.msra.mxu1 %v3086_v3  ;;  %11726 = vmatprep.subr.mxu0 %v14272_v9 }
 0x5bf   : >> { %11745 = vmatprep.subr.mxu1 %v3084_v4  ;;  %11727 = vmatpush3.msra.mxu0 %v14272_v9 }
 0x5c0   : >> { %v3082_v5 = vpop.permute.xlu0 %3081  ;;  %11746 = vmatpush3.msra.mxu1 %v3084_v4  ;;  %11729 = vmatmul.mubr.msk.f32.vlgmr.msra.gmra.mxu0 %vm2329_vm14, %v14317_v14 }
 0x5c1   : >> { %v3080_v6 = vpop.permute.xlu1 %3079  ;;  %11747 = vmatprep.subr.mxu1 %v3082_v5  ;;  %11751 = vmatprep.mubr.msk.f32.mxu1 %vm2329_vm14, %v14454_v35 }
 0x5c2   : >> { %11748 = vmatpush3.msra.mxu1 %v3082_v5  ;;  %11774 = vmatprep.mubr.msk.f32.mxu0 %vm2329_vm14, %v14347_v15 }
 0x5c3   : >> { %11749 = vmatprep.subr.mxu1 %v3080_v6 }
 0x5c4   : >> { %v3205_v7 = vpop.permute.xlu0 %3204  ;;  %11750 = vmatpush3.msra.mxu1 %v3080_v6 }
 0x5c5   : >> { %v3203_v8 = vpop.permute.xlu1 %3202  ;;  %11754 = vmatprep.subr.mxu0 %v3205_v7  ;;  %11752 = vmatmul.mubr.msk.f32.vlgmr.msra.gmra.mxu1 %vm2329_vm14, %v14489_v53  ;;  %v10413_v53 = vld [vmem:[%s17489_s15 + $0xc0] sm:$0xff] }
 0x5c6   : >> { %11755 = vmatpush3.msra.mxu0 %v3205_v7  ;;  %11797 = vmatprep.mubr.msk.f32.mxu1 %vm2329_vm14, %v14494_v54  ;;  %v3421_v54 = vld [vmem:[%s17489_s15 + $0x48] sm:$0xff] }
 0x5c7   : >> { %11756 = vmatprep.subr.mxu0 %v3203_v8 }
 0x5c8   : >> { %v3312_v9 = vpop.permute.xlu0 %3311  ;;  %11757 = vmatpush3.msra.mxu0 %v3203_v8 }
 0x5c9   : >> { %v3201_v14 = vpop.permute.xlu1 %3200  ;;  %11777 = vmatprep.subr.mxu1 %v3312_v9 }
 0x5ca   : >> { %11758 = vmatprep.subr.mxu0 %v3201_v14  ;;  %11778 = vmatpush3.msra.mxu1 %v3312_v9 }
 0x5cb   : >> { %11759 = vmatpush3.msra.mxu0 %v3201_v14 }
 0x5cc   : >> { %v3310_v15 = vpop.permute.xlu0 %3309 }
 0x5cd   : >> { %v3199_v30 = vpop.permute.xlu1 %3198  ;;  %11779 = vmatprep.subr.mxu1 %v3310_v15 }
 0x5ce   : >> { %11760 = vmatprep.subr.mxu0 %v3199_v30  ;;  %11780 = vmatpush3.msra.mxu1 %v3310_v15 }
 0x5cf   : >> { %11761 = vmatpush3.msra.mxu0 %v3199_v30 }
 0x5d0   : >> { %v3308_v32 = vpop.permute.xlu0 %3307 }
 0x5d1   : >> { %v3197_v33 = vpop.permute.xlu1 %3196  ;;  %11781 = vmatprep.subr.mxu1 %v3308_v32 }
 0x5d2   : >> { %11762 = vmatprep.subr.mxu0 %v3197_v33  ;;  %11782 = vmatpush3.msra.mxu1 %v3308_v32 }
 0x5d3   : >> { %11763 = vmatpush3.msra.mxu0 %v3197_v33 }
 0x5d4   : >> { %v3306_v34 = vpop.permute.xlu0 %3305 }
 0x5d5   : >> { %v3195_v35 = vpop.permute.xlu1 %3194  ;;  %11783 = vmatprep.subr.mxu1 %v3306_v34 }
 0x5d6   : >> { %11764 = vmatprep.subr.mxu0 %v3195_v35  ;;  %11784 = vmatpush3.msra.mxu1 %v3306_v34 }
 0x5d7   : >> { %11765 = vmatpush3.msra.mxu0 %v3195_v35 }
 0x5d8   : >> { %v3304_v36 = vpop.permute.xlu0 %3303 }
 0x5d9   : >> { %v3193_v37 = vpop.permute.xlu1 %3192  ;;  %11785 = vmatprep.subr.mxu1 %v3304_v36 }
 0x5da   : >> { %11766 = vmatprep.subr.mxu0 %v3193_v37  ;;  %11786 = vmatpush3.msra.mxu1 %v3304_v36 }
 0x5db   : >> { %11767 = vmatpush3.msra.mxu0 %v3193_v37 }
 0x5dc   : >> { %v3302_v38 = vpop.permute.xlu0 %3301 }
 0x5dd   : >> { %v3191_v39 = vpop.permute.xlu1 %3190  ;;  %11787 = vmatprep.subr.mxu1 %v3302_v38 }
 0x5de   : >> { %11768 = vmatprep.subr.mxu0 %v3191_v39  ;;  %11788 = vmatpush3.msra.mxu1 %v3302_v38 }
 0x5df   : >> { %11769 = vmatpush3.msra.mxu0 %v3191_v39 }
 0x5e0   : >> { %v3300_v40 = vpop.permute.xlu0 %3299 }
 0x5e1   : >> { %v3189_v41 = vpop.permute.xlu1 %3188  ;;  %11789 = vmatprep.subr.mxu1 %v3300_v40 }
 0x5e2   : >> { %11770 = vmatprep.subr.mxu0 %v3189_v41  ;;  %11790 = vmatpush3.msra.mxu1 %v3300_v40 }
 0x5e3   : >> { %11771 = vmatpush3.msra.mxu0 %v3189_v41 }
 0x5e4   : >> { %v3298_v42 = vpop.permute.xlu0 %3297 }
 0x5e5   : >> { %v3187_v43 = vpop.permute.xlu1 %3186  ;;  %11791 = vmatprep.subr.mxu1 %v3298_v42 }
 0x5e6   : >> { %11772 = vmatprep.subr.mxu0 %v3187_v43  ;;  %11792 = vmatpush3.msra.mxu1 %v3298_v42 }
 0x5e7   : >> { %11773 = vmatpush3.msra.mxu0 %v3187_v43 }
 0x5e8   : >> { %11775 = vmatmul.mubr.msk.f32.vlgmr.msra.gmra.mxu0 %vm2329_vm14, %v14503_v57  ;;  %v3296_v44 = vpop.permute.xlu0 %3295  ;;  %11800 = vmatprep.subr.msk.mxu0 %vm3433_vm15, %v3425_v46  ;;  %v10411_v57 = vld [vmem:[%s17489_s15 + $0xb0] sm:$0xff] }
 0x5e9   : >> { %11793 = vmatprep.subr.mxu1 %v3296_v44  ;;  %v3294_v45 = vpop.permute.xlu1 %3293  ;;  %11801 = vmatpush3.msk.msra.mxu0 %vm3433_vm15, %v3425_v46 }
 0x5ea   : >> { %11794 = vmatpush3.msra.mxu1 %v3296_v44  ;;  %11802 = vmatprep.subr.mxu0 %v3424_v48 }
 0x5eb   : >> { %11795 = vmatprep.subr.mxu1 %v3294_v45  ;;  %11803 = vmatpush3.msra.mxu0 %v3424_v48 }
 0x5ec   : >> { %11796 = vmatpush3.msra.mxu1 %v3294_v45  ;;  %11804 = vmatprep.subr.mxu0 %v3423_v50 }
 0x5ed   : >> { %11798 = vmatmul.mubr.msk.f32.vlgmr.msra.gmra.mxu1 %vm2329_vm14, %v14512_v26  ;;  %11831 = vmatprep.subr.msk.mxu1 %vm3433_vm15, %v10416_v47 }
 0x5ee   : >> { %11832 = vmatpush3.msk.msra.mxu1 %vm3433_vm15, %v10416_v47  ;;  %11805 = vmatpush3.msra.mxu0 %v3423_v50 }
 0x5ef   : >> { %11833 = vmatprep.subr.mxu1 %v10415_v49  ;;  %11806 = vmatprep.subr.mxu0 %v3422_v52 }
 0x5f0   : >> { %11834 = vmatpush3.msra.mxu1 %v10415_v49  ;;  %11807 = vmatpush3.msra.mxu0 %v3422_v52 }
 0x5f1   : >> { %11835 = vmatprep.subr.mxu1 %v10414_v51  ;;  %11808 = vmatprep.subr.mxu0 %v3421_v54 }
 0x5f2   : >> { %11836 = vmatpush3.msra.mxu1 %v10414_v51  ;;  %11809 = vmatpush3.msra.mxu0 %v3421_v54 }
 0x5f3   : >> { %11837 = vmatprep.subr.mxu1 %v10413_v53  ;;  %11810 = vmatprep.subr.mxu0 %v3420_v56 }
 0x5f4   : >> { %11838 = vmatpush3.msra.mxu1 %v10413_v53  ;;  %11811 = vmatpush3.msra.mxu0 %v3420_v56 }
 0x5f5   : >> { %11839 = vmatprep.subr.mxu1 %v10412_v55  ;;  %11812 = vmatprep.subr.mxu0 %v3419_v58 }
 0x5f6   : >> { %11840 = vmatpush3.msra.mxu1 %v10412_v55  ;;  %11813 = vmatpush3.msra.mxu0 %v3419_v58  ;;  %v2850_v33 = vpop.permute.xlu1 %2849  ;;  %v2845_v34 = vpop.permute.xlu0 %2844 }
 0x5f7   : >> { %11841 = vmatprep.subr.mxu1 %v10411_v57  ;;  %11814 = vmatprep.subr.mxu0 %v3418_v60 }
 0x5f8   : >> { %11842 = vmatpush3.msra.mxu1 %v10411_v57  ;;  %11815 = vmatpush3.msra.mxu0 %v3418_v60 }
 0x5f9   : >> { %11843 = vmatprep.subr.mxu1 %v10410_v59  ;;  %11816 = vmatprep.subr.mxu0 %v3417_v62 }
 0x5fa   : >> { %11844 = vmatpush3.msra.mxu1 %v10410_v59  ;;  %11817 = vmatpush3.msra.mxu0 %v3417_v62  ;;  %v2860_v46 = vpop.permute.xlu1 %2859  ;;  %v2865_v48 = vpop.permute.xlu0 %2864 }
 0x5fb   : >> { %11845 = vmatprep.subr.mxu1 %v10409_v61  ;;  %11818 = vmatprep.subr.mxu0 %v3416_v1 }
 0x5fc   : >> { %11846 = vmatpush3.msra.mxu1 %v10409_v61  ;;  %11819 = vmatpush3.msra.mxu0 %v3416_v1 }
 0x5fd   : >> { %11847 = vmatprep.subr.mxu1 %v10408_v63  ;;  %11820 = vmatprep.subr.mxu0 %v3415_v10 }
 0x5fe   : >> { %11848 = vmatpush3.msra.mxu1 %v10408_v63  ;;  %11821 = vmatpush3.msra.mxu0 %v3415_v10 }
 0x5ff   : >> { %11849 = vmatprep.subr.mxu1 %v10407_v12  ;;  %11822 = vmatprep.subr.mxu0 %v3414_v18 }
 0x600   : >> { %11850 = vmatpush3.msra.mxu1 %v10407_v12  ;;  %11823 = vmatpush3.msra.mxu0 %v3414_v18 }
 0x601   : >> { %11851 = vmatprep.subr.mxu1 %v10406_v13  ;;  %11824 = vmatprep.subr.mxu0 %v3413_v20 }
 0x602   : >> { %11852 = vmatpush3.msra.mxu1 %v10406_v13  ;;  %11825 = vmatpush3.msra.mxu0 %v3413_v20 }
 0x603   : >> { %11853 = vmatprep.subr.mxu1 %v10405_v19  ;;  %11826 = vmatprep.subr.mxu0 %v3412_v22 }
 0x604   : >> { %11854 = vmatpush3.msra.mxu1 %v10405_v19  ;;  %11827 = vmatpush3.msra.mxu0 %v3412_v22 }
 0x605   : >> { %11855 = vmatprep.subr.mxu1 %v10404_v21 }
 0x606   : >> { %11856 = vmatpush3.msra.mxu1 %v10404_v21 }
 0x607   : >> { %11857 = vmatprep.subr.mxu1 %v10403_v23 }
 0x608   : >> { %11858 = vmatpush3.msra.mxu1 %v10403_v23 }
 0x624   : >> { %v11592_v24 = vpop.f32.mrf.mxu0 }
 0x625   : >> { %v2489_v3 = vadd.f32 %v11615_v25, %v11592_v24 }
 0x626   : >> { %v2402_v26 = vpop.f32.mrf.mxu0 }
 0x627   : >> { %v2484_v17 = vadd.f32 %v2483_v27, %v2402_v26 }
 0x643   : >> { %v11638_v28 = vpop.f32.mrf.mxu0 }
 0x644   : >> { %v2607_v8 = vadd.f32 %v11638_v28, %v2489_v3 }
 0x645   : >> { %v2597_v31 = vpop.f32.mrf.mxu0 }
 0x646   : >> { %v2606_v7 = vadd.f32 %v2597_v31, %v2484_v17 }
 0x649   : >> { %v11661_v29 = vpop.f32.mrf.mxu1 }
 0x64a   : >> { %v2723_v32 = vadd.f32 %v11661_v29, %v2607_v8 }
 0x64b   : >> { %v2713_v11 = vpop.f32.mrf.mxu1 }
 0x64c   : >> { %v2722_v15 = vadd.f32 %v2713_v11, %v2606_v7 }
 0x66b   : >> { %v11684_v16 = vpop.f32.mrf.mxu0 }
 0x66c   : >> { %v2839_v38 = vadd.f32 %v11684_v16, %v2723_v32 }
 0x66d   : >> { %v2829_v4 = vpop.f32.mrf.mxu0 }
 0x66e   : >> { %v2838_v35 = vadd.f32 %v2829_v4, %v2722_v15  ;;  %v2853_v45 = vmul.f32 %v2850_v33, %v2839_v38 }
 0x670   : >> { %v2852_v42 = vmul.f32 %v2845_v34, %v2838_v35  ;;  %v2868_v55 = vadd.f32 %v2865_v48, %v2853_v45 }
 0x671   : >> { %v11707_v2 = vpop.f32.mrf.mxu1 }
 0x672   : >> { %v2867_v52 = vadd.f32 %v2860_v46, %v2852_v42  ;;  %v2872_v61 = vmul.f32 0.01, %v2868_v55  ;;  %vm2870_vm2 = vcmp.gt.f32.partialorder %v2868_v55, 0.0 }
 0x673   : >> { %v2995_v5 = vpop.f32.mrf.mxu1 }
 0x674   : >> { %v2871_v58 = vmul.f32 0.01, %v2867_v52  ;;  %vm2869_vm1 = vcmp.gt.f32.partialorder %v2867_v52, 0.0  ;;  %v2874_v10 = vsel %vm2870_vm2, %v2868_v55, %v2872_v61 }
 0x676   : >> { %v2873_v1 = vsel %vm2869_vm1, %v2867_v52, %v2871_v58 }
 0x680   : >> { %v11730_v6 = vpop.f32.mrf.mxu0 }
 0x681   : >> { %v3076_v30 = vadd.f32 %v11730_v6, %v11707_v2 }
 0x682   : >> { %v3070_v9 = vpop.f32.mrf.mxu0 }
 0x683   : >> { %v3071_v36 = vadd.f32 %v3070_v9, %v2995_v5 }
 0x685   : >> { %v11753_v14 = vpop.f32.mrf.mxu1 }
 0x686   : >> { %v3185_v40 = vadd.f32 %v11753_v14, %v3076_v30 }
 0x687   : >> { %v3175_v39 = vpop.f32.mrf.mxu1 }
 0x688   : >> { %v3184_v43 = vadd.f32 %v3175_v39, %v3071_v36 }
 0x6a8   : >> { %v11776_v37 = vpop.f32.mrf.mxu0 }
 0x6a9   : >> { %v3292_v44 = vadd.f32 %v11776_v37, %v3185_v40 }
 0x6aa   : >> { %v3282_v41 = vpop.f32.mrf.mxu0 }
 0x6ab   : >> { %v3291_v49 = vadd.f32 %v3282_v41, %v3184_v43 }
 0x6ad   : >> { %v11799_v47 = vpop.f32.mrf.mxu1 }
 0x6ae   : >> { %v3399_v50 = vadd.f32 %v11799_v47, %v3292_v44 }
 0x6af   : >> { %v3389_v51 = vpop.f32.mrf.mxu1 }
 0x6b0   : >> { %v3401_v53 = vmul.f32 %v3399_v50, %v2850_v33  ;;  %v3398_v54 = vadd.f32 %v3389_v51, %v3291_v49 }
 0x6b2   : >> { %v3403_v56 = vadd.f32 %v3401_v53, %v2865_v48  ;;  %v3400_v57 = vmul.f32 %v3398_v54, %v2845_v34 }
 0x6b4   : >> { %vm3405_vm0 = vcmp.gt.f32.partialorder %v3403_v56, 0.0  ;;  %v3407_v59 = vmul.f32 0.01, %v3403_v56  ;;  %v3402_v60 = vadd.f32 %v3400_v57, %v2860_v46 }
 0x6b6   : >> { %vm3404_vm3 = vcmp.gt.f32.partialorder %v3402_v60, 0.0  ;;  %v3406_v62 = vmul.f32 0.01, %v3402_v60  ;;  %v3409_v63 = vsel %vm3405_vm0, %v3403_v56, %v3407_v59 }
 0x6b7   : >> { %v3411_v18 = vmax.f32 %v2874_v10, %v3409_v63 }
 0x6b8   : >> { %v3408_v12 = vsel %vm3404_vm3, %v3402_v60, %v3406_v62 }
 0x6b9   : >> { %v3410_v13 = vmax.f32 %v2873_v1, %v3408_v12 }
 0x6bb   : >> { %11828 = vmatprep.mubr.msk.f32.mxu0 %vm3426_vm4, %v3410_v13  ;;  %11859 = vmatprep.mubr.msk.f32.mxu1 %vm3426_vm4, %v3410_v13 }
 0x6bc   : >> { %11829 = vmatmul.mubr.msk.f32.vlgmr.msra.gmra.mxu0 %vm3426_vm4, %v3411_v18  ;;  %11860 = vmatmul.mubr.msk.f32.vlgmr.msra.gmra.mxu1 %vm3426_vm4, %v3411_v18 }
 0x77c   : >> { %v11830_v19 = vpop.f32.mrf.mxu0  ;;  %v11861_v20 = vpop.f32.mrf.mxu1 }
 0x77d   : >> { %v3606_v21 = vmax.f32 %v11830_v19, %v11861_v20 }
 0x77e   : >> { %v3503_v22 = vpop.f32.mrf.mxu0  ;;  %v3596_v23 = vpop.f32.mrf.mxu1 }
 0x77f   : >> { %v3605_v24 = vmax.f32 %v3503_v22, %v3596_v23  ;;  %3613 = vrot.lane.b32.xlu0 %v3606_v21, %s12878_s29 }
 0x781   : >> { %3611 = vrot.lane.b32.xlu1 %v3605_v24, %s12878_s29 }
 0x7f0   : > { %2270 = sbr.rel (!%p2268_p6) target bundleno = 1235 (0x4d3), region = 272 }
 0x7f1   : >> { %v3614_v25 = vpop.permute.xlu0 %3613 }
 0x7f2   : >> { %10422 = vst.msk [vmem:[%s10221_s28 + $0x18] sm:$0xff] %vm3618_vm5, %v3614_v25 }
 0x7f3   : >> { %v3612_v26 = vpop.permute.xlu1 %3611 }
 0x7f4   : >> { %10421 = vst.msk [vmem:[%s10221_s28 + $0x10] sm:$0xff] %vm3618_vm5, %v3612_v26 }
 0x7f5 LB: >> { %s10423_s5 = sshll.u32 %s12844_s30, 5  ;;  %s12879_s0 = smov 127   ;;  %v12883_v52 = vmov 0   ;;  %v4195_v57 = vld [vmem:[%s17485_s11] sm:$0xff]  ;;  %v4196_v58 = vld [vmem:[%s17485_s11 + $0x8] sm:$0xff]  ;;  %v10443_v61 = vld [vmem:[%s17485_s11 + $0x18] sm:$0xff]  ;;  %s12844_s30 = sphi %s14646_s30, %s3626_s30  }
 0x7f6   : >> { %s14652_s26 = scalar_lea.vmem [#allocation4], %s10423_s5  ;;  %s17528_s3 = sld [smem:[#allocation13_spill]]  ;;  %12761 = vset.pattern.permute.xlu0 %v12883_v52  ;;  %12762 = vset.pattern.permute.xlu1 %v12883_v52  ;;  %v10442_v62 = vld [vmem:[%s17485_s11 + $0x10] sm:$0xff]  ;;  %vm4774_vm11 = vcmask 424960   ;;  %vm4959_vm12 = vcmask 220168  }
 0x7f7   : >> { %s12880_s25 = smov 126   ;;  %s12881_s28 = smov 125  }
 0x7f8   : >> { %s12882_s29 = smov 124  }
 0x7fb   : >> { %v14655_v27 = vld [vmem:[%s14652_s26 + $0x48] sm:$0xff]  ;;  %v14658_v28 = vld [vmem:[%s14652_s26 + $0x38] sm:$0xff]  ;;  %v14665_v29 = vld [vmem:[%s14652_s26 + $0x40] sm:$0xff] }
 0x7fc   : >> { %3672 = vrot.lane.b32.xlu0 %v14655_v27, %s12879_s0  ;;  %3668 = vrot.lane.b32.xlu1 %v14658_v28, %s12879_s0  ;;  %v14668_v31 = vld [vmem:[%s14652_s26 + $0x30] sm:$0xff]  ;;  %v14678_v11 = vld [vmem:[%s14652_s26 + $0x28] sm:$0xff] }
 0x7fd   : >> { %11885 = vmatprep.subr.mxu1 %v14655_v27  ;;  %v14681_v16 = vld [vmem:[%s14652_s26 + $0x20] sm:$0xff]  ;;  %v14691_v2 = vld [vmem:[%s14652_s26 + $0x18] sm:$0xff]  ;;  %v14694_v17 = vld [vmem:[%s14652_s26 + $0x10] sm:$0xff] }
 0x7fe   : >> { %11886 = vmatpush3.msra.mxu1 %v14655_v27  ;;  %v14700_v3 = vld [vmem:[%s17528_s3 + $0x10] sm:$0xff]  ;;  %v14709_v4 = vld [vmem:[%s17528_s3] sm:$0xff]  ;;  %v3630_v5 = vld [vmem:[%s14652_s26 + $0x8] sm:$0xff] }
 0x7ff   : >> { %11887 = vmatprep.subr.mxu1 %v14665_v29  ;;  %11882 = vmatprep.mubr.msk.f32.mxu0 %vm2329_vm14, %v14700_v3  ;;  %v3629_v6 = vld [vmem:[%s14652_s26] sm:$0xff]  ;;  %v14739_v7 = vld [vmem:[%s17528_s3 + $0x8] sm:$0xff]  ;;  %v14769_v8 = vld [vmem:[%s17528_s3 + $0x30] sm:$0xff] }
 0x800   : >> { %3670 = vrot.lane.b32.xlu0 %v14665_v29, %s12879_s0  ;;  %3666 = vrot.lane.b32.xlu1 %v14668_v31, %s12879_s0  ;;  %v14783_v9 = vld [vmem:[%s14652_s26 + $0x58] sm:$0xff]  ;;  %v14790_v14 = vld [vmem:[%s14652_s26 + $0x50] sm:$0xff] }
 0x801   : >> { %11888 = vmatpush3.msra.mxu1 %v14665_v29  ;;  %11905 = vmatprep.mubr.msk.f32.mxu1 %vm2329_vm14, %v14709_v4  ;;  %v14861_v42 = vld [vmem:[%s17528_s3 + $0x18] sm:$0xff]  ;;  %v14876_v47 = vld [vmem:[%s17528_s3 + $0x20] sm:$0xff]  ;;  %v14911_v12 = vld [vmem:[%s17528_s3 + $0x28] sm:$0xff] }
 0x802   : >> { %11889 = vmatprep.subr.mxu1 %v14658_v28  ;;  %v14916_v10 = vld [vmem:[%s17528_s3 + $0x40] sm:$0xff]  ;;  %v14925_v19 = vld [vmem:[%s17528_s3 + $0x38] sm:$0xff] }
 0x803   : >> { %11890 = vmatpush3.msra.mxu1 %v14658_v28 }
 0x804   : >> { %3664 = vrot.lane.b32.xlu0 %v14678_v11, %s12879_s0  ;;  %3662 = vrot.lane.b32.xlu1 %v14681_v16, %s12879_s0 }
 0x805   : >> { %11891 = vmatprep.subr.mxu1 %v14668_v31 }
 0x806   : >> { %11892 = vmatpush3.msra.mxu1 %v14668_v31 }
 0x807   : >> { %11893 = vmatprep.subr.mxu1 %v14678_v11 }
 0x808   : >> { %3660 = vrot.lane.b32.xlu0 %v14691_v2, %s12879_s0  ;;  %3658 = vrot.lane.b32.xlu1 %v14694_v17, %s12879_s0 }
 0x809   : >> { %11894 = vmatpush3.msra.mxu1 %v14678_v11 }
 0x80a   : >> { %11895 = vmatprep.subr.mxu1 %v14681_v16 }
 0x80b   : >> { %11896 = vmatpush3.msra.mxu1 %v14681_v16 }
 0x80c   : >> { %3656 = vrot.lane.b32.xlu0 %v3630_v5, %s12879_s0  ;;  %3654 = vrot.lane.b32.xlu1 %v3629_v6, %s12879_s0 }
 0x80d   : >> { %11897 = vmatprep.subr.mxu1 %v14691_v2 }
 0x80e   : >> { %11898 = vmatpush3.msra.mxu1 %v14691_v2 }
 0x80f   : >> { %11899 = vmatprep.subr.mxu1 %v14694_v17 }
 0x810   : >> { %3868 = vrot.lane.b32.xlu0 %v14655_v27, %s12880_s25  ;;  %3866 = vrot.lane.b32.xlu1 %v14665_v29, %s12880_s25 }
 0x811   : >> { %11900 = vmatpush3.msra.mxu1 %v14694_v17 }
 0x812   : >> { %11901 = vmatprep.subr.mxu1 %v3630_v5 }
 0x813   : >> { %11902 = vmatpush3.msra.mxu1 %v3630_v5 }
 0x814   : >> { %3984 = vrot.lane.b32.xlu0 %v14655_v27, %s12881_s28  ;;  %3864 = vrot.lane.b32.xlu1 %v14658_v28, %s12880_s25 }
 0x815   : >> { %11903 = vmatprep.subr.mxu1 %v3629_v6 }
 0x816   : >> { %11904 = vmatpush3.msra.mxu1 %v3629_v6 }
 0x817   : >> { %11906 = vmatmul.mubr.msk.f32.vlgmr.msra.gmra.mxu1 %vm2329_vm14, %v14739_v7 }
 0x818   : >> { %3982 = vrot.lane.b32.xlu0 %v14665_v29, %s12881_s28  ;;  %3862 = vrot.lane.b32.xlu1 %v14668_v31, %s12880_s25 }
 0x819   : >> { %11951 = vmatprep.mubr.msk.f32.mxu1 %vm2329_vm14, %v14769_v8 }
 0x81c   : >> { %3980 = vrot.lane.b32.xlu0 %v14658_v28, %s12881_s28  ;;  %3860 = vrot.lane.b32.xlu1 %v14678_v11, %s12880_s25 }
 0x820   : >> { %3978 = vrot.lane.b32.xlu0 %v14668_v31, %s12881_s28  ;;  %3858 = vrot.lane.b32.xlu1 %v14681_v16, %s12880_s25 }
 0x824   : >> { %3976 = vrot.lane.b32.xlu0 %v14678_v11, %s12881_s28  ;;  %3856 = vrot.lane.b32.xlu1 %v14691_v2, %s12880_s25 }
 0x828   : >> { %3974 = vrot.lane.b32.xlu0 %v14681_v16, %s12881_s28  ;;  %3854 = vrot.lane.b32.xlu1 %v14694_v17, %s12880_s25 }
 0x82c   : >> { %3972 = vrot.lane.b32.xlu0 %v14691_v2, %s12881_s28  ;;  %3852 = vrot.lane.b32.xlu1 %v3630_v5, %s12880_s25 }
 0x830   : >> { %3970 = vrot.lane.b32.xlu0 %v14694_v17, %s12881_s28  ;;  %3850 = vrot.lane.b32.xlu1 %v3629_v6, %s12880_s25 }
 0x834   : >> { %3968 = vrot.lane.b32.xlu0 %v3630_v5, %s12881_s28  ;;  %3966 = vrot.lane.b32.xlu1 %v3629_v6, %s12881_s28 }
 0x838   : >> { %4100 = vrot.lane.b32.xlu0 %v14655_v27, %s12882_s29  ;;  %4098 = vrot.lane.b32.xlu1 %v14665_v29, %s12882_s29 }
 0x83c   : >> { %4272 = vrot.lane.b32.xlu0 %v14783_v9, %s12879_s0  ;;  %4096 = vrot.lane.b32.xlu1 %v14658_v28, %s12882_s29 }
 0x840   : >> { %4270 = vrot.lane.b32.xlu0 %v14790_v14, %s12879_s0  ;;  %4094 = vrot.lane.b32.xlu1 %v14668_v31, %s12882_s29 }
 0x844   : >> { %4268 = vrot.lane.b32.xlu0 %v14655_v27, %s12879_s0  ;;  %4092 = vrot.lane.b32.xlu1 %v14678_v11, %s12882_s29 }
 0x848   : >> { %4266 = vrot.lane.b32.xlu0 %v14665_v29, %s12879_s0  ;;  %4090 = vrot.lane.b32.xlu1 %v14681_v16, %s12882_s29 }
 0x84c   : >> { %4264 = vrot.lane.b32.xlu0 %v14658_v28, %s12879_s0  ;;  %4088 = vrot.lane.b32.xlu1 %v14691_v2, %s12882_s29 }
 0x850   : >> { %4262 = vrot.lane.b32.xlu0 %v14668_v31, %s12879_s0  ;;  %4086 = vrot.lane.b32.xlu1 %v14694_v17, %s12882_s29 }
 0x854   : >> { %4260 = vrot.lane.b32.xlu0 %v14678_v11, %s12879_s0  ;;  %4084 = vrot.lane.b32.xlu1 %v3630_v5, %s12882_s29 }
 0x858   : >> { %4258 = vrot.lane.b32.xlu0 %v14681_v16, %s12879_s0  ;;  %4082 = vrot.lane.b32.xlu1 %v3629_v6, %s12882_s29 }
 0x85c   : >> { %4256 = vrot.lane.b32.xlu0 %v14691_v2, %s12879_s0  ;;  %4254 = vrot.lane.b32.xlu1 %v14694_v17, %s12879_s0 }
 0x860   : >> { %4452 = vrot.lane.b32.xlu0 %v14783_v9, %s12880_s25  ;;  %4450 = vrot.lane.b32.xlu1 %v14790_v14, %s12880_s25 }
 0x864   : >> { %4448 = vrot.lane.b32.xlu0 %v14655_v27, %s12880_s25  ;;  %4446 = vrot.lane.b32.xlu1 %v14665_v29, %s12880_s25 }
 0x868   : >> { %4444 = vrot.lane.b32.xlu0 %v14658_v28, %s12880_s25  ;;  %4442 = vrot.lane.b32.xlu1 %v14668_v31, %s12880_s25 }
 0x86c   : >> { %4440 = vrot.lane.b32.xlu0 %v14678_v11, %s12880_s25  ;;  %4438 = vrot.lane.b32.xlu1 %v14681_v16, %s12880_s25 }
 0x86e   : >> { %v3673_v15 = vpop.permute.xlu0 %3672  ;;  %v3669_v30 = vpop.permute.xlu1 %3668 }
 0x86f   : >> { %11862 = vmatprep.subr.mxu0 %v3673_v15 }
 0x870   : >> { %11863 = vmatpush3.msra.mxu0 %v3673_v15  ;;  %4436 = vrot.lane.b32.xlu0 %v14691_v2, %s12880_s25 }
 0x871   : >> { %4434 = vrot.lane.b32.xlu1 %v14694_v17, %s12880_s25  ;;  %s10479_s25 = sshll.u32 %s12844_s30, 4  ;;  %s3626_s30 = sadd.s32 1, %s12844_s30  }
 0x872   : >> { %v3671_v32 = vpop.permute.xlu0 %3670  ;;  %v3667_v33 = vpop.permute.xlu1 %3666  ;;  %s10230_s5 = scalar_lea.vmem [#allocation5], %s10479_s25  ;;  %p3623_p7 = scmp.ge.s32.totalorder %s3626_s30, 22  }
 0x873   : >> { %11864 = vmatprep.subr.mxu0 %v3671_v32  ;;  %s15026_s1 = smov (%p3623_p7), 0  }
 0x874   : >> { %11865 = vmatpush3.msra.mxu0 %v3671_v32  ;;  %4559 = vrot.lane.b32.xlu0 %v14783_v9, %s12881_s28 }
 0x875   : >> { %4557 = vrot.lane.b32.xlu1 %v14790_v14, %s12881_s28  ;;  %11866 = vmatprep.subr.mxu0 %v3669_v30 }
 0x876   : >> { %11867 = vmatpush3.msra.mxu0 %v3669_v30  ;;  %v3665_v34 = vpop.permute.xlu0 %3664  ;;  %v3663_v35 = vpop.permute.xlu1 %3662 }
 0x877   : >> { %11868 = vmatprep.subr.mxu0 %v3667_v33 }
 0x878   : >> { %11869 = vmatpush3.msra.mxu0 %v3667_v33  ;;  %4666 = vrot.lane.b32.xlu0 %v14783_v9, %s12882_s29 }
 0x879   : >> { %4555 = vrot.lane.b32.xlu1 %v14655_v27, %s12881_s28  ;;  %11870 = vmatprep.subr.mxu0 %v3665_v34 }
 0x87a   : >> { %11871 = vmatpush3.msra.mxu0 %v3665_v34  ;;  %v3661_v36 = vpop.permute.xlu0 %3660  ;;  %v3659_v37 = vpop.permute.xlu1 %3658 }
 0x87b   : >> { %11872 = vmatprep.subr.mxu0 %v3663_v35 }
 0x87c   : >> { %11873 = vmatpush3.msra.mxu0 %v3663_v35  ;;  %4664 = vrot.lane.b32.xlu0 %v14790_v14, %s12882_s29 }
 0x87d   : >> { %4553 = vrot.lane.b32.xlu1 %v14665_v29, %s12881_s28  ;;  %11874 = vmatprep.subr.mxu0 %v3661_v36 }
 0x87e   : >> { %11875 = vmatpush3.msra.mxu0 %v3661_v36  ;;  %v3657_v38 = vpop.permute.xlu0 %3656  ;;  %v3655_v39 = vpop.permute.xlu1 %3654 }
 0x87f   : >> { %11876 = vmatprep.subr.mxu0 %v3659_v37 }
 0x880   : >> { %11877 = vmatpush3.msra.mxu0 %v3659_v37  ;;  %4662 = vrot.lane.b32.xlu0 %v14655_v27, %s12882_s29 }
 0x881   : >> { %4551 = vrot.lane.b32.xlu1 %v14658_v28, %s12881_s28  ;;  %11878 = vmatprep.subr.mxu0 %v3657_v38 }
 0x882   : >> { %11879 = vmatpush3.msra.mxu0 %v3657_v38  ;;  %v3869_v40 = vpop.permute.xlu0 %3868  ;;  %v3867_v41 = vpop.permute.xlu1 %3866  ;;  %v14934_v38 = vld [vmem:[%s17528_s3 + $0x48] sm:$0xff]  ;;  %s12884_s3 = smov 1  }
 0x883   : >> { %11880 = vmatprep.subr.mxu0 %v3655_v39 }
 0x884   : >> { %4660 = vrot.lane.b32.xlu0 %v14665_v29, %s12882_s29  ;;  %11881 = vmatpush3.msra.mxu0 %v3655_v39 }
 0x885   : >> { %4549 = vrot.lane.b32.xlu1 %v14668_v31, %s12881_s28  ;;  %11908 = vmatprep.subr.mxu0 %v3869_v40 }
 0x886   : >> { %v3985_v43 = vpop.permute.xlu0 %3984  ;;  %11883 = vmatmul.mubr.msk.f32.vlgmr.msra.gmra.mxu0 %vm2329_vm14, %v14861_v42  ;;  %v3865_v44 = vpop.permute.xlu1 %3864 }
 0x887   : >> { %11909 = vmatpush3.msra.mxu0 %v3869_v40  ;;  %11931 = vmatprep.subr.mxu1 %v3985_v43 }
 0x888   : >> { %11910 = vmatprep.subr.mxu0 %v3867_v41  ;;  %4658 = vrot.lane.b32.xlu0 %v14658_v28, %s12882_s29 }
 0x889   : >> { %4547 = vrot.lane.b32.xlu1 %v14678_v11, %s12881_s28  ;;  %11911 = vmatpush3.msra.mxu0 %v3867_v41 }
 0x88a   : >> { %11932 = vmatpush3.msra.mxu1 %v3985_v43  ;;  %11912 = vmatprep.subr.mxu0 %v3865_v44  ;;  %v3983_v45 = vpop.permute.xlu0 %3982  ;;  %v3863_v46 = vpop.permute.xlu1 %3862 }
 0x88b   : >> { %11913 = vmatpush3.msra.mxu0 %v3865_v44  ;;  %11933 = vmatprep.subr.mxu1 %v3983_v45 }
 0x88c   : >> { %4656 = vrot.lane.b32.xlu0 %v14668_v31, %s12882_s29  ;;  %11914 = vmatprep.subr.mxu0 %v3863_v46 }
 0x88d   : >> { %4545 = vrot.lane.b32.xlu1 %v14681_v16, %s12881_s28  ;;  %11934 = vmatpush3.msra.mxu1 %v3983_v45 }
 0x88e   : >> { %11915 = vmatpush3.msra.mxu0 %v3863_v46  ;;  %v3981_v48 = vpop.permute.xlu0 %3980  ;;  %v3861_v49 = vpop.permute.xlu1 %3860  ;;  %11928 = vmatprep.mubr.msk.f32.mxu0 %vm2329_vm14, %v14876_v47 }
 0x88f   : >> { %11935 = vmatprep.subr.mxu1 %v3981_v48  ;;  %11916 = vmatprep.subr.mxu0 %v3861_v49 }
 0x890   : >> { %4654 = vrot.lane.b32.xlu0 %v14678_v11, %s12882_s29  ;;  %11936 = vmatpush3.msra.mxu1 %v3981_v48 }
 0x891   : >> { %4543 = vrot.lane.b32.xlu1 %v14691_v2, %s12881_s28  ;;  %11917 = vmatpush3.msra.mxu0 %v3861_v49 }
 0x892   : >> { %v3979_v50 = vpop.permute.xlu0 %3978  ;;  %v3859_v51 = vpop.permute.xlu1 %3858 }
 0x893   : >> { %11937 = vmatprep.subr.mxu1 %v3979_v50  ;;  %11918 = vmatprep.subr.mxu0 %v3859_v51 }
 0x894   : >> { %4652 = vrot.lane.b32.xlu0 %v14681_v16, %s12882_s29  ;;  %11938 = vmatpush3.msra.mxu1 %v3979_v50 }
 0x895   : >> { %4541 = vrot.lane.b32.xlu1 %v14694_v17, %s12881_s28  ;;  %11919 = vmatpush3.msra.mxu0 %v3859_v51 }
 0x896   : >> { %v3977_v53 = vpop.permute.xlu0 %3976  ;;  %v3857_v54 = vpop.permute.xlu1 %3856 }
 0x897   : >> { %11939 = vmatprep.subr.mxu1 %v3977_v53  ;;  %11920 = vmatprep.subr.mxu0 %v3857_v54 }
 0x898   : >> { %4650 = vrot.lane.b32.xlu0 %v14691_v2, %s12882_s29  ;;  %11940 = vmatpush3.msra.mxu1 %v3977_v53 }
 0x899   : >> { %11921 = vmatpush3.msra.mxu0 %v3857_v54  ;;  %4648 = vrot.lane.b32.xlu1 %v14694_v17, %s12882_s29 }
 0x89a   : >> { %v3975_v55 = vpop.permute.xlu0 %3974  ;;  %v3855_v56 = vpop.permute.xlu1 %3854 }
 0x89b   : >> { %11941 = vmatprep.subr.mxu1 %v3975_v55  ;;  %11922 = vmatprep.subr.mxu0 %v3855_v56 }
 0x89c   : >> { %11942 = vmatpush3.msra.mxu1 %v3975_v55  ;;  %11923 = vmatpush3.msra.mxu0 %v3855_v56 }
 0x89d   : >> { %4199 = vperm.xlu0 %12761, %v4195_v57   ;;  %4204 = vperm.xlu1 %12762, %v4196_v58   ;;  %v4773_v58 = vld [vmem:[%s17490_s16 + $0x30] sm:$0xf] }
 0x89e   : >> { %v3973_v59 = vpop.permute.xlu0 %3972  ;;  %v3853_v60 = vpop.permute.xlu1 %3852 }
 0x89f   : >> { %11943 = vmatprep.subr.mxu1 %v3973_v59  ;;  %11924 = vmatprep.subr.mxu0 %v3853_v60 }
 0x8a0   : >> { %11944 = vmatpush3.msra.mxu1 %v3973_v59  ;;  %11925 = vmatpush3.msra.mxu0 %v3853_v60  ;;  %v10475_v59 = vld [vmem:[%s17490_s16 + $0x68] sm:$0xf] }
 0x8a1   : >> { %4219 = vperm.xlu0 %12761, %v10443_v61   ;;  %4214 = vperm.xlu1 %12762, %v10442_v62   ;;  %v4772_v60 = vld [vmem:[%s17490_s16 + $0x28] sm:$0xff]  ;;  %v10474_v61 = vld [vmem:[%s17490_s16 + $0x60] sm:$0xff] }
 0x8a2   : >> { %v3971_v63 = vpop.permute.xlu0 %3970  ;;  %v3851_v1 = vpop.permute.xlu1 %3850  ;;  %v4771_v62 = vld [vmem:[%s17490_s16 + $0x20] sm:$0xff] }
 0x8a3   : >> { %11945 = vmatprep.subr.mxu1 %v3971_v63  ;;  %11926 = vmatprep.subr.mxu0 %v3851_v1 }
 0x8a4   : >> { %11946 = vmatpush3.msra.mxu1 %v3971_v63  ;;  %11927 = vmatpush3.msra.mxu0 %v3851_v1  ;;  %v10473_v63 = vld [vmem:[%s17490_s16 + $0x58] sm:$0xff] }
 0x8a5   : >> { %11929 = vmatmul.mubr.msk.f32.vlgmr.msra.gmra.mxu0 %vm2329_vm14, %v14911_v12  ;;  %v4770_v1 = vld [vmem:[%s17490_s16 + $0x18] sm:$0xff] }
 0x8a6   : >> { %v3969_v13 = vpop.permute.xlu0 %3968  ;;  %v3967_v18 = vpop.permute.xlu1 %3966  ;;  %11974 = vmatprep.mubr.msk.f32.mxu0 %vm2329_vm14, %v14916_v10 }
 0x8a7   : >> { %11947 = vmatprep.subr.mxu1 %v3969_v13 }
 0x8a8   : >> { %11948 = vmatpush3.msra.mxu1 %v3969_v13  ;;  %v10471_v13 = vld [vmem:[%s17490_s16 + $0x48] sm:$0xff] }
 0x8a9   : >> { %11949 = vmatprep.subr.mxu1 %v3967_v18 }
 0x8aa   : >> { %v4101_v20 = vpop.permute.xlu0 %4100  ;;  %v4099_v21 = vpop.permute.xlu1 %4098  ;;  %11950 = vmatpush3.msra.mxu1 %v3967_v18  ;;  %v4768_v18 = vld [vmem:[%s17490_s16 + $0x8] sm:$0xff] }
 0x8ab   : >> { %11954 = vmatprep.subr.mxu0 %v4101_v20  ;;  %11952 = vmatmul.mubr.msk.f32.vlgmr.msra.gmra.mxu1 %vm2329_vm14, %v14925_v19 }
 0x8ac   : >> { %11955 = vmatpush3.msra.mxu0 %v4101_v20  ;;  %11997 = vmatprep.mubr.msk.f32.mxu1 %vm2329_vm14, %v14700_v3  ;;  %v4767_v20 = vld [vmem:[%s17490_s16] sm:$0xff] }
 0x8ad   : >> { %11956 = vmatprep.subr.mxu0 %v4099_v21 }
 0x8ae   : >> { %v4273_v22 = vpop.permute.xlu0 %4272  ;;  %11957 = vmatpush3.msra.mxu0 %v4099_v21  ;;  %v4097_v23 = vpop.permute.xlu1 %4096  ;;  %v10469_v21 = vld [vmem:[%s17490_s16 + $0x38] sm:$0xff] }
 0x8af   : >> { %11977 = vmatprep.subr.mxu1 %v4273_v22  ;;  %11958 = vmatprep.subr.mxu0 %v4097_v23 }
 0x8b0   : >> { %11978 = vmatpush3.msra.mxu1 %v4273_v22  ;;  %11959 = vmatpush3.msra.mxu0 %v4097_v23 }
 0x8b2   : >> { %v4271_v24 = vpop.permute.xlu0 %4270  ;;  %v4095_v25 = vpop.permute.xlu1 %4094 }
 0x8b3   : >> { %11979 = vmatprep.subr.mxu1 %v4271_v24  ;;  %11960 = vmatprep.subr.mxu0 %v4095_v25 }
 0x8b4   : >> { %11980 = vmatpush3.msra.mxu1 %v4271_v24  ;;  %11961 = vmatpush3.msra.mxu0 %v4095_v25 }
 0x8b6   : >> { %v4269_v26 = vpop.permute.xlu0 %4268  ;;  %v4093_v5 = vpop.permute.xlu1 %4092 }
 0x8b7   : >> { %11981 = vmatprep.subr.mxu1 %v4269_v26  ;;  %11962 = vmatprep.subr.mxu0 %v4093_v5 }
 0x8b8   : >> { %11982 = vmatpush3.msra.mxu1 %v4269_v26  ;;  %11963 = vmatpush3.msra.mxu0 %v4093_v5 }
 0x8ba   : >> { %v4267_v3 = vpop.permute.xlu0 %4266  ;;  %v4091_v6 = vpop.permute.xlu1 %4090 }
 0x8bb   : >> { %11983 = vmatprep.subr.mxu1 %v4267_v3  ;;  %11964 = vmatprep.subr.mxu0 %v4091_v6 }
 0x8bc   : >> { %11984 = vmatpush3.msra.mxu1 %v4267_v3  ;;  %11965 = vmatpush3.msra.mxu0 %v4091_v6 }
 0x8be   : >> { %v4265_v15 = vpop.permute.xlu0 %4264  ;;  %v4089_v30 = vpop.permute.xlu1 %4088 }
 0x8bf   : >> { %11985 = vmatprep.subr.mxu1 %v4265_v15  ;;  %11966 = vmatprep.subr.mxu0 %v4089_v30 }
 0x8c0   : >> { %11986 = vmatpush3.msra.mxu1 %v4265_v15  ;;  %11967 = vmatpush3.msra.mxu0 %v4089_v30 }
 0x8c2   : >> { %v4263_v32 = vpop.permute.xlu0 %4262  ;;  %v4087_v33 = vpop.permute.xlu1 %4086 }
 0x8c3   : >> { %11987 = vmatprep.subr.mxu1 %v4263_v32  ;;  %11968 = vmatprep.subr.mxu0 %v4087_v33 }
 0x8c4   : >> { %11988 = vmatpush3.msra.mxu1 %v4263_v32  ;;  %11969 = vmatpush3.msra.mxu0 %v4087_v33 }
 0x8c6   : >> { %v4261_v34 = vpop.permute.xlu0 %4260  ;;  %v4085_v35 = vpop.permute.xlu1 %4084 }
 0x8c7   : >> { %11989 = vmatprep.subr.mxu1 %v4261_v34  ;;  %11970 = vmatprep.subr.mxu0 %v4085_v35 }
 0x8c8   : >> { %11990 = vmatpush3.msra.mxu1 %v4261_v34  ;;  %11971 = vmatpush3.msra.mxu0 %v4085_v35 }
 0x8ca   : >> { %v4259_v36 = vpop.permute.xlu0 %4258  ;;  %v4083_v37 = vpop.permute.xlu1 %4082 }
 0x8cb   : >> { %11972 = vmatprep.subr.mxu0 %v4083_v37  ;;  %11991 = vmatprep.subr.mxu1 %v4259_v36 }
 0x8cc   : >> { %11973 = vmatpush3.msra.mxu0 %v4083_v37  ;;  %11992 = vmatpush3.msra.mxu1 %v4259_v36 }
 0x8cd   : >> { %11975 = vmatmul.mubr.msk.f32.vlgmr.msra.gmra.mxu0 %vm2329_vm14, %v14934_v38  ;;  %12000 = vmatprep.subr.mxu0 %v14783_v9 }
 0x8ce   : >> { %v4257_v39 = vpop.permute.xlu0 %4256  ;;  %v4255_v40 = vpop.permute.xlu1 %4254  ;;  %12001 = vmatpush3.msra.mxu0 %v14783_v9  ;;  %12020 = vmatprep.mubr.msk.f32.mxu0 %vm2329_vm14, %v14709_v4 }
 0x8cf   : >> { %11993 = vmatprep.subr.mxu1 %v4257_v39  ;;  %12002 = vmatprep.subr.mxu0 %v14790_v14 }
 0x8d0   : >> { %11994 = vmatpush3.msra.mxu1 %v4257_v39  ;;  %12003 = vmatpush3.msra.mxu0 %v14790_v14 }
 0x8d1   : >> { %11995 = vmatprep.subr.mxu1 %v4255_v40  ;;  %12004 = vmatprep.subr.mxu0 %v14655_v27 }
 0x8d2   : >> { %v4453_v41 = vpop.permute.xlu0 %4452  ;;  %v4451_v43 = vpop.permute.xlu1 %4450  ;;  %11996 = vmatpush3.msra.mxu1 %v4255_v40  ;;  %12005 = vmatpush3.msra.mxu0 %v14655_v27 }
 0x8d3   : >> { %12023 = vmatprep.subr.mxu1 %v4453_v41  ;;  %11998 = vmatmul.mubr.msk.f32.vlgmr.msra.gmra.mxu1 %vm2329_vm14, %v14861_v42 }
 0x8d4   : >> { %12024 = vmatpush3.msra.mxu1 %v4453_v41  ;;  %12006 = vmatprep.subr.mxu0 %v14665_v29 }
 0x8d5   : >> { %12025 = vmatprep.subr.mxu1 %v4451_v43  ;;  %12007 = vmatpush3.msra.mxu0 %v14665_v29 }
 0x8d6   : >> { %v4449_v4 = vpop.permute.xlu0 %4448  ;;  %v4447_v9 = vpop.permute.xlu1 %4446  ;;  %12026 = vmatpush3.msra.mxu1 %v4451_v43  ;;  %12008 = vmatprep.subr.mxu0 %v14658_v28 }
 0x8d7   : >> { %12027 = vmatprep.subr.mxu1 %v4449_v4  ;;  %12009 = vmatpush3.msra.mxu0 %v14658_v28  ;;  %v11907_v23 = vpop.f32.mrf.mxu1 }
 0x8d8   : >> { %12028 = vmatpush3.msra.mxu1 %v4449_v4  ;;  %12010 = vmatprep.subr.mxu0 %v14668_v31 }
 0x8d9   : >> { %12029 = vmatprep.subr.mxu1 %v4447_v9  ;;  %12011 = vmatpush3.msra.mxu0 %v14668_v31  ;;  %v3838_v25 = vpop.f32.mrf.mxu1 }
 0x8da   : >> { %v4445_v27 = vpop.permute.xlu0 %4444  ;;  %v4443_v14 = vpop.permute.xlu1 %4442  ;;  %12030 = vmatpush3.msra.mxu1 %v4447_v9  ;;  %12012 = vmatprep.subr.mxu0 %v14678_v11 }
 0x8db   : >> { %12031 = vmatprep.subr.mxu1 %v4445_v27  ;;  %12013 = vmatpush3.msra.mxu0 %v14678_v11 }
 0x8dc   : >> { %12032 = vmatpush3.msra.mxu1 %v4445_v27  ;;  %12014 = vmatprep.subr.mxu0 %v14681_v16 }
 0x8dd   : >> { %12033 = vmatprep.subr.mxu1 %v4443_v14  ;;  %12015 = vmatpush3.msra.mxu0 %v14681_v16 }
 0x8de   : >> { %v4441_v28 = vpop.permute.xlu0 %4440  ;;  %v4439_v29 = vpop.permute.xlu1 %4438  ;;  %12034 = vmatpush3.msra.mxu1 %v4443_v14  ;;  %12016 = vmatprep.subr.mxu0 %v14691_v2 }
 0x8df   : >> { %12035 = vmatprep.subr.mxu1 %v4441_v28  ;;  %12017 = vmatpush3.msra.mxu0 %v14691_v2 }
 0x8e0   : >> { %12036 = vmatpush3.msra.mxu1 %v4441_v28  ;;  %12018 = vmatprep.subr.mxu0 %v14694_v17 }
 0x8e1   : >> { %12037 = vmatprep.subr.mxu1 %v4439_v29  ;;  %12019 = vmatpush3.msra.mxu0 %v14694_v17 }
 0x8e2   : >> { %v4437_v31 = vpop.permute.xlu0 %4436  ;;  %12038 = vmatpush3.msra.mxu1 %v4439_v29  ;;  %12021 = vmatmul.mubr.msk.f32.vlgmr.msra.gmra.mxu0 %vm2329_vm14, %v14739_v7 }
 0x8e3   : >> { %v4435_v11 = vpop.permute.xlu1 %4434  ;;  %12039 = vmatprep.subr.mxu1 %v4437_v31  ;;  %12043 = vmatprep.mubr.msk.f32.mxu1 %vm2329_vm14, %v14876_v47 }
 0x8e4   : >> { %12040 = vmatpush3.msra.mxu1 %v4437_v31  ;;  %12066 = vmatprep.mubr.msk.f32.mxu0 %vm2329_vm14, %v14769_v8 }
 0x8e5   : >> { %12041 = vmatprep.subr.mxu1 %v4435_v11 }
 0x8e6   : >> { %v4560_v16 = vpop.permute.xlu0 %4559  ;;  %12042 = vmatpush3.msra.mxu1 %v4435_v11 }
 0x8e7   : >> { %v4558_v2 = vpop.permute.xlu1 %4557  ;;  %12046 = vmatprep.subr.mxu0 %v4560_v16  ;;  %12044 = vmatmul.mubr.msk.f32.vlgmr.msra.gmra.mxu1 %vm2329_vm14, %v14911_v12  ;;  %v10472_v12 = vld [vmem:[%s17490_s16 + $0x50] sm:$0xff] }
 0x8e8   : >> { %12047 = vmatpush3.msra.mxu0 %v4560_v16  ;;  %12089 = vmatprep.mubr.msk.f32.mxu1 %vm2329_vm14, %v14916_v10  ;;  %v4769_v10 = vld [vmem:[%s17490_s16 + $0x10] sm:$0xff] }
 0x8e9   : >> { %12048 = vmatprep.subr.mxu0 %v4558_v2 }
 0x8ea   : >> { %v4667_v17 = vpop.permute.xlu0 %4666  ;;  %12049 = vmatpush3.msra.mxu0 %v4558_v2 }
 0x8eb   : >> { %v4556_v7 = vpop.permute.xlu1 %4555  ;;  %12069 = vmatprep.subr.mxu1 %v4667_v17 }
 0x8ec   : >> { %12050 = vmatprep.subr.mxu0 %v4556_v7  ;;  %12070 = vmatpush3.msra.mxu1 %v4667_v17 }
 0x8ed   : >> { %12051 = vmatpush3.msra.mxu0 %v4556_v7 }
 0x8ee   : >> { %v4665_v8 = vpop.permute.xlu0 %4664 }
 0x8ef   : >> { %v4554_v42 = vpop.permute.xlu1 %4553  ;;  %12071 = vmatprep.subr.mxu1 %v4665_v8 }
 0x8f0   : >> { %12052 = vmatprep.subr.mxu0 %v4554_v42  ;;  %12072 = vmatpush3.msra.mxu1 %v4665_v8 }
 0x8f1   : >> { %12053 = vmatpush3.msra.mxu0 %v4554_v42 }
 0x8f2   : >> { %v4663_v44 = vpop.permute.xlu0 %4662 }
 0x8f3   : >> { %v4552_v45 = vpop.permute.xlu1 %4551  ;;  %12073 = vmatprep.subr.mxu1 %v4663_v44 }
 0x8f4   : >> { %12054 = vmatprep.subr.mxu0 %v4552_v45  ;;  %12074 = vmatpush3.msra.mxu1 %v4663_v44 }
 0x8f5   : >> { %12055 = vmatpush3.msra.mxu0 %v4552_v45 }
 0x8f6   : >> { %v4661_v46 = vpop.permute.xlu0 %4660 }
 0x8f7   : >> { %v4550_v47 = vpop.permute.xlu1 %4549  ;;  %12075 = vmatprep.subr.mxu1 %v4661_v46 }
 0x8f8   : >> { %12056 = vmatprep.subr.mxu0 %v4550_v47  ;;  %12076 = vmatpush3.msra.mxu1 %v4661_v46 }
 0x8f9   : >> { %12057 = vmatpush3.msra.mxu0 %v4550_v47 }
 0x8fa   : >> { %v4659_v48 = vpop.permute.xlu0 %4658 }
 0x8fb   : >> { %v4548_v49 = vpop.permute.xlu1 %4547  ;;  %12077 = vmatprep.subr.mxu1 %v4659_v48 }
 0x8fc   : >> { %12058 = vmatprep.subr.mxu0 %v4548_v49  ;;  %12078 = vmatpush3.msra.mxu1 %v4659_v48 }
 0x8fd   : >> { %12059 = vmatpush3.msra.mxu0 %v4548_v49 }
 0x8fe   : >> { %v4657_v50 = vpop.permute.xlu0 %4656 }
 0x8ff   : >> { %v4546_v51 = vpop.permute.xlu1 %4545  ;;  %12079 = vmatprep.subr.mxu1 %v4657_v50 }
 0x900   : >> { %12060 = vmatprep.subr.mxu0 %v4546_v51  ;;  %12080 = vmatpush3.msra.mxu1 %v4657_v50 }
 0x901   : >> { %12061 = vmatpush3.msra.mxu0 %v4546_v51 }
 0x902   : >> { %v4655_v52 = vpop.permute.xlu0 %4654 }
 0x903   : >> { %v4544_v53 = vpop.permute.xlu1 %4543  ;;  %12081 = vmatprep.subr.mxu1 %v4655_v52 }
 0x904   : >> { %12062 = vmatprep.subr.mxu0 %v4544_v53  ;;  %12082 = vmatpush3.msra.mxu1 %v4655_v52 }
 0x905   : >> { %12063 = vmatpush3.msra.mxu0 %v4544_v53 }
 0x906   : >> { %v4653_v54 = vpop.permute.xlu0 %4652 }
 0x907   : >> { %v4542_v55 = vpop.permute.xlu1 %4541  ;;  %12083 = vmatprep.subr.mxu1 %v4653_v54 }
 0x908   : >> { %12064 = vmatprep.subr.mxu0 %v4542_v55  ;;  %12084 = vmatpush3.msra.mxu1 %v4653_v54 }
 0x909   : >> { %12065 = vmatpush3.msra.mxu0 %v4542_v55 }
 0x90a   : >> { %12067 = vmatmul.mubr.msk.f32.vlgmr.msra.gmra.mxu0 %vm2329_vm14, %v14925_v19  ;;  %v4651_v56 = vpop.permute.xlu0 %4650  ;;  %12092 = vmatprep.subr.msk.mxu0 %vm3433_vm15, %v4773_v58  ;;  %v10470_v19 = vld [vmem:[%s17490_s16 + $0x40] sm:$0xff] }
 0x90b   : >> { %12085 = vmatprep.subr.mxu1 %v4651_v56  ;;  %v4649_v57 = vpop.permute.xlu1 %4648  ;;  %12093 = vmatpush3.msk.msra.mxu0 %vm3433_vm15, %v4773_v58 }
 0x90c   : >> { %12086 = vmatpush3.msra.mxu1 %v4651_v56  ;;  %12094 = vmatprep.subr.mxu0 %v4772_v60 }
 0x90d   : >> { %12087 = vmatprep.subr.mxu1 %v4649_v57  ;;  %12095 = vmatpush3.msra.mxu0 %v4772_v60 }
 0x90e   : >> { %12088 = vmatpush3.msra.mxu1 %v4649_v57  ;;  %12096 = vmatprep.subr.mxu0 %v4771_v62 }
 0x90f   : >> { %12090 = vmatmul.mubr.msk.f32.vlgmr.msra.gmra.mxu1 %vm2329_vm14, %v14934_v38  ;;  %12109 = vmatprep.subr.msk.mxu1 %vm3433_vm15, %v10475_v59 }
 0x910   : >> { %12110 = vmatpush3.msk.msra.mxu1 %vm3433_vm15, %v10475_v59  ;;  %12097 = vmatpush3.msra.mxu0 %v4771_v62 }
 0x911   : >> { %12111 = vmatprep.subr.mxu1 %v10474_v61  ;;  %12098 = vmatprep.subr.mxu0 %v4770_v1 }
 0x912   : >> { %12112 = vmatpush3.msra.mxu1 %v10474_v61  ;;  %12099 = vmatpush3.msra.mxu0 %v4770_v1 }
 0x913   : >> { %12113 = vmatprep.subr.mxu1 %v10473_v63  ;;  %12100 = vmatprep.subr.mxu0 %v4769_v10 }
 0x914   : >> { %12114 = vmatpush3.msra.mxu1 %v10473_v63  ;;  %12101 = vmatpush3.msra.mxu0 %v4769_v10 }
 0x915   : >> { %12115 = vmatprep.subr.mxu1 %v10472_v12  ;;  %12102 = vmatprep.subr.mxu0 %v4768_v18 }
 0x916   : >> { %12116 = vmatpush3.msra.mxu1 %v10472_v12  ;;  %12103 = vmatpush3.msra.mxu0 %v4768_v18 }
 0x917   : >> { %12117 = vmatprep.subr.mxu1 %v10471_v13  ;;  %12104 = vmatprep.subr.mxu0 %v4767_v20 }
 0x918   : >> { %12118 = vmatpush3.msra.mxu1 %v10471_v13  ;;  %12105 = vmatpush3.msra.mxu0 %v4767_v20  ;;  %v4205_v9 = vpop.permute.xlu1 %4204  ;;  %v4200_v27 = vpop.permute.xlu0 %4199 }
 0x919   : >> { %12119 = vmatprep.subr.mxu1 %v10470_v19 }
 0x91a   : >> { %12120 = vmatpush3.msra.mxu1 %v10470_v19 }
 0x91b   : >> { %12121 = vmatprep.subr.mxu1 %v10469_v21 }
 0x91c   : >> { %12122 = vmatpush3.msra.mxu1 %v10469_v21  ;;  %v4215_v44 = vpop.permute.xlu1 %4214  ;;  %v4220_v46 = vpop.permute.xlu0 %4219 }
 0x946   : >> { %v11884_v22 = vpop.f32.mrf.mxu0 }
 0x947   : >> { %v3844_v33 = vadd.f32 %v11907_v23, %v11884_v22 }
 0x948   : >> { %v3757_v24 = vpop.f32.mrf.mxu0 }
 0x949   : >> { %v3839_v32 = vadd.f32 %v3838_v25, %v3757_v24 }
 0x965   : >> { %v11930_v26 = vpop.f32.mrf.mxu0 }
 0x966   : >> { %v3962_v38 = vadd.f32 %v11930_v26, %v3844_v33 }
 0x967   : >> { %v3952_v3 = vpop.f32.mrf.mxu0 }
 0x968   : >> { %v3961_v37 = vadd.f32 %v3952_v3, %v3839_v32 }
 0x96b   : >> { %v11953_v5 = vpop.f32.mrf.mxu1 }
 0x96c   : >> { %v4078_v4 = vadd.f32 %v11953_v5, %v3962_v38 }
 0x96d   : >> { %v4068_v6 = vpop.f32.mrf.mxu1 }
 0x96e   : >> { %v4077_v41 = vadd.f32 %v4068_v6, %v3961_v37 }
 0x98d   : >> { %v11976_v15 = vpop.f32.mrf.mxu0 }
 0x98e   : >> { %v4194_v31 = vadd.f32 %v11976_v15, %v4078_v4 }
 0x98f   : >> { %v4184_v34 = vpop.f32.mrf.mxu0 }
 0x990   : >> { %v4193_v14 = vadd.f32 %v4184_v34, %v4077_v41  ;;  %v4208_v42 = vmul.f32 %v4205_v9, %v4194_v31 }
 0x992   : >> { %v4207_v17 = vmul.f32 %v4200_v27, %v4193_v14  ;;  %v4223_v53 = vadd.f32 %v4220_v46, %v4208_v42 }
 0x993   : >> { %v11999_v30 = vpop.f32.mrf.mxu1 }
 0x994   : >> { %v4222_v50 = vadd.f32 %v4215_v44, %v4207_v17  ;;  %v4227_v59 = vmul.f32 0.01, %v4223_v53  ;;  %vm4225_vm9 = vcmp.gt.f32.partialorder %v4223_v53, 0.0 }
 0x995   : >> { %v4350_v35 = vpop.f32.mrf.mxu1 }
 0x996   : >> { %v4226_v56 = vmul.f32 0.01, %v4222_v50  ;;  %vm4224_vm8 = vcmp.gt.f32.partialorder %v4222_v50, 0.0  ;;  %v4229_v1 = vsel %vm4225_vm9, %v4223_v53, %v4227_v59 }
 0x998   : >> { %v4228_v62 = vsel %vm4224_vm8, %v4222_v50, %v4226_v56 }
 0x9a2   : >> { %v12022_v36 = vpop.f32.mrf.mxu0 }
 0x9a3   : >> { %v4431_v43 = vadd.f32 %v12022_v36, %v11999_v30 }
 0x9a4   : >> { %v4425_v39 = vpop.f32.mrf.mxu0 }
 0x9a5   : >> { %v4426_v28 = vadd.f32 %v4425_v39, %v4350_v35 }
 0x9a7   : >> { %v12045_v40 = vpop.f32.mrf.mxu1 }
 0x9a8   : >> { %v4540_v16 = vadd.f32 %v12045_v40, %v4431_v43 }
 0x9a9   : >> { %v4530_v11 = vpop.f32.mrf.mxu1 }
 0x9aa   : >> { %v4539_v7 = vadd.f32 %v4530_v11, %v4426_v28 }
 0x9ca   : >> { %v12068_v29 = vpop.f32.mrf.mxu0 }
 0x9cb   : >> { %v4647_v8 = vadd.f32 %v12068_v29, %v4540_v16 }
 0x9cc   : >> { %v4637_v2 = vpop.f32.mrf.mxu0 }
 0x9cd   : >> { %v4646_v47 = vadd.f32 %v4637_v2, %v4539_v7 }
 0x9cf   : >> { %v12091_v45 = vpop.f32.mrf.mxu1 }
 0x9d0   : >> { %v4754_v48 = vadd.f32 %v12091_v45, %v4647_v8 }
 0x9d1   : >> { %v4744_v49 = vpop.f32.mrf.mxu1 }
 0x9d2   : >> { %v4756_v51 = vmul.f32 %v4754_v48, %v4205_v9  ;;  %v4753_v52 = vadd.f32 %v4744_v49, %v4646_v47 }
 0x9d4   : >> { %v4758_v54 = vadd.f32 %v4756_v51, %v4220_v46  ;;  %v4755_v55 = vmul.f32 %v4753_v52, %v4200_v27 }
 0x9d6   : >> { %vm4760_vm7 = vcmp.gt.f32.partialorder %v4758_v54, 0.0  ;;  %v4762_v57 = vmul.f32 0.01, %v4758_v54  ;;  %v4757_v58 = vadd.f32 %v4755_v55, %v4215_v44 }
 0x9d8   : >> { %vm4759_vm10 = vcmp.gt.f32.partialorder %v4757_v58, 0.0  ;;  %v4761_v60 = vmul.f32 0.01, %v4757_v58  ;;  %v4764_v61 = vsel %vm4760_vm7, %v4758_v54, %v4762_v57 }
 0x9d9   : >> { %v4766_v10 = vmax.f32 %v4229_v1, %v4764_v61 }
 0x9da   : >> { %v4763_v63 = vsel %vm4759_vm10, %v4757_v58, %v4761_v60 }
 0x9db   : >> { %v4765_v12 = vmax.f32 %v4228_v62, %v4763_v63 }
 0x9dd   : >> { %12106 = vmatprep.mubr.msk.f32.mxu0 %vm4774_vm11, %v4765_v12  ;;  %12123 = vmatprep.mubr.msk.f32.mxu1 %vm4774_vm11, %v4765_v12 }
 0x9de   : >> { %12107 = vmatmul.mubr.msk.f32.vlgmr.msra.gmra.mxu0 %vm4774_vm11, %v4766_v10  ;;  %12124 = vmatmul.mubr.msk.f32.vlgmr.msra.gmra.mxu1 %vm4774_vm11, %v4766_v10 }
 0xa9e   : >> { %v12108_v13 = vpop.f32.mrf.mxu0  ;;  %v12125_v18 = vpop.f32.mrf.mxu1 }
 0xa9f   : >> { %v4947_v19 = vmax.f32 %v12108_v13, %v12125_v18 }
 0xaa0   : >> { %v4851_v20 = vpop.f32.mrf.mxu0  ;;  %v4937_v21 = vpop.f32.mrf.mxu1 }
 0xaa1   : >> { %v4946_v22 = vmax.f32 %v4851_v20, %v4937_v21  ;;  %4954 = vrot.lane.b32.xlu0 %v4947_v19, %s12884_s3 }
 0xaa3   : >> { %4952 = vrot.lane.b32.xlu1 %v4946_v22, %s12884_s3 }
 0xb12   : > { %3625 = sbr.rel (!%p3623_p7) target bundleno = 2037 (0x7f5), region = 283 }
 0xb13   : >> { %v4955_v23 = vpop.permute.xlu0 %4954 }
 0xb14   : >> { %10481 = vst.msk [vmem:[%s10230_s5 + $0x18] sm:$0xff] %vm4959_vm12, %v4955_v23 }
 0xb15   : >> { %v4953_v24 = vpop.permute.xlu1 %4952 }
 0xb16   : >> { %10480 = vst.msk [vmem:[%s10230_s5 + $0x10] sm:$0xff] %vm4959_vm12, %v4953_v24 }
 0xb17 LB: >> { %s10482_s7 = sshll.u32 %s12848_s1, 5  ;;  %s12885_s30 = smov 127   ;;  %v12889_v53 = vmov 0   ;;  %v5632_v59 = vld [vmem:[%s17486_s12] sm:$0xff]  ;;  %v5633_v60 = vld [vmem:[%s17486_s12 + $0x8] sm:$0xff]  ;;  %v5635_v18 = vld [vmem:[%s17486_s12 + $0x18] sm:$0xff]  ;;  %s12848_s1 = sphi %s15026_s1, %s4967_s1  }
 0xb18   : >> { %s15034_s28 = scalar_lea.vmem [#allocation5], %s10482_s7  ;;  %s17529_s29 = sld [smem:[#allocation14_spill]]  ;;  %12763 = vset.pattern.permute.xlu0 %v12889_v53  ;;  %12764 = vset.pattern.permute.xlu1 %v12889_v53  ;;  %v10520_v63 = vld [vmem:[%s17486_s12 + $0x28] sm:$0xff]  ;;  %v10519_v1 = vld [vmem:[%s17486_s12 + $0x20] sm:$0xff]  ;;  %v5634_v20 = vld [vmem:[%s17486_s12 + $0x10] sm:$0xff]  ;;  %vm6309_vm2 = vcmask 195584  }
 0xb19   : >> { %s12886_s25 = smov 126   ;;  %s12887_s5 = smov 125   ;;  %vm6519_vm8 = vcmask 105480  }
 0xb1a   : >> { %s12888_s24 = smov 124   ;;  %s4967_s1 = sadd.s32 1, %s12848_s1  }
 0xb1b   : >> { %p4964_p8 = scmp.ge.s32.totalorder %s4967_s1, 10  }
 0xb1c   : > { %s15507_s26 = smov (%p4964_p8), 0  }
 0xb1d   : >> { %v15037_v25 = vld [vmem:[%s15034_s28 + $0x48] sm:$0xff]  ;;  %v15040_v26 = vld [vmem:[%s15034_s28 + $0x38] sm:$0xff]  ;;  %v15047_v5 = vld [vmem:[%s15034_s28 + $0x40] sm:$0xff] }
 0xb1e   : >> { %5017 = vrot.lane.b32.xlu0 %v15037_v25, %s12885_s30  ;;  %5013 = vrot.lane.b32.xlu1 %v15040_v26, %s12885_s30  ;;  %v15050_v3 = vld [vmem:[%s15034_s28 + $0x30] sm:$0xff]  ;;  %v15060_v6 = vld [vmem:[%s15034_s28 + $0x28] sm:$0xff] }
 0xb1f   : >> { %12152 = vmatprep.subr.mxu1 %v15037_v25  ;;  %v15063_v15 = vld [vmem:[%s15034_s28 + $0x20] sm:$0xff]  ;;  %v15073_v30 = vld [vmem:[%s15034_s28 + $0x18] sm:$0xff]  ;;  %v15076_v32 = vld [vmem:[%s15034_s28 + $0x10] sm:$0xff] }
 0xb20   : >> { %12153 = vmatpush3.msra.mxu1 %v15037_v25  ;;  %v15082_v33 = vld [vmem:[%s17529_s29 + $0x20] sm:$0xff]  ;;  %v15098_v35 = vld [vmem:[%s15034_s28 + $0x8] sm:$0xff]  ;;  %v15158_v38 = vld [vmem:[%s17529_s29 + $0x10] sm:$0xff] }
 0xb21   : >> { %12154 = vmatprep.subr.mxu1 %v15047_v5  ;;  %12146 = vmatprep.mubr.msk.f32.mxu0 %vm2329_vm14, %v15082_v33  ;;  %v15091_v34 = vld [vmem:[%s17529_s29] sm:$0xff]  ;;  %v15129_v37 = vld [vmem:[%s17529_s29 + $0x8] sm:$0xff]  ;;  %v15165_v39 = vld [vmem:[%s17529_s29 + $0x18] sm:$0xff] }
 0xb22   : >> { %5015 = vrot.lane.b32.xlu0 %v15047_v5, %s12885_s30  ;;  %5011 = vrot.lane.b32.xlu1 %v15050_v3, %s12885_s30  ;;  %v15101_v36 = vld [vmem:[%s15034_s28] sm:$0xff]  ;;  %v15193_v41 = vld [vmem:[%s15034_s28 + $0x58] sm:$0xff] }
 0xb23   : >> { %12155 = vmatpush3.msra.mxu1 %v15047_v5  ;;  %12172 = vmatprep.mubr.msk.f32.mxu1 %vm2329_vm14, %v15091_v34  ;;  %v15176_v40 = vld [vmem:[%s17529_s29 + $0x60] sm:$0xff]  ;;  %v15200_v43 = vld [vmem:[%s15034_s28 + $0x50] sm:$0xff]  ;;  %v15273_v8 = vld [vmem:[%s17529_s29 + $0x28] sm:$0xff] }
 0xb24   : >> { %12156 = vmatprep.subr.mxu1 %v15040_v26  ;;  %v15288_v47 = vld [vmem:[%s17529_s29 + $0x30] sm:$0xff]  ;;  %v15299_v50 = vld [vmem:[%s17529_s29 + $0x38] sm:$0xff]  ;;  %v15310_v54 = vld [vmem:[%s17529_s29 + $0x40] sm:$0xff] }
 0xb25   : >> { %12157 = vmatpush3.msra.mxu1 %v15040_v26  ;;  %v15337_v13 = vld [vmem:[%s17529_s29 + $0x48] sm:$0xff]  ;;  %v15345_v19 = vld [vmem:[%s17529_s29 + $0x50] sm:$0xff]  ;;  %v15357_v23 = vld [vmem:[%s17529_s29 + $0x58] sm:$0xff] }
 0xb26   : >> { %5009 = vrot.lane.b32.xlu0 %v15060_v6, %s12885_s30  ;;  %5007 = vrot.lane.b32.xlu1 %v15063_v15, %s12885_s30  ;;  %v15362_v24 = vld [vmem:[%s17529_s29 + $0x80] sm:$0xff]  ;;  %v15400_v53 = vld [vmem:[%s17529_s29 + $0x88] sm:$0xff] }
 0xb27   : >> { %12158 = vmatprep.subr.mxu1 %v15050_v3 }
 0xb28   : >> { %12159 = vmatpush3.msra.mxu1 %v15050_v3 }
 0xb29   : >> { %12160 = vmatprep.subr.mxu1 %v15060_v6 }
 0xb2a   : >> { %5005 = vrot.lane.b32.xlu0 %v15073_v30, %s12885_s30  ;;  %5003 = vrot.lane.b32.xlu1 %v15076_v32, %s12885_s30 }
 0xb2b   : >> { %12161 = vmatpush3.msra.mxu1 %v15060_v6 }
 0xb2c   : >> { %12162 = vmatprep.subr.mxu1 %v15063_v15 }
 0xb2d   : >> { %12163 = vmatpush3.msra.mxu1 %v15063_v15 }
 0xb2e   : >> { %5001 = vrot.lane.b32.xlu0 %v15098_v35, %s12885_s30  ;;  %4999 = vrot.lane.b32.xlu1 %v15101_v36, %s12885_s30 }
 0xb2f   : >> { %12164 = vmatprep.subr.mxu1 %v15073_v30 }
 0xb30   : >> { %12165 = vmatpush3.msra.mxu1 %v15073_v30 }
 0xb31   : >> { %12166 = vmatprep.subr.mxu1 %v15076_v32 }
 0xb32   : >> { %5247 = vrot.lane.b32.xlu0 %v15037_v25, %s12886_s25  ;;  %5245 = vrot.lane.b32.xlu1 %v15047_v5, %s12886_s25 }
 0xb33   : >> { %12167 = vmatpush3.msra.mxu1 %v15076_v32 }
 0xb34   : >> { %12168 = vmatprep.subr.mxu1 %v15098_v35 }
 0xb35   : >> { %12169 = vmatpush3.msra.mxu1 %v15098_v35 }
 0xb36   : >> { %5383 = vrot.lane.b32.xlu0 %v15037_v25, %s12887_s5  ;;  %5243 = vrot.lane.b32.xlu1 %v15040_v26, %s12886_s25 }
 0xb37   : >> { %12170 = vmatprep.subr.mxu1 %v15101_v36 }
 0xb38   : >> { %12171 = vmatpush3.msra.mxu1 %v15101_v36 }
 0xb39   : >> { %12173 = vmatmul.mubr.msk.f32.vlgmr.msra.gmra.mxu1 %vm2329_vm14, %v15129_v37 }
 0xb3a   : >> { %5381 = vrot.lane.b32.xlu0 %v15047_v5, %s12887_s5  ;;  %5241 = vrot.lane.b32.xlu1 %v15050_v3, %s12886_s25 }
 0xb3b   : >> { %12175 = vmatprep.mubr.msk.f32.mxu1 %vm2329_vm14, %v15158_v38 }
 0xb3d   : >> { %12176 = vmatmul.mubr.msk.f32.gmra.mxu1 %vm2329_vm14, %v15165_v39 }
 0xb3e   : >> { %5379 = vrot.lane.b32.xlu0 %v15040_v26, %s12887_s5  ;;  %5239 = vrot.lane.b32.xlu1 %v15060_v6, %s12886_s25 }
 0xb3f   : >> { %12224 = vmatprep.mubr.msk.f32.mxu1 %vm2329_vm14, %v15176_v40 }
 0xb42   : >> { %5377 = vrot.lane.b32.xlu0 %v15050_v3, %s12887_s5  ;;  %5237 = vrot.lane.b32.xlu1 %v15063_v15, %s12886_s25 }
 0xb46   : >> { %5375 = vrot.lane.b32.xlu0 %v15060_v6, %s12887_s5  ;;  %5235 = vrot.lane.b32.xlu1 %v15073_v30, %s12886_s25 }
 0xb4a   : >> { %5373 = vrot.lane.b32.xlu0 %v15063_v15, %s12887_s5  ;;  %5233 = vrot.lane.b32.xlu1 %v15076_v32, %s12886_s25 }
 0xb4e   : >> { %5371 = vrot.lane.b32.xlu0 %v15073_v30, %s12887_s5  ;;  %5231 = vrot.lane.b32.xlu1 %v15098_v35, %s12886_s25 }
 0xb52   : >> { %5369 = vrot.lane.b32.xlu0 %v15076_v32, %s12887_s5  ;;  %5229 = vrot.lane.b32.xlu1 %v15101_v36, %s12886_s25 }
 0xb56   : >> { %5367 = vrot.lane.b32.xlu0 %v15098_v35, %s12887_s5  ;;  %5365 = vrot.lane.b32.xlu1 %v15101_v36, %s12887_s5 }
 0xb5a   : >> { %5519 = vrot.lane.b32.xlu0 %v15037_v25, %s12888_s24  ;;  %5517 = vrot.lane.b32.xlu1 %v15047_v5, %s12888_s24 }
 0xb5e   : >> { %5743 = vrot.lane.b32.xlu0 %v15193_v41, %s12885_s30  ;;  %5515 = vrot.lane.b32.xlu1 %v15040_v26, %s12888_s24 }
 0xb62   : >> { %5741 = vrot.lane.b32.xlu0 %v15200_v43, %s12885_s30  ;;  %5513 = vrot.lane.b32.xlu1 %v15050_v3, %s12888_s24 }
 0xb66   : >> { %5739 = vrot.lane.b32.xlu0 %v15037_v25, %s12885_s30  ;;  %5511 = vrot.lane.b32.xlu1 %v15060_v6, %s12888_s24 }
 0xb6a   : >> { %5737 = vrot.lane.b32.xlu0 %v15047_v5, %s12885_s30  ;;  %5509 = vrot.lane.b32.xlu1 %v15063_v15, %s12888_s24 }
 0xb6e   : >> { %5735 = vrot.lane.b32.xlu0 %v15040_v26, %s12885_s30  ;;  %5507 = vrot.lane.b32.xlu1 %v15073_v30, %s12888_s24 }
 0xb72   : >> { %5733 = vrot.lane.b32.xlu0 %v15050_v3, %s12885_s30  ;;  %5505 = vrot.lane.b32.xlu1 %v15076_v32, %s12888_s24 }
 0xb76   : >> { %5731 = vrot.lane.b32.xlu0 %v15060_v6, %s12885_s30  ;;  %5503 = vrot.lane.b32.xlu1 %v15098_v35, %s12888_s24  ;;  %v15367_v35 = vld [vmem:[%s17529_s29 + $0x68] sm:$0xff] }
 0xb7a   : >> { %5729 = vrot.lane.b32.xlu0 %v15063_v15, %s12885_s30  ;;  %5501 = vrot.lane.b32.xlu1 %v15101_v36, %s12888_s24  ;;  %v15374_v36 = vld [vmem:[%s17529_s29 + $0x70] sm:$0xff] }
 0xb7e   : >> { %5727 = vrot.lane.b32.xlu0 %v15073_v30, %s12885_s30  ;;  %5725 = vrot.lane.b32.xlu1 %v15076_v32, %s12885_s30 }
 0xb82   : >> { %5943 = vrot.lane.b32.xlu0 %v15193_v41, %s12886_s25  ;;  %5941 = vrot.lane.b32.xlu1 %v15200_v43, %s12886_s25 }
 0xb86   : >> { %5939 = vrot.lane.b32.xlu0 %v15037_v25, %s12886_s25  ;;  %5937 = vrot.lane.b32.xlu1 %v15047_v5, %s12886_s25 }
 0xb8a   : >> { %5935 = vrot.lane.b32.xlu0 %v15040_v26, %s12886_s25  ;;  %5933 = vrot.lane.b32.xlu1 %v15050_v3, %s12886_s25 }
 0xb8e   : >> { %5931 = vrot.lane.b32.xlu0 %v15060_v6, %s12886_s25  ;;  %5929 = vrot.lane.b32.xlu1 %v15063_v15, %s12886_s25 }
 0xb90   : >> { %v5018_v4 = vpop.permute.xlu0 %5017  ;;  %v5014_v9 = vpop.permute.xlu1 %5013 }
 0xb91   : >> { %12126 = vmatprep.subr.mxu0 %v5018_v4 }
 0xb92   : >> { %12127 = vmatpush3.msra.mxu0 %v5018_v4  ;;  %5927 = vrot.lane.b32.xlu0 %v15073_v30, %s12886_s25 }
 0xb93   : >> { %5925 = vrot.lane.b32.xlu1 %v15076_v32, %s12886_s25  ;;  %s10239_s25 = scalar_lea.vmem [#allocation6], %s10482_s7 }
 0xb94   : >> { %v5016_v27 = vpop.permute.xlu0 %5015  ;;  %v5012_v14 = vpop.permute.xlu1 %5011 }
 0xb95   : >> { %12128 = vmatprep.subr.mxu0 %v5016_v27 }
 0xb96   : >> { %12129 = vmatpush3.msra.mxu0 %v5016_v27  ;;  %6062 = vrot.lane.b32.xlu0 %v15193_v41, %s12887_s5  ;;  %v10522_v27 = vld [vmem:[%s17486_s12 + $0x38] sm:$0xff] }
 0xb97   : >> { %6060 = vrot.lane.b32.xlu1 %v15200_v43, %s12887_s5  ;;  %12130 = vmatprep.subr.mxu0 %v5014_v9 }
 0xb98   : >> { %12131 = vmatpush3.msra.mxu0 %v5014_v9  ;;  %v5010_v28 = vpop.permute.xlu0 %5009  ;;  %v5008_v29 = vpop.permute.xlu1 %5007 }
 0xb99   : >> { %12132 = vmatprep.subr.mxu0 %v5012_v14 }
 0xb9a   : >> { %12133 = vmatpush3.msra.mxu0 %v5012_v14  ;;  %6181 = vrot.lane.b32.xlu0 %v15193_v41, %s12888_s24  ;;  %v10521_v14 = vld [vmem:[%s17486_s12 + $0x30] sm:$0xff] }
 0xb9b   : >> { %6058 = vrot.lane.b32.xlu1 %v15037_v25, %s12887_s5  ;;  %12134 = vmatprep.subr.mxu0 %v5010_v28 }
 0xb9c   : >> { %12135 = vmatpush3.msra.mxu0 %v5010_v28  ;;  %v5006_v31 = vpop.permute.xlu0 %5005  ;;  %v5004_v11 = vpop.permute.xlu1 %5003 }
 0xb9d   : >> { %12136 = vmatprep.subr.mxu0 %v5008_v29 }
 0xb9e   : >> { %12137 = vmatpush3.msra.mxu0 %v5008_v29  ;;  %6179 = vrot.lane.b32.xlu0 %v15200_v43, %s12888_s24 }
 0xb9f   : >> { %6056 = vrot.lane.b32.xlu1 %v15047_v5, %s12887_s5  ;;  %12138 = vmatprep.subr.mxu0 %v5006_v31 }
 0xba0   : >> { %12139 = vmatpush3.msra.mxu0 %v5006_v31  ;;  %v5002_v16 = vpop.permute.xlu0 %5001  ;;  %v5000_v2 = vpop.permute.xlu1 %4999  ;;  %v15391_v31 = vld [vmem:[%s17529_s29 + $0x78] sm:$0xff] }
 0xba1   : >> { %12140 = vmatprep.subr.mxu0 %v5004_v11 }
 0xba2   : >> { %12141 = vmatpush3.msra.mxu0 %v5004_v11  ;;  %6177 = vrot.lane.b32.xlu0 %v15037_v25, %s12888_s24 }
 0xba3   : >> { %6054 = vrot.lane.b32.xlu1 %v15040_v26, %s12887_s5  ;;  %12142 = vmatprep.subr.mxu0 %v5002_v16 }
 0xba4   : >> { %12143 = vmatpush3.msra.mxu0 %v5002_v16  ;;  %v5248_v17 = vpop.permute.xlu0 %5247  ;;  %v5246_v7 = vpop.permute.xlu1 %5245 }
 0xba5   : >> { %12144 = vmatprep.subr.mxu0 %v5000_v2 }
 0xba6   : >> { %6175 = vrot.lane.b32.xlu0 %v15047_v5, %s12888_s24  ;;  %12145 = vmatpush3.msra.mxu0 %v5000_v2 }
 0xba7   : >> { %6052 = vrot.lane.b32.xlu1 %v15050_v3, %s12887_s5  ;;  %12178 = vmatprep.subr.mxu0 %v5248_v17 }
 0xba8   : >> { %v5384_v42 = vpop.permute.xlu0 %5383  ;;  %12147 = vmatmul.mubr.msk.f32.vlgmr.msra.gmra.mxu0 %vm2329_vm14, %v15273_v8  ;;  %v5244_v44 = vpop.permute.xlu1 %5243 }
 0xba9   : >> { %12179 = vmatpush3.msra.mxu0 %v5248_v17  ;;  %12204 = vmatprep.subr.mxu1 %v5384_v42 }
 0xbaa   : >> { %12180 = vmatprep.subr.mxu0 %v5246_v7  ;;  %6173 = vrot.lane.b32.xlu0 %v15040_v26, %s12888_s24 }
 0xbab   : >> { %6050 = vrot.lane.b32.xlu1 %v15060_v6, %s12887_s5  ;;  %12181 = vmatpush3.msra.mxu0 %v5246_v7 }
 0xbac   : >> { %12205 = vmatpush3.msra.mxu1 %v5384_v42  ;;  %12182 = vmatprep.subr.mxu0 %v5244_v44  ;;  %v5382_v45 = vpop.permute.xlu0 %5381  ;;  %v5242_v46 = vpop.permute.xlu1 %5241 }
 0xbad   : >> { %12183 = vmatpush3.msra.mxu0 %v5244_v44  ;;  %12206 = vmatprep.subr.mxu1 %v5382_v45 }
 0xbae   : >> { %6171 = vrot.lane.b32.xlu0 %v15050_v3, %s12888_s24  ;;  %12184 = vmatprep.subr.mxu0 %v5242_v46 }
 0xbaf   : >> { %6048 = vrot.lane.b32.xlu1 %v15063_v15, %s12887_s5  ;;  %12207 = vmatpush3.msra.mxu1 %v5382_v45 }
 0xbb0   : >> { %12185 = vmatpush3.msra.mxu0 %v5242_v46  ;;  %v5380_v48 = vpop.permute.xlu0 %5379  ;;  %v5240_v49 = vpop.permute.xlu1 %5239  ;;  %12149 = vmatprep.mubr.msk.f32.mxu0 %vm2329_vm14, %v15288_v47 }
 0xbb1   : >> { %12208 = vmatprep.subr.mxu1 %v5380_v48  ;;  %12186 = vmatprep.subr.mxu0 %v5240_v49 }
 0xbb2   : >> { %6169 = vrot.lane.b32.xlu0 %v15060_v6, %s12888_s24  ;;  %12209 = vmatpush3.msra.mxu1 %v5380_v48 }
 0xbb3   : >> { %6046 = vrot.lane.b32.xlu1 %v15073_v30, %s12887_s5  ;;  %12187 = vmatpush3.msra.mxu0 %v5240_v49 }
 0xbb4   : >> { %v5378_v51 = vpop.permute.xlu0 %5377  ;;  %v5238_v52 = vpop.permute.xlu1 %5237  ;;  %12150 = vmatmul.mubr.msk.f32.gmra.mxu0 %vm2329_vm14, %v15299_v50 }
 0xbb5   : >> { %12210 = vmatprep.subr.mxu1 %v5378_v51  ;;  %12188 = vmatprep.subr.mxu0 %v5238_v52 }
 0xbb6   : >> { %6167 = vrot.lane.b32.xlu0 %v15063_v15, %s12888_s24  ;;  %12211 = vmatpush3.msra.mxu1 %v5378_v51 }
 0xbb7   : >> { %6044 = vrot.lane.b32.xlu1 %v15076_v32, %s12887_s5  ;;  %12189 = vmatpush3.msra.mxu0 %v5238_v52  ;;  %s12890_s5 = smov 1  }
 0xbb8   : >> { %v5376_v55 = vpop.permute.xlu0 %5375  ;;  %v5236_v56 = vpop.permute.xlu1 %5235  ;;  %12198 = vmatprep.mubr.msk.f32.mxu0 %vm2329_vm14, %v15310_v54 }
 0xbb9   : >> { %12212 = vmatprep.subr.mxu1 %v5376_v55  ;;  %12190 = vmatprep.subr.mxu0 %v5236_v56 }
 0xbba   : >> { %6165 = vrot.lane.b32.xlu0 %v15073_v30, %s12888_s24  ;;  %12213 = vmatpush3.msra.mxu1 %v5376_v55  ;;  %v15405_v55 = vld [vmem:[%s17529_s29 + $0x90] sm:$0xff] }
 0xbbb   : >> { %12191 = vmatpush3.msra.mxu0 %v5236_v56  ;;  %6163 = vrot.lane.b32.xlu1 %v15076_v32, %s12888_s24 }
 0xbbc   : >> { %v5374_v57 = vpop.permute.xlu0 %5373  ;;  %v5234_v58 = vpop.permute.xlu1 %5233 }
 0xbbd   : >> { %12214 = vmatprep.subr.mxu1 %v5374_v57  ;;  %12192 = vmatprep.subr.mxu0 %v5234_v58 }
 0xbbe   : >> { %12215 = vmatpush3.msra.mxu1 %v5374_v57  ;;  %12193 = vmatpush3.msra.mxu0 %v5234_v58  ;;  %v15415_v58 = vld [vmem:[%s17529_s29 + $0x98] sm:$0xff] }
 0xbbf   : >> { %5638 = vperm.xlu0 %12763, %v5632_v59   ;;  %5643 = vperm.xlu1 %12764, %v5633_v60  }
 0xbc0   : >> { %v5372_v61 = vpop.permute.xlu0 %5371  ;;  %v5232_v62 = vpop.permute.xlu1 %5231 }
 0xbc1   : >> { %12216 = vmatprep.subr.mxu1 %v5372_v61  ;;  %12194 = vmatprep.subr.mxu0 %v5232_v62 }
 0xbc2   : >> { %12217 = vmatpush3.msra.mxu1 %v5372_v61  ;;  %12195 = vmatpush3.msra.mxu0 %v5232_v62 }
 0xbc3   : >> { %5672 = vperm.xlu0 %12763, %v10520_v63   ;;  %5667 = vperm.xlu1 %12764, %v10519_v1  }
 0xbc4   : >> { %v5370_v12 = vpop.permute.xlu0 %5369  ;;  %v5230_v10 = vpop.permute.xlu1 %5229 }
 0xbc5   : >> { %12218 = vmatprep.subr.mxu1 %v5370_v12  ;;  %12196 = vmatprep.subr.mxu0 %v5230_v10 }
 0xbc6   : >> { %12219 = vmatpush3.msra.mxu1 %v5370_v12  ;;  %12197 = vmatpush3.msra.mxu0 %v5230_v10 }
 0xbc7   : >> { %12199 = vmatmul.mubr.msk.f32.vlgmr.msra.gmra.mxu0 %vm2329_vm14, %v15337_v13  ;;  %5653 = vperm.xlu0 %12763, %v5635_v18  }
 0xbc8   : >> { %v5368_v21 = vpop.permute.xlu0 %5367  ;;  %v5366_v22 = vpop.permute.xlu1 %5365  ;;  %12201 = vmatprep.mubr.msk.f32.mxu0 %vm2329_vm14, %v15345_v19  ;;  %5648 = vperm.xlu1 %12764, %v5634_v20   ;;  %v6308_v20 = vld [vmem:[%s17491_s17 + $0x10] sm:$0xff] }
 0xbc9   : >> { %12220 = vmatprep.subr.mxu1 %v5368_v21 }
 0xbca   : >> { %12221 = vmatpush3.msra.mxu1 %v5368_v21  ;;  %v10561_v21 = vld [vmem:[%s17491_s17 + $0x28] sm:$0xff] }
 0xbcb   : >> { %12222 = vmatprep.subr.mxu1 %v5366_v22  ;;  %12202 = vmatmul.mubr.msk.f32.gmra.mxu0 %vm2329_vm14, %v15357_v23 }
 0xbcc   : >> { %v5520_v4 = vpop.permute.xlu0 %5519  ;;  %v5518_v9 = vpop.permute.xlu1 %5517  ;;  %12223 = vmatpush3.msra.mxu1 %v5366_v22  ;;  %12250 = vmatprep.mubr.msk.f32.mxu0 %vm2329_vm14, %v15362_v24  ;;  %v6307_v22 = vld [vmem:[%s17491_s17 + $0x8] sm:$0xff] }
 0xbcd   : >> { %12230 = vmatprep.subr.mxu0 %v5520_v4  ;;  %12225 = vmatmul.mubr.msk.f32.vlgmr.msra.gmra.mxu1 %vm2329_vm14, %v15367_v35 }
 0xbce   : >> { %12231 = vmatpush3.msra.mxu0 %v5520_v4  ;;  %12227 = vmatprep.mubr.msk.f32.mxu1 %vm2329_vm14, %v15374_v36 }
 0xbcf   : >> { %12232 = vmatprep.subr.mxu0 %v5518_v9  ;;  %5682 = vperm.xlu0 %12763, %v10522_v27  }
 0xbd0   : >> { %v5744_v28 = vpop.permute.xlu0 %5743  ;;  %12233 = vmatpush3.msra.mxu0 %v5518_v9  ;;  %v5516_v29 = vpop.permute.xlu1 %5515  ;;  %5677 = vperm.xlu1 %12764, %v10521_v14  }
 0xbd1   : >> { %12256 = vmatprep.subr.mxu1 %v5744_v28  ;;  %12234 = vmatprep.subr.mxu0 %v5516_v29 }
 0xbd2   : >> { %12257 = vmatpush3.msra.mxu1 %v5744_v28  ;;  %12235 = vmatpush3.msra.mxu0 %v5516_v29 }
 0xbd3   : >> { %12228 = vmatmul.mubr.msk.f32.gmra.mxu1 %vm2329_vm14, %v15391_v31 }
 0xbd4   : >> { %v5742_v11 = vpop.permute.xlu0 %5741  ;;  %v5514_v16 = vpop.permute.xlu1 %5513  ;;  %12276 = vmatprep.mubr.msk.f32.mxu1 %vm2329_vm14, %v15082_v33 }
 0xbd5   : >> { %12258 = vmatprep.subr.mxu1 %v5742_v11  ;;  %12236 = vmatprep.subr.mxu0 %v5514_v16 }
 0xbd6   : >> { %12259 = vmatpush3.msra.mxu1 %v5742_v11  ;;  %12237 = vmatpush3.msra.mxu0 %v5514_v16 }
 0xbd8   : >> { %v5740_v2 = vpop.permute.xlu0 %5739  ;;  %v5512_v17 = vpop.permute.xlu1 %5511 }
 0xbd9   : >> { %12260 = vmatprep.subr.mxu1 %v5740_v2  ;;  %12238 = vmatprep.subr.mxu0 %v5512_v17 }
 0xbda   : >> { %12261 = vmatpush3.msra.mxu1 %v5740_v2  ;;  %12239 = vmatpush3.msra.mxu0 %v5512_v17 }
 0xbdc   : >> { %v5738_v7 = vpop.permute.xlu0 %5737  ;;  %v5510_v42 = vpop.permute.xlu1 %5509 }
 0xbdd   : >> { %12262 = vmatprep.subr.mxu1 %v5738_v7  ;;  %12240 = vmatprep.subr.mxu0 %v5510_v42 }
 0xbde   : >> { %12263 = vmatpush3.msra.mxu1 %v5738_v7  ;;  %12241 = vmatpush3.msra.mxu0 %v5510_v42 }
 0xbe0   : >> { %v5736_v44 = vpop.permute.xlu0 %5735  ;;  %v5508_v45 = vpop.permute.xlu1 %5507 }
 0xbe1   : >> { %12264 = vmatprep.subr.mxu1 %v5736_v44  ;;  %12242 = vmatprep.subr.mxu0 %v5508_v45 }
 0xbe2   : >> { %12265 = vmatpush3.msra.mxu1 %v5736_v44  ;;  %12243 = vmatpush3.msra.mxu0 %v5508_v45 }
 0xbe4   : >> { %v5734_v33 = vpop.permute.xlu0 %5733  ;;  %v5506_v46 = vpop.permute.xlu1 %5505 }
 0xbe5   : >> { %12266 = vmatprep.subr.mxu1 %v5734_v33  ;;  %12244 = vmatprep.subr.mxu0 %v5506_v46 }
 0xbe6   : >> { %12267 = vmatpush3.msra.mxu1 %v5734_v33  ;;  %12245 = vmatpush3.msra.mxu0 %v5506_v46 }
 0xbe8   : >> { %v5732_v48 = vpop.permute.xlu0 %5731  ;;  %v5504_v49 = vpop.permute.xlu1 %5503 }
 0xbe9   : >> { %12268 = vmatprep.subr.mxu1 %v5732_v48  ;;  %12246 = vmatprep.subr.mxu0 %v5504_v49 }
 0xbea   : >> { %12269 = vmatpush3.msra.mxu1 %v5732_v48  ;;  %12247 = vmatpush3.msra.mxu0 %v5504_v49 }
 0xbec   : >> { %v5730_v51 = vpop.permute.xlu0 %5729  ;;  %v5502_v52 = vpop.permute.xlu1 %5501 }
 0xbed   : >> { %12248 = vmatprep.subr.mxu0 %v5502_v52  ;;  %12270 = vmatprep.subr.mxu1 %v5730_v51 }
 0xbee   : >> { %12249 = vmatpush3.msra.mxu0 %v5502_v52  ;;  %12271 = vmatpush3.msra.mxu1 %v5730_v51 }
 0xbef   : >> { %12251 = vmatmul.mubr.msk.f32.vlgmr.msra.gmra.mxu0 %vm2329_vm14, %v15400_v53  ;;  %12282 = vmatprep.subr.mxu0 %v15193_v41 }
 0xbf0   : >> { %v5728_v56 = vpop.permute.xlu0 %5727  ;;  %v5726_v57 = vpop.permute.xlu1 %5725  ;;  %12253 = vmatprep.mubr.msk.f32.mxu0 %vm2329_vm14, %v15405_v55  ;;  %12283 = vmatpush3.msra.mxu0 %v15193_v41 }
 0xbf1   : >> { %12272 = vmatprep.subr.mxu1 %v5728_v56  ;;  %12284 = vmatprep.subr.mxu0 %v15200_v43 }
 0xbf2   : >> { %12273 = vmatpush3.msra.mxu1 %v5728_v56  ;;  %12285 = vmatpush3.msra.mxu0 %v15200_v43 }
 0xbf3   : >> { %12254 = vmatmul.mubr.msk.f32.gmra.mxu0 %vm2329_vm14, %v15415_v58  ;;  %12274 = vmatprep.subr.mxu1 %v5726_v57 }
 0xbf4   : >> { %v5944_v59 = vpop.permute.xlu0 %5943  ;;  %v5942_v60 = vpop.permute.xlu1 %5941  ;;  %12275 = vmatpush3.msra.mxu1 %v5726_v57  ;;  %12286 = vmatprep.subr.mxu0 %v15037_v25 }
 0xbf5   : >> { %12308 = vmatprep.subr.mxu1 %v5944_v59  ;;  %12277 = vmatmul.mubr.msk.f32.vlgmr.msra.gmra.mxu1 %vm2329_vm14, %v15273_v8 }
 0xbf6   : >> { %12309 = vmatpush3.msra.mxu1 %v5944_v59  ;;  %12287 = vmatpush3.msra.mxu0 %v15037_v25 }
 0xbf7   : >> { %12310 = vmatprep.subr.mxu1 %v5942_v60  ;;  %12288 = vmatprep.subr.mxu0 %v15047_v5 }
 0xbf8   : >> { %v5940_v41 = vpop.permute.xlu0 %5939  ;;  %v5938_v43 = vpop.permute.xlu1 %5937  ;;  %12311 = vmatpush3.msra.mxu1 %v5942_v60  ;;  %12289 = vmatpush3.msra.mxu0 %v15047_v5 }
 0xbf9   : >> { %12312 = vmatprep.subr.mxu1 %v5940_v41  ;;  %12290 = vmatprep.subr.mxu0 %v15040_v26  ;;  %v12174_v9 = vpop.f32.mrf.mxu1 }
 0xbfa   : >> { %12313 = vmatpush3.msra.mxu1 %v5940_v41  ;;  %12291 = vmatpush3.msra.mxu0 %v15040_v26 }
 0xbfb   : >> { %12314 = vmatprep.subr.mxu1 %v5938_v43  ;;  %12292 = vmatprep.subr.mxu0 %v15050_v3  ;;  %v5205_v14 = vpop.f32.mrf.mxu1 }
 0xbfc   : >> { %v5936_v8 = vpop.permute.xlu0 %5935  ;;  %v5934_v61 = vpop.permute.xlu1 %5933  ;;  %12315 = vmatpush3.msra.mxu1 %v5938_v43  ;;  %12293 = vmatpush3.msra.mxu0 %v15050_v3 }
 0xbfd   : >> { %12316 = vmatprep.subr.mxu1 %v5936_v8  ;;  %12294 = vmatprep.subr.mxu0 %v15060_v6  ;;  %v12177_v29 = vpop.f32.mrf.mxu1 }
 0xbfe   : >> { %12317 = vmatpush3.msra.mxu1 %v5936_v8  ;;  %12295 = vmatpush3.msra.mxu0 %v15060_v6 }
 0xbff   : >> { %12318 = vmatprep.subr.mxu1 %v5934_v61  ;;  %12296 = vmatprep.subr.mxu0 %v15063_v15  ;;  %v5215_v11 = vpop.f32.mrf.mxu1 }
 0xc00   : >> { %v5932_v25 = vpop.permute.xlu0 %5931  ;;  %v5930_v5 = vpop.permute.xlu1 %5929  ;;  %12319 = vmatpush3.msra.mxu1 %v5934_v61  ;;  %12297 = vmatpush3.msra.mxu0 %v15063_v15 }
 0xc01   : >> { %12320 = vmatprep.subr.mxu1 %v5932_v25  ;;  %12298 = vmatprep.subr.mxu0 %v15073_v30 }
 0xc02   : >> { %12321 = vmatpush3.msra.mxu1 %v5932_v25  ;;  %12279 = vmatprep.mubr.msk.f32.mxu1 %vm2329_vm14, %v15288_v47 }
 0xc03   : >> { %12322 = vmatprep.subr.mxu1 %v5930_v5  ;;  %12299 = vmatpush3.msra.mxu0 %v15073_v30 }
 0xc04   : >> { %v5928_v26 = vpop.permute.xlu0 %5927  ;;  %12323 = vmatpush3.msra.mxu1 %v5930_v5  ;;  %12300 = vmatprep.subr.mxu0 %v15076_v32 }
 0xc05   : >> { %v5926_v3 = vpop.permute.xlu1 %5925  ;;  %12324 = vmatprep.subr.mxu1 %v5928_v26  ;;  %12280 = vmatmul.mubr.msk.f32.gmra.mxu1 %vm2329_vm14, %v15299_v50 }
 0xc06   : >> { %12325 = vmatpush3.msra.mxu1 %v5928_v26  ;;  %12301 = vmatpush3.msra.mxu0 %v15076_v32 }
 0xc07   : >> { %12302 = vmatprep.mubr.msk.f32.mxu0 %vm2329_vm14, %v15091_v34  ;;  %12326 = vmatprep.subr.mxu1 %v5926_v3 }
 0xc08   : >> { %v6063_v6 = vpop.permute.xlu0 %6062  ;;  %12303 = vmatmul.mubr.msk.f32.vlgmr.msra.gmra.mxu0 %vm2329_vm14, %v15129_v37  ;;  %12327 = vmatpush3.msra.mxu1 %v5926_v3 }
 0xc09   : >> { %v6061_v15 = vpop.permute.xlu1 %6060  ;;  %12328 = vmatprep.mubr.msk.f32.mxu1 %vm2329_vm14, %v15310_v54  ;;  %12334 = vmatprep.subr.mxu0 %v6063_v6 }
 0xc0a   : >> { %12329 = vmatmul.mubr.msk.f32.vlgmr.msra.gmra.mxu1 %vm2329_vm14, %v15337_v13  ;;  %12335 = vmatpush3.msra.mxu0 %v6063_v6 }
 0xc0b   : >> { %12336 = vmatprep.subr.mxu0 %v6061_v15  ;;  %12305 = vmatprep.mubr.msk.f32.mxu0 %vm2329_vm14, %v15158_v38 }
 0xc0c   : >> { %v6182_v30 = vpop.permute.xlu0 %6181  ;;  %12337 = vmatpush3.msra.mxu0 %v6061_v15  ;;  %12331 = vmatprep.mubr.msk.f32.mxu1 %vm2329_vm14, %v15345_v19 }
 0xc0d   : >> { %v6059_v32 = vpop.permute.xlu1 %6058  ;;  %12360 = vmatprep.subr.mxu1 %v6182_v30  ;;  %12306 = vmatmul.mubr.msk.f32.gmra.mxu0 %vm2329_vm14, %v15165_v39 }
 0xc0e   : >> { %12338 = vmatprep.subr.mxu0 %v6059_v32  ;;  %12361 = vmatpush3.msra.mxu1 %v6182_v30 }
 0xc0f   : >> { %12339 = vmatpush3.msra.mxu0 %v6059_v32  ;;  %12332 = vmatmul.mubr.msk.f32.gmra.mxu1 %vm2329_vm14, %v15357_v23  ;;  %v10560_v23 = vld [vmem:[%s17491_s17 + $0x20] sm:$0xff] }
 0xc10   : >> { %v6180_v34 = vpop.permute.xlu0 %6179  ;;  %12354 = vmatprep.mubr.msk.f32.mxu0 %vm2329_vm14, %v15176_v40  ;;  %12380 = vmatprep.mubr.msk.f32.mxu1 %vm2329_vm14, %v15362_v24  ;;  %v6306_v24 = vld [vmem:[%s17491_s17] sm:$0xff] }
 0xc11   : >> { %v6057_v37 = vpop.permute.xlu1 %6056  ;;  %12362 = vmatprep.subr.mxu1 %v6180_v34 }
 0xc12   : >> { %12340 = vmatprep.subr.mxu0 %v6057_v37  ;;  %12363 = vmatpush3.msra.mxu1 %v6180_v34 }
 0xc13   : >> { %12341 = vmatpush3.msra.mxu0 %v6057_v37 }
 0xc14   : >> { %v6178_v38 = vpop.permute.xlu0 %6177 }
 0xc15   : >> { %v6055_v39 = vpop.permute.xlu1 %6054  ;;  %12364 = vmatprep.subr.mxu1 %v6178_v38 }
 0xc16   : >> { %12342 = vmatprep.subr.mxu0 %v6055_v39  ;;  %12365 = vmatpush3.msra.mxu1 %v6178_v38 }
 0xc17   : >> { %12343 = vmatpush3.msra.mxu0 %v6055_v39 }
 0xc18   : >> { %v6176_v47 = vpop.permute.xlu0 %6175 }
 0xc19   : >> { %v6053_v50 = vpop.permute.xlu1 %6052  ;;  %12366 = vmatprep.subr.mxu1 %v6176_v47 }
 0xc1a   : >> { %12344 = vmatprep.subr.mxu0 %v6053_v50  ;;  %12367 = vmatpush3.msra.mxu1 %v6176_v47 }
 0xc1b   : >> { %12345 = vmatpush3.msra.mxu0 %v6053_v50 }
 0xc1c   : >> { %v6174_v40 = vpop.permute.xlu0 %6173 }
 0xc1d   : >> { %v6051_v54 = vpop.permute.xlu1 %6050  ;;  %12368 = vmatprep.subr.mxu1 %v6174_v40 }
 0xc1e   : >> { %12346 = vmatprep.subr.mxu0 %v6051_v54  ;;  %12369 = vmatpush3.msra.mxu1 %v6174_v40 }
 0xc1f   : >> { %12347 = vmatpush3.msra.mxu0 %v6051_v54 }
 0xc20   : >> { %v6172_v62 = vpop.permute.xlu0 %6171 }
 0xc21   : >> { %v6049_v63 = vpop.permute.xlu1 %6048  ;;  %12370 = vmatprep.subr.mxu1 %v6172_v62 }
 0xc22   : >> { %12348 = vmatprep.subr.mxu0 %v6049_v63  ;;  %12371 = vmatpush3.msra.mxu1 %v6172_v62 }
 0xc23   : >> { %12349 = vmatpush3.msra.mxu0 %v6049_v63 }
 0xc24   : >> { %v6170_v1 = vpop.permute.xlu0 %6169 }
 0xc25   : >> { %v6047_v12 = vpop.permute.xlu1 %6046  ;;  %12372 = vmatprep.subr.mxu1 %v6170_v1 }
 0xc26   : >> { %12350 = vmatprep.subr.mxu0 %v6047_v12  ;;  %12373 = vmatpush3.msra.mxu1 %v6170_v1 }
 0xc27   : >> { %12351 = vmatpush3.msra.mxu0 %v6047_v12 }
 0xc28   : >> { %v6168_v10 = vpop.permute.xlu0 %6167 }
 0xc29   : >> { %v6045_v13 = vpop.permute.xlu1 %6044  ;;  %12374 = vmatprep.subr.mxu1 %v6168_v10 }
 0xc2a   : >> { %12352 = vmatprep.subr.mxu0 %v6045_v13  ;;  %12375 = vmatpush3.msra.mxu1 %v6168_v10 }
 0xc2b   : >> { %12353 = vmatpush3.msra.mxu0 %v6045_v13 }
 0xc2c   : >> { %12355 = vmatmul.mubr.msk.f32.vlgmr.msra.gmra.mxu0 %vm2329_vm14, %v15367_v35  ;;  %v6166_v18 = vpop.permute.xlu0 %6165  ;;  %12386 = vmatprep.subr.mxu0 %v6308_v20  ;;  %v10559_v35 = vld [vmem:[%s17491_s17 + $0x18] sm:$0xff] }
 0xc2d   : >> { %12376 = vmatprep.subr.mxu1 %v6166_v18  ;;  %12357 = vmatprep.mubr.msk.f32.mxu0 %vm2329_vm14, %v15374_v36  ;;  %v6164_v19 = vpop.permute.xlu1 %6163 }
 0xc2e   : >> { %12377 = vmatpush3.msra.mxu1 %v6166_v18  ;;  %12387 = vmatpush3.msra.mxu0 %v6308_v20 }
 0xc2f   : >> { %12378 = vmatprep.subr.mxu1 %v6164_v19  ;;  %12388 = vmatprep.subr.mxu0 %v6307_v22 }
 0xc30   : >> { %12358 = vmatmul.mubr.msk.f32.gmra.mxu0 %vm2329_vm14, %v15391_v31  ;;  %12379 = vmatpush3.msra.mxu1 %v6164_v19 }
 0xc31   : >> { %12381 = vmatmul.mubr.msk.f32.vlgmr.msra.gmra.mxu1 %vm2329_vm14, %v15400_v53  ;;  %12398 = vmatprep.subr.mxu1 %v10561_v21 }
 0xc32   : >> { %12383 = vmatprep.mubr.msk.f32.mxu1 %vm2329_vm14, %v15405_v55  ;;  %12399 = vmatpush3.msra.mxu1 %v10561_v21 }
 0xc33   : >> { %12400 = vmatprep.subr.mxu1 %v10560_v23  ;;  %12389 = vmatpush3.msra.mxu0 %v6307_v22 }
 0xc34   : >> { %12401 = vmatpush3.msra.mxu1 %v10560_v23  ;;  %12390 = vmatprep.subr.mxu0 %v6306_v24 }
 0xc35   : >> { %12384 = vmatmul.mubr.msk.f32.gmra.mxu1 %vm2329_vm14, %v15415_v58  ;;  %12402 = vmatprep.subr.mxu1 %v10559_v35 }
 0xc36   : >> { %12391 = vmatpush3.msra.mxu0 %v6306_v24  ;;  %12403 = vmatpush3.msra.mxu1 %v10559_v35 }
 0xc3a   : >> { %v5644_v59 = vpop.permute.xlu1 %5643  ;;  %v5639_v61 = vpop.permute.xlu0 %5638 }
 0xc3e   : >> { %v5668_v34 = vpop.permute.xlu1 %5667  ;;  %v5673_v47 = vpop.permute.xlu0 %5672 }
 0xc42   : >> { %v5654_v35 = vpop.permute.xlu0 %5653 }
 0xc43   : >> { %v5649_v21 = vpop.permute.xlu1 %5648 }
 0xc68   : >> { %v12148_v36 = vpop.f32.mrf.mxu0 }
 0xc69   : >> { %v5211_v56 = vadd.f32 %v12174_v9, %v12148_v36 }
 0xc6a   : >> { %v5108_v4 = vpop.f32.mrf.mxu0 }
 0xc6b   : >> { %v5206_v57 = vadd.f32 %v5205_v14, %v5108_v4 }
 0xc74   : >> { %v12151_v27 = vpop.f32.mrf.mxu0 }
 0xc75   : >> { %v5221_v5 = vadd.f32 %v12177_v29, %v12151_v27 }
 0xc76   : >> { %v5118_v28 = vpop.f32.mrf.mxu0 }
 0xc77   : >> { %v5216_v41 = vadd.f32 %v5215_v11, %v5118_v28 }
 0xc87   : >> { %v12200_v31 = vpop.f32.mrf.mxu0 }
 0xc88   : >> { %v5357_v43 = vadd.f32 %v12200_v31, %v5211_v56  ;;  %v5683_v56 = vpop.permute.xlu0 %5682 }
 0xc89   : >> { %v5337_v16 = vpop.f32.mrf.mxu0 }
 0xc8a   : >> { %v5356_v8 = vadd.f32 %v5337_v16, %v5206_v57 }
 0xc8b   : >> { %v12203_v17 = vpop.f32.mrf.mxu0 }
 0xc8c   : >> { %v5359_v32 = vadd.f32 %v12203_v17, %v5221_v5 }
 0xc8d   : >> { %v12226_v2 = vpop.f32.mrf.mxu1  ;;  %v5347_v42 = vpop.f32.mrf.mxu0 }
 0xc8e   : >> { %v5493_v3 = vadd.f32 %v12226_v2, %v5357_v43  ;;  %v5358_v15 = vadd.f32 %v5347_v42, %v5216_v41 }
 0xc8f   : >> { %v5473_v7 = vpop.f32.mrf.mxu1 }
 0xc90   : >> { %v5492_v6 = vadd.f32 %v5473_v7, %v5356_v8 }
 0xc93   : >> { %v12229_v44 = vpop.f32.mrf.mxu1 }
 0xc94   : >> { %v5495_v1 = vadd.f32 %v12229_v44, %v5359_v32 }
 0xc95   : >> { %v5483_v33 = vpop.f32.mrf.mxu1 }
 0xc96   : >> { %v5494_v63 = vadd.f32 %v5483_v33, %v5358_v15 }
 0xcaf   : >> { %v12252_v45 = vpop.f32.mrf.mxu0 }
 0xcb0   : >> { %v5629_v39 = vadd.f32 %v12252_v45, %v5493_v3 }
 0xcb1   : >> { %v5609_v48 = vpop.f32.mrf.mxu0 }
 0xcb2   : >> { %v5628_v50 = vadd.f32 %v5609_v48, %v5492_v6  ;;  %v5657_v18 = vmul.f32 %v5644_v59, %v5629_v39  ;;  %v5678_v48 = vpop.permute.xlu1 %5677 }
 0xcb3   : >> { %v12255_v51 = vpop.f32.mrf.mxu0 }
 0xcb4   : >> { %v5656_v19 = vmul.f32 %v5639_v61, %v5628_v50  ;;  %v5631_v27 = vadd.f32 %v12255_v51, %v5495_v1  ;;  %v5686_v31 = vadd.f32 %v5673_v47, %v5657_v18 }
 0xcb5   : >> { %v12278_v46 = vpop.f32.mrf.mxu1  ;;  %v5619_v53 = vpop.f32.mrf.mxu0 }
 0xcb6   : >> { %v5630_v36 = vadd.f32 %v5619_v53, %v5494_v63  ;;  %v5685_v11 = vadd.f32 %v5668_v34, %v5656_v19  ;;  %vm5690_vm15 = vcmp.gt.f32.partialorder %v5686_v31, 0.0 }
 0xcb7   : >> { %v5821_v49 = vpop.f32.mrf.mxu1 }
 0xcb8   : >> { %v5658_v44 = vmul.f32 %v5649_v21, %v5630_v36  ;;  %v5693_v51 = vmul.f32 0.01, %v5685_v11  ;;  %vm5689_vm0 = vcmp.gt.f32.partialorder %v5685_v11, 0.0 }
 0xcba   : >> { %v5697_v15 = vsel %vm5689_vm0, %v5685_v11, %v5693_v51 }
 0xcc5   : >> { %v12281_v52 = vpop.f32.mrf.mxu1 }
 0xcc7   : >> { %v5831_v58 = vpop.f32.mrf.mxu1 }
 0xcc8   : >> { %v12304_v55 = vpop.f32.mrf.mxu0 }
 0xcc9   : >> { %v5912_v37 = vadd.f32 %v12304_v55, %v12278_v46  ;;  %v5659_v46 = vmul.f32 %v5654_v35, %v5631_v27  ;;  %v5694_v55 = vmul.f32 0.01, %v5686_v31 }
 0xcca   : >> { %v5906_v60 = vpop.f32.mrf.mxu0  ;;  %v12330_v25 = vpop.f32.mrf.mxu1 }
 0xccb   : >> { %v5907_v54 = vadd.f32 %v5906_v60, %v5821_v49  ;;  %v6041_v12 = vadd.f32 %v12330_v25, %v5912_v37  ;;  %v5688_v25 = vadd.f32 %v5683_v56, %v5659_v46  ;;  %v5698_v6 = vsel %vm5690_vm15, %v5686_v31, %v5694_v55 }
 0xccc   : >> { %v6021_v30 = vpop.f32.mrf.mxu1 }
 0xccd   : >> { %v12307_v26 = vpop.f32.mrf.mxu0  ;;  %v6040_v22 = vadd.f32 %v6021_v30, %v5907_v54  ;;  %v5696_v39 = vmul.f32 0.01, %v5688_v25  ;;  %vm5692_vm5 = vcmp.gt.f32.partialorder %v5688_v25, 0.0 }
 0xcce   : >> { %v5922_v10 = vadd.f32 %v12307_v26, %v12281_v52 }
 0xccf   : >> { %v5916_v38 = vpop.f32.mrf.mxu0  ;;  %v12333_v40 = vpop.f32.mrf.mxu1  ;;  %v5700_v63 = vsel %vm5692_vm5, %v5688_v25, %v5696_v39 }
 0xcd0   : >> { %v5917_v4 = vadd.f32 %v5916_v38, %v5831_v58  ;;  %v6043_v14 = vadd.f32 %v12333_v40, %v5922_v10 }
 0xcd1   : >> { %v6031_v20 = vpop.f32.mrf.mxu1 }
 0xcd2   : >> { %v6042_v45 = vadd.f32 %v6031_v20, %v5917_v4 }
 0xcec   : >> { %v12356_v62 = vpop.f32.mrf.mxu0 }
 0xced   : >> { %v6160_v23 = vadd.f32 %v12356_v62, %v6041_v12 }
 0xcee   : >> { %v6140_v13 = vpop.f32.mrf.mxu0 }
 0xcef   : >> { %v6159_v28 = vadd.f32 %v6140_v13, %v6040_v22 }
 0xcf0   : >> { %v12359_v24 = vpop.f32.mrf.mxu0 }
 0xcf1   : >> { %v12382_v9 = vpop.f32.mrf.mxu1  ;;  %v6162_v2 = vadd.f32 %v12359_v24, %v6043_v14 }
 0xcf2   : >> { %v6279_v29 = vadd.f32 %v12382_v9, %v6160_v23  ;;  %v6150_v17 = vpop.f32.mrf.mxu0 }
 0xcf3   : >> { %v6259_v16 = vpop.f32.mrf.mxu1  ;;  %v6161_v57 = vadd.f32 %v6150_v17, %v6042_v45 }
 0xcf4   : >> { %v6283_v7 = vmul.f32 %v6279_v29, %v5644_v59  ;;  %v6278_v42 = vadd.f32 %v6259_v16, %v6159_v28  ;;  %v5687_v59 = vadd.f32 %v5678_v48, %v5658_v44 }
 0xcf5   : >> { %v12385_v33 = vpop.f32.mrf.mxu1 }
 0xcf6   : >> { %v6287_v49 = vadd.f32 %v6283_v7, %v5673_v47  ;;  %v6282_v52 = vmul.f32 %v6278_v42, %v5639_v61  ;;  %v6281_v53 = vadd.f32 %v12385_v33, %v6162_v2  ;;  %v5695_v37 = vmul.f32 0.01, %v5687_v59 }
 0xcf7   : >> { %v6269_v58 = vpop.f32.mrf.mxu1  ;;  %vm5691_vm4 = vcmp.gt.f32.partialorder %v5687_v59, 0.0 }
 0xcf8   : >> { %vm6291_vm13 = vcmp.gt.f32.partialorder %v6287_v49, 0.0  ;;  %v6295_v60 = vmul.f32 0.01, %v6287_v49  ;;  %v6286_v41 = vadd.f32 %v6282_v52, %v5668_v34  ;;  %v6285_v43 = vmul.f32 %v6281_v53, %v5654_v35 }
 0xcf9   : >> { %v6280_v8 = vadd.f32 %v6269_v58, %v6161_v57  ;;  %v5699_v54 = vsel %vm5691_vm4, %v5687_v59, %v5695_v37 }
 0xcfa   : >> { %vm6290_vm1 = vcmp.gt.f32.partialorder %v6286_v41, 0.0  ;;  %v6294_v5 = vmul.f32 0.01, %v6286_v41  ;;  %v6289_v26 = vadd.f32 %v6285_v43, %v5683_v56  ;;  %v6299_v3 = vsel %vm6291_vm13, %v6287_v49, %v6295_v60 }
 0xcfb   : >> { %v6284_v61 = vmul.f32 %v6280_v8, %v5649_v21  ;;  %v6303_v47 = vmax.f32 %v5698_v6, %v6299_v3 }
 0xcfc   : >> { %v6297_v30 = vmul.f32 0.01, %v6289_v26  ;;  %v6298_v32 = vsel %vm6290_vm1, %v6286_v41, %v6294_v5  ;;  %vm6293_vm3 = vcmp.gt.f32.partialorder %v6289_v26, 0.0 }
 0xcfd   : >> { %v6288_v38 = vadd.f32 %v6284_v61, %v5678_v48  ;;  %v6302_v34 = vmax.f32 %v5697_v15, %v6298_v32 }
 0xcfe   : >> { %v6301_v40 = vsel %vm6293_vm3, %v6289_v26, %v6297_v30 }
 0xcff   : >> { %vm6292_vm7 = vcmp.gt.f32.partialorder %v6288_v38, 0.0  ;;  %v6296_v50 = vmul.f32 0.01, %v6288_v38  ;;  %12392 = vmatprep.mubr.msk.f32.mxu0 %vm6309_vm2, %v6302_v34  ;;  %12404 = vmatprep.mubr.msk.f32.mxu1 %vm6309_vm2, %v6302_v34  ;;  %v6305_v12 = vmax.f32 %v5700_v63, %v6301_v40 }
 0xd00   : >> { %12393 = vmatmul.mubr.msk.f32.vlgmr.msra.gmra.mxu0 %vm6309_vm2, %v6303_v47  ;;  %12405 = vmatmul.mubr.msk.f32.vlgmr.msra.gmra.mxu1 %vm6309_vm2, %v6303_v47 }
 0xd01   : >> { %v6300_v62 = vsel %vm6292_vm7, %v6288_v38, %v6296_v50 }
 0xd02   : >> { %v6304_v1 = vmax.f32 %v5699_v54, %v6300_v62 }
 0xd04   : >> { %12395 = vmatprep.mubr.msk.f32.mxu0 %vm6309_vm2, %v6304_v1  ;;  %12407 = vmatprep.mubr.msk.f32.mxu1 %vm6309_vm2, %v6304_v1 }
 0xd05   : >> { %12396 = vmatmul.mubr.msk.f32.gmra.mxu0 %vm6309_vm2, %v6305_v12  ;;  %12408 = vmatmul.mubr.msk.f32.gmra.mxu1 %vm6309_vm2, %v6305_v12 }
 0xdc0   : >> { %v12394_v10 = vpop.f32.mrf.mxu0  ;;  %v12406_v13 = vpop.f32.mrf.mxu1 }
 0xdc1   : >> { %v6497_v18 = vmax.f32 %v12394_v10, %v12406_v13 }
 0xdc2   : >> { %v6388_v19 = vpop.f32.mrf.mxu0  ;;  %v6477_v20 = vpop.f32.mrf.mxu1 }
 0xdc3   : >> { %v6496_v21 = vmax.f32 %v6388_v19, %v6477_v20  ;;  %6508 = vrot.lane.b32.xlu0 %v6497_v18, %s12890_s5 }
 0xdc5   : >> { %v12397_v22 = vpop.f32.mrf.mxu0  ;;  %v12409_v23 = vpop.f32.mrf.mxu1  ;;  %6506 = vrot.lane.b32.xlu1 %v6496_v21, %s12890_s5 }
 0xdc6   : >> { %v6499_v24 = vmax.f32 %v12397_v22, %v12409_v23 }
 0xdc7   : >> { %v6398_v35 = vpop.f32.mrf.mxu0  ;;  %v6487_v36 = vpop.f32.mrf.mxu1 }
 0xdc8   : >> { %v6498_v4 = vmax.f32 %v6398_v35, %v6487_v36  ;;  %6512 = vrot.lane.b32.xlu0 %v6499_v24, %s12890_s5 }
 0xdca   : >> { %6510 = vrot.lane.b32.xlu1 %v6498_v4, %s12890_s5 }
 0xe35   : >> { %v6509_v9 = vpop.permute.xlu0 %6508 }
 0xe36   : >> { %10568 = vst.msk [vmem:[%s10239_s25 + $0x28] sm:$0xff] %vm6519_vm8, %v6509_v9 }
 0xe37   : >> { %v6507_v27 = vpop.permute.xlu1 %6506 }
 0xe38   : >> { %10567 = vst.msk [vmem:[%s10239_s25 + $0x20] sm:$0xff] %vm6519_vm8, %v6507_v27 }
 0xe39   : > { %4966 = sbr.rel (!%p4964_p8) target bundleno = 2839 (0xb17), region = 294 }
 0xe3a   : >> { %v6513_v14 = vpop.permute.xlu0 %6512 }
 0xe3b   : >> { %10570 = vst.msk [vmem:[%s10239_s25 + $0x38] sm:$0xff] %vm6519_vm8, %v6513_v14 }
 0xe3c   : >> { %v6511_v28 = vpop.permute.xlu1 %6510 }
 0xe3d   : >> { %10569 = vst.msk [vmem:[%s10239_s25 + $0x30] sm:$0xff] %vm6519_vm8, %v6511_v28 }
 0xe3e LB: >> { %v12891_v29 = vmov 0.0   ;;  %s10571_s7 = sshll.u32 %s12852_s26, 6  ;;  %s17507_s1 = smov 127   ;;  %vm6649_vm14 = vcmask 261120   ;;  %vm8183_vm9 = vcmask 1041408   ;;  %vm8170_vm13 = vcmask 80896   ;;  %s12852_s26 = sphi %s15507_s26, %s6529_s26  }
 0xe3f   : >> { %6662 = vmatprep.subr.mxu0 %v12891_v29  ;;  %6759 = vmatprep.subr.mxu1 %v12891_v29  ;;  %s15515_s0 = scalar_lea.vmem [#allocation6], %s10571_s7  ;;  %s17530_s28 = sld [smem:[#allocation15_spill]]  ;;  %vm8386_vm4 = vcmask 48136  }
 0xe40   : >> { %s12893_s25 = smov 126   ;;  %s12894_s7 = smov 125  }
 0xe41   : >> { %s12895_s3 = smov 124   ;;  %s17531_s24 = smov 127  }
 0xe42   : >> { %s10682_s6 = sshll.u32 %s12852_s26, 5  ;;  %s6529_s26 = sadd.s32 1, %s12852_s26  }
 0xe43   : >> { %p6526_p9 = scmp.ge.s32.totalorder %s6529_s26, 4  }
 0xe44   : >> { %v15518_v31 = vld [vmem:[%s15515_s0 + $0x78] sm:$0xff]  ;;  %v15521_v11 = vld [vmem:[%s15515_s0 + $0x68] sm:$0xff]  ;;  %v15528_v16 = vld [vmem:[%s15515_s0 + $0x70] sm:$0xff] }
 0xe45   : >> { %6619 = vrot.lane.b32.xlu0 %v15518_v31, %s17507_s1  ;;  %6615 = vrot.lane.b32.xlu1 %v15521_v11, %s17507_s1  ;;  %v15531_v2 = vld [vmem:[%s15515_s0 + $0x60] sm:$0xff]  ;;  %v15541_v17 = vld [vmem:[%s15515_s0 + $0x58] sm:$0xff] }
 0xe46   : >> { %6760 = vmatpush1.msra.mxu1 %v15518_v31  ;;  %v15544_v7 = vld [vmem:[%s15515_s0 + $0x50] sm:$0xff]  ;;  %v15554_v42 = vld [vmem:[%s15515_s0 + $0x48] sm:$0xff]  ;;  %v15557_v44 = vld [vmem:[%s15515_s0 + $0x40] sm:$0xff] }
 0xe47   : >> { %6761 = vmatprep.subr.mxu1 %v12891_v29  ;;  %v15567_v45 = vld [vmem:[%s15515_s0 + $0x38] sm:$0xff]  ;;  %v15570_v33 = vld [vmem:[%s15515_s0 + $0x30] sm:$0xff]  ;;  %v15580_v46 = vld [vmem:[%s15515_s0 + $0x28] sm:$0xff] }
 0xe48   : >> { %6762 = vmatpush1.msra.mxu1 %v15528_v16  ;;  %v15583_v48 = vld [vmem:[%s15515_s0 + $0x20] sm:$0xff]  ;;  %v15593_v49 = vld [vmem:[%s15515_s0 + $0x18] sm:$0xff]  ;;  %v15596_v52 = vld [vmem:[%s15515_s0 + $0x10] sm:$0xff] }
 0xe49   : >> { %6617 = vrot.lane.b32.xlu0 %v15528_v16, %s17507_s1  ;;  %6613 = vrot.lane.b32.xlu1 %v15531_v2, %s17507_s1  ;;  %v15606_v53 = vld [vmem:[%s15515_s0 + $0x8] sm:$0xff]  ;;  %v15609_v55 = vld [vmem:[%s15515_s0] sm:$0xff] }
 0xe4a   : >> { %6763 = vmatprep.subr.mxu1 %v12891_v29  ;;  %v15617_v51 = vld [vmem:[%s17530_s28 + $0x48] sm:$0xff]  ;;  %v15624_v56 = vld [vmem:[%s15515_s0 + $0x98] sm:$0xff]  ;;  %v15627_v57 = vld [vmem:[%s15515_s0 + $0x90] sm:$0xff] }
 0xe4b   : >> { %6764 = vmatpush1.msra.mxu1 %v15521_v11  ;;  %10580 = vmatprep.mubr.msk.f32.mxu0 %vm6649_vm14, %v15617_v51  ;;  %v6553_v58 = vld [vmem:[%s17530_s28 + $0x8] sm:$0xff]  ;;  %v15646_v41 = vld [vmem:[%s15515_s0 + $0x80] sm:$0xff]  ;;  %v6555_v59 = vld [vmem:[%s17530_s28 + $0x18] sm:$0xff] }
 0xe4c   : >> { %6765 = vmatprep.subr.mxu1 %v12891_v29  ;;  %10584 = vmatprep.mubr.msk.f32.mxu1 %vm6649_vm14, %v6553_v58  ;;  %v15643_v60 = vld [vmem:[%s15515_s0 + $0x88] sm:$0xff]  ;;  %v6552_v43 = vld [vmem:[%s17530_s28] sm:$0xff]  ;;  %v6554_v8 = vld [vmem:[%s17530_s28 + $0x10] sm:$0xff] }
 0xe4d   : >> { %6611 = vrot.lane.b32.xlu0 %v15541_v17, %s17507_s1  ;;  %6609 = vrot.lane.b32.xlu1 %v15544_v7, %s17507_s1  ;;  %v6557_v25 = vld [vmem:[%s17530_s28 + $0x28] sm:$0xff]  ;;  %v6556_v5 = vld [vmem:[%s17530_s28 + $0x20] sm:$0xff] }
 0xe4e   : >> { %6766 = vmatpush1.msra.mxu1 %v15531_v2  ;;  %v6559_v26 = vld [vmem:[%s17530_s28 + $0x38] sm:$0xff]  ;;  %v6558_v3 = vld [vmem:[%s17530_s28 + $0x30] sm:$0xff]  ;;  %v10601_v61 = vld [vmem:[%s17530_s28 + $0xc8] sm:$0xff] }
 0xe4f   : >> { %6767 = vmatprep.subr.mxu1 %v12891_v29  ;;  %v15834_v22 = vld [vmem:[%s17530_s28 + $0x40] sm:$0xff]  ;;  %v15839_v23 = vld [vmem:[%s17530_s28 + $0x58] sm:$0xff]  ;;  %v15860_v9 = vld [vmem:[%s17530_s28 + $0x50] sm:$0xff] }
 0xe50   : >> { %6768 = vmatpush1.msra.mxu1 %v15541_v17  ;;  %v15872_v28 = vld [vmem:[%s17530_s28 + $0x68] sm:$0xff] }
 0xe51   : >> { %6607 = vrot.lane.b32.xlu0 %v15554_v42, %s17507_s1  ;;  %6605 = vrot.lane.b32.xlu1 %v15557_v44, %s17507_s1 }
 0xe52   : >> { %6769 = vmatprep.subr.mxu1 %v12891_v29 }
 0xe53   : >> { %6770 = vmatpush1.msra.mxu1 %v15544_v7 }
 0xe54   : >> { %6771 = vmatprep.subr.mxu1 %v12891_v29 }
 0xe55   : >> { %6603 = vrot.lane.b32.xlu0 %v15567_v45, %s17507_s1  ;;  %6601 = vrot.lane.b32.xlu1 %v15570_v33, %s17507_s1 }
 0xe56   : >> { %6772 = vmatpush1.msra.mxu1 %v15554_v42 }
 0xe57   : >> { %6773 = vmatprep.subr.mxu1 %v12891_v29 }
 0xe58   : >> { %6774 = vmatpush1.msra.mxu1 %v15557_v44 }
 0xe59   : >> { %6599 = vrot.lane.b32.xlu0 %v15580_v46, %s17507_s1  ;;  %6597 = vrot.lane.b32.xlu1 %v15583_v48, %s17507_s1 }
 0xe5a   : >> { %6775 = vmatprep.subr.mxu1 %v12891_v29 }
 0xe5b   : >> { %6776 = vmatpush1.msra.mxu1 %v15567_v45 }
 0xe5c   : >> { %6777 = vmatprep.subr.mxu1 %v12891_v29 }
 0xe5d   : >> { %6595 = vrot.lane.b32.xlu0 %v15593_v49, %s17507_s1  ;;  %6593 = vrot.lane.b32.xlu1 %v15596_v52, %s17507_s1 }
 0xe5e   : >> { %6778 = vmatpush1.msra.mxu1 %v15570_v33 }
 0xe5f   : >> { %6779 = vmatprep.subr.mxu1 %v12891_v29 }
 0xe60   : >> { %6780 = vmatpush1.msra.mxu1 %v15580_v46 }
 0xe61   : >> { %6591 = vrot.lane.b32.xlu0 %v15606_v53, %s17507_s1  ;;  %6589 = vrot.lane.b32.xlu1 %v15609_v55, %s17507_s1 }
 0xe62   : >> { %6781 = vmatprep.subr.mxu1 %v12891_v29 }
 0xe63   : >> { %6782 = vmatpush1.msra.mxu1 %v15583_v48 }
 0xe64   : >> { %6783 = vmatprep.subr.mxu1 %v12891_v29 }
 0xe65   : >> { %6627 = vrot.lane.b32.xlu0 %v15624_v56, %s17507_s1  ;;  %6625 = vrot.lane.b32.xlu1 %v15627_v57, %s17507_s1 }
 0xe66   : >> { %6784 = vmatpush1.msra.mxu1 %v15593_v49 }
 0xe67   : >> { %6785 = vmatprep.subr.mxu1 %v12891_v29 }
 0xe68   : >> { %6786 = vmatpush1.msra.mxu1 %v15596_v52 }
 0xe69   : >> { %6623 = vrot.lane.b32.xlu0 %v15643_v60, %s17507_s1  ;;  %6621 = vrot.lane.b32.xlu1 %v15646_v41, %s17507_s1  ;;  %s10248_s1 = scalar_lea.vmem [#allocation7], %s10682_s6 }
 0xe6a   : >> { %6787 = vmatprep.subr.mxu1 %v12891_v29 }
 0xe6b   : >> { %6788 = vmatpush1.msra.mxu1 %v15606_v53 }
 0xe6c   : >> { %6789 = vmatprep.subr.mxu1 %v12891_v29 }
 0xe6d   : >> { %6883 = vrot.lane.b32.xlu0 %v15518_v31, %s12893_s25  ;;  %6881 = vrot.lane.b32.xlu1 %v15528_v16, %s12893_s25 }
 0xe6e   : >> { %6790 = vmatpush1.msra.mxu1 %v15609_v55 }
 0xe6f   : >> { %6815 = vmatprep.subr.mxu1 %v12891_v29 }
 0xe70   : >> { %6816 = vmatpush2.msra.mxu1 %v15624_v56 }
 0xe71   : >> { %7053 = vrot.lane.b32.xlu0 %v15518_v31, %s12894_s7  ;;  %6879 = vrot.lane.b32.xlu1 %v15521_v11, %s12893_s25 }
 0xe72   : >> { %6817 = vmatprep.subr.mxu1 %v12891_v29 }
 0xe73   : >> { %6818 = vmatpush2.msra.mxu1 %v15627_v57 }
 0xe74   : >> { %6819 = vmatprep.subr.mxu1 %v12891_v29 }
 0xe75   : >> { %7051 = vrot.lane.b32.xlu0 %v15528_v16, %s12894_s7  ;;  %6877 = vrot.lane.b32.xlu1 %v15531_v2, %s12893_s25 }
 0xe76   : >> { %6820 = vmatpush2.msra.mxu1 %v15643_v60 }
 0xe77   : >> { %6821 = vmatprep.subr.mxu1 %v12891_v29 }
 0xe78   : >> { %6822 = vmatpush2.msra.mxu1 %v15646_v41 }
 0xe79   : >> { %7049 = vrot.lane.b32.xlu0 %v15521_v11, %s12894_s7  ;;  %6875 = vrot.lane.b32.xlu1 %v15541_v17, %s12893_s25 }
 0xe7a   : >> { %7095 = vmatprep.subr.mxu1 %v12891_v29  ;;  %6824 = vmatmul.mubr.f32.vlgmr.msra.gmra.mxu1 %v6552_v43  ;;  %v15885_v43 = vld [vmem:[%s17530_s28 + $0x60] sm:$0xff] }
 0xe7b   : >> { %10585 = vmatprep.mubr.msk.f32.mxu1 %vm6649_vm14, %v6555_v59 }
 0xe7d   : >> { %7047 = vrot.lane.b32.xlu0 %v15531_v2, %s12894_s7  ;;  %6873 = vrot.lane.b32.xlu1 %v15544_v7, %s12893_s25 }
 0xe7e   : >> { %6829 = vmatmul.mubr.f32.gmra.mxu1 %v6554_v8  ;;  %v15897_v8 = vld [vmem:[%s17530_s28 + $0x78] sm:$0xff] }
 0xe7f   : >> { %10586 = vmatprep.mubr.msk.f32.mxu1 %vm6649_vm14, %v6557_v25 }
 0xe81   : >> { %7045 = vrot.lane.b32.xlu0 %v15541_v17, %s12894_s7  ;;  %6871 = vrot.lane.b32.xlu1 %v15554_v42, %s12893_s25 }
 0xe82   : >> { %6834 = vmatmul.mubr.f32.gmra.mxu1 %v6556_v5  ;;  %v15910_v5 = vld [vmem:[%s17530_s28 + $0x70] sm:$0xff] }
 0xe83   : >> { %10587 = vmatprep.mubr.msk.f32.mxu1 %vm6649_vm14, %v6559_v26 }
 0xe85   : >> { %7043 = vrot.lane.b32.xlu0 %v15544_v7, %s12894_s7  ;;  %6869 = vrot.lane.b32.xlu1 %v15557_v44, %s12893_s25 }
 0xe86   : >> { %6839 = vmatmul.mubr.f32.gmra.mxu1 %v6558_v3  ;;  %v15922_v3 = vld [vmem:[%s17530_s28 + $0x88] sm:$0xff] }
 0xe87   : >> { %10608 = vmatprep.mubr.msk.f32.mxu1 %vm6649_vm14, %v10601_v61  ;;  %v15930_v61 = vld [vmem:[%s15515_s0 + $0xb8] sm:$0xff] }
 0xe89   : >> { %7041 = vrot.lane.b32.xlu0 %v15554_v42, %s12894_s7  ;;  %6867 = vrot.lane.b32.xlu1 %v15567_v45, %s12893_s25 }
 0xe8d   : >> { %7039 = vrot.lane.b32.xlu0 %v15557_v44, %s12894_s7  ;;  %6865 = vrot.lane.b32.xlu1 %v15570_v33, %s12893_s25 }
 0xe91   : >> { %7037 = vrot.lane.b32.xlu0 %v15567_v45, %s12894_s7  ;;  %6863 = vrot.lane.b32.xlu1 %v15580_v46, %s12893_s25 }
 0xe95   : >> { %7035 = vrot.lane.b32.xlu0 %v15570_v33, %s12894_s7  ;;  %6861 = vrot.lane.b32.xlu1 %v15583_v48, %s12893_s25 }
 0xe99   : >> { %7033 = vrot.lane.b32.xlu0 %v15580_v46, %s12894_s7  ;;  %6859 = vrot.lane.b32.xlu1 %v15593_v49, %s12893_s25 }
 0xe9d   : >> { %7031 = vrot.lane.b32.xlu0 %v15583_v48, %s12894_s7  ;;  %6857 = vrot.lane.b32.xlu1 %v15596_v52, %s12893_s25 }
 0xea1   : >> { %7029 = vrot.lane.b32.xlu0 %v15593_v49, %s12894_s7  ;;  %6855 = vrot.lane.b32.xlu1 %v15606_v53, %s12893_s25 }
 0xea5   : >> { %7027 = vrot.lane.b32.xlu0 %v15596_v52, %s12894_s7  ;;  %6853 = vrot.lane.b32.xlu1 %v15609_v55, %s12893_s25 }
 0xea9   : >> { %7025 = vrot.lane.b32.xlu0 %v15606_v53, %s12894_s7  ;;  %6891 = vrot.lane.b32.xlu1 %v15624_v56, %s12893_s25 }
 0xead   : >> { %7023 = vrot.lane.b32.xlu0 %v15609_v55, %s12894_s7  ;;  %6889 = vrot.lane.b32.xlu1 %v15627_v57, %s12893_s25 }
 0xeb1   : >> { %7061 = vrot.lane.b32.xlu0 %v15624_v56, %s12894_s7  ;;  %6887 = vrot.lane.b32.xlu1 %v15643_v60, %s12893_s25 }
 0xeb5   : >> { %7059 = vrot.lane.b32.xlu0 %v15627_v57, %s12894_s7  ;;  %6885 = vrot.lane.b32.xlu1 %v15646_v41, %s12893_s25 }
 0xeb7   : >> { %v6620_v6 = vpop.permute.xlu0 %6619  ;;  %v6616_v15 = vpop.permute.xlu1 %6615 }
 0xeb8   : >> { %6663 = vmatpush1.msra.mxu0 %v6620_v6 }
 0xeb9   : >> { %7057 = vrot.lane.b32.xlu0 %v15643_v60, %s12894_s7  ;;  %7055 = vrot.lane.b32.xlu1 %v15646_v41, %s12894_s7 }
 0xeba   : >> { %6664 = vmatprep.subr.mxu0 %v12891_v29 }
 0xebb   : >> { %v6618_v30 = vpop.permute.xlu0 %6617  ;;  %v6614_v32 = vpop.permute.xlu1 %6613 }
 0xebc   : >> { %6665 = vmatpush1.msra.mxu0 %v6618_v30  ;;  %v15941_v30 = vld [vmem:[%s15515_s0 + $0xb0] sm:$0xff] }
 0xebd   : >> { %6666 = vmatprep.subr.mxu0 %v12891_v29  ;;  %7223 = vrot.lane.b32.xlu0 %v15518_v31, %s12895_s3 }
 0xebe   : >> { %7221 = vrot.lane.b32.xlu1 %v15528_v16, %s12895_s3  ;;  %6667 = vmatpush1.msra.mxu0 %v6616_v15 }
 0xebf   : >> { %6668 = vmatprep.subr.mxu0 %v12891_v29  ;;  %v6612_v37 = vpop.permute.xlu0 %6611  ;;  %v6610_v38 = vpop.permute.xlu1 %6609 }
 0xec0   : >> { %6669 = vmatpush1.msra.mxu0 %v6614_v32 }
 0xec1   : >> { %6670 = vmatprep.subr.mxu0 %v12891_v29  ;;  %7497 = vrot.lane.b32.xlu0 %v15624_v56, %s17531_s24 }
 0xec2   : >> { %7219 = vrot.lane.b32.xlu1 %v15521_v11, %s12895_s3  ;;  %6671 = vmatpush1.msra.mxu0 %v6612_v37 }
 0xec3   : >> { %6672 = vmatprep.subr.mxu0 %v12891_v29  ;;  %v6608_v34 = vpop.permute.xlu0 %6607  ;;  %v6606_v39 = vpop.permute.xlu1 %6605 }
 0xec4   : >> { %6673 = vmatpush1.msra.mxu0 %v6610_v38  ;;  %v15950_v38 = vld [vmem:[%s15515_s0 + $0xa8] sm:$0xff] }
 0xec5   : >> { %6674 = vmatprep.subr.mxu0 %v12891_v29  ;;  %7495 = vrot.lane.b32.xlu0 %v15627_v57, %s17531_s24 }
 0xec6   : >> { %7217 = vrot.lane.b32.xlu1 %v15531_v2, %s12895_s3  ;;  %6675 = vmatpush1.msra.mxu0 %v6608_v34 }
 0xec7   : >> { %6676 = vmatprep.subr.mxu0 %v12891_v29  ;;  %v6604_v47 = vpop.permute.xlu0 %6603  ;;  %v6602_v50 = vpop.permute.xlu1 %6601 }
 0xec8   : >> { %6677 = vmatpush1.msra.mxu0 %v6606_v39 }
 0xec9   : >> { %6678 = vmatprep.subr.mxu0 %v12891_v29  ;;  %7493 = vrot.lane.b32.xlu0 %v15643_v60, %s17531_s24 }
 0xeca   : >> { %7215 = vrot.lane.b32.xlu1 %v15541_v17, %s12895_s3  ;;  %6679 = vmatpush1.msra.mxu0 %v6604_v47  ;;  %v15954_v47 = vld [vmem:[%s15515_s0 + $0xa0] sm:$0xff] }
 0xecb   : >> { %6680 = vmatprep.subr.mxu0 %v12891_v29  ;;  %v6600_v40 = vpop.permute.xlu0 %6599  ;;  %v6598_v54 = vpop.permute.xlu1 %6597 }
 0xecc   : >> { %6681 = vmatpush1.msra.mxu0 %v6602_v50 }
 0xecd   : >> { %6682 = vmatprep.subr.mxu0 %v12891_v29  ;;  %7491 = vrot.lane.b32.xlu0 %v15646_v41, %s17531_s24 }
 0xece   : >> { %7213 = vrot.lane.b32.xlu1 %v15544_v7, %s12895_s3  ;;  %6683 = vmatpush1.msra.mxu0 %v6600_v40 }
 0xecf   : >> { %6684 = vmatprep.subr.mxu0 %v12891_v29  ;;  %v6596_v62 = vpop.permute.xlu0 %6595  ;;  %v6594_v63 = vpop.permute.xlu1 %6593 }
 0xed0   : >> { %6685 = vmatpush1.msra.mxu0 %v6598_v54 }
 0xed1   : >> { %6686 = vmatprep.subr.mxu0 %v12891_v29  ;;  %7489 = vrot.lane.b32.xlu0 %v15518_v31, %s17531_s24 }
 0xed2   : >> { %7211 = vrot.lane.b32.xlu1 %v15554_v42, %s12895_s3  ;;  %6687 = vmatpush1.msra.mxu0 %v6596_v62 }
 0xed3   : >> { %6688 = vmatprep.subr.mxu0 %v12891_v29  ;;  %v6592_v1 = vpop.permute.xlu0 %6591  ;;  %v6590_v12 = vpop.permute.xlu1 %6589 }
 0xed4   : >> { %6689 = vmatpush1.msra.mxu0 %v6594_v63 }
 0xed5   : >> { %6690 = vmatprep.subr.mxu0 %v12891_v29  ;;  %7487 = vrot.lane.b32.xlu0 %v15528_v16, %s17531_s24 }
 0xed6   : >> { %7209 = vrot.lane.b32.xlu1 %v15557_v44, %s12895_s3  ;;  %6691 = vmatpush1.msra.mxu0 %v6592_v1 }
 0xed7   : >> { %6692 = vmatprep.subr.mxu0 %v12891_v29  ;;  %v6628_v10 = vpop.permute.xlu0 %6627  ;;  %v6626_v13 = vpop.permute.xlu1 %6625 }
 0xed8   : >> { %6693 = vmatpush1.msra.mxu0 %v6590_v12 }
 0xed9   : >> { %7485 = vrot.lane.b32.xlu0 %v15521_v11, %s17531_s24  ;;  %6718 = vmatprep.subr.mxu0 %v12891_v29 }
 0xeda   : >> { %7207 = vrot.lane.b32.xlu1 %v15567_v45, %s12895_s3  ;;  %6719 = vmatpush2.msra.mxu0 %v6628_v10 }
 0xedb   : >> { %v6624_v18 = vpop.permute.xlu0 %6623  ;;  %6720 = vmatprep.subr.mxu0 %v12891_v29  ;;  %v6622_v19 = vpop.permute.xlu1 %6621 }
 0xedc   : >> { %6721 = vmatpush2.msra.mxu0 %v6626_v13 }
 0xedd   : >> { %7483 = vrot.lane.b32.xlu0 %v15531_v2, %s17531_s24  ;;  %6722 = vmatprep.subr.mxu0 %v12891_v29 }
 0xede   : >> { %7205 = vrot.lane.b32.xlu1 %v15570_v33, %s12895_s3  ;;  %6723 = vmatpush2.msra.mxu0 %v6624_v18 }
 0xedf   : >> { %v6884_v20 = vpop.permute.xlu0 %6883  ;;  %6724 = vmatprep.subr.mxu0 %v12891_v29  ;;  %v6882_v21 = vpop.permute.xlu1 %6881 }
 0xee0   : >> { %6725 = vmatpush2.msra.mxu0 %v6622_v19 }
 0xee1   : >> { %7481 = vrot.lane.b32.xlu0 %v15541_v17, %s17531_s24  ;;  %6925 = vmatprep.subr.mxu0 %v12891_v29 }
 0xee2   : >> { %7203 = vrot.lane.b32.xlu1 %v15580_v46, %s12895_s3  ;;  %6727 = vmatmul.mubr.f32.vlgmr.msra.gmra.mxu0 %v15834_v22 }
 0xee3   : >> { %6926 = vmatpush1.msra.mxu0 %v6884_v20  ;;  %v7054_v24 = vpop.permute.xlu0 %7053  ;;  %v6880_v35 = vpop.permute.xlu1 %6879  ;;  %10581 = vmatprep.mubr.msk.f32.mxu0 %vm6649_vm14, %v15839_v23 }
 0xee4   : >> { %6927 = vmatprep.subr.mxu0 %v12891_v29  ;;  %7096 = vmatpush1.msra.mxu1 %v7054_v24 }
 0xee5   : >> { %6928 = vmatpush1.msra.mxu0 %v6882_v21  ;;  %7479 = vrot.lane.b32.xlu0 %v15544_v7, %s17531_s24 }
 0xee6   : >> { %7201 = vrot.lane.b32.xlu1 %v15583_v48, %s12895_s3  ;;  %6929 = vmatprep.subr.mxu0 %v12891_v29 }
 0xee7   : >> { %6930 = vmatpush1.msra.mxu0 %v6880_v35  ;;  %v7052_v36 = vpop.permute.xlu0 %7051  ;;  %v6878_v4 = vpop.permute.xlu1 %6877  ;;  %7097 = vmatprep.subr.mxu1 %v12891_v29 }
 0xee8   : >> { %7098 = vmatpush1.msra.mxu1 %v7052_v36  ;;  %6931 = vmatprep.subr.mxu0 %v12891_v29 }
 0xee9   : >> { %7477 = vrot.lane.b32.xlu0 %v15554_v42, %s17531_s24  ;;  %6932 = vmatpush1.msra.mxu0 %v6878_v4  ;;  %v16007_v4 = vld [vmem:[%s17530_s28 + $0x80] sm:$0xff] }
 0xeea   : >> { %7199 = vrot.lane.b32.xlu1 %v15593_v49, %s12895_s3  ;;  %7099 = vmatprep.subr.mxu1 %v12891_v29 }
 0xeeb   : >> { %v7050_v27 = vpop.permute.xlu0 %7049  ;;  %v6876_v14 = vpop.permute.xlu1 %6875  ;;  %6933 = vmatprep.subr.mxu0 %v12891_v29  ;;  %6732 = vmatmul.mubr.f32.gmra.mxu0 %v15860_v9 }
 0xeec   : >> { %7100 = vmatpush1.msra.mxu1 %v7050_v27  ;;  %6934 = vmatpush1.msra.mxu0 %v6876_v14 }
 0xeed   : >> { %7475 = vrot.lane.b32.xlu0 %v15557_v44, %s17531_s24  ;;  %7101 = vmatprep.subr.mxu1 %v12891_v29 }
 0xeee   : >> { %7197 = vrot.lane.b32.xlu1 %v15596_v52, %s12895_s3  ;;  %6935 = vmatprep.subr.mxu0 %v12891_v29 }
 0xeef   : >> { %v7048_v49 = vpop.permute.xlu0 %7047  ;;  %v6874_v58 = vpop.permute.xlu1 %6873  ;;  %10582 = vmatprep.mubr.msk.f32.mxu0 %vm6649_vm14, %v15872_v28 }
 0xef0   : >> { %7102 = vmatpush1.msra.mxu1 %v7048_v49  ;;  %6936 = vmatpush1.msra.mxu0 %v6874_v58  ;;  %v16043_v58 = vld [vmem:[%s17530_s28 + $0x90] sm:$0xff] }
 0xef1   : >> { %7473 = vrot.lane.b32.xlu0 %v15567_v45, %s17531_s24  ;;  %7103 = vmatprep.subr.mxu1 %v12891_v29 }
 0xef2   : >> { %7195 = vrot.lane.b32.xlu1 %v15606_v53, %s12895_s3  ;;  %6937 = vmatprep.subr.mxu0 %v12891_v29 }
 0xef3   : >> { %v7046_v52 = vpop.permute.xlu0 %7045  ;;  %v6872_v59 = vpop.permute.xlu1 %6871  ;;  %6737 = vmatmul.mubr.f32.gmra.mxu0 %v15885_v43 }
 0xef4   : >> { %7104 = vmatpush1.msra.mxu1 %v7046_v52  ;;  %6938 = vmatpush1.msra.mxu0 %v6872_v59  ;;  %v16053_v52 = vld [vmem:[%s17530_s28 + $0xa8] sm:$0xff] }
 0xef5   : >> { %7471 = vrot.lane.b32.xlu0 %v15570_v33, %s17531_s24  ;;  %7105 = vmatprep.subr.mxu1 %v12891_v29 }
 0xef6   : >> { %7193 = vrot.lane.b32.xlu1 %v15609_v55, %s12895_s3  ;;  %6939 = vmatprep.subr.mxu0 %v12891_v29 }
 0xef7   : >> { %v7044_v53 = vpop.permute.xlu0 %7043  ;;  %v6870_v25 = vpop.permute.xlu1 %6869  ;;  %10583 = vmatprep.mubr.msk.f32.mxu0 %vm6649_vm14, %v15897_v8 }
 0xef8   : >> { %7106 = vmatpush1.msra.mxu1 %v7044_v53  ;;  %6940 = vmatpush1.msra.mxu0 %v6870_v25  ;;  %v16064_v25 = vld [vmem:[%s17530_s28 + $0xa0] sm:$0xff] }
 0xef9   : >> { %7469 = vrot.lane.b32.xlu0 %v15580_v46, %s17531_s24  ;;  %7107 = vmatprep.subr.mxu1 %v12891_v29 }
 0xefa   : >> { %7231 = vrot.lane.b32.xlu1 %v15624_v56, %s12895_s3  ;;  %6941 = vmatprep.subr.mxu0 %v12891_v29 }
 0xefb   : >> { %v7042_v55 = vpop.permute.xlu0 %7041  ;;  %v6868_v26 = vpop.permute.xlu1 %6867  ;;  %6742 = vmatmul.mubr.f32.gmra.mxu0 %v15910_v5 }
 0xefc   : >> { %7108 = vmatpush1.msra.mxu1 %v7042_v55  ;;  %6942 = vmatpush1.msra.mxu0 %v6868_v26  ;;  %v16071_v55 = vld [vmem:[%s17530_s28 + $0xb8] sm:$0xff] }
 0xefd   : >> { %7467 = vrot.lane.b32.xlu0 %v15583_v48, %s17531_s24  ;;  %7109 = vmatprep.subr.mxu1 %v12891_v29 }
 0xefe   : >> { %7229 = vrot.lane.b32.xlu1 %v15627_v57, %s12895_s3  ;;  %6943 = vmatprep.subr.mxu0 %v12891_v29 }
 0xeff   : >> { %v7040_v6 = vpop.permute.xlu0 %7039  ;;  %v6866_v15 = vpop.permute.xlu1 %6865  ;;  %10596 = vmatprep.mubr.msk.f32.mxu0 %vm6649_vm14, %v15922_v3 }
 0xf00   : >> { %7110 = vmatpush1.msra.mxu1 %v7040_v6  ;;  %6944 = vmatpush1.msra.mxu0 %v6866_v15  ;;  %v16083_v15 = vld [vmem:[%s17530_s28 + $0xd0] sm:$0xff] }
 0xf01   : >> { %7505 = vrot.lane.b32.xlu0 %v15930_v61, %s17531_s24  ;;  %7111 = vmatprep.subr.mxu1 %v12891_v29 }
 0xf02   : >> { %7227 = vrot.lane.b32.xlu1 %v15643_v60, %s12895_s3  ;;  %6945 = vmatprep.subr.mxu0 %v12891_v29 }
 0xf03   : >> { %v7038_v32 = vpop.permute.xlu0 %7037  ;;  %v6864_v37 = vpop.permute.xlu1 %6863 }
 0xf04   : >> { %7112 = vmatpush1.msra.mxu1 %v7038_v32  ;;  %6946 = vmatpush1.msra.mxu0 %v6864_v37  ;;  %v16090_v32 = vld [vmem:[%s17530_s28 + $0xb0] sm:$0xff] }
 0xf05   : >> { %7503 = vrot.lane.b32.xlu0 %v15941_v30, %s17531_s24  ;;  %7113 = vmatprep.subr.mxu1 %v12891_v29 }
 0xf06   : >> { %7225 = vrot.lane.b32.xlu1 %v15646_v41, %s12895_s3  ;;  %6947 = vmatprep.subr.mxu0 %v12891_v29 }
 0xf07   : >> { %v7036_v34 = vpop.permute.xlu0 %7035  ;;  %v6862_v39 = vpop.permute.xlu1 %6861 }
 0xf08   : >> { %7114 = vmatpush1.msra.mxu1 %v7036_v34  ;;  %6948 = vmatpush1.msra.mxu0 %v6862_v39  ;;  %v16108_v39 = vld [vmem:[%s17530_s28 + $0x108] sm:$0xff] }
 0xf09   : >> { %7501 = vrot.lane.b32.xlu0 %v15950_v38, %s17531_s24  ;;  %7115 = vmatprep.subr.mxu1 %v12891_v29 }
 0xf0a   : >> { %7499 = vrot.lane.b32.xlu1 %v15954_v47, %s17531_s24  ;;  %6949 = vmatprep.subr.mxu0 %v12891_v29  ;;  %s12897_s24 = smov 1  }
 0xf0b   : >> { %v7034_v50 = vpop.permute.xlu0 %7033  ;;  %v6860_v40 = vpop.permute.xlu1 %6859 }
 0xf0c   : >> { %7116 = vmatpush1.msra.mxu1 %v7034_v50  ;;  %6950 = vmatpush1.msra.mxu0 %v6860_v40 }
 0xf0d   : >> { %7727 = vrot.lane.b32.xlu0 %v15624_v56, %s12893_s25  ;;  %7117 = vmatprep.subr.mxu1 %v12891_v29 }
 0xf0e   : >> { %7725 = vrot.lane.b32.xlu1 %v15627_v57, %s12893_s25  ;;  %6951 = vmatprep.subr.mxu0 %v12891_v29 }
 0xf0f   : >> { %v7032_v54 = vpop.permute.xlu0 %7031  ;;  %v6858_v62 = vpop.permute.xlu1 %6857 }
 0xf10   : >> { %7118 = vmatpush1.msra.mxu1 %v7032_v54  ;;  %6952 = vmatpush1.msra.mxu0 %v6858_v62  ;;  %v16128_v54 = vld [vmem:[%s17530_s28 + $0xf8] sm:$0xff] }
 0xf11   : >> { %7723 = vrot.lane.b32.xlu0 %v15643_v60, %s12893_s25  ;;  %7119 = vmatprep.subr.mxu1 %v12891_v29 }
 0xf12   : >> { %7721 = vrot.lane.b32.xlu1 %v15646_v41, %s12893_s25  ;;  %6953 = vmatprep.subr.mxu0 %v12891_v29 }
 0xf13   : >> { %v7030_v63 = vpop.permute.xlu0 %7029  ;;  %v6856_v1 = vpop.permute.xlu1 %6855 }
 0xf14   : >> { %7120 = vmatpush1.msra.mxu1 %v7030_v63  ;;  %6954 = vmatpush1.msra.mxu0 %v6856_v1 }
 0xf15   : >> { %7719 = vrot.lane.b32.xlu0 %v15518_v31, %s12893_s25  ;;  %7121 = vmatprep.subr.mxu1 %v12891_v29 }
 0xf16   : >> { %7717 = vrot.lane.b32.xlu1 %v15528_v16, %s12893_s25  ;;  %6955 = vmatprep.subr.mxu0 %v12891_v29 }
 0xf17   : >> { %v7028_v12 = vpop.permute.xlu0 %7027  ;;  %v6854_v10 = vpop.permute.xlu1 %6853 }
 0xf18   : >> { %7122 = vmatpush1.msra.mxu1 %v7028_v12  ;;  %6956 = vmatpush1.msra.mxu0 %v6854_v10  ;;  %v12896_v10 = vmov 0  }
 0xf19   : >> { %7715 = vrot.lane.b32.xlu0 %v15521_v11, %s12893_s25  ;;  %7123 = vmatprep.subr.mxu1 %v12891_v29 }
 0xf1a   : >> { %7713 = vrot.lane.b32.xlu1 %v15531_v2, %s12893_s25  ;;  %6981 = vmatprep.subr.mxu0 %v12891_v29 }
 0xf1b   : >> { %v7026_v13 = vpop.permute.xlu0 %7025  ;;  %v6892_v18 = vpop.permute.xlu1 %6891  ;;  %12766 = vset.pattern.permute.xlu1 %v12896_v10  ;;  %12765 = vset.pattern.permute.xlu0 %v12896_v10 }
 0xf1c   : >> { %7124 = vmatpush1.msra.mxu1 %v7026_v13  ;;  %6982 = vmatpush2.msra.mxu0 %v6892_v18 }
 0xf1d   : >> { %7711 = vrot.lane.b32.xlu0 %v15541_v17, %s12893_s25  ;;  %7125 = vmatprep.subr.mxu1 %v12891_v29 }
 0xf1e   : >> { %7709 = vrot.lane.b32.xlu1 %v15544_v7, %s12893_s25  ;;  %6983 = vmatprep.subr.mxu0 %v12891_v29 }
 0xf1f   : >> { %v7024_v19 = vpop.permute.xlu0 %7023  ;;  %v6890_v20 = vpop.permute.xlu1 %6889 }
 0xf20   : >> { %7126 = vmatpush1.msra.mxu1 %v7024_v19  ;;  %6984 = vmatpush2.msra.mxu0 %v6890_v20  ;;  %v16182_v20 = vld [vmem:[%s15515_s0 + $0x50] sm:$0xff] }
 0xf21   : >> { %7707 = vrot.lane.b32.xlu0 %v15554_v42, %s12893_s25  ;;  %7151 = vmatprep.subr.mxu1 %v12891_v29 }
 0xf22   : >> { %7705 = vrot.lane.b32.xlu1 %v15557_v44, %s12893_s25  ;;  %6985 = vmatprep.subr.mxu0 %v12891_v29 }
 0xf23   : >> { %v7062_v21 = vpop.permute.xlu0 %7061  ;;  %v6888_v24 = vpop.permute.xlu1 %6887 }
 0xf24   : >> { %7152 = vmatpush2.msra.mxu1 %v7062_v21  ;;  %6986 = vmatpush2.msra.mxu0 %v6888_v24  ;;  %v16191_v21 = vld [vmem:[%s15515_s0 + $0x48] sm:$0xff]  ;;  %v16196_v24 = vld [vmem:[%s15515_s0 + $0x38] sm:$0xff] }
 0xf25   : >> { %7703 = vrot.lane.b32.xlu0 %v15567_v45, %s12893_s25  ;;  %7153 = vmatprep.subr.mxu1 %v12891_v29  ;;  %v16015_v45 = vld [vmem:[%s17530_s28 + $0x98] sm:$0xff] }
 0xf26   : >> { %7701 = vrot.lane.b32.xlu1 %v15570_v33, %s12893_s25  ;;  %6987 = vmatprep.subr.mxu0 %v12891_v29 }
 0xf27   : >> { %v7060_v35 = vpop.permute.xlu0 %7059  ;;  %v6886_v36 = vpop.permute.xlu1 %6885 }
 0xf28   : >> { %7154 = vmatpush2.msra.mxu1 %v7060_v35  ;;  %6988 = vmatpush2.msra.mxu0 %v6886_v36  ;;  %v16203_v36 = vld [vmem:[%s15515_s0 + $0x40] sm:$0xff] }
 0xf29   : >> { %7699 = vrot.lane.b32.xlu0 %v15580_v46, %s12893_s25  ;;  %7155 = vmatprep.subr.mxu1 %v12891_v29  ;;  %v16024_v46 = vld [vmem:[%s17530_s28 + $0xc0] sm:$0xff] }
 0xf2a   : >> { %7697 = vrot.lane.b32.xlu1 %v15583_v48, %s12893_s25  ;;  %7265 = vmatprep.subr.mxu0 %v12891_v29  ;;  %v16034_v48 = vld [vmem:[%s17530_s28 + $0xd8] sm:$0xff] }
 0xf2b   : >> { %v7058_v33 = vpop.permute.xlu0 %7057  ;;  %v7056_v27 = vpop.permute.xlu1 %7055  ;;  %6990 = vmatmul.mubr.f32.vlgmr.msra.gmra.mxu0 %v16007_v4 }
 0xf2c   : >> { %7156 = vmatpush2.msra.mxu1 %v7058_v33  ;;  %10597 = vmatprep.mubr.msk.f32.mxu0 %vm6649_vm14, %v16015_v45  ;;  %v16208_v33 = vld [vmem:[%s15515_s0 + $0x30] sm:$0xff] }
 0xf2d   : >> { %7735 = vrot.lane.b32.xlu0 %v15930_v61, %s12893_s25  ;;  %7157 = vmatprep.subr.mxu1 %v12891_v29 }
 0xf2e   : >> { %7733 = vrot.lane.b32.xlu1 %v15941_v30, %s12893_s25  ;;  %7158 = vmatpush2.msra.mxu1 %v7056_v27 }
 0xf2f   : >> { %v7224_v14 = vpop.permute.xlu0 %7223  ;;  %7527 = vmatprep.subr.mxu1 %v12891_v29  ;;  %7160 = vmatmul.mubr.f32.vlgmr.msra.gmra.mxu1 %v16024_v46 }
 0xf30   : >> { %v7222_v49 = vpop.permute.xlu1 %7221  ;;  %7266 = vmatpush1.msra.mxu0 %v7224_v14  ;;  %10609 = vmatprep.mubr.msk.f32.mxu1 %vm6649_vm14, %v16034_v48 }
 0xf31   : >> { %7731 = vrot.lane.b32.xlu0 %v15950_v38, %s12893_s25  ;;  %7267 = vmatprep.subr.mxu0 %v12891_v29 }
 0xf32   : >> { %7729 = vrot.lane.b32.xlu1 %v15954_v47, %s12893_s25  ;;  %7268 = vmatpush1.msra.mxu0 %v7222_v49  ;;  %v16217_v49 = vld [vmem:[%s15515_s0 + $0x28] sm:$0xff] }
 0xf33   : >> { %v7498_v59 = vpop.permute.xlu0 %7497  ;;  %7269 = vmatprep.subr.mxu0 %v12891_v29  ;;  %6995 = vmatmul.mubr.f32.gmra.mxu0 %v16043_v58 }
 0xf34   : >> { %v7220_v53 = vpop.permute.xlu1 %7219  ;;  %7528 = vmatpush1.msra.mxu1 %v7498_v59  ;;  %10598 = vmatprep.mubr.msk.f32.mxu0 %vm6649_vm14, %v16053_v52 }
 0xf35   : >> { %7876 = vrot.lane.b32.xlu0 %v15624_v56, %s12894_s7  ;;  %7270 = vmatpush1.msra.mxu0 %v7220_v53 }
 0xf36   : >> { %7874 = vrot.lane.b32.xlu1 %v15627_v57, %s12894_s7  ;;  %7529 = vmatprep.subr.mxu1 %v12891_v29 }
 0xf37   : >> { %v7496_v26 = vpop.permute.xlu0 %7495  ;;  %7271 = vmatprep.subr.mxu0 %v12891_v29  ;;  %7000 = vmatmul.mubr.f32.gmra.mxu0 %v16064_v25 }
 0xf38   : >> { %v7218_v6 = vpop.permute.xlu1 %7217  ;;  %7530 = vmatpush1.msra.mxu1 %v7496_v26  ;;  %10599 = vmatprep.mubr.msk.f32.mxu0 %vm6649_vm14, %v16071_v55  ;;  %v16226_v26 = vld [vmem:[%s15515_s0 + $0x20] sm:$0xff] }
 0xf39   : >> { %8025 = vrot.lane.b32.xlu0 %v15624_v56, %s12895_s3  ;;  %7272 = vmatpush1.msra.mxu0 %v7218_v6  ;;  %v16101_v56 = vld [vmem:[%s17530_s28 + $0xe8] sm:$0xff] }
 0xf3a   : >> { %7872 = vrot.lane.b32.xlu1 %v15643_v60, %s12894_s7  ;;  %7531 = vmatprep.subr.mxu1 %v12891_v29 }
 0xf3b   : >> { %v7494_v37 = vpop.permute.xlu0 %7493  ;;  %7273 = vmatprep.subr.mxu0 %v12891_v29  ;;  %7165 = vmatmul.mubr.f32.gmra.mxu1 %v16083_v15 }
 0xf3c   : >> { %v7216_v34 = vpop.permute.xlu1 %7215  ;;  %7532 = vmatpush1.msra.mxu1 %v7494_v37  ;;  %7005 = vmatmul.mubr.f32.gmra.mxu0 %v16090_v32 }
 0xf3d   : >> { %8023 = vrot.lane.b32.xlu0 %v15627_v57, %s12895_s3  ;;  %7274 = vmatpush1.msra.mxu0 %v7216_v34  ;;  %v16119_v57 = vld [vmem:[%s17530_s28 + $0xe0] sm:$0xff] }
 0xf3e   : >> { %7870 = vrot.lane.b32.xlu1 %v15646_v41, %s12894_s7  ;;  %7533 = vmatprep.subr.mxu1 %v12891_v29 }
 0xf3f   : >> { %v7492_v50 = vpop.permute.xlu0 %7491  ;;  %7275 = vmatprep.subr.mxu0 %v12891_v29  ;;  %10610 = vmatprep.mubr.msk.f32.mxu1 %vm6649_vm14, %v16101_v56 }
 0xf40   : >> { %v7214_v40 = vpop.permute.xlu1 %7213  ;;  %7534 = vmatpush1.msra.mxu1 %v7492_v50  ;;  %10620 = vmatprep.mubr.msk.f32.mxu0 %vm6649_vm14, %v16108_v39 }
 0xf41   : >> { %8021 = vrot.lane.b32.xlu0 %v15643_v60, %s12895_s3  ;;  %7276 = vmatpush1.msra.mxu0 %v7214_v40  ;;  %v16140_v60 = vld [vmem:[%s17530_s28 + $0xf0] sm:$0xff] }
 0xf42   : >> { %7868 = vrot.lane.b32.xlu1 %v15518_v31, %s12894_s7  ;;  %7535 = vmatprep.subr.mxu1 %v12891_v29 }
 0xf43   : >> { %v7490_v62 = vpop.permute.xlu0 %7489  ;;  %7277 = vmatprep.subr.mxu0 %v12891_v29  ;;  %7170 = vmatmul.mubr.f32.gmra.mxu1 %v16119_v57 }
 0xf44   : >> { %v7212_v63 = vpop.permute.xlu1 %7211  ;;  %7536 = vmatpush1.msra.mxu1 %v7490_v62  ;;  %10611 = vmatprep.mubr.msk.f32.mxu1 %vm6649_vm14, %v16128_v54  ;;  %v16247_v62 = vld [vmem:[%s17530_s28 + $0x100] sm:$0xff] }
 0xf45   : >> { %8019 = vrot.lane.b32.xlu0 %v15646_v41, %s12895_s3  ;;  %7278 = vmatpush1.msra.mxu0 %v7212_v63 }
 0xf46   : >> { %7866 = vrot.lane.b32.xlu1 %v15528_v16, %s12894_s7  ;;  %7537 = vmatprep.subr.mxu1 %v12891_v29 }
 0xf47   : >> { %v7488_v1 = vpop.permute.xlu0 %7487  ;;  %7279 = vmatprep.subr.mxu0 %v12891_v29  ;;  %7175 = vmatmul.mubr.f32.gmra.mxu1 %v16140_v60 }
 0xf48   : >> { %v7210_v12 = vpop.permute.xlu1 %7209  ;;  %7538 = vmatpush1.msra.mxu1 %v7488_v1  ;;  %10650 = vmatprep.mubr.msk.f32.mxu1 %vm6649_vm14, %v15617_v51  ;;  %v16252_v1 = vld [vmem:[%s17530_s28 + $0x118] sm:$0xff] }
 0xf49   : >> { %8017 = vrot.lane.b32.xlu0 %v15518_v31, %s12895_s3  ;;  %7280 = vmatpush1.msra.mxu0 %v7210_v12 }
 0xf4a   : >> { %7864 = vrot.lane.b32.xlu1 %v15521_v11, %s12894_s7  ;;  %7539 = vmatprep.subr.mxu1 %v12891_v29 }
 0xf4b   : >> { %v7486_v41 = vpop.permute.xlu0 %7485  ;;  %7281 = vmatprep.subr.mxu0 %v12891_v29 }
 0xf4c   : >> { %v7208_v13 = vpop.permute.xlu1 %7207  ;;  %7540 = vmatpush1.msra.mxu1 %v7486_v41  ;;  %v16265_v41 = vld [vmem:[%s17530_s28 + $0x110] sm:$0xff] }
 0xf4d   : >> { %8015 = vrot.lane.b32.xlu0 %v15528_v16, %s12895_s3  ;;  %7282 = vmatpush1.msra.mxu0 %v7208_v13  ;;  %v16271_v13 = vld [vmem:[%s17530_s28 + $0x128] sm:$0xff] }
 0xf4e   : >> { %7862 = vrot.lane.b32.xlu1 %v15531_v2, %s12894_s7  ;;  %7541 = vmatprep.subr.mxu1 %v12891_v29 }
 0xf4f   : >> { %v7484_v31 = vpop.permute.xlu0 %7483  ;;  %7283 = vmatprep.subr.mxu0 %v12891_v29 }
 0xf50   : >> { %v7206_v51 = vpop.permute.xlu1 %7205  ;;  %7542 = vmatpush1.msra.mxu1 %v7484_v31 }
 0xf51   : >> { %8013 = vrot.lane.b32.xlu0 %v15521_v11, %s12895_s3  ;;  %7284 = vmatpush1.msra.mxu0 %v7206_v51  ;;  %v16284_v51 = vld [vmem:[%s17530_s28 + $0x120] sm:$0xff] }
 0xf52   : >> { %7860 = vrot.lane.b32.xlu1 %v15541_v17, %s12894_s7  ;;  %7543 = vmatprep.subr.mxu1 %v12891_v29 }
 0xf53   : >> { %v7482_v16 = vpop.permute.xlu0 %7481  ;;  %7285 = vmatprep.subr.mxu0 %v12891_v29 }
 0xf54   : >> { %v7204_v18 = vpop.permute.xlu1 %7203  ;;  %7544 = vmatpush1.msra.mxu1 %v7482_v16 }
 0xf55   : >> { %8011 = vrot.lane.b32.xlu0 %v15531_v2, %s12895_s3  ;;  %7286 = vmatpush1.msra.mxu0 %v7204_v18  ;;  %v12774_v18 = vld [vmem:[%s15515_s0 + $0x98] sm:$0xff] }
 0xf56   : >> { %7858 = vrot.lane.b32.xlu1 %v15544_v7, %s12894_s7  ;;  %7545 = vmatprep.subr.mxu1 %v12891_v29 }
 0xf57   : >> { %v7480_v11 = vpop.permute.xlu0 %7479  ;;  %7287 = vmatprep.subr.mxu0 %v12891_v29 }
 0xf58   : >> { %v7202_v19 = vpop.permute.xlu1 %7201  ;;  %7546 = vmatpush1.msra.mxu1 %v7480_v11 }
 0xf59   : >> { %8009 = vrot.lane.b32.xlu0 %v15541_v17, %s12895_s3  ;;  %7288 = vmatpush1.msra.mxu0 %v7202_v19  ;;  %v16297_v19 = vld [vmem:[%s17530_s28 + $0x138] sm:$0xff] }
 0xf5a   : >> { %7856 = vrot.lane.b32.xlu1 %v15554_v42, %s12894_s7  ;;  %7547 = vmatprep.subr.mxu1 %v12891_v29 }
 0xf5b   : >> { %v7478_v2 = vpop.permute.xlu0 %7477  ;;  %7289 = vmatprep.subr.mxu0 %v12891_v29 }
 0xf5c   : >> { %v7200_v7 = vpop.permute.xlu1 %7199  ;;  %7548 = vmatpush1.msra.mxu1 %v7478_v2 }
 0xf5d   : >> { %8007 = vrot.lane.b32.xlu0 %v16182_v20, %s12895_s3  ;;  %7290 = vmatpush1.msra.mxu0 %v7200_v7  ;;  %v16306_v7 = vld [vmem:[%s17530_s28 + $0x130] sm:$0xff] }
 0xf5e   : >> { %7854 = vrot.lane.b32.xlu1 %v15557_v44, %s12894_s7  ;;  %7549 = vmatprep.subr.mxu1 %v12891_v29 }
 0xf5f   : >> { %v7476_v17 = vpop.permute.xlu0 %7475  ;;  %7291 = vmatprep.subr.mxu0 %v12891_v29 }
 0xf60   : >> { %v7198_v42 = vpop.permute.xlu1 %7197  ;;  %7550 = vmatpush1.msra.mxu1 %v7476_v17  ;;  %v16308_v17 = vpop.f32.mrf.mxu1 }
 0xf61   : >> { %8005 = vrot.lane.b32.xlu0 %v16191_v21, %s12895_s3  ;;  %7292 = vmatpush1.msra.mxu0 %v7198_v42  ;;  %v12776_v42 = vld [vmem:[%s15515_s0 + $0x88] sm:$0xff] }
 0xf62   : >> { %7852 = vrot.lane.b32.xlu1 %v16196_v24, %s12894_s7  ;;  %7551 = vmatprep.subr.mxu1 %v12891_v29 }
 0xf63   : >> { %v7474_v44 = vpop.permute.xlu0 %7473  ;;  %7293 = vmatprep.subr.mxu0 %v12891_v29 }
 0xf64   : >> { %v7196_v35 = vpop.permute.xlu1 %7195  ;;  %7552 = vmatpush1.msra.mxu1 %v7474_v44 }
 0xf65   : >> { %8003 = vrot.lane.b32.xlu0 %v16203_v36, %s12895_s3  ;;  %7294 = vmatpush1.msra.mxu0 %v7196_v35  ;;  %v6827_v35 = vpop.f32.mrf.mxu1 }
 0xf66   : >> { %7850 = vrot.lane.b32.xlu1 %v16208_v33, %s12894_s7  ;;  %7553 = vmatprep.subr.mxu1 %v12891_v29 }
 0xf67   : >> { %v7472_v27 = vpop.permute.xlu0 %7471  ;;  %7295 = vmatprep.subr.mxu0 %v12891_v29 }
 0xf68   : >> { %v7194_v14 = vpop.permute.xlu1 %7193  ;;  %7554 = vmatpush1.msra.mxu1 %v7472_v27 }
 0xf69   : >> { %8001 = vrot.lane.b32.xlu0 %v16196_v24, %s12895_s3  ;;  %7296 = vmatpush1.msra.mxu0 %v7194_v14  ;;  %v12777_v14 = vld [vmem:[%s15515_s0 + $0x80] sm:$0xff] }
 0xf6a   : >> { %7848 = vrot.lane.b32.xlu1 %v16217_v49, %s12894_s7  ;;  %7555 = vmatprep.subr.mxu1 %v12891_v29 }
 0xf6b   : >> { %v7470_v59 = vpop.permute.xlu0 %7469  ;;  %7321 = vmatprep.subr.mxu0 %v12891_v29 }
 0xf6c   : >> { %v7232_v53 = vpop.permute.xlu1 %7231  ;;  %7556 = vmatpush1.msra.mxu1 %v7470_v59  ;;  %v16318_v59 = vpop.f32.mrf.mxu1 }
 0xf6d   : >> { %7999 = vrot.lane.b32.xlu0 %v16208_v33, %s12895_s3  ;;  %7322 = vmatpush2.msra.mxu0 %v7232_v53  ;;  %v12778_v53 = vld [vmem:[%s15515_s0 + $0x78] sm:$0xff] }
 0xf6e   : >> { %7846 = vrot.lane.b32.xlu1 %v16226_v26, %s12894_s7  ;;  %7557 = vmatprep.subr.mxu1 %v12891_v29 }
 0xf6f   : >> { %v7468_v6 = vpop.permute.xlu0 %7467  ;;  %7323 = vmatprep.subr.mxu0 %v12891_v29 }
 0xf70   : >> { %v7230_v37 = vpop.permute.xlu1 %7229  ;;  %7558 = vmatpush1.msra.mxu1 %v7468_v6 }
 0xf71   : >> { %7997 = vrot.lane.b32.xlu0 %v16217_v49, %s12895_s3  ;;  %7324 = vmatpush2.msra.mxu0 %v7230_v37  ;;  %v6832_v37 = vpop.f32.mrf.mxu1 }
 0xf72   : >> { %7884 = vrot.lane.b32.xlu1 %v15930_v61, %s12894_s7  ;;  %7583 = vmatprep.subr.mxu1 %v12891_v29 }
 0xf73   : >> { %v7506_v34 = vpop.permute.xlu0 %7505  ;;  %7325 = vmatprep.subr.mxu0 %v12891_v29 }
 0xf74   : >> { %v7228_v50 = vpop.permute.xlu1 %7227  ;;  %7584 = vmatpush2.msra.mxu1 %v7506_v34 }
 0xf75   : >> { %7995 = vrot.lane.b32.xlu0 %v16226_v26, %s12895_s3  ;;  %7326 = vmatpush2.msra.mxu0 %v7228_v50  ;;  %v12779_v50 = vld [vmem:[%s15515_s0 + $0x70] sm:$0xff] }
 0xf76   : >> { %7882 = vrot.lane.b32.xlu1 %v15941_v30, %s12894_s7  ;;  %7327 = vmatprep.subr.mxu0 %v12891_v29 }
 0xf77   : >> { %v7504_v40 = vpop.permute.xlu0 %7503  ;;  %7585 = vmatprep.subr.mxu1 %v12891_v29 }
 0xf78   : >> { %v7226_v63 = vpop.permute.xlu1 %7225  ;;  %7586 = vmatpush2.msra.mxu1 %v7504_v40  ;;  %v16326_v40 = vpop.f32.mrf.mxu1 }
 0xf79   : >> { %7328 = vmatpush2.msra.mxu0 %v7226_v63  ;;  %8033 = vrot.lane.b32.xlu0 %v15930_v61, %s12895_s3  ;;  %v12780_v63 = vld [vmem:[%s15515_s0 + $0x68] sm:$0xff] }
 0xf7a   : >> { %7880 = vrot.lane.b32.xlu1 %v15950_v38, %s12894_s7  ;;  %7330 = vmatmul.mubr.f32.vlgmr.msra.gmra.mxu0 %v16247_v62 }
 0xf7b   : >> { %v7502_v12 = vpop.permute.xlu0 %7501  ;;  %7587 = vmatprep.subr.mxu1 %v12891_v29  ;;  %10621 = vmatprep.mubr.msk.f32.mxu0 %vm6649_vm14, %v16252_v1 }
 0xf7c   : >> { %v7500_v10 = vpop.permute.xlu1 %7499  ;;  %7588 = vmatpush2.msra.mxu1 %v7502_v12  ;;  %7612 = vmatprep.subr.mxu0 %v12891_v29 }
 0xf7d   : >> { %8031 = vrot.lane.b32.xlu0 %v15941_v30, %s12895_s3  ;;  %7589 = vmatprep.subr.mxu1 %v12891_v29 }
 0xf7e   : >> { %7878 = vrot.lane.b32.xlu1 %v15954_v47, %s12894_s7  ;;  %7335 = vmatmul.mubr.f32.gmra.mxu0 %v16265_v41 }
 0xf7f   : >> { %7590 = vmatpush2.msra.mxu1 %v7500_v10  ;;  %v7728_v31 = vpop.permute.xlu0 %7727  ;;  %10622 = vmatprep.mubr.msk.f32.mxu0 %vm6649_vm14, %v16271_v13  ;;  %v6837_v10 = vpop.f32.mrf.mxu1 }
 0xf80   : >> { %v7726_v16 = vpop.permute.xlu1 %7725  ;;  %7757 = vmatprep.subr.mxu1 %v12891_v29  ;;  %7592 = vmatmul.mubr.f32.vlgmr.msra.gmra.mxu1 %v15834_v22  ;;  %v12775_v22 = vld [vmem:[%s15515_s0 + $0x90] sm:$0xff]  ;;  %v12785_v10 = vld [vmem:[%s17530_s28 + $0x18] sm:$0xff] }
 0xf81   : >> { %7613 = vmatpush1.msra.mxu0 %v12774_v18  ;;  %7758 = vmatpush1.msra.mxu1 %v7728_v31  ;;  %v16334_v18 = vpop.f32.mrf.mxu1 }
 0xf82   : >> { %8029 = vrot.lane.b32.xlu0 %v15950_v38, %s12895_s3  ;;  %7340 = vmatmul.mubr.f32.gmra.mxu0 %v16284_v51 }
 0xf83   : >> { %7614 = vmatprep.subr.mxu0 %v12891_v29  ;;  %7759 = vmatprep.subr.mxu1 %v12891_v29  ;;  %v7724_v11 = vpop.permute.xlu0 %7723 }
 0xf84   : >> { %7615 = vmatpush1.msra.mxu0 %v12775_v22  ;;  %7760 = vmatpush1.msra.mxu1 %v7726_v16  ;;  %v7722_v2 = vpop.permute.xlu1 %7721  ;;  %v12781_v16 = vld [vmem:[%s15515_s0 + $0x60] sm:$0xff] }
 0xf85   : >> { %8027 = vrot.lane.b32.xlu1 %v15954_v47, %s12895_s3  ;;  %7616 = vmatprep.subr.mxu0 %v12891_v29 }
 0xf86   : >> { %7761 = vmatprep.subr.mxu1 %v12891_v29  ;;  %10623 = vmatprep.mubr.msk.f32.mxu0 %vm6649_vm14, %v16297_v19 }
 0xf87   : >> { %7617 = vmatpush1.msra.mxu0 %v12776_v42  ;;  %7762 = vmatpush1.msra.mxu1 %v7724_v11  ;;  %v7720_v44 = vpop.permute.xlu0 %7719  ;;  %v12782_v11 = vld [vmem:[%s15515_s0 + $0x58] sm:$0xff]  ;;  %s16555_s0 = smov (%p6526_p9), 0  }
 0xf88   : >> { %7345 = vmatmul.mubr.f32.gmra.mxu0 %v16306_v7  ;;  %7618 = vmatprep.subr.mxu0 %v12891_v29  ;;  %v7718_v27 = vpop.permute.xlu1 %7717 }
 0xf89   : >> { %7763 = vmatprep.subr.mxu1 %v12891_v29  ;;  %7619 = vmatpush1.msra.mxu0 %v12777_v14 }
 0xf8a   : >> { %7764 = vmatpush1.msra.mxu1 %v7722_v2  ;;  %7620 = vmatprep.subr.mxu0 %v12891_v29  ;;  %v6842_v2 = vpop.f32.mrf.mxu1 }
 0xf8b   : >> { %7765 = vmatprep.subr.mxu1 %v12891_v29  ;;  %7621 = vmatpush1.msra.mxu0 %v12778_v53  ;;  %v7716_v6 = vpop.permute.xlu0 %7715 }
 0xf8c   : >> { %7766 = vmatpush1.msra.mxu1 %v7720_v44  ;;  %7622 = vmatprep.subr.mxu0 %v12891_v29  ;;  %v7714_v34 = vpop.permute.xlu1 %7713 }
 0xf8d   : >> { %7767 = vmatprep.subr.mxu1 %v12891_v29  ;;  %7623 = vmatpush1.msra.mxu0 %v12779_v50 }
 0xf8e   : >> { %7768 = vmatpush1.msra.mxu1 %v7718_v27  ;;  %7624 = vmatprep.subr.mxu0 %v12891_v29 }
 0xf8f   : >> { %7769 = vmatprep.subr.mxu1 %v12891_v29  ;;  %7625 = vmatpush1.msra.mxu0 %v12780_v63  ;;  %v7712_v12 = vpop.permute.xlu0 %7711 }
 0xf90   : >> { %7770 = vmatpush1.msra.mxu1 %v7716_v6  ;;  %7626 = vmatprep.subr.mxu0 %v12891_v29  ;;  %v7710_v31 = vpop.permute.xlu1 %7709 }
 0xf91   : >> { %7771 = vmatprep.subr.mxu1 %v12891_v29  ;;  %7627 = vmatpush1.msra.mxu0 %v12781_v16 }
 0xf92   : >> { %7772 = vmatpush1.msra.mxu1 %v7714_v34  ;;  %7628 = vmatprep.subr.mxu0 %v12891_v29  ;;  %v7355_v34 = vld [vmem:[%s17487_s13 + $0x8] sm:$0xff] }
 0xf93   : >> { %7773 = vmatprep.subr.mxu1 %v12891_v29  ;;  %7629 = vmatpush1.msra.mxu0 %v12782_v11  ;;  %v7708_v22 = vpop.permute.xlu0 %7707  ;;  %v12786_v11 = vld [vmem:[%s17530_s28 + $0x10] sm:$0xff] }
 0xf94   : >> { %7774 = vmatpush1.msra.mxu1 %v7712_v12  ;;  %7630 = vmatprep.subr.mxu0 %v12891_v29  ;;  %v7706_v42 = vpop.permute.xlu1 %7705  ;;  %v10624_v12 = vld [vmem:[%s17487_s13 + $0x20] sm:$0xff] }
 0xf95   : >> { %7775 = vmatprep.subr.mxu1 %v12891_v29  ;;  %7631 = vmatpush1.msra.mxu0 %v16182_v20 }
 0xf96   : >> { %7776 = vmatpush1.msra.mxu1 %v7710_v31  ;;  %7632 = vmatprep.subr.mxu0 %v12891_v29 }
 0xf97   : >> { %7777 = vmatprep.subr.mxu1 %v12891_v29  ;;  %7633 = vmatpush1.msra.mxu0 %v16191_v21  ;;  %v7704_v44 = vpop.permute.xlu0 %7703 }
 0xf98   : >> { %7778 = vmatpush1.msra.mxu1 %v7708_v22  ;;  %7634 = vmatprep.subr.mxu0 %v12891_v29  ;;  %v7702_v35 = vpop.permute.xlu1 %7701  ;;  %v10625_v22 = vld [vmem:[%s17487_s13 + $0x28] sm:$0xff] }
 0xf99   : >> { %7779 = vmatprep.subr.mxu1 %v12891_v29  ;;  %7635 = vmatpush1.msra.mxu0 %v16203_v36 }
 0xf9a   : >> { %7780 = vmatpush1.msra.mxu1 %v7706_v42  ;;  %7636 = vmatprep.subr.mxu0 %v12891_v29 }
 0xf9b   : >> { %7781 = vmatprep.subr.mxu1 %v12891_v29  ;;  %7637 = vmatpush1.msra.mxu0 %v16196_v24  ;;  %v7700_v20 = vpop.permute.xlu0 %7699 }
 0xf9c   : >> { %7782 = vmatpush1.msra.mxu1 %v7704_v44  ;;  %7638 = vmatprep.subr.mxu0 %v12891_v29  ;;  %v7698_v21 = vpop.permute.xlu1 %7697 }
 0xf9d   : >> { %7783 = vmatprep.subr.mxu1 %v12891_v29  ;;  %7639 = vmatpush1.msra.mxu0 %v16208_v33 }
 0xf9e   : >> { %7784 = vmatpush1.msra.mxu1 %v7702_v35  ;;  %7640 = vmatprep.subr.mxu0 %v12891_v29  ;;  %v7356_v35 = vld [vmem:[%s17487_s13 + $0x10] sm:$0xff] }
 0xf9f   : >> { %7785 = vmatprep.subr.mxu1 %v12891_v29  ;;  %7641 = vmatpush1.msra.mxu0 %v16217_v49  ;;  %v7736_v36 = vpop.permute.xlu0 %7735 }
 0xfa0   : >> { %7786 = vmatpush1.msra.mxu1 %v7700_v20  ;;  %10651 = vmatprep.mubr.msk.f32.mxu1 %vm6649_vm14, %v15839_v23  ;;  %v7734_v24 = vpop.permute.xlu1 %7733 }
 0xfa1   : >> { %7642 = vmatprep.subr.mxu0 %v12891_v29  ;;  %7787 = vmatprep.subr.mxu1 %v12891_v29 }
 0xfa2   : >> { %7597 = vmatmul.mubr.f32.gmra.mxu1 %v15860_v9  ;;  %7643 = vmatpush1.msra.mxu0 %v16226_v26  ;;  %v6728_v33 = vpop.f32.mrf.mxu0 }
 0xfa3   : >> { %7788 = vmatpush1.msra.mxu1 %v7698_v21  ;;  %7668 = vmatprep.subr.mxu0 %v12891_v29  ;;  %v7732_v27 = vpop.permute.xlu0 %7731  ;;  %v16365_v49 = vadd.f32 %v16308_v17, %v6728_v33  ;;  %v12788_v21 = vld [vmem:[%s17530_s28 + $0x20] sm:$0xff]  ;;  %v10626_v33 = vld [vmem:[%s17487_s13 + $0x30] sm:$0xff] }
 0xfa4   : >> { %7813 = vmatprep.subr.mxu1 %v12891_v29  ;;  %7669 = vmatpush2.msra.mxu0 %v15930_v61  ;;  %v7730_v23 = vpop.permute.xlu1 %7729  ;;  %v6730_v14 = vpop.f32.mrf.mxu0 }
 0xfa5   : >> { %7814 = vmatpush2.msra.mxu1 %v7736_v36  ;;  %10652 = vmatprep.mubr.msk.f32.mxu1 %vm6649_vm14, %v15872_v28  ;;  %v7357_v36 = vld [vmem:[%s17487_s13 + $0x18] sm:$0xff]  ;;  %v12790_v14 = vld [vmem:[%s17530_s28 + $0x30] sm:$0xff] }
 0xfa6   : >> { %7670 = vmatprep.subr.mxu0 %v12891_v29  ;;  %7815 = vmatprep.subr.mxu1 %v12891_v29 }
 0xfa7   : >> { %7602 = vmatmul.mubr.f32.gmra.mxu1 %v15885_v43  ;;  %7671 = vmatpush2.msra.mxu0 %v15941_v30  ;;  %v7877_v9 = vpop.permute.xlu0 %7876 }
 0xfa8   : >> { %7816 = vmatpush2.msra.mxu1 %v7734_v24  ;;  %7672 = vmatprep.subr.mxu0 %v12891_v29  ;;  %v7875_v26 = vpop.permute.xlu1 %7874 }
 0xfa9   : >> { %7817 = vmatprep.subr.mxu1 %v12891_v29  ;;  %7673 = vmatpush2.msra.mxu0 %v15950_v38  ;;  %v12783_v38 = vld [vmem:[%s17530_s28 + $0x8] sm:$0xff] }
 0xfaa   : >> { %7818 = vmatpush2.msra.mxu1 %v7732_v27  ;;  %10653 = vmatprep.mubr.msk.f32.mxu1 %vm6649_vm14, %v15897_v8 }
 0xfab   : >> { %7674 = vmatprep.subr.mxu0 %v12891_v29  ;;  %7819 = vmatprep.subr.mxu1 %v12891_v29  ;;  %v8026_v28 = vpop.permute.xlu0 %8025  ;;  %v6733_v43 = vpop.f32.mrf.mxu0 }
 0xfac   : >> { %7607 = vmatmul.mubr.f32.gmra.mxu1 %v15910_v5  ;;  %7675 = vmatpush2.msra.mxu0 %v15954_v47  ;;  %v7873_v61 = vpop.permute.xlu1 %7872  ;;  %v16385_v30 = vadd.f32 %v16318_v59, %v6733_v43  ;;  %v12784_v5 = vld [vmem:[%s17530_s28] sm:$0xff] }
 0xfad   : >> { %7820 = vmatpush2.msra.mxu1 %v7730_v23  ;;  %10654 = vmatprep.mubr.msk.f32.mxu0 %vm6649_vm14, %v12783_v38  ;;  %v6735_v8 = vpop.f32.mrf.mxu0  ;;  %v10627_v23 = vld [vmem:[%s17487_s13 + $0x38] sm:$0xff] }
 0xfae   : >> { %7906 = vmatprep.subr.mxu0 %v12891_v29  ;;  %7677 = vmatmul.mubr.f32.vlgmr.msra.gmra.mxu0 %v12784_v5 }
 0xfaf   : >> { %7907 = vmatpush1.msra.mxu0 %v7877_v9  ;;  %10658 = vmatprep.mubr.msk.f32.mxu1 %vm6649_vm14, %v15922_v3  ;;  %v8024_v47 = vpop.permute.xlu0 %8023 }
 0xfb0   : >> { %7908 = vmatprep.subr.mxu0 %v12891_v29  ;;  %7822 = vmatmul.mubr.f32.vlgmr.msra.gmra.mxu1 %v16007_v4  ;;  %v7871_v17 = vpop.permute.xlu1 %7870 }
 0xfb1   : >> { %7909 = vmatpush1.msra.mxu0 %v7875_v26  ;;  %8055 = vmatprep.subr.mxu1 %v12891_v29  ;;  %v12791_v26 = vld [vmem:[%s17530_s28 + $0xc8] sm:$0xff] }
 0xfb2   : >> { %8056 = vmatpush1.msra.mxu1 %v8026_v28  ;;  %7910 = vmatprep.subr.mxu0 %v12891_v29 }
 0xfb3   : >> { %7911 = vmatpush1.msra.mxu0 %v7873_v61  ;;  %8057 = vmatprep.subr.mxu1 %v12891_v29  ;;  %v8022_v59 = vpop.permute.xlu0 %8021  ;;  %v6738_v53 = vpop.f32.mrf.mxu0 }
 0xfb4   : >> { %8058 = vmatpush1.msra.mxu1 %v8024_v47  ;;  %7912 = vmatprep.subr.mxu0 %v12891_v29  ;;  %v7869_v3 = vpop.permute.xlu1 %7868  ;;  %v16404_v6 = vadd.f32 %v16326_v40, %v6738_v53  ;;  %v7354_v40 = vld [vmem:[%s17487_s13] sm:$0xff] }
 0xfb5   : >> { %7913 = vmatpush1.msra.mxu0 %v7871_v17  ;;  %8059 = vmatprep.subr.mxu1 %v12891_v29  ;;  %v6740_v4 = vpop.f32.mrf.mxu0 }
 0xfb6   : >> { %8060 = vmatpush1.msra.mxu1 %v8022_v59  ;;  %7914 = vmatprep.subr.mxu0 %v12891_v29 }
 0xfb7   : >> { %7915 = vmatpush1.msra.mxu0 %v7869_v3  ;;  %v8020_v37 = vpop.permute.xlu0 %8019  ;;  %8061 = vmatprep.subr.mxu1 %v12891_v29 }
 0xfb8   : >> { %v7867_v50 = vpop.permute.xlu1 %7866  ;;  %8062 = vmatpush1.msra.mxu1 %v8020_v37  ;;  %7916 = vmatprep.subr.mxu0 %v12891_v29 }
 0xfb9   : >> { %7917 = vmatpush1.msra.mxu0 %v7867_v50  ;;  %8063 = vmatprep.subr.mxu1 %v12891_v29 }
 0xfba   : >> { %7918 = vmatprep.subr.mxu0 %v12891_v29  ;;  %7365 = vperm.xlu1 %12766, %v7355_v34  }
 0xfbb   : >> { %v8018_v63 = vpop.permute.xlu0 %8017  ;;  %7360 = vperm.xlu0 %12765, %v7354_v40   ;;  %10655 = vmatprep.mubr.msk.f32.mxu0 %vm6649_vm14, %v12785_v10  ;;  %v6743_v31 = vpop.f32.mrf.mxu0 }
 0xfbc   : >> { %v7865_v16 = vpop.permute.xlu1 %7864  ;;  %8064 = vmatpush1.msra.mxu1 %v8018_v63  ;;  %7682 = vmatmul.mubr.f32.gmra.mxu0 %v12786_v11  ;;  %v16432_v2 = vadd.f32 %v16334_v18, %v6743_v31  ;;  %v12787_v18 = vld [vmem:[%s17530_s28 + $0x28] sm:$0xff] }
 0xfbd   : >> { %7919 = vmatpush1.msra.mxu0 %v7865_v16  ;;  %8065 = vmatprep.subr.mxu1 %v12891_v29  ;;  %v6745_v42 = vpop.f32.mrf.mxu0 }
 0xfbe   : >> { %7920 = vmatprep.subr.mxu0 %v12891_v29  ;;  %7389 = vperm.xlu1 %12766, %v10624_v12  }
 0xfbf   : >> { %v8016_v44 = vpop.permute.xlu0 %8015  ;;  %10659 = vmatprep.mubr.msk.f32.mxu1 %vm6649_vm14, %v16015_v45  ;;  %7394 = vperm.xlu0 %12765, %v10625_v22  }
 0xfc0   : >> { %v7863_v20 = vpop.permute.xlu1 %7862  ;;  %8066 = vmatpush1.msra.mxu1 %v8016_v44  ;;  %10656 = vmatprep.mubr.msk.f32.mxu0 %vm6649_vm14, %v12787_v18 }
 0xfc1   : >> { %7921 = vmatpush1.msra.mxu0 %v7863_v20  ;;  %8067 = vmatprep.subr.mxu1 %v12891_v29 }
 0xfc2   : >> { %7922 = vmatprep.subr.mxu0 %v12891_v29  ;;  %7370 = vperm.xlu1 %12766, %v7356_v35  }
 0xfc3   : >> { %v8014_v45 = vpop.permute.xlu0 %8013  ;;  %7827 = vmatmul.mubr.f32.gmra.mxu1 %v16043_v58  ;;  %7687 = vmatmul.mubr.f32.gmra.mxu0 %v12788_v21 }
 0xfc4   : >> { %v7861_v24 = vpop.permute.xlu1 %7860  ;;  %8068 = vmatpush1.msra.mxu1 %v8014_v45  ;;  %10660 = vmatprep.mubr.msk.f32.mxu1 %vm6649_vm14, %v16053_v52  ;;  %v12789_v52 = vld [vmem:[%s17530_s28 + $0x38] sm:$0xff] }
 0xfc5   : >> { %7923 = vmatpush1.msra.mxu0 %v7861_v24  ;;  %8069 = vmatprep.subr.mxu1 %v12891_v29 }
 0xfc6   : >> { %7924 = vmatprep.subr.mxu0 %v12891_v29  ;;  %7375 = vperm.xlu0 %12765, %v7357_v36  }
 0xfc7   : >> { %v8012_v58 = vpop.permute.xlu0 %8011  ;;  %7399 = vperm.xlu1 %12766, %v10626_v33   ;;  %7832 = vmatmul.mubr.f32.gmra.mxu1 %v16064_v25 }
 0xfc8   : >> { %v7859_v27 = vpop.permute.xlu1 %7858  ;;  %8070 = vmatpush1.msra.mxu1 %v8012_v58  ;;  %10657 = vmatprep.mubr.msk.f32.mxu0 %vm6649_vm14, %v12789_v52 }
 0xfc9   : >> { %7925 = vmatpush1.msra.mxu0 %v7859_v27  ;;  %8071 = vmatprep.subr.mxu1 %v12891_v29 }
 0xfca   : >> { %7692 = vmatmul.mubr.f32.gmra.mxu0 %v12790_v14  ;;  %10661 = vmatprep.mubr.msk.f32.mxu1 %vm6649_vm14, %v16071_v55  ;;  %v10675_v14 = vld [vmem:[%s17492_s18 + $0x10] sm:$0xff] }
 0xfcb   : >> { %v8010_v25 = vpop.permute.xlu0 %8009  ;;  %7926 = vmatprep.subr.mxu0 %v12891_v29  ;;  %7404 = vperm.xlu0 %12765, %v10627_v23   ;;  %v8168_v23 = vld [vmem:[%s17492_s18] sm:$0xff] }
 0xfcc   : >> { %v7857_v9 = vpop.permute.xlu1 %7856  ;;  %8072 = vmatpush1.msra.mxu1 %v8010_v25  ;;  %10662 = vmatprep.mubr.msk.f32.mxu0 %vm6649_vm14, %v12791_v26 }
 0xfcd   : >> { %7837 = vmatmul.mubr.f32.gmra.mxu1 %v16090_v32  ;;  %7927 = vmatpush1.msra.mxu0 %v7857_v9 }
 0xfce   : >> { %8073 = vmatprep.subr.mxu1 %v12891_v29  ;;  %7928 = vmatprep.subr.mxu0 %v12891_v29 }
 0xfcf   : >> { %v8008_v55 = vpop.permute.xlu0 %8007  ;;  %10666 = vmatprep.mubr.msk.f32.mxu1 %vm6649_vm14, %v16108_v39 }
 0xfd0   : >> { %v7855_v28 = vpop.permute.xlu1 %7854  ;;  %8074 = vmatpush1.msra.mxu1 %v8008_v55 }
 0xfd1   : >> { %7929 = vmatpush1.msra.mxu0 %v7855_v28  ;;  %8075 = vmatprep.subr.mxu1 %v12891_v29 }
 0xfd2   : >> { %7930 = vmatprep.subr.mxu0 %v12891_v29 }
 0xfd3   : >> { %v8006_v43 = vpop.permute.xlu0 %8005 }
 0xfd4   : >> { %v7853_v61 = vpop.permute.xlu1 %7852  ;;  %8076 = vmatpush1.msra.mxu1 %v8006_v43 }
 0xfd5   : >> { %7931 = vmatpush1.msra.mxu0 %v7853_v61  ;;  %8077 = vmatprep.subr.mxu1 %v12891_v29 }
 0xfd6   : >> { %7932 = vmatprep.subr.mxu0 %v12891_v29 }
 0xfd7   : >> { %v8004_v32 = vpop.permute.xlu0 %8003 }
 0xfd8   : >> { %v7851_v38 = vpop.permute.xlu1 %7850  ;;  %8078 = vmatpush1.msra.mxu1 %v8004_v32 }
 0xfd9   : >> { %7933 = vmatpush1.msra.mxu0 %v7851_v38  ;;  %8079 = vmatprep.subr.mxu1 %v12891_v29 }
 0xfda   : >> { %7934 = vmatprep.subr.mxu0 %v12891_v29 }
 0xfdb   : >> { %v8002_v39 = vpop.permute.xlu0 %8001 }
 0xfdc   : >> { %v7849_v8 = vpop.permute.xlu1 %7848  ;;  %8080 = vmatpush1.msra.mxu1 %v8002_v39 }
 0xfdd   : >> { %7935 = vmatpush1.msra.mxu0 %v7849_v8  ;;  %8081 = vmatprep.subr.mxu1 %v12891_v29 }
 0xfde   : >> { %7936 = vmatprep.subr.mxu0 %v12891_v29 }
 0xfdf   : >> { %v8000_v5 = vpop.permute.xlu0 %7999 }
 0xfe0   : >> { %v7847_v47 = vpop.permute.xlu1 %7846  ;;  %8082 = vmatpush1.msra.mxu1 %v8000_v5 }
 0xfe1   : >> { %7937 = vmatpush1.msra.mxu0 %v7847_v47  ;;  %8083 = vmatprep.subr.mxu1 %v12891_v29 }
 0xfe2   : >> { %7962 = vmatprep.subr.mxu0 %v12891_v29 }
 0xfe3   : >> { %v7998_v17 = vpop.permute.xlu0 %7997 }
 0xfe4   : >> { %v7885_v59 = vpop.permute.xlu1 %7884  ;;  %8084 = vmatpush1.msra.mxu1 %v7998_v17 }
 0xfe5   : >> { %7963 = vmatpush2.msra.mxu0 %v7885_v59  ;;  %8085 = vmatprep.subr.mxu1 %v12891_v29 }
 0xfe6   : >> { %7964 = vmatprep.subr.mxu0 %v12891_v29 }
 0xfe7   : >> { %v7996_v53 = vpop.permute.xlu0 %7995 }
 0xfe8   : >> { %v7883_v3 = vpop.permute.xlu1 %7882  ;;  %8086 = vmatpush1.msra.mxu1 %v7996_v53 }
 0xfe9   : >> { %7965 = vmatpush2.msra.mxu0 %v7883_v3  ;;  %8111 = vmatprep.subr.mxu1 %v12891_v29 }
 0xfea   : >> { %7966 = vmatprep.subr.mxu0 %v12891_v29 }
 0xfeb   : >> { %v8034_v4 = vpop.permute.xlu0 %8033  ;;  %v6991_v37 = vpop.f32.mrf.mxu0 }
 0xfec   : >> { %v7881_v34 = vpop.permute.xlu1 %7880  ;;  %8112 = vmatpush2.msra.mxu1 %v8034_v4  ;;  %v7010_v50 = vadd.f32 %v6991_v37, %v16365_v49 }
 0xfed   : >> { %7967 = vmatpush2.msra.mxu0 %v7881_v34  ;;  %8113 = vmatprep.subr.mxu1 %v12891_v29  ;;  %v6993_v40 = vpop.f32.mrf.mxu0 }
 0xfee   : >> { %7968 = vmatprep.subr.mxu0 %v12891_v29 }
 0xfef   : >> { %v8032_v63 = vpop.permute.xlu0 %8031  ;;  %v7161_v12 = vpop.f32.mrf.mxu1 }
 0xff0   : >> { %v7879_v10 = vpop.permute.xlu1 %7878  ;;  %8114 = vmatpush2.msra.mxu1 %v8032_v63  ;;  %v7180_v31 = vadd.f32 %v7161_v12, %v7010_v50 }
 0xff1   : >> { %7969 = vmatpush2.msra.mxu0 %v7879_v10  ;;  %8115 = vmatprep.subr.mxu1 %v12891_v29  ;;  %v7163_v16 = vpop.f32.mrf.mxu1 }
 0xff2   : >> { %7971 = vmatmul.mubr.f32.vlgmr.msra.gmra.mxu0 %v16024_v46 }
 0xff3   : >> { %10663 = vmatprep.mubr.msk.f32.mxu0 %vm6649_vm14, %v16034_v48  ;;  %v6996_v49 = vpop.f32.mrf.mxu0 }
 0xff4   : >> { %v8030_v11 = vpop.permute.xlu0 %8029  ;;  %v7011_v22 = vadd.f32 %v6996_v49, %v16385_v30 }
 0xff5   : >> { %8116 = vmatpush2.msra.mxu1 %v8030_v11  ;;  %v6998_v42 = vpop.f32.mrf.mxu0 }
 0xff6   : >> { %7976 = vmatmul.mubr.f32.gmra.mxu0 %v16083_v15  ;;  %8117 = vmatprep.subr.mxu1 %v12891_v29 }
 0xff7   : >> { %v8028_v44 = vpop.permute.xlu1 %8027  ;;  %10664 = vmatprep.mubr.msk.f32.mxu0 %vm6649_vm14, %v16101_v56  ;;  %v7001_v35 = vpop.f32.mrf.mxu0 }
 0xff8   : >> { %8118 = vmatpush2.msra.mxu1 %v8028_v44  ;;  %v7012_v46 = vadd.f32 %v7001_v35, %v16404_v6 }
 0xff9   : >> { %8120 = vmatmul.mubr.f32.vlgmr.msra.gmra.mxu1 %v16247_v62  ;;  %v7003_v48 = vpop.f32.mrf.mxu0 }
 0xffa   : >> { %7981 = vmatmul.mubr.f32.gmra.mxu0 %v16119_v57  ;;  %10667 = vmatprep.mubr.msk.f32.mxu1 %vm6649_vm14, %v16252_v1 }
 0xffb   : >> { %10665 = vmatprep.mubr.msk.f32.mxu0 %vm6649_vm14, %v16128_v54  ;;  %v7166_v29 = vpop.f32.mrf.mxu1 }
 0xffc   : >> { %v7006_v15 = vpop.f32.mrf.mxu0  ;;  %v7181_v30 = vadd.f32 %v7166_v29, %v7011_v22 }
 0xffd   : >> { %8125 = vmatmul.mubr.f32.gmra.mxu1 %v16265_v41  ;;  %v7013_v56 = vadd.f32 %v7006_v15, %v16432_v2  ;;  %v7168_v20 = vpop.f32.mrf.mxu1 }
 0xffe   : >> { %7986 = vmatmul.mubr.f32.gmra.mxu0 %v16140_v60  ;;  %10668 = vmatprep.mubr.msk.f32.mxu1 %vm6649_vm14, %v16271_v13  ;;  %v7008_v57 = vpop.f32.mrf.mxu0 }
0x1001   : >> { %8130 = vmatmul.mubr.f32.gmra.mxu1 %v16284_v51  ;;  %v8169_v51 = vld [vmem:[%s17492_s18 + $0x8] sm:$0x3] }
0x1002   : >> { %10669 = vmatprep.mubr.msk.f32.mxu1 %vm6649_vm14, %v16297_v19  ;;  %v10676_v19 = vld [vmem:[%s17492_s18 + $0x18] sm:$0x3]  ;;  %12410 = vmatprep.subr.msk.mxu0 %vm8183_vm9, %v8169_v51 }
0x1003   : >> { %v7171_v54 = vpop.f32.mrf.mxu1  ;;  %12420 = vmatprep.subr.msk.mxu1 %vm8183_vm9, %v10676_v19  ;;  %12411 = vmatpush3.msk.msra.mxu0 %vm8183_vm9, %v8169_v51 }
0x1004   : >> { %v7182_v62 = vadd.f32 %v7171_v54, %v7012_v46  ;;  %12421 = vmatpush3.msk.msra.mxu1 %vm8183_vm9, %v10676_v19  ;;  %12412 = vmatprep.subr.mxu0 %v8168_v23 }
0x1005   : >> { %8135 = vmatmul.mubr.f32.gmra.mxu1 %v16306_v7  ;;  %v7173_v1 = vpop.f32.mrf.mxu1  ;;  %12422 = vmatprep.subr.mxu1 %v10675_v14 }
0x1006   : >> { %12413 = vmatpush3.msra.mxu0 %v8168_v23  ;;  %12423 = vmatpush3.msra.mxu1 %v10675_v14 }
0x1007   : >> { %v7176_v41 = vpop.f32.mrf.mxu1 }
0x1008   : >> { %v7183_v6 = vadd.f32 %v7176_v41, %v7013_v56 }
0x1009   : >> { %v7178_v2 = vpop.f32.mrf.mxu1 }
0x1035   : >> { %v7366_v16 = vpop.permute.xlu1 %7365 }
0x1036   : >> { %v7361_v49 = vpop.permute.xlu0 %7360 }
0x1039   : >> { %v7390_v11 = vpop.permute.xlu1 %7389 }
0x103a   : >> { %v7331_v18 = vpop.f32.mrf.mxu0  ;;  %v7395_v15 = vpop.permute.xlu0 %7394 }
0x103b   : >> { %v7350_v45 = vadd.f32 %v7331_v18, %v7180_v31 }
0x103c   : >> { %v7333_v60 = vpop.f32.mrf.mxu0 }
0x103d   : >> { %v7378_v42 = vmul.f32 %v7361_v49, %v7350_v45 }
0x103e   : >> { %v7336_v21 = vpop.f32.mrf.mxu0 }
0x103f   : >> { %v7351_v36 = vadd.f32 %v7336_v21, %v7181_v30  ;;  %v7407_v29 = vadd.f32 %v7390_v11, %v7378_v42  ;;  %v7371_v30 = vpop.permute.xlu1 %7370 }
0x1040   : >> { %v7338_v13 = vpop.f32.mrf.mxu0  ;;  %v7593_v24 = vpop.f32.mrf.mxu1 }
0x1041   : >> { %v7379_v48 = vmul.f32 %v7366_v16, %v7351_v36  ;;  %vm7411_vm10 = vcmp.gt.f32.partialorder %v7407_v29, 0.0 }
0x1042   : >> { %v7341_v7 = vpop.f32.mrf.mxu0  ;;  %v7595_v58 = vpop.f32.mrf.mxu1 }
0x1043   : >> { %v7352_v33 = vadd.f32 %v7341_v7, %v7182_v62  ;;  %v7408_v2 = vadd.f32 %v7395_v15, %v7379_v48  ;;  %v7400_v51 = vpop.permute.xlu1 %7399 }
0x1044   : >> { %v7343_v27 = vpop.f32.mrf.mxu0 }
0x1045   : >> { %v7380_v13 = vmul.f32 %v7371_v30, %v7352_v33  ;;  %vm7412_vm11 = vcmp.gt.f32.partialorder %v7408_v2, 0.0 }
0x1047   : >> { %v7409_v33 = vadd.f32 %v7400_v51, %v7380_v13 }
0x1048   : >> { %v7346_v52 = vpop.f32.mrf.mxu0 }
0x1049   : >> { %v16539_v25 = vadd.f32 %v7346_v52, %v7183_v6  ;;  %v7415_v6 = vmul.f32 0.01, %v7407_v29  ;;  %vm7413_vm0 = vcmp.gt.f32.partialorder %v7409_v33, 0.0 }
0x104a   : >> { %v7348_v9 = vpop.f32.mrf.mxu0 }
0x104b   : >> { %v7419_v23 = vsel %vm7411_vm10, %v7407_v29, %v7415_v6 }
0x1062   : >> { %v7598_v26 = vpop.f32.mrf.mxu1 }
0x1064   : >> { %v7600_v55 = vpop.f32.mrf.mxu1 }
0x1067   : >> { %v7603_v28 = vpop.f32.mrf.mxu1 }
0x1069   : >> { %v7605_v43 = vpop.f32.mrf.mxu1 }
0x106a   : >> { %v7416_v43 = vmul.f32 0.01, %v7408_v2 }
0x106c   : >> { %v7608_v61 = vpop.f32.mrf.mxu1 }
0x106e   : >> { %v7610_v32 = vpop.f32.mrf.mxu1  ;;  %v7678_v38 = vpop.f32.mrf.mxu0 }
0x106f   : >> { %v7679_v39 = vadd.f32 %v7678_v38, %v7593_v24  ;;  %v7376_v24 = vpop.permute.xlu0 %7375 }
0x1070   : >> { %v7823_v8 = vpop.f32.mrf.mxu1  ;;  %v7680_v5 = vpop.f32.mrf.mxu0  ;;  %v7381_v32 = vmul.f32 %v7376_v24, %v16539_v25 }
0x1071   : >> { %v7842_v47 = vadd.f32 %v7823_v8, %v7679_v39 }
0x1072   : >> { %v7825_v17 = vpop.f32.mrf.mxu1 }
0x107c   : >> { %v7683_v59 = vpop.f32.mrf.mxu0 }
0x107d   : >> { %v7684_v35 = vadd.f32 %v7683_v59, %v7598_v26 }
0x107e   : >> { %v7685_v53 = vpop.f32.mrf.mxu0 }
0x1083   : >> { %v7828_v3 = vpop.f32.mrf.mxu1  ;;  %v7688_v4 = vpop.f32.mrf.mxu0 }
0x1084   : >> { %v7843_v54 = vadd.f32 %v7828_v3, %v7684_v35  ;;  %v7689_v62 = vadd.f32 %v7688_v4, %v7603_v28 }
0x1085   : >> { %v7830_v37 = vpop.f32.mrf.mxu1  ;;  %v7690_v34 = vpop.f32.mrf.mxu0 }
0x1086   : >> { %v7420_v37 = vsel %vm7412_vm11, %v7408_v2, %v7416_v43  ;;  %v7417_v34 = vmul.f32 0.01, %v7409_v33 }
0x1087   : >> { %v7833_v50 = vpop.f32.mrf.mxu1 }
0x1088   : >> { %v7844_v19 = vadd.f32 %v7833_v50, %v7689_v62 }
0x1089   : >> { %v7835_v40 = vpop.f32.mrf.mxu1 }
0x108a   : >> { %v7693_v63 = vpop.f32.mrf.mxu0 }
0x108b   : >> { %v7694_v7 = vadd.f32 %v7693_v63, %v7608_v61 }
0x108c   : >> { %v7695_v12 = vpop.f32.mrf.mxu0 }
0x108d   : >> { %v7838_v10 = vpop.f32.mrf.mxu1 }
0x108e   : >> { %v7845_v39 = vadd.f32 %v7838_v10, %v7694_v7 }
0x108f   : >> { %v7840_v31 = vpop.f32.mrf.mxu1 }
0x10b2   : >> { %v7972_v22 = vpop.f32.mrf.mxu0 }
0x10b3   : >> { %v7991_v56 = vadd.f32 %v7972_v22, %v7842_v47  ;;  %v7405_v47 = vpop.permute.xlu0 %7404 }
0x10b4   : >> { %v7974_v44 = vpop.f32.mrf.mxu0  ;;  %v7410_v25 = vadd.f32 %v7405_v47, %v7381_v32 }
0x10b6   : >> { %v7977_v46 = vpop.f32.mrf.mxu0  ;;  %v7418_v22 = vmul.f32 0.01, %v7410_v25  ;;  %vm7414_vm2 = vcmp.gt.f32.partialorder %v7410_v25, 0.0 }
0x10b7   : >> { %v7992_v60 = vadd.f32 %v7977_v46, %v7843_v54 }
0x10b8   : >> { %v7979_v20 = vpop.f32.mrf.mxu0  ;;  %v7422_v48 = vsel %vm7414_vm2, %v7410_v25, %v7418_v22 }
0x10b9   : >> { %v8121_v57 = vpop.f32.mrf.mxu1 }
0x10ba   : >> { %v8140_v1 = vadd.f32 %v8121_v57, %v7991_v56  ;;  %v7982_v41 = vpop.f32.mrf.mxu0 }
0x10bb   : >> { %v8123_v18 = vpop.f32.mrf.mxu1  ;;  %v7993_v26 = vadd.f32 %v7982_v41, %v7844_v19 }
0x10bc   : >> { %v8144_v45 = vmul.f32 %v8140_v1, %v7361_v49  ;;  %v7984_v21 = vpop.f32.mrf.mxu0 }
0x10bd   : >> { %v8126_v36 = vpop.f32.mrf.mxu1 }
0x10be   : >> { %v8148_v58 = vadd.f32 %v8144_v45, %v7390_v11  ;;  %v8141_v27 = vadd.f32 %v8126_v36, %v7992_v60  ;;  %v7987_v52 = vpop.f32.mrf.mxu0  ;;  %v7421_v11 = vsel %vm7413_vm0, %v7409_v33, %v7417_v34 }
0x10bf   : >> { %v8128_v14 = vpop.f32.mrf.mxu1  ;;  %v7994_v3 = vadd.f32 %v7987_v52, %v7845_v39 }
0x10c0   : >> { %vm8152_vm12 = vcmp.gt.f32.partialorder %v8148_v58, 0.0  ;;  %v8156_v9 = vmul.f32 0.01, %v8148_v58  ;;  %v8145_v55 = vmul.f32 %v8141_v27, %v7366_v16  ;;  %v7989_v28 = vpop.f32.mrf.mxu0 }
0x10c1   : >> { %v8131_v38 = vpop.f32.mrf.mxu1 }
0x10c2   : >> { %v8149_v8 = vadd.f32 %v8145_v55, %v7395_v15  ;;  %v8142_v61 = vadd.f32 %v8131_v38, %v7993_v26  ;;  %v8160_v5 = vsel %vm8152_vm12, %v8148_v58, %v8156_v9 }
0x10c3   : >> { %v8133_v17 = vpop.f32.mrf.mxu1  ;;  %v8164_v59 = vmax.f32 %v7419_v23, %v8160_v5 }
0x10c4   : >> { %vm8153_vm15 = vcmp.gt.f32.partialorder %v8149_v8, 0.0  ;;  %v8157_v53 = vmul.f32 0.01, %v8149_v8  ;;  %v8146_v4 = vmul.f32 %v8142_v61, %v7371_v30 }
0x10c5   : >> { %v8136_v50 = vpop.f32.mrf.mxu1  ;;  %12414 = vmatprep.mubr.msk.f32.mxu0 %vm8170_vm13, %v8164_v59  ;;  %12424 = vmatprep.mubr.msk.f32.mxu1 %vm8170_vm13, %v8164_v59 }
0x10c6   : >> { %v8161_v40 = vsel %vm8153_vm15, %v8149_v8, %v8157_v53  ;;  %v8150_v63 = vadd.f32 %v8146_v4, %v7400_v51  ;;  %v8143_v12 = vadd.f32 %v8136_v50, %v7994_v3 }
0x10c7   : >> { %v8165_v10 = vmax.f32 %v7420_v37, %v8161_v40  ;;  %v8138_v31 = vpop.f32.mrf.mxu1 }
0x10c8   : >> { %vm8154_vm1 = vcmp.gt.f32.partialorder %v8150_v63, 0.0  ;;  %v8158_v16 = vmul.f32 0.01, %v8150_v63  ;;  %v8147_v49 = vmul.f32 %v8143_v12, %v7376_v24 }
0x10c9   : >> { %12415 = vmatmul.mubr.msk.f32.vlgmr.msra.gmra.mxu0 %vm8170_vm13, %v8165_v10  ;;  %12425 = vmatmul.mubr.msk.f32.vlgmr.msra.gmra.mxu1 %vm8170_vm13, %v8165_v10 }
0x10ca   : >> { %v8151_v42 = vadd.f32 %v8147_v49, %v7405_v47  ;;  %v8162_v44 = vsel %vm8154_vm1, %v8150_v63, %v8158_v16 }
0x10cb   : >> { %v8166_v35 = vmax.f32 %v7421_v11, %v8162_v44 }
0x10cc   : >> { %vm8155_vm3 = vcmp.gt.f32.partialorder %v8151_v42, 0.0  ;;  %v8159_v46 = vmul.f32 0.01, %v8151_v42 }
0x10cd   : >> { %12417 = vmatprep.mubr.msk.f32.mxu0 %vm8170_vm13, %v8166_v35  ;;  %12427 = vmatprep.mubr.msk.f32.mxu1 %vm8170_vm13, %v8166_v35 }
0x10ce   : >> { %v8163_v29 = vsel %vm8155_vm3, %v8151_v42, %v8159_v46 }
0x10cf   : >> { %v8167_v15 = vmax.f32 %v7422_v48, %v8163_v29 }
0x10d1   : >> { %12418 = vmatmul.mubr.msk.f32.gmra.mxu0 %vm8170_vm13, %v8167_v15  ;;  %12428 = vmatmul.mubr.msk.f32.gmra.mxu1 %vm8170_vm13, %v8167_v15 }
0x1189   : >> { %v12416_v30 = vpop.f32.mrf.mxu0  ;;  %v12426_v56 = vpop.f32.mrf.mxu1 }
0x118a   : >> { %v8364_v20 = vmax.f32 %v12416_v30, %v12426_v56 }
0x118b   : >> { %v8253_v57 = vpop.f32.mrf.mxu0  ;;  %v8344_v54 = vpop.f32.mrf.mxu1 }
0x118c   : >> { %v8363_v62 = vmax.f32 %v8253_v57, %v8344_v54  ;;  %8375 = vrot.lane.b32.xlu0 %v8364_v20, %s12897_s24 }
0x118e   : >> { %8373 = vrot.lane.b32.xlu1 %v8363_v62, %s12897_s24 }
0x1191   : >> { %v12419_v1 = vpop.f32.mrf.mxu0  ;;  %v12429_v41 = vpop.f32.mrf.mxu1 }
0x1192   : >> { %v8366_v6 = vmax.f32 %v12419_v1, %v12429_v41 }
0x1193   : >> { %v8263_v2 = vpop.f32.mrf.mxu0  ;;  %v8354_v18 = vpop.f32.mrf.mxu1 }
0x1194   : >> { %v8365_v60 = vmax.f32 %v8263_v2, %v8354_v18  ;;  %8379 = vrot.lane.b32.xlu0 %v8366_v6, %s12897_s24 }
0x1196   : >> { %8377 = vrot.lane.b32.xlu1 %v8365_v60, %s12897_s24 }
0x11fe   : >> { %v8376_v45 = vpop.permute.xlu0 %8375 }
0x11ff   : >> { %10684 = vst.msk [vmem:[%s10248_s1 + $0x28] sm:$0xff] %vm8386_vm4, %v8376_v45 }
0x1200   : >> { %v8374_v21 = vpop.permute.xlu1 %8373 }
0x1201   : >> { %10683 = vst.msk [vmem:[%s10248_s1 + $0x20] sm:$0xff] %vm8386_vm4, %v8374_v21 }
0x1205   : > { %6528 = sbr.rel (!%p6526_p9) target bundleno = 3646 (0xe3e), region = 305 }
0x1206   : >> { %v8380_v13 = vpop.permute.xlu0 %8379 }
0x1207   : >> { %10686 = vst.msk [vmem:[%s10248_s1 + $0x38] sm:$0xff] %vm8386_vm4, %v8380_v13 }
0x1208   : >> { %v8378_v24 = vpop.permute.xlu1 %8377 }
0x1209   : >> { %10685 = vst.msk [vmem:[%s10248_s1 + $0x30] sm:$0xff] %vm8386_vm4, %v8378_v24 }
0x120a LB: >> { %v12898_v36 = vmov 0.0   ;;  %s17510_s3 = sshll.u32 %s12856_s0, 5  ;;  %s12899_s26 = smov 127   ;;  %v12903_v13 = vmov 0   ;;  %s12856_s0 = sphi %s16555_s0, %s8396_s0  }
0x120b   : >> { %8529 = vmatprep.subr.mxu0 %v12898_v36  ;;  %8626 = vmatprep.subr.mxu1 %v12898_v36  ;;  %s16565_s30 = scalar_lea.vmem [#allocation7], %s17510_s3  ;;  %s17532_s7 = sld [smem:[#allocation16_spill]] }
0x120c   : >> { %s12900_s1 = smov 126   ;;  %s12902_s5 = smov 124   ;;  %12793 = vset.pattern.permute.xlu1 %v12903_v13  ;;  %12792 = vset.pattern.permute.xlu0 %v12903_v13 }
0x1210   : >> { %v16568_v51 = vld [vmem:[%s16565_s30 + $0x78] sm:$0xff]  ;;  %v16571_v19 = vld [vmem:[%s16565_s30 + $0x68] sm:$0xff]  ;;  %v16578_v7 = vld [vmem:[%s16565_s30 + $0x70] sm:$0xff] }
0x1211   : >> { %8486 = vrot.lane.b32.xlu0 %v16568_v51, %s12899_s26  ;;  %8482 = vrot.lane.b32.xlu1 %v16571_v19, %s12899_s26  ;;  %v16581_v58 = vld [vmem:[%s16565_s30 + $0x60] sm:$0xff]  ;;  %v16591_v27 = vld [vmem:[%s16565_s30 + $0x58] sm:$0xff] }
0x1212   : >> { %8627 = vmatpush1.msra.mxu1 %v16568_v51  ;;  %v16594_v52 = vld [vmem:[%s16565_s30 + $0x50] sm:$0xff]  ;;  %v16604_v23 = vld [vmem:[%s16565_s30 + $0x48] sm:$0xff]  ;;  %v16607_v14 = vld [vmem:[%s16565_s30 + $0x40] sm:$0xff] }
0x1213   : >> { %8628 = vmatprep.subr.mxu1 %v12898_v36  ;;  %v16617_v9 = vld [vmem:[%s16565_s30 + $0x38] sm:$0xff]  ;;  %v16620_v26 = vld [vmem:[%s16565_s30 + $0x30] sm:$0xff]  ;;  %v16630_v55 = vld [vmem:[%s16565_s30 + $0x28] sm:$0xff] }
0x1214   : >> { %8629 = vmatpush1.msra.mxu1 %v16578_v7  ;;  %v16633_v28 = vld [vmem:[%s16565_s30 + $0x20] sm:$0xff]  ;;  %v16643_v43 = vld [vmem:[%s16565_s30 + $0x18] sm:$0xff]  ;;  %v16646_v32 = vld [vmem:[%s16565_s30 + $0x10] sm:$0xff] }
0x1215   : >> { %8484 = vrot.lane.b32.xlu0 %v16578_v7, %s12899_s26  ;;  %8480 = vrot.lane.b32.xlu1 %v16581_v58, %s12899_s26  ;;  %v16656_v33 = vld [vmem:[%s16565_s30 + $0x8] sm:$0xff]  ;;  %v16659_v38 = vld [vmem:[%s16565_s30] sm:$0xff] }
0x1216   : >> { %8630 = vmatprep.subr.mxu1 %v12898_v36  ;;  %v10689_v39 = vld [vmem:[%s17532_s7 + $0x48] sm:$0xff]  ;;  %v16675_v61 = vld [vmem:[%s16565_s30 + $0x98] sm:$0xff]  ;;  %v16678_v5 = vld [vmem:[%s16565_s30 + $0x90] sm:$0xff] }
0x1217   : >> { %8631 = vmatpush1.msra.mxu1 %v16571_v19  ;;  %v8420_v8 = vld [vmem:[%s17532_s7 + $0x8] sm:$0xff]  ;;  %10696 = vmatprep.mubr.msk.f32.mxu0 %vm6649_vm14, %v10689_v39  ;;  %v16693_v17 = vld [vmem:[%s16565_s30 + $0x80] sm:$0xff]  ;;  %v8422_v53 = vld [vmem:[%s17532_s7 + $0x18] sm:$0xff] }
0x1218   : >> { %8632 = vmatprep.subr.mxu1 %v12898_v36  ;;  %10700 = vmatprep.mubr.msk.f32.mxu1 %vm6649_vm14, %v8420_v8  ;;  %v16690_v47 = vld [vmem:[%s16565_s30 + $0x88] sm:$0xff]  ;;  %s12901_s30 = smov 125   ;;  %v8419_v59 = vld [vmem:[%s17532_s7] sm:$0xff]  ;;  %v8421_v3 = vld [vmem:[%s17532_s7 + $0x10] sm:$0xff] }
0x1219   : >> { %8478 = vrot.lane.b32.xlu0 %v16591_v27, %s12899_s26  ;;  %8476 = vrot.lane.b32.xlu1 %v16594_v52, %s12899_s26  ;;  %v8424_v4 = vld [vmem:[%s17532_s7 + $0x28] sm:$0xff]  ;;  %v8423_v37 = vld [vmem:[%s17532_s7 + $0x20] sm:$0xff] }
0x121a   : >> { %8633 = vmatpush1.msra.mxu1 %v16581_v58  ;;  %v8426_v34 = vld [vmem:[%s17532_s7 + $0x38] sm:$0xff]  ;;  %v8425_v50 = vld [vmem:[%s17532_s7 + $0x30] sm:$0xff]  ;;  %v10717_v25 = vld [vmem:[%s17532_s7 + $0xc8] sm:$0xff] }
0x121b   : >> { %8634 = vmatprep.subr.mxu1 %v12898_v36  ;;  %v10688_v1 = vld [vmem:[%s17532_s7 + $0x40] sm:$0xff]  ;;  %v10691_v2 = vld [vmem:[%s17532_s7 + $0x58] sm:$0xff]  ;;  %v10690_v18 = vld [vmem:[%s17532_s7 + $0x50] sm:$0xff] }
0x121c   : >> { %8635 = vmatpush1.msra.mxu1 %v16591_v27  ;;  %v10693_v21 = vld [vmem:[%s17532_s7 + $0x68] sm:$0xff]  ;;  %v10692_v24 = vld [vmem:[%s17532_s7 + $0x60] sm:$0xff]  ;;  %v10711_v13 = vld [vmem:[%s17532_s7 + $0xb8] sm:$0xff] }
0x121d   : >> { %8474 = vrot.lane.b32.xlu0 %v16604_v23, %s12899_s26  ;;  %8472 = vrot.lane.b32.xlu1 %v16607_v14, %s12899_s26 }
0x121e   : >> { %8636 = vmatprep.subr.mxu1 %v12898_v36 }
0x121f   : >> { %8637 = vmatpush1.msra.mxu1 %v16594_v52 }
0x1220   : >> { %8638 = vmatprep.subr.mxu1 %v12898_v36 }
0x1221   : >> { %8470 = vrot.lane.b32.xlu0 %v16617_v9, %s12899_s26  ;;  %8468 = vrot.lane.b32.xlu1 %v16620_v26, %s12899_s26 }
0x1222   : >> { %8639 = vmatpush1.msra.mxu1 %v16604_v23 }
0x1223   : >> { %8640 = vmatprep.subr.mxu1 %v12898_v36 }
0x1224   : >> { %8641 = vmatpush1.msra.mxu1 %v16607_v14 }
0x1225   : >> { %8466 = vrot.lane.b32.xlu0 %v16630_v55, %s12899_s26  ;;  %8464 = vrot.lane.b32.xlu1 %v16633_v28, %s12899_s26 }
0x1226   : >> { %8642 = vmatprep.subr.mxu1 %v12898_v36 }
0x1227   : >> { %8643 = vmatpush1.msra.mxu1 %v16617_v9 }
0x1228   : >> { %8644 = vmatprep.subr.mxu1 %v12898_v36 }
0x1229   : >> { %8462 = vrot.lane.b32.xlu0 %v16643_v43, %s12899_s26  ;;  %8460 = vrot.lane.b32.xlu1 %v16646_v32, %s12899_s26 }
0x122a   : >> { %8645 = vmatpush1.msra.mxu1 %v16620_v26 }
0x122b   : >> { %8646 = vmatprep.subr.mxu1 %v12898_v36 }
0x122c   : >> { %8647 = vmatpush1.msra.mxu1 %v16630_v55 }
0x122d   : >> { %8458 = vrot.lane.b32.xlu0 %v16656_v33, %s12899_s26  ;;  %8456 = vrot.lane.b32.xlu1 %v16659_v38, %s12899_s26 }
0x122e   : >> { %8648 = vmatprep.subr.mxu1 %v12898_v36 }
0x122f   : >> { %8649 = vmatpush1.msra.mxu1 %v16633_v28 }
0x1230   : >> { %8650 = vmatprep.subr.mxu1 %v12898_v36 }
0x1231   : >> { %8494 = vrot.lane.b32.xlu0 %v16675_v61, %s12899_s26  ;;  %8492 = vrot.lane.b32.xlu1 %v16678_v5, %s12899_s26 }
0x1232   : >> { %8651 = vmatpush1.msra.mxu1 %v16643_v43 }
0x1233   : >> { %8652 = vmatprep.subr.mxu1 %v12898_v36 }
0x1234   : >> { %8653 = vmatpush1.msra.mxu1 %v16646_v32 }
0x1235   : >> { %8490 = vrot.lane.b32.xlu0 %v16690_v47, %s12899_s26  ;;  %8488 = vrot.lane.b32.xlu1 %v16693_v17, %s12899_s26  ;;  %s17533_s26 = sshll.u32 %s12856_s0, 5  ;;  %s8396_s0 = sadd.s32 1, %s12856_s0  }
0x1236   : >> { %8654 = vmatprep.subr.mxu1 %v12898_v36  ;;  %s9290_s3 = scalar_lea.vmem [#allocation8], %s17533_s26  ;;  %p8393_p10 = scmp.ge.s32.totalorder %s8396_s0, 2  }
0x1237   : >> { %8655 = vmatpush1.msra.mxu1 %v16656_v33  ;;  %s12904_s8 = smov (%p8393_p10), 126   ;;  %s12905_s25 = smov (%p8393_p10), 127  }
0x1238   : >> { %8656 = vmatprep.subr.mxu1 %v12898_v36 }
0x1239   : >> { %8750 = vrot.lane.b32.xlu0 %v16568_v51, %s12900_s1  ;;  %8920 = vrot.lane.b32.xlu1 %v16568_v51, %s12901_s30 }
0x123a   : >> { %8657 = vmatpush1.msra.mxu1 %v16659_v38 }
0x123b   : >> { %8682 = vmatprep.subr.mxu1 %v12898_v36 }
0x123c   : >> { %8683 = vmatpush2.msra.mxu1 %v16675_v61 }
0x123d   : >> { %8748 = vrot.lane.b32.xlu0 %v16578_v7, %s12900_s1  ;;  %8918 = vrot.lane.b32.xlu1 %v16578_v7, %s12901_s30 }
0x123e   : >> { %8684 = vmatprep.subr.mxu1 %v12898_v36 }
0x123f   : >> { %8685 = vmatpush2.msra.mxu1 %v16678_v5 }
0x1240   : >> { %8686 = vmatprep.subr.mxu1 %v12898_v36 }
0x1241   : >> { %8746 = vrot.lane.b32.xlu0 %v16571_v19, %s12900_s1  ;;  %8916 = vrot.lane.b32.xlu1 %v16571_v19, %s12901_s30 }
0x1242   : >> { %8687 = vmatpush2.msra.mxu1 %v16690_v47 }
0x1243   : >> { %8688 = vmatprep.subr.mxu1 %v12898_v36 }
0x1244   : >> { %8689 = vmatpush2.msra.mxu1 %v16693_v17 }
0x1245   : >> { %8744 = vrot.lane.b32.xlu0 %v16581_v58, %s12900_s1  ;;  %8914 = vrot.lane.b32.xlu1 %v16581_v58, %s12901_s30 }
0x1246   : >> { %8962 = vmatprep.subr.mxu1 %v12898_v36  ;;  %8691 = vmatmul.mubr.f32.vlgmr.msra.gmra.mxu1 %v8419_v59 }
0x1247   : >> { %10701 = vmatprep.mubr.msk.f32.mxu1 %vm6649_vm14, %v8422_v53 }
0x1249   : >> { %8742 = vrot.lane.b32.xlu0 %v16591_v27, %s12900_s1  ;;  %8912 = vrot.lane.b32.xlu1 %v16591_v27, %s12901_s30 }
0x124a   : >> { %8696 = vmatmul.mubr.f32.gmra.mxu1 %v8421_v3 }
0x124b   : >> { %10702 = vmatprep.mubr.msk.f32.mxu1 %vm6649_vm14, %v8424_v4 }
0x124d   : >> { %8740 = vrot.lane.b32.xlu0 %v16594_v52, %s12900_s1  ;;  %8910 = vrot.lane.b32.xlu1 %v16594_v52, %s12901_s30 }
0x124e   : >> { %8701 = vmatmul.mubr.f32.gmra.mxu1 %v8423_v37 }
0x124f   : >> { %10703 = vmatprep.mubr.msk.f32.mxu1 %vm6649_vm14, %v8426_v34 }
0x1251   : >> { %8738 = vrot.lane.b32.xlu0 %v16604_v23, %s12900_s1  ;;  %8908 = vrot.lane.b32.xlu1 %v16604_v23, %s12901_s30 }
0x1252   : >> { %8706 = vmatmul.mubr.f32.gmra.mxu1 %v8425_v50 }
0x1253   : >> { %10724 = vmatprep.mubr.msk.f32.mxu1 %vm6649_vm14, %v10717_v25 }
0x1255   : >> { %8736 = vrot.lane.b32.xlu0 %v16607_v14, %s12900_s1  ;;  %8906 = vrot.lane.b32.xlu1 %v16607_v14, %s12901_s30 }
0x1259   : >> { %8734 = vrot.lane.b32.xlu0 %v16617_v9, %s12900_s1  ;;  %8904 = vrot.lane.b32.xlu1 %v16617_v9, %s12901_s30 }
0x125d   : >> { %8732 = vrot.lane.b32.xlu0 %v16620_v26, %s12900_s1  ;;  %8902 = vrot.lane.b32.xlu1 %v16620_v26, %s12901_s30 }
0x1261   : >> { %8730 = vrot.lane.b32.xlu0 %v16630_v55, %s12900_s1  ;;  %8900 = vrot.lane.b32.xlu1 %v16630_v55, %s12901_s30 }
0x1265   : >> { %8728 = vrot.lane.b32.xlu0 %v16633_v28, %s12900_s1  ;;  %8898 = vrot.lane.b32.xlu1 %v16633_v28, %s12901_s30 }
0x1269   : >> { %8726 = vrot.lane.b32.xlu0 %v16643_v43, %s12900_s1  ;;  %8896 = vrot.lane.b32.xlu1 %v16643_v43, %s12901_s30 }
0x126d   : >> { %8724 = vrot.lane.b32.xlu0 %v16646_v32, %s12900_s1  ;;  %8894 = vrot.lane.b32.xlu1 %v16646_v32, %s12901_s30 }
0x1271   : >> { %8722 = vrot.lane.b32.xlu0 %v16656_v33, %s12900_s1  ;;  %8892 = vrot.lane.b32.xlu1 %v16656_v33, %s12901_s30 }
0x1275   : >> { %8720 = vrot.lane.b32.xlu0 %v16659_v38, %s12900_s1  ;;  %8890 = vrot.lane.b32.xlu1 %v16659_v38, %s12901_s30 }
0x1279   : >> { %8758 = vrot.lane.b32.xlu0 %v16675_v61, %s12900_s1  ;;  %8928 = vrot.lane.b32.xlu1 %v16675_v61, %s12901_s30 }
0x127d   : >> { %8756 = vrot.lane.b32.xlu0 %v16678_v5, %s12900_s1  ;;  %8926 = vrot.lane.b32.xlu1 %v16678_v5, %s12901_s30 }
0x1281   : >> { %8754 = vrot.lane.b32.xlu0 %v16690_v47, %s12900_s1  ;;  %8924 = vrot.lane.b32.xlu1 %v16690_v47, %s12901_s30 }
0x1283   : >> { %v8487_v40 = vpop.permute.xlu0 %8486  ;;  %v8483_v63 = vpop.permute.xlu1 %8482 }
0x1284   : >> { %8530 = vmatpush1.msra.mxu0 %v8487_v40 }
0x1285   : >> { %8752 = vrot.lane.b32.xlu0 %v16693_v17, %s12900_s1  ;;  %8922 = vrot.lane.b32.xlu1 %v16693_v17, %s12901_s30 }
0x1286   : >> { %8531 = vmatprep.subr.mxu0 %v12898_v36 }
0x1287   : >> { %v8485_v12 = vpop.permute.xlu0 %8484  ;;  %v8481_v10 = vpop.permute.xlu1 %8480 }
0x1288   : >> { %8532 = vmatpush1.msra.mxu0 %v8485_v12 }
0x1289   : >> { %8533 = vmatprep.subr.mxu0 %v12898_v36  ;;  %9090 = vrot.lane.b32.xlu0 %v16568_v51, %s12902_s5  ;;  %v9221_v51 = vld [vmem:[%s17488_s14] sm:$0xff] }
0x128a   : >> { %8534 = vmatpush1.msra.mxu0 %v8483_v63  ;;  %9088 = vrot.lane.b32.xlu1 %v16578_v7, %s12902_s5 }
0x128b   : >> { %8535 = vmatprep.subr.mxu0 %v12898_v36  ;;  %v8479_v31 = vpop.permute.xlu0 %8478  ;;  %v8477_v16 = vpop.permute.xlu1 %8476 }
0x128c   : >> { %8536 = vmatpush1.msra.mxu0 %v8481_v10 }
0x128d   : >> { %8537 = vmatprep.subr.mxu0 %v12898_v36  ;;  %9086 = vrot.lane.b32.xlu0 %v16571_v19, %s12902_s5 }
0x128e   : >> { %8538 = vmatpush1.msra.mxu0 %v8479_v31  ;;  %9084 = vrot.lane.b32.xlu1 %v16581_v58, %s12902_s5  ;;  %v10695_v58 = vld [vmem:[%s17532_s7 + $0x78] sm:$0xff] }
0x128f   : >> { %8539 = vmatprep.subr.mxu0 %v12898_v36  ;;  %v8475_v49 = vpop.permute.xlu0 %8474  ;;  %v8473_v11 = vpop.permute.xlu1 %8472 }
0x1290   : >> { %8540 = vmatpush1.msra.mxu0 %v8477_v16 }
0x1291   : >> { %8541 = vmatprep.subr.mxu0 %v12898_v36  ;;  %9082 = vrot.lane.b32.xlu0 %v16591_v27, %s12902_s5  ;;  %v9222_v27 = vld [vmem:[%s17488_s14 + $0x8] sm:$0xff] }
0x1292   : >> { %8542 = vmatpush1.msra.mxu0 %v8475_v49  ;;  %9080 = vrot.lane.b32.xlu1 %v16594_v52, %s12902_s5  ;;  %v10694_v52 = vld [vmem:[%s17532_s7 + $0x70] sm:$0xff] }
0x1293   : >> { %8543 = vmatprep.subr.mxu0 %v12898_v36  ;;  %v8471_v22 = vpop.permute.xlu0 %8470  ;;  %v8469_v42 = vpop.permute.xlu1 %8468 }
0x1294   : >> { %8544 = vmatpush1.msra.mxu0 %v8473_v11 }
0x1295   : >> { %8545 = vmatprep.subr.mxu0 %v12898_v36  ;;  %9078 = vrot.lane.b32.xlu0 %v16604_v23, %s12902_s5  ;;  %v9224_v23 = vld [vmem:[%s17488_s14 + $0x18] sm:$0xff] }
0x1296   : >> { %8546 = vmatpush1.msra.mxu0 %v8471_v22  ;;  %9076 = vrot.lane.b32.xlu1 %v16607_v14, %s12902_s5 }
0x1297   : >> { %8547 = vmatprep.subr.mxu0 %v12898_v36  ;;  %v8467_v44 = vpop.permute.xlu0 %8466  ;;  %v8465_v35 = vpop.permute.xlu1 %8464 }
0x1298   : >> { %8548 = vmatpush1.msra.mxu0 %v8469_v42 }
0x1299   : >> { %8549 = vmatprep.subr.mxu0 %v12898_v36  ;;  %9074 = vrot.lane.b32.xlu0 %v16617_v9, %s12902_s5 }
0x129a   : >> { %8550 = vmatpush1.msra.mxu0 %v8467_v44  ;;  %9072 = vrot.lane.b32.xlu1 %v16620_v26, %s12902_s5  ;;  %v10705_v26 = vld [vmem:[%s17532_s7 + $0x88] sm:$0xff] }
0x129b   : >> { %8551 = vmatprep.subr.mxu0 %v12898_v36  ;;  %v8463_v46 = vpop.permute.xlu0 %8462  ;;  %v8461_v48 = vpop.permute.xlu1 %8460 }
0x129c   : >> { %8552 = vmatpush1.msra.mxu0 %v8465_v35 }
0x129d   : >> { %8553 = vmatprep.subr.mxu0 %v12898_v36  ;;  %9070 = vrot.lane.b32.xlu0 %v16630_v55, %s12902_s5  ;;  %v9223_v55 = vld [vmem:[%s17488_s14 + $0x10] sm:$0xff] }
0x129e   : >> { %8554 = vmatpush1.msra.mxu0 %v8463_v46  ;;  %9068 = vrot.lane.b32.xlu1 %v16633_v28, %s12902_s5  ;;  %v10741_v28 = vld [vmem:[%s17488_s14 + $0x28] sm:$0xff] }
0x129f   : >> { %8555 = vmatprep.subr.mxu0 %v12898_v36  ;;  %v8459_v29 = vpop.permute.xlu0 %8458  ;;  %v8457_v15 = vpop.permute.xlu1 %8456 }
0x12a0   : >> { %8556 = vmatpush1.msra.mxu0 %v8461_v48  ;;  %v10704_v48 = vld [vmem:[%s17532_s7 + $0x80] sm:$0xff] }
0x12a1   : >> { %8557 = vmatprep.subr.mxu0 %v12898_v36  ;;  %9066 = vrot.lane.b32.xlu0 %v16643_v43, %s12902_s5 }
0x12a2   : >> { %8558 = vmatpush1.msra.mxu0 %v8459_v29  ;;  %9064 = vrot.lane.b32.xlu1 %v16646_v32, %s12902_s5  ;;  %v10716_v29 = vld [vmem:[%s17532_s7 + $0xc0] sm:$0xff] }
0x12a3   : >> { %8559 = vmatprep.subr.mxu0 %v12898_v36  ;;  %v8495_v30 = vpop.permute.xlu0 %8494  ;;  %v8493_v56 = vpop.permute.xlu1 %8492 }
0x12a4   : >> { %8560 = vmatpush1.msra.mxu0 %v8457_v15 }
0x12a5   : >> { %9062 = vrot.lane.b32.xlu0 %v16656_v33, %s12902_s5  ;;  %8585 = vmatprep.subr.mxu0 %v12898_v36  ;;  %v10740_v33 = vld [vmem:[%s17488_s14 + $0x20] sm:$0xff] }
0x12a6   : >> { %8586 = vmatpush2.msra.mxu0 %v8495_v30  ;;  %9060 = vrot.lane.b32.xlu1 %v16659_v38, %s12902_s5  ;;  %v10743_v38 = vld [vmem:[%s17488_s14 + $0x38] sm:$0xff] }
0x12a7   : >> { %v8491_v20 = vpop.permute.xlu0 %8490  ;;  %8587 = vmatprep.subr.mxu0 %v12898_v36  ;;  %v8489_v57 = vpop.permute.xlu1 %8488 }
0x12a8   : >> { %8588 = vmatpush2.msra.mxu0 %v8493_v56  ;;  %v10707_v56 = vld [vmem:[%s17532_s7 + $0x98] sm:$0xff] }
0x12a9   : >> { %9098 = vrot.lane.b32.xlu0 %v16675_v61, %s12902_s5  ;;  %8589 = vmatprep.subr.mxu0 %v12898_v36  ;;  %v10742_v61 = vld [vmem:[%s17488_s14 + $0x30] sm:$0xff] }
0x12aa   : >> { %8590 = vmatpush2.msra.mxu0 %v8491_v20  ;;  %9096 = vrot.lane.b32.xlu1 %v16678_v5, %s12902_s5  ;;  %v10719_v20 = vld [vmem:[%s17532_s7 + $0xd8] sm:$0xff] }
0x12ab   : >> { %v8751_v54 = vpop.permute.xlu0 %8750  ;;  %8591 = vmatprep.subr.mxu0 %v12898_v36  ;;  %v8921_v62 = vpop.permute.xlu1 %8920 }
0x12ac   : >> { %8592 = vmatpush2.msra.mxu0 %v8489_v57  ;;  %8963 = vmatpush1.msra.mxu1 %v8921_v62  ;;  %v10706_v57 = vld [vmem:[%s17532_s7 + $0x90] sm:$0xff] }
0x12ad   : >> { %9094 = vrot.lane.b32.xlu0 %v16690_v47, %s12902_s5  ;;  %8792 = vmatprep.subr.mxu0 %v12898_v36 }
0x12ae   : >> { %8594 = vmatmul.mubr.f32.vlgmr.msra.gmra.mxu0 %v10688_v1  ;;  %9092 = vrot.lane.b32.xlu1 %v16693_v17, %s12902_s5  ;;  %v10718_v1 = vld [vmem:[%s17532_s7 + $0xd0] sm:$0xff] }
0x12af   : >> { %8793 = vmatpush1.msra.mxu0 %v8751_v54  ;;  %v8749_v41 = vpop.permute.xlu0 %8748  ;;  %v8919_v6 = vpop.permute.xlu1 %8918  ;;  %8964 = vmatprep.subr.mxu1 %v12898_v36 }
0x12b0   : >> { %8794 = vmatprep.subr.mxu0 %v12898_v36  ;;  %8965 = vmatpush1.msra.mxu1 %v8919_v6 }
0x12b1   : >> { %8795 = vmatpush1.msra.mxu0 %v8749_v41  ;;  %8966 = vmatprep.subr.mxu1 %v12898_v36  ;;  %v10709_v41 = vld [vmem:[%s17532_s7 + $0xa8] sm:$0xff] }
0x12b2   : >> { %8796 = vmatprep.subr.mxu0 %v12898_v36  ;;  %10697 = vmatprep.mubr.msk.f32.mxu0 %vm6649_vm14, %v10691_v2  ;;  %v10708_v2 = vld [vmem:[%s17532_s7 + $0xa0] sm:$0xff] }
0x12b3   : >> { %v8747_v60 = vpop.permute.xlu0 %8746  ;;  %v8917_v45 = vpop.permute.xlu1 %8916  ;;  %8599 = vmatmul.mubr.f32.gmra.mxu0 %v10690_v18  ;;  %9227 = vperm.xlu0 %12792, %v9221_v51   ;;  %v10710_v51 = vld [vmem:[%s17532_s7 + $0xb0] sm:$0xff] }
0x12b4   : >> { %8797 = vmatpush1.msra.mxu0 %v8747_v60  ;;  %8967 = vmatpush1.msra.mxu1 %v8917_v45  ;;  %v10721_v60 = vld [vmem:[%s17532_s7 + $0xe8] sm:$0xff] }
0x12b5   : >> { %8798 = vmatprep.subr.mxu0 %v12898_v36  ;;  %8968 = vmatprep.subr.mxu1 %v12898_v36 }
0x12b6   : >> { %10698 = vmatprep.mubr.msk.f32.mxu0 %vm6649_vm14, %v10693_v21  ;;  %9232 = vperm.xlu1 %12793, %v9222_v27   ;;  %v10720_v21 = vld [vmem:[%s17532_s7 + $0xe0] sm:$0xff] }
0x12b7   : >> { %v8745_v19 = vpop.permute.xlu0 %8744  ;;  %v8915_v7 = vpop.permute.xlu1 %8914  ;;  %8604 = vmatmul.mubr.f32.gmra.mxu0 %v10692_v24  ;;  %9242 = vperm.xlu0 %12792, %v9224_v23   ;;  %v10722_v23 = vld [vmem:[%s17532_s7 + $0xf0] sm:$0xff] }
0x12b8   : >> { %8799 = vmatpush1.msra.mxu0 %v8745_v19  ;;  %8969 = vmatpush1.msra.mxu1 %v8915_v7  ;;  %v10723_v7 = vld [vmem:[%s17532_s7 + $0xf8] sm:$0xff] }
0x12b9   : >> { %8800 = vmatprep.subr.mxu0 %v12898_v36  ;;  %8970 = vmatprep.subr.mxu1 %v12898_v36 }
0x12ba   : >> { %10699 = vmatprep.mubr.msk.f32.mxu0 %vm6649_vm14, %v10695_v58  ;;  %9237 = vperm.xlu1 %12793, %v9223_v55  }
0x12bb   : >> { %v8743_v14 = vpop.permute.xlu0 %8742  ;;  %v8913_v9 = vpop.permute.xlu1 %8912  ;;  %8609 = vmatmul.mubr.f32.gmra.mxu0 %v10694_v52  ;;  %9261 = vperm.xlu0 %12792, %v10741_v28  }
0x12bc   : >> { %8801 = vmatpush1.msra.mxu0 %v8743_v14  ;;  %8971 = vmatpush1.msra.mxu1 %v8913_v9 }
0x12bd   : >> { %8802 = vmatprep.subr.mxu0 %v12898_v36  ;;  %8972 = vmatprep.subr.mxu1 %v12898_v36 }
0x12be   : >> { %10712 = vmatprep.mubr.msk.f32.mxu0 %vm6649_vm14, %v10705_v26  ;;  %9256 = vperm.xlu1 %12793, %v10740_v33  }
0x12bf   : >> { %v8741_v43 = vpop.permute.xlu0 %8740  ;;  %v8911_v32 = vpop.permute.xlu1 %8910  ;;  %9271 = vperm.xlu0 %12792, %v10743_v38  }
0x12c0   : >> { %8803 = vmatpush1.msra.mxu0 %v8741_v43  ;;  %8973 = vmatpush1.msra.mxu1 %v8911_v32 }
0x12c1   : >> { %8804 = vmatprep.subr.mxu0 %v12898_v36  ;;  %8974 = vmatprep.subr.mxu1 %v12898_v36 }
0x12c2   : >> { %9266 = vperm.xlu1 %12793, %v10742_v61  }
0x12c3   : >> { %v8739_v39 = vpop.permute.xlu0 %8738  ;;  %v8909_v8 = vpop.permute.xlu1 %8908 }
0x12c4   : >> { %8805 = vmatpush1.msra.mxu0 %v8739_v39  ;;  %8975 = vmatpush1.msra.mxu1 %v8909_v8 }
0x12c5   : >> { %8806 = vmatprep.subr.mxu0 %v12898_v36  ;;  %8976 = vmatprep.subr.mxu1 %v12898_v36 }
0x12c7   : >> { %v8737_v5 = vpop.permute.xlu0 %8736  ;;  %v8907_v47 = vpop.permute.xlu1 %8906 }
0x12c8   : >> { %8807 = vmatpush1.msra.mxu0 %v8737_v5  ;;  %8977 = vmatpush1.msra.mxu1 %v8907_v47  ;;  %v10729_v5 = vld [vmem:[%s17532_s7 + $0x108] sm:$0xff] }
0x12c9   : >> { %8808 = vmatprep.subr.mxu0 %v12898_v36  ;;  %8978 = vmatprep.subr.mxu1 %v12898_v36  ;;  %v10733_v47 = vld [vmem:[%s17532_s7 + $0x128] sm:$0xff] }
0x12cb   : >> { %v8735_v17 = vpop.permute.xlu0 %8734  ;;  %v8905_v59 = vpop.permute.xlu1 %8904 }
0x12cc   : >> { %8809 = vmatpush1.msra.mxu0 %v8735_v17  ;;  %8979 = vmatpush1.msra.mxu1 %v8905_v59  ;;  %v10728_v17 = vld [vmem:[%s17532_s7 + $0x100] sm:$0xff] }
0x12cd   : >> { %8810 = vmatprep.subr.mxu0 %v12898_v36  ;;  %8980 = vmatprep.subr.mxu1 %v12898_v36  ;;  %v10732_v59 = vld [vmem:[%s17532_s7 + $0x120] sm:$0xff] }
0x12cf   : >> { %v8733_v53 = vpop.permute.xlu0 %8732  ;;  %v8903_v3 = vpop.permute.xlu1 %8902 }
0x12d0   : >> { %8811 = vmatpush1.msra.mxu0 %v8733_v53  ;;  %8981 = vmatpush1.msra.mxu1 %v8903_v3  ;;  %v10731_v53 = vld [vmem:[%s17532_s7 + $0x118] sm:$0xff] }
0x12d1   : >> { %8812 = vmatprep.subr.mxu0 %v12898_v36  ;;  %8982 = vmatprep.subr.mxu1 %v12898_v36  ;;  %v10735_v3 = vld [vmem:[%s17532_s7 + $0x138] sm:$0xff] }
0x12d3   : >> { %v8731_v4 = vpop.permute.xlu0 %8730  ;;  %v8901_v37 = vpop.permute.xlu1 %8900 }
0x12d4   : >> { %8813 = vmatpush1.msra.mxu0 %v8731_v4  ;;  %8983 = vmatpush1.msra.mxu1 %v8901_v37  ;;  %v10734_v4 = vld [vmem:[%s17532_s7 + $0x130] sm:$0xff] }
0x12d5   : >> { %8814 = vmatprep.subr.mxu0 %v12898_v36  ;;  %8984 = vmatprep.subr.mxu1 %v12898_v36 }
0x12d7   : >> { %v8729_v34 = vpop.permute.xlu0 %8728  ;;  %v8899_v50 = vpop.permute.xlu1 %8898 }
0x12d8   : >> { %8815 = vmatpush1.msra.mxu0 %v8729_v34  ;;  %8985 = vmatpush1.msra.mxu1 %v8899_v50 }
0x12d9   : >> { %8816 = vmatprep.subr.mxu0 %v12898_v36  ;;  %8986 = vmatprep.subr.mxu1 %v12898_v36 }
0x12db   : >> { %v8727_v25 = vpop.permute.xlu0 %8726  ;;  %v8897_v40 = vpop.permute.xlu1 %8896 }
0x12dc   : >> { %8817 = vmatpush1.msra.mxu0 %v8727_v25  ;;  %8987 = vmatpush1.msra.mxu1 %v8897_v40 }
0x12dd   : >> { %8818 = vmatprep.subr.mxu0 %v12898_v36  ;;  %8988 = vmatprep.subr.mxu1 %v12898_v36 }
0x12df   : >> { %v8725_v63 = vpop.permute.xlu0 %8724  ;;  %v8895_v12 = vpop.permute.xlu1 %8894 }
0x12e0   : >> { %8819 = vmatpush1.msra.mxu0 %v8725_v63  ;;  %8989 = vmatpush1.msra.mxu1 %v8895_v12 }
0x12e1   : >> { %8820 = vmatprep.subr.mxu0 %v12898_v36  ;;  %8990 = vmatprep.subr.mxu1 %v12898_v36 }
0x12e3   : >> { %v8723_v10 = vpop.permute.xlu0 %8722  ;;  %v8893_v31 = vpop.permute.xlu1 %8892 }
0x12e4   : >> { %8821 = vmatpush1.msra.mxu0 %v8723_v10  ;;  %8991 = vmatpush1.msra.mxu1 %v8893_v31 }
0x12e5   : >> { %8822 = vmatprep.subr.mxu0 %v12898_v36  ;;  %8992 = vmatprep.subr.mxu1 %v12898_v36 }
0x12e7   : >> { %v8721_v16 = vpop.permute.xlu0 %8720  ;;  %v8891_v49 = vpop.permute.xlu1 %8890 }
0x12e8   : >> { %8823 = vmatpush1.msra.mxu0 %v8721_v16  ;;  %8993 = vmatpush1.msra.mxu1 %v8891_v49 }
0x12e9   : >> { %8848 = vmatprep.subr.mxu0 %v12898_v36  ;;  %9018 = vmatprep.subr.mxu1 %v12898_v36 }
0x12eb   : >> { %v8759_v11 = vpop.permute.xlu0 %8758  ;;  %v8929_v22 = vpop.permute.xlu1 %8928 }
0x12ec   : >> { %8849 = vmatpush2.msra.mxu0 %v8759_v11  ;;  %9019 = vmatpush2.msra.mxu1 %v8929_v22 }
0x12ed   : >> { %8850 = vmatprep.subr.mxu0 %v12898_v36  ;;  %9020 = vmatprep.subr.mxu1 %v12898_v36 }
0x12ef   : >> { %v8757_v42 = vpop.permute.xlu0 %8756  ;;  %v8927_v44 = vpop.permute.xlu1 %8926 }
0x12f0   : >> { %8851 = vmatpush2.msra.mxu0 %v8757_v42  ;;  %9021 = vmatpush2.msra.mxu1 %v8927_v44 }
0x12f1   : >> { %8852 = vmatprep.subr.mxu0 %v12898_v36  ;;  %9022 = vmatprep.subr.mxu1 %v12898_v36 }
0x12f3   : >> { %v8755_v35 = vpop.permute.xlu0 %8754  ;;  %v8925_v46 = vpop.permute.xlu1 %8924 }
0x12f4   : >> { %8853 = vmatpush2.msra.mxu0 %v8755_v35  ;;  %9023 = vmatpush2.msra.mxu1 %v8925_v46 }
0x12f5   : >> { %8854 = vmatprep.subr.mxu0 %v12898_v36  ;;  %9024 = vmatprep.subr.mxu1 %v12898_v36 }
0x12f7   : >> { %v8753_v15 = vpop.permute.xlu0 %8752  ;;  %v8923_v30 = vpop.permute.xlu1 %8922 }
0x12f8   : >> { %8855 = vmatpush2.msra.mxu0 %v8753_v15  ;;  %9025 = vmatpush2.msra.mxu1 %v8923_v30 }
0x12f9   : >> { %8857 = vmatmul.mubr.f32.vlgmr.msra.gmra.mxu0 %v10704_v48  ;;  %9027 = vmatmul.mubr.f32.vlgmr.msra.gmra.mxu1 %v10716_v29 }
0x12fa   : >> { %9132 = vmatprep.subr.mxu0 %v12898_v36  ;;  %12585 = vmatprep.subr.mxu1 %v12898_v36 }
0x12fb   : >> { %v9091_v54 = vpop.permute.xlu0 %9090  ;;  %10713 = vmatprep.mubr.msk.f32.mxu0 %vm6649_vm14, %v10707_v56  ;;  %10725 = vmatprep.mubr.msk.f32.mxu1 %vm6649_vm14, %v10719_v20 }
0x12fc   : >> { %9133 = vmatpush1.msra.mxu0 %v9091_v54  ;;  %12605 = vmatpush1.msra.mxu1 %v9091_v54  ;;  %v9089_v62 = vpop.permute.xlu1 %9088 }
0x12fd   : >> { %8862 = vmatmul.mubr.f32.gmra.mxu0 %v10706_v57  ;;  %9134 = vmatprep.subr.mxu0 %v12898_v36 }
0x12fe   : >> { %12586 = vmatprep.subr.mxu1 %v12898_v36  ;;  %9135 = vmatpush1.msra.mxu0 %v9089_v62 }
0x12ff   : >> { %12606 = vmatpush1.msra.mxu1 %v9089_v62  ;;  %v9087_v6 = vpop.permute.xlu0 %9086  ;;  %9136 = vmatprep.subr.mxu0 %v12898_v36 }
0x1300   : >> { %9032 = vmatmul.mubr.f32.gmra.mxu1 %v10718_v1  ;;  %12587 = vmatprep.subr.mxu1 %v12898_v36  ;;  %v9085_v18 = vpop.permute.xlu1 %9084 }
0x1301   : >> { %10714 = vmatprep.mubr.msk.f32.mxu0 %vm6649_vm14, %v10709_v41  ;;  %9137 = vmatpush1.msra.mxu0 %v9087_v6 }
0x1302   : >> { %12607 = vmatpush1.msra.mxu1 %v9087_v6  ;;  %8867 = vmatmul.mubr.f32.gmra.mxu0 %v10708_v2 }
0x1303   : >> { %9138 = vmatprep.subr.mxu0 %v12898_v36  ;;  %12588 = vmatprep.subr.mxu1 %v12898_v36  ;;  %v9083_v45 = vpop.permute.xlu0 %9082 }
0x1304   : >> { %10726 = vmatprep.mubr.msk.f32.mxu1 %vm6649_vm14, %v10721_v60  ;;  %9139 = vmatpush1.msra.mxu0 %v9085_v18  ;;  %v9081_v24 = vpop.permute.xlu1 %9080 }
0x1305   : >> { %12608 = vmatpush1.msra.mxu1 %v9085_v18  ;;  %9140 = vmatprep.subr.mxu0 %v12898_v36 }
0x1306   : >> { %9037 = vmatmul.mubr.f32.gmra.mxu1 %v10720_v21  ;;  %12589 = vmatprep.subr.mxu1 %v12898_v36  ;;  %v17023_v19 = vpop.f32.mrf.mxu1 }
0x1307   : >> { %10715 = vmatprep.mubr.msk.f32.mxu0 %vm6649_vm14, %v10711_v13  ;;  %9141 = vmatpush1.msra.mxu0 %v9083_v45  ;;  %v9079_v58 = vpop.permute.xlu0 %9078 }
0x1308   : >> { %12609 = vmatpush1.msra.mxu1 %v9083_v45  ;;  %8872 = vmatmul.mubr.f32.gmra.mxu0 %v10710_v51  ;;  %v9077_v27 = vpop.permute.xlu1 %9076  ;;  %v8694_v52 = vpop.f32.mrf.mxu1 }
0x1309   : >> { %9142 = vmatprep.subr.mxu0 %v12898_v36  ;;  %12590 = vmatprep.subr.mxu1 %v12898_v36 }
0x130a   : >> { %10727 = vmatprep.mubr.msk.f32.mxu1 %vm6649_vm14, %v10723_v7  ;;  %9143 = vmatpush1.msra.mxu0 %v9081_v24  ;;  %v8697_v37 = vpop.f32.mrf.mxu1 }
0x130b   : >> { %12610 = vmatpush1.msra.mxu1 %v9081_v24  ;;  %9144 = vmatprep.subr.mxu0 %v12898_v36  ;;  %v9075_v14 = vpop.permute.xlu0 %9074 }
0x130c   : >> { %9042 = vmatmul.mubr.f32.gmra.mxu1 %v10722_v23  ;;  %12591 = vmatprep.subr.mxu1 %v12898_v36  ;;  %v9073_v9 = vpop.permute.xlu1 %9072  ;;  %v8699_v34 = vpop.f32.mrf.mxu1 }
0x130d   : >> { %9145 = vmatpush1.msra.mxu0 %v9079_v58  ;;  %12611 = vmatpush1.msra.mxu1 %v9079_v58 }
0x130e   : >> { %9146 = vmatprep.subr.mxu0 %v12898_v36  ;;  %12592 = vmatprep.subr.mxu1 %v12898_v36  ;;  %v8702_v50 = vpop.f32.mrf.mxu1 }
0x130f   : >> { %9147 = vmatpush1.msra.mxu0 %v9077_v27  ;;  %12612 = vmatpush1.msra.mxu1 %v9077_v27  ;;  %v9071_v26 = vpop.permute.xlu0 %9070 }
0x1310   : >> { %9148 = vmatprep.subr.mxu0 %v12898_v36  ;;  %12593 = vmatprep.subr.mxu1 %v12898_v36  ;;  %v9069_v55 = vpop.permute.xlu1 %9068  ;;  %v8704_v25 = vpop.f32.mrf.mxu1 }
0x1311   : >> { %9149 = vmatpush1.msra.mxu0 %v9075_v14  ;;  %12613 = vmatpush1.msra.mxu1 %v9075_v14 }
0x1312   : >> { %9150 = vmatprep.subr.mxu0 %v12898_v36  ;;  %12594 = vmatprep.subr.mxu1 %v12898_v36  ;;  %v8707_v40 = vpop.f32.mrf.mxu1 }
0x1313   : >> { %9151 = vmatpush1.msra.mxu0 %v9073_v9  ;;  %12614 = vmatpush1.msra.mxu1 %v9073_v9  ;;  %v9067_v28 = vpop.permute.xlu0 %9066 }
0x1314   : >> { %9152 = vmatprep.subr.mxu0 %v12898_v36  ;;  %12595 = vmatprep.subr.mxu1 %v12898_v36  ;;  %v9065_v43 = vpop.permute.xlu1 %9064  ;;  %v8709_v63 = vpop.f32.mrf.mxu1 }
0x1315   : >> { %9153 = vmatpush1.msra.mxu0 %v9071_v26  ;;  %12615 = vmatpush1.msra.mxu1 %v9071_v26 }
0x1316   : >> { %9154 = vmatprep.subr.mxu0 %v12898_v36  ;;  %12596 = vmatprep.subr.mxu1 %v12898_v36 }
0x1317   : >> { %9155 = vmatpush1.msra.mxu0 %v9069_v55  ;;  %12616 = vmatpush1.msra.mxu1 %v9069_v55  ;;  %v9063_v32 = vpop.permute.xlu0 %9062 }
0x1318   : >> { %9156 = vmatprep.subr.mxu0 %v12898_v36  ;;  %12597 = vmatprep.subr.mxu1 %v12898_v36  ;;  %v9061_v33 = vpop.permute.xlu1 %9060 }
0x1319   : >> { %9157 = vmatpush1.msra.mxu0 %v9067_v28  ;;  %12617 = vmatpush1.msra.mxu1 %v9067_v28 }
0x131a   : >> { %9158 = vmatprep.subr.mxu0 %v12898_v36  ;;  %12598 = vmatprep.subr.mxu1 %v12898_v36 }
0x131b   : >> { %9159 = vmatpush1.msra.mxu0 %v9065_v43  ;;  %12618 = vmatpush1.msra.mxu1 %v9065_v43  ;;  %v9099_v38 = vpop.permute.xlu0 %9098 }
0x131c   : >> { %9160 = vmatprep.subr.mxu0 %v12898_v36  ;;  %12599 = vmatprep.subr.mxu1 %v12898_v36  ;;  %v9097_v39 = vpop.permute.xlu1 %9096 }
0x131d   : >> { %9161 = vmatpush1.msra.mxu0 %v9063_v32  ;;  %12619 = vmatpush1.msra.mxu1 %v9063_v32 }
0x131e   : >> { %9162 = vmatprep.subr.mxu0 %v12898_v36  ;;  %12600 = vmatprep.subr.mxu1 %v12898_v36 }
0x131f   : >> { %9163 = vmatpush1.msra.mxu0 %v9061_v33  ;;  %12620 = vmatpush1.msra.mxu1 %v9061_v33  ;;  %v9095_v8 = vpop.permute.xlu0 %9094 }
0x1320   : >> { %9188 = vmatprep.subr.mxu0 %v12898_v36  ;;  %12601 = vmatprep.subr.mxu1 %v12898_v36  ;;  %v9093_v61 = vpop.permute.xlu1 %9092 }
0x1321   : >> { %9189 = vmatpush2.msra.mxu0 %v9099_v38  ;;  %12621 = vmatpush2.msra.mxu1 %v9099_v38 }
0x1322   : >> { %9190 = vmatprep.subr.mxu0 %v12898_v36  ;;  %12602 = vmatprep.subr.mxu1 %v12898_v36 }
0x1323   : >> { %9191 = vmatpush2.msra.mxu0 %v9097_v39  ;;  %12622 = vmatpush2.msra.mxu1 %v9097_v39 }
0x1324   : >> { %9192 = vmatprep.subr.mxu0 %v12898_v36  ;;  %12603 = vmatprep.subr.mxu1 %v12898_v36 }
0x1325   : >> { %9193 = vmatpush2.msra.mxu0 %v9095_v8  ;;  %12623 = vmatpush2.msra.mxu1 %v9095_v8 }
0x1326   : >> { %9194 = vmatprep.subr.mxu0 %v12898_v36  ;;  %12604 = vmatprep.subr.mxu1 %v12898_v36  ;;  %v10730_v36 = vld [vmem:[%s17532_s7 + $0x110] sm:$0xff] }
0x1327   : >> { %9195 = vmatpush2.msra.mxu0 %v9093_v61  ;;  %12624 = vmatpush2.msra.mxu1 %v9093_v61 }
0x1328   : >> { %10736 = vmatprep.mubr.msk.f32.mxu0 %vm6649_vm14, %v10729_v5  ;;  %10738 = vmatprep.mubr.msk.f32.mxu1 %vm6649_vm14, %v10733_v47 }
0x1329   : >> { %9197 = vmatmul.mubr.f32.vlgmr.msra.gmra.mxu0 %v10728_v17  ;;  %9207 = vmatmul.mubr.f32.vlgmr.msra.gmra.mxu1 %v10732_v59 }
0x132a   : >> { %10737 = vmatprep.mubr.msk.f32.mxu0 %vm6649_vm14, %v10731_v53  ;;  %10739 = vmatprep.mubr.msk.f32.mxu1 %vm6649_vm14, %v10735_v3  ;;  %vm12906_vm14 = vmmov (%p8393_p10), 0  }
0x132d   : >> { %9202 = vmatmul.mubr.f32.gmra.mxu0 %v10730_v36  ;;  %9212 = vmatmul.mubr.f32.gmra.mxu1 %v10734_v4 }
0x132e   : >> { %v9228_v60 = vpop.permute.xlu0 %9227 }
0x1331   : >> { %v9233_v18 = vpop.permute.xlu1 %9232 }
0x1332   : >> { %v9243_v27 = vpop.permute.xlu0 %9242 }
0x1335   : >> { %v9238_v45 = vpop.permute.xlu1 %9237 }
0x1339   : >> { %v9257_v52 = vpop.permute.xlu1 %9256 }
0x133d   : >> { %v9267_v61 = vpop.permute.xlu1 %9266 }
0x136e   : >> { %v8595_v12 = vpop.f32.mrf.mxu0 }
0x136f   : >> { %v8693_v21 = vadd.f32 %v17023_v19, %v8595_v12  ;;  %v9262_v19 = vpop.permute.xlu0 %9261 }
0x1370   : >> { %v8597_v10 = vpop.f32.mrf.mxu0 }
0x1373   : >> { %v8600_v31 = vpop.f32.mrf.mxu0  ;;  %v9272_v12 = vpop.permute.xlu0 %9271 }
0x1374   : >> { %v8698_v7 = vadd.f32 %v8697_v37, %v8600_v31 }
0x1375   : >> { %v8602_v16 = vpop.f32.mrf.mxu0 }
0x1377   : >> { %v8605_v49 = vpop.f32.mrf.mxu0 }
0x1378   : >> { %v8703_v13 = vadd.f32 %v8702_v50, %v8605_v49 }
0x1379   : >> { %v8607_v11 = vpop.f32.mrf.mxu0 }
0x137b   : >> { %v8610_v22 = vpop.f32.mrf.mxu0 }
0x137c   : >> { %v8708_v58 = vadd.f32 %v8707_v40, %v8610_v22 }
0x137d   : >> { %v8612_v42 = vpop.f32.mrf.mxu0 }
0x13b9   : >> { %v8858_v44 = vpop.f32.mrf.mxu0  ;;  %v9028_v35 = vpop.f32.mrf.mxu1 }
0x13ba   : >> { %v8877_v24 = vadd.f32 %v8858_v44, %v8693_v21  ;;  %v9324_v21 = vld [vmem:[%s17493_s19 + $0x68] sm:$0xff] (%p8393_p10) }
0x13bb   : >> { %v8860_v46 = vpop.f32.mrf.mxu0  ;;  %v9030_v48 = vpop.f32.mrf.mxu1 }
0x13bc   : >> { %v9047_v23 = vadd.f32 %v9028_v35, %v8877_v24  ;;  %v9325_v24 = vld [vmem:[%s17493_s19 + $0x70] sm:$0xff] (%p8393_p10) }
0x13bd   : >> { %v8863_v29 = vpop.f32.mrf.mxu0 }
0x13be   : >> { %v8878_v14 = vadd.f32 %v8863_v29, %v8698_v7  ;;  %v9326_v7 = vld [vmem:[%s17493_s19 + $0x78] sm:$0xff] (%p8393_p10) }
0x13bf   : >> { %v8865_v15 = vpop.f32.mrf.mxu0 }
0x13c0   : >> { %v9033_v30 = vpop.f32.mrf.mxu1 }
0x13c1   : >> { %v9048_v39 = vadd.f32 %v9033_v30, %v8878_v14 }
0x13c2   : >> { %v8868_v56 = vpop.f32.mrf.mxu0  ;;  %v9035_v20 = vpop.f32.mrf.mxu1 }
0x13c3   : >> { %v8879_v51 = vadd.f32 %v8868_v56, %v8703_v13  ;;  %v9316_v13 = vld [vmem:[%s17493_s19 + $0x28] sm:$0xff] (%p8393_p10) }
0x13c4   : >> { %v8870_v57 = vpop.f32.mrf.mxu0 }
0x13c5   : > { %v9319_v57 = vld [vmem:[%s17493_s19 + $0x40] sm:$0xff] (%p8393_p10) }
0x13c6   : >> { %v9038_v54 = vpop.f32.mrf.mxu1 }
0x13c7   : >> { %v9049_v9 = vadd.f32 %v9038_v54, %v8879_v51  ;;  %v9311_v54 = vld [vmem:[%s17493_s19] sm:$0xff] (%p8393_p10)  ;;  %v9317_v51 = vld [vmem:[%s17493_s19 + $0x30] sm:$0xff] (%p8393_p10) }
0x13c8   : >> { %v8873_v62 = vpop.f32.mrf.mxu0  ;;  %v9040_v1 = vpop.f32.mrf.mxu1 }
0x13c9   : >> { %v8880_v26 = vadd.f32 %v8873_v62, %v8708_v58  ;;  %v9320_v62 = vld [vmem:[%s17493_s19 + $0x48] sm:$0xff] (%p8393_p10)  ;;  %v9318_v58 = vld [vmem:[%s17493_s19 + $0x38] sm:$0xff] (%p8393_p10) }
0x13ca   : >> { %v8875_v41 = vpop.f32.mrf.mxu0  ;;  %v9312_v1 = vld [vmem:[%s17493_s19 + $0x8] sm:$0xff] (%p8393_p10) }
0x13cb   : > { %v9321_v41 = vld [vmem:[%s17493_s19 + $0x50] sm:$0xff] (%p8393_p10) }
0x13cc   : >> { %v9043_v6 = vpop.f32.mrf.mxu1 }
0x13cd   : >> { %v9050_v8 = vadd.f32 %v9043_v6, %v8880_v26  ;;  %v9313_v6 = vld [vmem:[%s17493_s19 + $0x10] sm:$0xff] (%p8393_p10) }
0x13ce   : >> { %v9045_v2 = vpop.f32.mrf.mxu1 }
0x13cf   : > { %v9322_v2 = vld [vmem:[%s17493_s19 + $0x58] sm:$0xff] (%p8393_p10) }
0x13e9   : >> { %v9198_v55 = vpop.f32.mrf.mxu0  ;;  %v9208_v28 = vpop.f32.mrf.mxu1 }
0x13ea   : >> { %v9217_v43 = vadd.f32 %v9198_v55, %v9047_v23  ;;  %v9219_v32 = vadd.f32 %v9208_v28, %v9049_v9 }
0x13eb   : >> { %v9200_v33 = vpop.f32.mrf.mxu0  ;;  %v9210_v38 = vpop.f32.mrf.mxu1 }
0x13ec   : >> { %v9245_v5 = vmul.f32 %v9228_v60, %v9217_v43  ;;  %v9247_v47 = vmul.f32 %v9238_v45, %v9219_v32  ;;  %v9323_v60 = vld [vmem:[%s17493_s19 + $0x60] sm:$0xff] (%p8393_p10) }
0x13ed   : >> { %v9203_v17 = vpop.f32.mrf.mxu0  ;;  %v9213_v59 = vpop.f32.mrf.mxu1  ;;  %v9315_v45 = vld [vmem:[%s17493_s19 + $0x20] sm:$0xff] (%p8393_p10) }
0x13ee   : >> { %v9274_v53 = vadd.f32 %v9257_v52, %v9245_v5  ;;  %v9276_v3 = vadd.f32 %v9267_v61, %v9247_v47  ;;  %v9218_v36 = vadd.f32 %v9203_v17, %v9048_v39  ;;  %v9220_v4 = vadd.f32 %v9213_v59, %v9050_v8  ;;  %v10792_v52 = vld [vmem:[%s17493_s19 + $0x100] sm:$0xff] (%p8393_p10)  ;;  %v10761_v5 = vld [vmem:[%s17493_s19 + $0x88] sm:$0xff] (%p8393_p10)  ;;  %v10762_v47 = vld [vmem:[%s17493_s19 + $0x90] sm:$0xff] (%p8393_p10) }
0x13ef   : >> { %v9205_v37 = vpop.f32.mrf.mxu0  ;;  %v9215_v34 = vpop.f32.mrf.mxu1 }
0x13f0   : >> { %vm9278_vm5 = vcmp.gt.f32.partialorder %v9274_v53, 0.0  ;;  %v9282_v50 = vmul.f32 0.01, %v9274_v53  ;;  %vm9280_vm7 = vcmp.gt.f32.partialorder %v9276_v3, 0.0  ;;  %v9284_v25 = vmul.f32 0.01, %v9276_v3 }
0x13f1   : >> { %v9246_v40 = vmul.f32 %v9233_v18, %v9218_v36  ;;  %v9248_v63 = vmul.f32 %v9243_v27, %v9220_v4  ;;  %v9314_v18 = vld [vmem:[%s17493_s19 + $0x18] sm:$0xff] (%p8393_p10)  ;;  %v10760_v27 = vld [vmem:[%s17493_s19 + $0x80] sm:$0xff] (%p8393_p10)  ;;  %v10793_v36 = vld [vmem:[%s17493_s19 + $0x108] sm:$0xff] (%p8393_p10) }
0x13f2   : >> { %v9286_v10 = vsel %vm9278_vm5, %v9274_v53, %v9282_v50  ;;  %v9288_v31 = vsel %vm9280_vm7, %v9276_v3, %v9284_v25  ;;  %v10763_v53 = vld [vmem:[%s17493_s19 + $0x98] sm:$0xff] (%p8393_p10)  ;;  %v10764_v3 = vld [vmem:[%s17493_s19 + $0xa0] sm:$0xff] (%p8393_p10)  ;;  %v10794_v4 = vld [vmem:[%s17493_s19 + $0x110] sm:$0xff] (%p8393_p10) }
0x13f3   : >> { %9291 = vst.msk [vmem:[%s9290_s3] sm:$0xff] %vm1221_vm6, %v9286_v10  ;;  %9293 = vst.msk [vmem:[%s9290_s3 + $0x10] sm:$0xff] %vm1221_vm6, %v9288_v31  ;;  %v9275_v16 = vadd.f32 %v9262_v19, %v9246_v40  ;;  %v9277_v49 = vadd.f32 %v9272_v12, %v9248_v63  ;;  %v10765_v37 = vld [vmem:[%s17493_s19 + $0xa8] sm:$0xff] (%p8393_p10)  ;;  %v10766_v34 = vld [vmem:[%s17493_s19 + $0xb0] sm:$0xff] (%p8393_p10) }
0x13f4   : > { %8395 = sbr.rel (!%p8393_p10) target bundleno = 4618 (0x120a), region = 316  ;;  %v10795_v50 = vld [vmem:[%s17493_s19 + $0x118] sm:$0xff] (%p8393_p10)  ;;  %v10796_v25 = vld [vmem:[%s17493_s19 + $0x120] sm:$0xff] (%p8393_p10)  ;;  %v10797_v12 = vld [vmem:[%s17493_s19 + $0x128] sm:$0xff] (%p8393_p10) }
0x13f5   : >> { %vm9279_vm8 = vcmp.gt.f32.partialorder %v9275_v16, 0.0  ;;  %v9283_v11 = vmul.f32 0.01, %v9275_v16  ;;  %vm9281_vm9 = vcmp.gt.f32.partialorder %v9277_v49, 0.0  ;;  %v9285_v22 = vmul.f32 0.01, %v9277_v49 }
0x13f6   : > { %v10767_v40 = vld [vmem:[%s17493_s19 + $0xb8] sm:$0xff] (%p8393_p10)  ;;  %v10768_v63 = vld [vmem:[%s17493_s19 + $0xc0] sm:$0xff] (%p8393_p10)  ;;  %v10798_v10 = vld [vmem:[%s17493_s19 + $0x130] sm:$0xff] (%p8393_p10) }
0x13f7   : >> { %v9287_v42 = vsel %vm9279_vm8, %v9275_v16, %v9283_v11  ;;  %v9289_v44 = vsel %vm9281_vm9, %v9277_v49, %v9285_v22  ;;  %v10769_v31 = vld [vmem:[%s17493_s19 + $0xc8] sm:$0xff] (%p8393_p10)  ;;  %v10770_v16 = vld [vmem:[%s17493_s19 + $0xd0] sm:$0xff] (%p8393_p10)  ;;  %v10799_v49 = vld [vmem:[%s17493_s19 + $0x138] sm:$0xff] (%p8393_p10) }
0x13f8   : >> { %9292 = vst.msk [vmem:[%s9290_s3 + $0x8] sm:$0xff] %vm1221_vm6, %v9287_v42  ;;  %9294 = vst.msk [vmem:[%s9290_s3 + $0x18] sm:$0xff] %vm1221_vm6, %v9289_v44  ;;  %vm9335_vm6 = vcmask (%p8393_p10), 523264   ;;  %v10800_v11 = vld [vmem:[%s17493_s19 + $0x140] sm:$0xff] (%p8393_p10)  ;;  %v10771_v22 = vld [vmem:[%s17493_s19 + $0xd8] sm:$0xff] (%p8393_p10) }
0x13f9   : > { %12458 = vmatprep.mubr.msk.f32.mxu1 %vm9335_vm6, %v9319_v57  ;;  %12446 = vmatprep.mubr.msk.f32.mxu0 %vm9335_vm6, %v9311_v54  ;;  %v10772_v42 = vld [vmem:[%s17493_s19 + $0xe0] sm:$0xff]  ;;  %v10801_v44 = vld [vmem:[%s17493_s19 + $0x148] sm:$0xff]  ;;  %v10807_v57 = vld [vmem:[%s17493_s19 + $0x178] sm:$0xff] }
0x13ff   : > { %v9334_v35 = vld [vmem:[#allocation8 + $0x38] sm:$0xff]  ;;  %v9333_v46 = vld [vmem:[#allocation8 + $0x30] sm:$0xff]  ;;  %v9332_v48 = vld [vmem:[#allocation8 + $0x28] sm:$0xff] }
0x1400   : > { %9834 = vrot.lane.b32.xlu1 %v9334_v35, %s12904_s8  ;;  %9584 = vrot.lane.b32.xlu0 %v9334_v35, %s12905_s25  ;;  %v9331_v29 = vld [vmem:[#allocation8 + $0x20] sm:$0xff]  ;;  %v9330_v15 = vld [vmem:[#allocation8 + $0x18] sm:$0xff]  ;;  %v9329_v30 = vld [vmem:[#allocation8 + $0x10] sm:$0xff] }
0x1401   : > { %12625 = vmatprep.subr.mxu1 %v9334_v35  ;;  %12430 = vmatprep.subr.mxu0 %v9334_v35  ;;  %v9328_v56 = vld [vmem:[#allocation8 + $0x8] sm:$0xff]  ;;  %v9327_v20 = vld [vmem:[#allocation8] sm:$0xff] }
0x1402   : > { %12633 = vmatpush3.msra.mxu1 %v9334_v35  ;;  %12431 = vmatpush3.msra.mxu0 %v9334_v35  ;;  %v10802_v35 = vld [vmem:[%s17493_s19 + $0x150] sm:$0xff] }
0x1403   : > { %12626 = vmatprep.subr.mxu1 %v9333_v46  ;;  %12432 = vmatprep.subr.mxu0 %v9333_v46 }
0x1404   : > { %9582 = vrot.lane.b32.xlu0 %v9333_v46, %s12905_s25  ;;  %9580 = vrot.lane.b32.xlu1 %v9332_v48, %s12905_s25 }
0x1405   : > { %12634 = vmatpush3.msra.mxu1 %v9333_v46  ;;  %12433 = vmatpush3.msra.mxu0 %v9333_v46 }
0x1406   : > { %12627 = vmatprep.subr.mxu1 %v9332_v48  ;;  %12434 = vmatprep.subr.mxu0 %v9332_v48 }
0x1407   : > { %12635 = vmatpush3.msra.mxu1 %v9332_v48  ;;  %12435 = vmatpush3.msra.mxu0 %v9332_v48 }
0x1408   : > { %9832 = vrot.lane.b32.xlu0 %v9333_v46, %s12904_s8  ;;  %9578 = vrot.lane.b32.xlu1 %v9331_v29, %s12905_s25  ;;  %v10773_v46 = vld [vmem:[%s17493_s19 + $0xe8] sm:$0xff] }
0x1409   : > { %12628 = vmatprep.subr.mxu1 %v9331_v29  ;;  %12436 = vmatprep.subr.mxu0 %v9331_v29 }
0x140a   : > { %12636 = vmatpush3.msra.mxu1 %v9331_v29  ;;  %12437 = vmatpush3.msra.mxu0 %v9331_v29 }
0x140b   : > { %12629 = vmatprep.subr.mxu1 %v9330_v15  ;;  %12438 = vmatprep.subr.mxu0 %v9330_v15 }
0x140c   : > { %9830 = vrot.lane.b32.xlu0 %v9332_v48, %s12904_s8  ;;  %9576 = vrot.lane.b32.xlu1 %v9330_v15, %s12905_s25  ;;  %v10774_v48 = vld [vmem:[%s17493_s19 + $0xf0] sm:$0xff] }
0x140d   : > { %12637 = vmatpush3.msra.mxu1 %v9330_v15  ;;  %12439 = vmatpush3.msra.mxu0 %v9330_v15 }
0x140e   : > { %12630 = vmatprep.subr.mxu1 %v9329_v30  ;;  %12440 = vmatprep.subr.mxu0 %v9329_v30 }
0x140f   : > { %12638 = vmatpush3.msra.mxu1 %v9329_v30  ;;  %12441 = vmatpush3.msra.mxu0 %v9329_v30 }
0x1410   : > { %9828 = vrot.lane.b32.xlu0 %v9331_v29, %s12904_s8  ;;  %9574 = vrot.lane.b32.xlu1 %v9329_v30, %s12905_s25  ;;  %v10803_v29 = vld [vmem:[%s17493_s19 + $0x158] sm:$0xff] }
0x1411   : > { %12631 = vmatprep.subr.mxu1 %v9328_v56  ;;  %12442 = vmatprep.subr.mxu0 %v9328_v56 }
0x1412   : > { %12639 = vmatpush3.msra.mxu1 %v9328_v56  ;;  %12443 = vmatpush3.msra.mxu0 %v9328_v56 }
0x1413   : > { %12632 = vmatprep.subr.mxu1 %v9327_v20  ;;  %12444 = vmatprep.subr.mxu0 %v9327_v20 }
0x1414   : > { %9826 = vrot.lane.b32.xlu0 %v9330_v15, %s12904_s8  ;;  %9572 = vrot.lane.b32.xlu1 %v9328_v56, %s12905_s25  ;;  %v10804_v15 = vld [vmem:[%s17493_s19 + $0x160] sm:$0xff] }
0x1415   : > { %12640 = vmatpush3.msra.mxu1 %v9327_v20  ;;  %12445 = vmatpush3.msra.mxu0 %v9327_v20 }
0x1416   : > { %12459 = vmatmul.mubr.msk.f32.vlgmr.msra.gmra.mxu1 %vm9335_vm6, %v9320_v62  ;;  %12447 = vmatmul.mubr.msk.f32.vlgmr.msra.gmra.mxu0 %vm9335_vm6, %v9312_v1 }
0x1417   : > { %12461 = vmatprep.mubr.msk.f32.mxu1 %vm9335_vm6, %v9321_v41  ;;  %12449 = vmatprep.mubr.msk.f32.mxu0 %vm9335_vm6, %v9313_v6 }
0x1418   : > { %9824 = vrot.lane.b32.xlu0 %v9329_v30, %s12904_s8  ;;  %9570 = vrot.lane.b32.xlu1 %v9327_v20, %s12905_s25  ;;  %v10775_v30 = vld [vmem:[%s17493_s19 + $0xf8] sm:$0xff] }
0x141a   : > { %12462 = vmatmul.mubr.msk.f32.gmra.mxu1 %vm9335_vm6, %v9322_v2  ;;  %12450 = vmatmul.mubr.msk.f32.gmra.mxu0 %vm9335_vm6, %v9314_v18 }
0x141b   : > { %12464 = vmatprep.mubr.msk.f32.mxu1 %vm9335_vm6, %v9323_v60  ;;  %12452 = vmatprep.mubr.msk.f32.mxu0 %vm9335_vm6, %v9315_v45 }
0x141c   : > { %9822 = vrot.lane.b32.xlu0 %v9328_v56, %s12904_s8  ;;  %9820 = vrot.lane.b32.xlu1 %v9327_v20, %s12904_s8  ;;  %v10805_v56 = vld [vmem:[%s17493_s19 + $0x168] sm:$0xff]  ;;  %v10806_v20 = vld [vmem:[%s17493_s19 + $0x170] sm:$0xff] }
0x141e   : > { %12465 = vmatmul.mubr.msk.f32.gmra.mxu1 %vm9335_vm6, %v9324_v21  ;;  %12453 = vmatmul.mubr.msk.f32.gmra.mxu0 %vm9335_vm6, %v9316_v13 }
0x141f   : > { %12467 = vmatprep.mubr.msk.f32.mxu1 %vm9335_vm6, %v9325_v24  ;;  %12455 = vmatprep.mubr.msk.f32.mxu0 %vm9335_vm6, %v9317_v51 }
0x1422   : > { %12468 = vmatmul.mubr.msk.f32.gmra.mxu1 %vm9335_vm6, %v9326_v7  ;;  %12456 = vmatmul.mubr.msk.f32.gmra.mxu0 %vm9335_vm6, %v9318_v58 }
0x1423   : > { %12486 = vmatprep.mubr.msk.f32.mxu1 %vm9335_vm6, %v10760_v27  ;;  %12526 = vmatprep.mubr.msk.f32.mxu0 %vm9335_vm6, %v10792_v52 }
0x1472   : > { %v9835_v23 = vpop.permute.xlu1 %9834  ;;  %v9585_v14 = vpop.permute.xlu0 %9584 }
0x1473   : > { %12470 = vmatprep.subr.mxu1 %v9585_v14  ;;  %12510 = vmatprep.subr.mxu0 %v9835_v23 }
0x1474   : > { %12471 = vmatpush3.msra.mxu1 %v9585_v14  ;;  %12511 = vmatpush3.msra.mxu0 %v9835_v23 }
0x1476   : > { %v9583_v9 = vpop.permute.xlu0 %9582  ;;  %v9581_v26 = vpop.permute.xlu1 %9580 }
0x1477   : > { %12472 = vmatprep.subr.mxu1 %v9583_v9 }
0x1478   : > { %12473 = vmatpush3.msra.mxu1 %v9583_v9 }
0x1479   : > { %12474 = vmatprep.subr.mxu1 %v9581_v26 }
0x147a   : > { %v9833_v55 = vpop.permute.xlu0 %9832  ;;  %v9579_v28 = vpop.permute.xlu1 %9578  ;;  %12475 = vmatpush3.msra.mxu1 %v9581_v26 }
0x147b   : > { %12512 = vmatprep.subr.mxu0 %v9833_v55  ;;  %12476 = vmatprep.subr.mxu1 %v9579_v28 }
0x147c   : > { %12513 = vmatpush3.msra.mxu0 %v9833_v55  ;;  %12477 = vmatpush3.msra.mxu1 %v9579_v28 }
0x147e   : > { %v9831_v43 = vpop.permute.xlu0 %9830  ;;  %v9577_v32 = vpop.permute.xlu1 %9576 }
0x147f   : > { %12514 = vmatprep.subr.mxu0 %v9831_v43  ;;  %12478 = vmatprep.subr.mxu1 %v9577_v32 }
0x1480   : > { %12515 = vmatpush3.msra.mxu0 %v9831_v43  ;;  %12479 = vmatpush3.msra.mxu1 %v9577_v32 }
0x1482   : > { %v9829_v33 = vpop.permute.xlu0 %9828  ;;  %v9575_v38 = vpop.permute.xlu1 %9574 }
0x1483   : > { %12516 = vmatprep.subr.mxu0 %v9829_v33  ;;  %12480 = vmatprep.subr.mxu1 %v9575_v38 }
0x1484   : > { %12517 = vmatpush3.msra.mxu0 %v9829_v33  ;;  %12481 = vmatpush3.msra.mxu1 %v9575_v38 }
0x1486   : > { %v9827_v39 = vpop.permute.xlu0 %9826  ;;  %v9573_v8 = vpop.permute.xlu1 %9572 }
0x1487   : > { %12518 = vmatprep.subr.mxu0 %v9827_v39  ;;  %12482 = vmatprep.subr.mxu1 %v9573_v8 }
0x1488   : > { %12519 = vmatpush3.msra.mxu0 %v9827_v39  ;;  %12483 = vmatpush3.msra.mxu1 %v9573_v8 }
0x148a   : > { %v9825_v19 = vpop.permute.xlu0 %9824  ;;  %v9571_v61 = vpop.permute.xlu1 %9570 }
0x148b   : > { %12484 = vmatprep.subr.mxu1 %v9571_v61  ;;  %12520 = vmatprep.subr.mxu0 %v9825_v19 }
0x148c   : > { %12485 = vmatpush3.msra.mxu1 %v9571_v61  ;;  %12521 = vmatpush3.msra.mxu0 %v9825_v19 }
0x148d   : > { %12487 = vmatmul.mubr.msk.f32.vlgmr.msra.gmra.mxu1 %vm9335_vm6, %v10761_v5  ;;  %12550 = vmatprep.subr.mxu1 %v17511_v0 }
0x148e   : > { %v9823_v17 = vpop.permute.xlu0 %9822  ;;  %v9821_v59 = vpop.permute.xlu1 %9820  ;;  %12489 = vmatprep.mubr.msk.f32.mxu1 %vm9335_vm6, %v10762_v47 }
0x148f   : > { %12522 = vmatprep.subr.mxu0 %v9823_v17 }
0x1490   : > { %12523 = vmatpush3.msra.mxu0 %v9823_v17 }
0x1491   : > { %12490 = vmatmul.mubr.msk.f32.gmra.mxu1 %vm9335_vm6, %v10763_v53  ;;  %12524 = vmatprep.subr.mxu0 %v9821_v59 }
0x1492   : > { %12525 = vmatpush3.msra.mxu0 %v9821_v59  ;;  %12492 = vmatprep.mubr.msk.f32.mxu1 %vm9335_vm6, %v10764_v3 }
0x1493   : > { %12527 = vmatmul.mubr.msk.f32.vlgmr.msra.gmra.mxu0 %vm9335_vm6, %v10793_v36 }
0x1494   : > { %12529 = vmatprep.mubr.msk.f32.mxu0 %vm9335_vm6, %v10794_v4 }
0x1495   : > { %12493 = vmatmul.mubr.msk.f32.gmra.mxu1 %vm9335_vm6, %v10765_v37 }
0x1496   : > { %12495 = vmatprep.mubr.msk.f32.mxu1 %vm9335_vm6, %v10766_v34 }
0x1497   : > { %12530 = vmatmul.mubr.msk.f32.gmra.mxu0 %vm9335_vm6, %v10795_v50  ;;  %v9308_v50 = vld [vmem:[%s17494_s20 + $0x68] sm:$0xff] }
0x1498   : > { %12532 = vmatprep.mubr.msk.f32.mxu0 %vm9335_vm6, %v10796_v25  ;;  %v9310_v25 = vld [vmem:[%s17494_s20 + $0x78] sm:$0xff] }
0x1499   : > { %12496 = vmatmul.mubr.msk.f32.gmra.mxu1 %vm9335_vm6, %v10767_v40 }
0x149a   : > { %12498 = vmatprep.mubr.msk.f32.mxu1 %vm9335_vm6, %v10768_v63 }
0x149b   : > { %12533 = vmatmul.mubr.msk.f32.gmra.mxu0 %vm9335_vm6, %v10797_v12  ;;  %v9307_v12 = vld [vmem:[%s17494_s20 + $0x60] sm:$0xff] }
0x149c   : > { %12535 = vmatprep.mubr.msk.f32.mxu0 %vm9335_vm6, %v10798_v10  ;;  %v9309_v10 = vld [vmem:[%s17494_s20 + $0x70] sm:$0xff] }
0x149d   : > { %12499 = vmatmul.mubr.msk.f32.gmra.mxu1 %vm9335_vm6, %v10769_v31 }
0x149e   : > { %12501 = vmatprep.mubr.msk.f32.mxu1 %vm9335_vm6, %v10770_v16  ;;  %v9306_v16 = vld [vmem:[%s17494_s20 + $0x58] sm:$0xff] }
0x149f   : > { %12536 = vmatmul.mubr.msk.f32.gmra.mxu0 %vm9335_vm6, %v10799_v49 }
0x14a0   : > { %12538 = vmatprep.mubr.msk.f32.mxu0 %vm9335_vm6, %v10800_v11 }
0x14a1   : > { %12502 = vmatmul.mubr.msk.f32.gmra.mxu1 %vm9335_vm6, %v10771_v22 }
0x14a2   : > { %12504 = vmatprep.mubr.msk.f32.mxu1 %vm9335_vm6, %v10772_v42 }
0x14a3   : > { %12539 = vmatmul.mubr.msk.f32.gmra.mxu0 %vm9335_vm6, %v10801_v44  ;;  %v9305_v44 = vld [vmem:[%s17494_s20 + $0x50] sm:$0xff] }
0x14a4   : > { %12541 = vmatprep.mubr.msk.f32.mxu0 %vm9335_vm6, %v10802_v35 }
0x14a5   : > { %12505 = vmatmul.mubr.msk.f32.gmra.mxu1 %vm9335_vm6, %v10773_v46 }
0x14a6   : > { %12507 = vmatprep.mubr.msk.f32.mxu1 %vm9335_vm6, %v10774_v48 }
0x14a7   : > { %12542 = vmatmul.mubr.msk.f32.gmra.mxu0 %vm9335_vm6, %v10803_v29 }
0x14a8   : > { %12544 = vmatprep.mubr.msk.f32.mxu0 %vm9335_vm6, %v10804_v15 }
0x14a9   : > { %12508 = vmatmul.mubr.msk.f32.gmra.mxu1 %vm9335_vm6, %v10775_v30 }
0x14aa   : > { %12582 = vmatprep.mubr.msk.f32.mxu1 %vm12906_vm14, %v17511_v0 }
0x14ab   : > { %12545 = vmatmul.mubr.msk.f32.gmra.mxu0 %vm9335_vm6, %v10805_v56  ;;  %v9304_v56 = vld [vmem:[%s17494_s20 + $0x48] sm:$0xff] }
0x14ac   : > { %12547 = vmatprep.mubr.msk.f32.mxu0 %vm9335_vm6, %v10806_v20 }
0x14af   : > { %12548 = vmatmul.mubr.msk.f32.gmra.mxu0 %vm9335_vm6, %v10807_v57 }
0x14d6   : > { %v17311_v54 = vpop.f32.mrf.mxu1  ;;  %v17315_v1 = vpop.f32.mrf.mxu0 }
0x14d8   : > { %v17313_v62 = vpop.f32.mrf.mxu1  ;;  %v17317_v6 = vpop.f32.mrf.mxu0 }
0x14da   : > { %v12463_v41 = vpop.f32.mrf.mxu1  ;;  %v17319_v18 = vpop.f32.mrf.mxu0 }
0x14db   : > { %v9540_v15 = vadd.f32 %v12463_v41, %v9306_v16 }
0x14dc   : > { %v9500_v2 = vpop.f32.mrf.mxu1  ;;  %v17321_v45 = vpop.f32.mrf.mxu0 }
0x14de   : > { %v12466_v60 = vpop.f32.mrf.mxu1  ;;  %v17323_v13 = vpop.f32.mrf.mxu0 }
0x14df   : > { %v9542_v49 = vadd.f32 %v12466_v60, %v9308_v50  ;;  %v9539_v50 = vadd.f32 %v9500_v2, %v9305_v44 }
0x14e0   : > { %v9510_v21 = vpop.f32.mrf.mxu1  ;;  %v17325_v51 = vpop.f32.mrf.mxu0 }
0x14e1   : > { %v9541_v35 = vadd.f32 %v9510_v21, %v9307_v12  ;;  %v9303_v21 = vld [vmem:[%s17494_s20 + $0x40] sm:$0xff] }
0x14e2   : > { %v12469_v24 = vpop.f32.mrf.mxu1  ;;  %v17327_v58 = vpop.f32.mrf.mxu0  ;;  %v9537_v16 = vadd.f32 %v17313_v62, %v9303_v21  ;;  %v9300_v62 = vld [vmem:[%s17494_s20 + $0x28] sm:$0xff] }
0x14e3   : > { %v9544_v11 = vadd.f32 %v12469_v24, %v9310_v25 }
0x14e4   : > { %v9520_v7 = vpop.f32.mrf.mxu1  ;;  %v17333_v23 = vpop.f32.mrf.mxu0 }
0x14e5   : > { %v9543_v46 = vadd.f32 %v9520_v7, %v9309_v10 }
0x154d   : > { %v17329_v27 = vpop.f32.mrf.mxu1 }
0x154f   : > { %v17331_v52 = vpop.f32.mrf.mxu1 }
0x1551   : > { %v17335_v14 = vpop.f32.mrf.mxu1 }
0x1553   : > { %v17337_v9 = vpop.f32.mrf.mxu1  ;;  %v17339_v26 = vpop.f32.mrf.mxu0 }
0x1555   : > { %v17341_v55 = vpop.f32.mrf.mxu1  ;;  %v17343_v28 = vpop.f32.mrf.mxu0 }
0x1557   : > { %v17345_v43 = vpop.f32.mrf.mxu1  ;;  %v17347_v32 = vpop.f32.mrf.mxu0 }
0x1559   : > { %v17349_v33 = vpop.f32.mrf.mxu1  ;;  %v17351_v38 = vpop.f32.mrf.mxu0 }
0x155b   : > { %v17353_v39 = vpop.f32.mrf.mxu1  ;;  %v17355_v8 = vpop.f32.mrf.mxu0 }
0x155d   : > { %v12500_v19 = vpop.f32.mrf.mxu1  ;;  %v17357_v61 = vpop.f32.mrf.mxu0 }
0x155f   : > { %v17359_v5 = vpop.f32.mrf.mxu1  ;;  %v17361_v47 = vpop.f32.mrf.mxu0 }
0x1561   : > { %v12503_v17 = vpop.f32.mrf.mxu1  ;;  %v17363_v59 = vpop.f32.mrf.mxu0 }
0x1562   : > { %v9798_v25 = vadd.f32 %v12503_v17, %v9540_v15 }
0x1563   : > { %v9758_v53 = vpop.f32.mrf.mxu1  ;;  %v12540_v3 = vpop.f32.mrf.mxu0 }
0x1564   : > { %v9797_v12 = vadd.f32 %v9758_v53, %v9539_v50 }
0x1565   : > { %v12506_v36 = vpop.f32.mrf.mxu1  ;;  %v17365_v4 = vpop.f32.mrf.mxu0 }
0x1566   : > { %v9800_v48 = vadd.f32 %v12506_v36, %v9542_v49 }
0x1567   : > { %v9768_v37 = vpop.f32.mrf.mxu1  ;;  %v12543_v34 = vpop.f32.mrf.mxu0 }
0x1568   : > { %v9799_v20 = vadd.f32 %v9768_v37, %v9541_v35  ;;  %v10048_v10 = vadd.f32 %v12543_v34, %v9798_v25  ;;  %v9302_v37 = vld [vmem:[%s17494_s20 + $0x38] sm:$0xff]  ;;  %v17534_v34 = vmov 0.0  }
0x1569   : > { %v12509_v40 = vpop.f32.mrf.mxu1  ;;  %v10008_v63 = vpop.f32.mrf.mxu0 }
0x156a   : > { %v9802_v29 = vadd.f32 %v12509_v40, %v9544_v11  ;;  %v9538_v40 = vadd.f32 %v17311_v54, %v9304_v56  ;;  %v10047_v54 = vadd.f32 %v10008_v63, %v9797_v12  ;;  %v10080_v35 = vmul.f32 0.01, %v10048_v10 }
0x156b   : > { %v12546_v31 = vpop.f32.mrf.mxu0  ;;  %v9778_v22 = vpop.f32.mrf.mxu1  ;;  %vm10064_vm15 = vcmp.gt.f32.partialorder %v10048_v10, 0.0 }
0x156c   : > { %v9801_v57 = vadd.f32 %v9778_v22, %v9543_v46  ;;  %v10050_v60 = vadd.f32 %v12546_v31, %v9800_v48  ;;  %v9796_v49 = vadd.f32 %v12500_v19, %v9538_v40  ;;  %v9536_v22 = vadd.f32 %v17327_v58, %v9302_v37  ;;  %v9299_v58 = vld [vmem:[%s17494_s20 + $0x20] sm:$0xff] }
0x156d   : > { %v10018_v42 = vpop.f32.mrf.mxu0  ;;  %vm10063_vm0 = vcmp.gt.f32.partialorder %v10047_v54, 0.0  ;;  %v9533_v56 = vadd.f32 %v17325_v51, %v9299_v58  ;;  %v9296_v51 = vld [vmem:[%s17494_s20 + $0x8] sm:$0xff] }
0x156e   : > { %v10049_v7 = vadd.f32 %v10018_v42, %v9799_v20  ;;  %v10082_v31 = vmul.f32 0.01, %v10050_v60  ;;  %vm10066_vm12 = vcmp.gt.f32.partialorder %v10050_v60, 0.0  ;;  %v9795_v42 = vadd.f32 %v17359_v5, %v9537_v16 }
0x156f   : > { %v12549_v30 = vpop.f32.mrf.mxu0  ;;  %v10046_v44 = vadd.f32 %v12540_v3, %v9796_v49  ;;  %v9794_v46 = vadd.f32 %v17349_v33, %v9536_v22  ;;  %v9534_v3 = vadd.f32 %v17323_v13, %v9300_v62  ;;  %v9297_v13 = vld [vmem:[%s17494_s20 + $0x10] sm:$0xff] }
0x1570   : > { %v10052_v24 = vadd.f32 %v12549_v30, %v9802_v29  ;;  %v10081_v53 = vmul.f32 0.01, %v10049_v7  ;;  %vm10065_vm13 = vcmp.gt.f32.partialorder %v10049_v7, 0.0  ;;  %v10098_v19 = vsel %vm10066_vm12, %v10050_v60, %v10082_v31 }
0x1571   : > { %v10028_v0 = vpop.f32.mrf.mxu0  ;;  %v10045_v48 = vadd.f32 %v17365_v4, %v9795_v42  ;;  %v10079_v29 = vmul.f32 0.01, %v10047_v54  ;;  %v10044_v30 = vadd.f32 %v17361_v47, %v9794_v46  ;;  %v10078_v33 = vmul.f32 0.01, %v10046_v44 }
0x1572   : > { %vm10068_vm10 = vcmp.gt.f32.partialorder %v10052_v24, 0.0  ;;  %v10084_v36 = vmul.f32 0.01, %v10052_v24  ;;  %v10051_v41 = vadd.f32 %v10028_v0, %v9801_v57  ;;  %v9301_v0 = vld [vmem:[%s17494_s20 + $0x30] sm:$0xff]  ;;  %v10097_v5 = vsel %vm10065_vm13, %v10049_v7, %v10081_v53 }
0x1573   : > { %v9535_v63 = vadd.f32 %v17333_v23, %v9301_v0  ;;  %v9298_v23 = vld [vmem:[%s17494_s20 + $0x18] sm:$0xff]  ;;  %v10096_v4 = vsel %vm10064_vm15, %v10048_v10, %v10080_v35  ;;  %vm10062_vm1 = vcmp.gt.f32.partialorder %v10046_v44, 0.0  ;;  %v9792_v20 = vadd.f32 %v17341_v55, %v9534_v3  ;;  %v10101_v0 = vld [vmem:[%s17495_s21] sm:$0xff] }
0x1574   : > { %vm10067_vm11 = vcmp.gt.f32.partialorder %v10051_v41, 0.0  ;;  %v10083_v2 = vmul.f32 0.01, %v10051_v41  ;;  %v10100_v17 = vsel %vm10068_vm10, %v10052_v24, %v10084_v36  ;;  %v10095_v47 = vsel %vm10063_vm0, %v10047_v54, %v10079_v29  ;;  %v10102_v54 = vld [vmem:[%s17496_s22] sm:$0xff] }
0x1575   : > { %12551 = vmatpush3.msra.mxu1 %v10100_v17  ;;  %v9793_v15 = vadd.f32 %v17353_v39, %v9535_v63  ;;  %v10077_v39 = vmul.f32 0.01, %v10045_v48  ;;  %v9532_v60 = vadd.f32 %v17319_v18, %v9298_v23  ;;  %vm10061_vm2 = vcmp.gt.f32.partialorder %v10045_v48, 0.0  ;;  %v9295_v18 = vld [vmem:[%s17494_s20] sm:$0xff] }
0x1576   : > { %12552 = vmatprep.subr.mxu1 %v17534_v34  ;;  %v10099_v11 = vsel %vm10067_vm11, %v10051_v41, %v10083_v2  ;;  %v9791_v24 = vadd.f32 %v17345_v43, %v9533_v56  ;;  %v10042_v50 = vadd.f32 %v17355_v8, %v9792_v20  ;;  %v10076_v55 = vmul.f32 0.01, %v10044_v30 }
0x1577   : > { %12553 = vmatpush3.msra.mxu1 %v10099_v11  ;;  %v10043_v57 = vadd.f32 %v17363_v59, %v9793_v15  ;;  %v10094_v59 = vsel %vm10062_vm1, %v10046_v44, %v10078_v33  ;;  %v9531_v25 = vadd.f32 %v17321_v45, %v9297_v13  ;;  %vm10060_vm3 = vcmp.gt.f32.partialorder %v10044_v30, 0.0 }
0x1578   : > { %12554 = vmatprep.subr.mxu1 %v17534_v34  ;;  %v9790_v21 = vadd.f32 %v17335_v14, %v9532_v60  ;;  %v10041_v7 = vadd.f32 %v17357_v61, %v9791_v24  ;;  %v10093_v8 = vsel %vm10061_vm2, %v10045_v48, %v10077_v39  ;;  %v9530_v36 = vadd.f32 %v17315_v1, %v9296_v51 }
0x1579   : > { %12555 = vmatpush3.msra.mxu1 %v10098_v19  ;;  %v10075_v43 = vmul.f32 0.01, %v10043_v57  ;;  %vm10059_vm4 = vcmp.gt.f32.partialorder %v10043_v57, 0.0  ;;  %v9789_v45 = vadd.f32 %v17337_v9, %v9531_v25  ;;  %v10074_v40 = vmul.f32 0.01, %v10042_v50 }
0x157a   : > { %12556 = vmatprep.subr.mxu1 %v17534_v34  ;;  %v10040_v41 = vadd.f32 %v17347_v32, %v9790_v21  ;;  %v10092_v12 = vsel %vm10060_vm3, %v10044_v30, %v10076_v55  ;;  %v9529_v14 = vadd.f32 %v17317_v6, %v9295_v18  ;;  %vm10058_vm5 = vcmp.gt.f32.partialorder %v10042_v50, 0.0 }
0x157b   : > { %12557 = vmatpush3.msra.mxu1 %v10097_v5  ;;  %v9788_v61 = vadd.f32 %v17329_v27, %v9530_v36  ;;  %v10039_v10 = vadd.f32 %v17351_v38, %v9789_v45  ;;  %v10073_v37 = vmul.f32 0.01, %v10041_v7  ;;  %v10091_v1 = vsel %vm10059_vm4, %v10043_v57, %v10075_v43 }
0x157c   : > { %12558 = vmatprep.subr.mxu1 %v17534_v34  ;;  %vm10057_vm7 = vcmp.gt.f32.partialorder %v10041_v7, 0.0  ;;  %v9787_v9 = vadd.f32 %v17331_v52, %v9529_v14  ;;  %v10072_v31 = vmul.f32 0.01, %v10040_v41  ;;  %v10090_v6 = vsel %vm10058_vm5, %v10042_v50, %v10074_v40 }
0x157d   : > { %12559 = vmatpush3.msra.mxu1 %v10096_v4  ;;  %v10038_v32 = vadd.f32 %v17339_v26, %v9788_v61  ;;  %vm10056_vm8 = vcmp.gt.f32.partialorder %v10040_v41, 0.0  ;;  %v10071_v2 = vmul.f32 0.01, %v10039_v10  ;;  %v10089_v38 = vsel %vm10057_vm7, %v10041_v7, %v10073_v37 }
0x157e   : > { %12560 = vmatprep.subr.mxu1 %v17534_v34  ;;  %v10037_v27 = vadd.f32 %v17343_v28, %v9787_v9  ;;  %vm10055_vm9 = vcmp.gt.f32.partialorder %v10039_v10, 0.0  ;;  %v10088_v52 = vsel %vm10056_vm8, %v10040_v41, %v10072_v31  ;;  %vm10173_vm10 = vcmask 7168  }
0x157f   : > { %12561 = vmatpush3.msra.mxu1 %v10095_v47  ;;  %v10070_v17 = vmul.f32 0.01, %v10038_v32  ;;  %vm10054_vm6 = vcmp.gt.f32.partialorder %v10038_v32, 0.0  ;;  %v10087_v16 = vsel %vm10055_vm9, %v10039_v10, %v10071_v2 }
0x1580   : > { %12562 = vmatprep.subr.mxu1 %v17534_v34  ;;  %v10069_v26 = vmul.f32 0.01, %v10037_v27  ;;  %vm10053_vm14 = vcmp.gt.f32.partialorder %v10037_v27, 0.0 }
0x1581   : > { %12563 = vmatpush3.msra.mxu1 %v10094_v59  ;;  %v10086_v28 = vsel %vm10054_vm6, %v10038_v32, %v10070_v17 }
0x1582   : > { %12564 = vmatprep.subr.mxu1 %v17534_v34  ;;  %v10085_v49 = vsel %vm10053_vm14, %v10037_v27, %v10069_v26 }
0x1583   : > { %12565 = vmatpush3.msra.mxu1 %v10093_v8 }
0x1584   : > { %12566 = vmatprep.subr.mxu1 %v17534_v34 }
0x1585   : > { %12567 = vmatpush3.msra.mxu1 %v10092_v12 }
0x1586   : > { %12568 = vmatprep.subr.mxu1 %v17534_v34 }
0x1587   : > { %12569 = vmatpush3.msra.mxu1 %v10091_v1 }
0x1588   : > { %12570 = vmatprep.subr.mxu1 %v17534_v34 }
0x1589   : > { %12571 = vmatpush3.msra.mxu1 %v10090_v6 }
0x158a   : > { %12572 = vmatprep.subr.mxu1 %v17534_v34 }
0x158b   : > { %12573 = vmatpush3.msra.mxu1 %v10089_v38 }
0x158c   : > { %12574 = vmatprep.subr.mxu1 %v17534_v34 }
0x158d   : > { %12575 = vmatpush3.msra.mxu1 %v10088_v52 }
0x158e   : > { %12576 = vmatprep.subr.mxu1 %v17534_v34 }
0x158f   : > { %12577 = vmatpush3.msra.mxu1 %v10087_v16 }
0x1590   : > { %12578 = vmatprep.subr.mxu1 %v17534_v34 }
0x1591   : > { %12579 = vmatpush3.msra.mxu1 %v10086_v28 }
0x1592   : > { %12580 = vmatprep.subr.mxu1 %v17534_v34 }
0x1593   : > { %12581 = vmatpush3.msra.mxu1 %v10085_v49 }
0x1594   : > { %12583 = vmatmul.mubr.f32.vlgmr.msra.gmra.mxu1 %v10101_v0 }
0x1654   : > { %v10169_v53 = vpop.f32.mrf.mxu1 }
0x1655   : > { %v10170_v11 = vadd.f32 %v10169_v53, %v10102_v54 }
0x1656   : > { %v12584_v22 = vpop.f32.mrf.mxu1 }
0x1657   : > { %10174 = vst.msk [vmem:[%s14080_s2] sm:$0xff] %vm10173_vm10, %v10170_v11 }
0x1658 PF: > { %s33_s4 = sadd.s32 1, %s12828_s4  }
0x1659   : > { %p30_p11 = scmp.ge.s32.totalorder %s33_s4, 4  }
0x165b   :  { %32 = sbr.rel (!%p30_p11) target bundleno = 10 (0xa), region = 327 }

</bundles_post_ra>
